<compile_context>
chip_gen: v6e
topology: v6e:2x2x1
jax: 0.10.0
libtpu: 0.0.40
codegen_flags: <defaults>
</compile_context>

<pallas_src>
import functools

import jax
import jax.numpy as jnp
from jax.experimental import pallas as pl
from jax.experimental.pallas import tpu as pltpu


# ---------------------------------------------------------------------------
# Fused RRDB kernel
# ---------------------------------------------------------------------------
def _rrdb_kernel(*refs, nc, gc, H, W):
    HW = H * W
    n_wb = (len(refs) - 3) // 2          # number of (weight, bias) pairs (= 15)
    x_ref = refs[0]
    w_refs = refs[1:1 + n_wb]            # (Cout, 9*Cin) bf16, K-packed
    b_refs = refs[1 + n_wb:1 + 2 * n_wb]  # (Cout, 1) f32
    o_ref = refs[1 + 2 * n_wb]
    taps_ref = refs[2 + 2 * n_wb]        # VMEM (9*(nc+4gc), HW) bf16 tap slab
    n_blocks = n_wb // 5

    cin_list = [nc + i * gc for i in range(5)]

    # Hoisted once: column index along the flattened H*W (lane) axis and the
    # two horizontal-boundary masks (left tap needs col w-1, right tap col w+1).
    # Vertical wrap is handled by the in-register zero padding below.
    col = jax.lax.broadcasted_iota(jnp.int32, (1, HW), 1) % W
    left_ok = col >= 1                   # valid lanes for kx == 0 taps
    right_ok = col <= W - 2              # valid lanes for kx == 2 taps

    # Hoisted zero pads (only two distinct group sizes ever occur: nc and gc).
    zpad_nc = jnp.zeros((nc, W + 1), jnp.bfloat16)
    zpad_gc = jnp.zeros((gc, W + 1), jnp.bfloat16)

    def store_taps(y_f32, chan_start, sz):
        """Write the 9 shifted, boundary-masked bf16 copies of y (sz, HW) into
        the tap slab at rows [9*chan_start + t*sz, ...) for tap t = ky*3+kx."""
        y = y_f32.astype(jnp.bfloat16)
        zpad = zpad_nc if sz == nc else zpad_gc
        ypad = jnp.concatenate([zpad, y, zpad], axis=1)   # (sz, HW + 2W + 2)
        base = 9 * chan_start
        for ky in range(3):
            for kx in range(3):
                t = ky * 3 + kx
                off = ky * W + kx                          # shift by (ky-1, kx-1)
                v = ypad[:, off:off + HW]
                if kx == 0:                                # needs column w-1
                    v = jnp.where(left_ok, v, 0)
                elif kx == 2:                              # needs column w+1
                    v = jnp.where(right_ok, v, 0)
                taps_ref[pl.ds(base + t * sz, sz), :] = v

    x0 = x_ref[0]                                          # (nc, HW) fp32
    cur = x0                                               # running RDB input
    for blk in range(n_blocks):
        store_taps(cur, 0, nc)                             # group 0 = block input
        chan = nc
        for i in range(5):
            cin = cin_list[i]
            w = w_refs[blk * 5 + i][...]                   # (cout, 9*cin) bf16
            b = b_refs[blk * 5 + i][...]                   # (cout, 1)   fp32
            # Single lane-dense GEMM: K = 9*Cin, N = H*W, fp32 accumulation.
            y = jnp.dot(w, taps_ref[pl.ds(0, 9 * cin), :],
                        preferred_element_type=jnp.float32)  # (cout, HW)
            y = y + b
            if i < 4:                                      # conv1..conv4: +ReLU
                y = jnp.maximum(y, 0.0)
                store_taps(y, chan, gc)                    # append to dense cat
                chan += gc
            else:                                          # conv5: local residual
                cur = cur + 0.2 * y                        # fp32 skip path

    o_ref[0] = (x0 + 0.2 * cur).astype(o_ref.dtype)        # outer RRDB residual


# ---------------------------------------------------------------------------
# Wrapper
# ---------------------------------------------------------------------------
@jax.jit
def rrdb_forward(x_nchw, ws, bs):
    """x_nchw: (N, nc, H, W) fp32.  ws/bs: 15 packed weights/biases (3 blocks x 5)."""
    N, C, H, W = x_nchw.shape
    HW = H * W
    nc = C
    gc = ws[0].shape[0]
    ctot = nc + 4 * gc

    # Alignment contract for the tap-slab layout (holds for all ESRGAN configs).
    assert HW % 128 == 0, "H*W must be a multiple of 128 (lane-dense output)"
    assert nc % 8 == 0 and gc % 8 == 0, "nc/gc must be multiples of 8 (sublane)"

    x2 = x_nchw.reshape(N, C, HW)          # NCHW flattened -> (C, HW) lane-dense

    kernel = functools.partial(_rrdb_kernel, nc=nc, gc=gc, H=H, W=W)
    in_specs = [pl.BlockSpec((1, nc, HW), lambda n: (n, 0, 0))]
    in_specs += [pl.BlockSpec(w.shape, lambda n: (0, 0)) for w in ws]
    in_specs += [pl.BlockSpec(b.shape, lambda n: (0, 0)) for b in bs]

    out = pl.pallas_call(
        kernel,
        out_shape=jax.ShapeDtypeStruct((N, nc, HW), x_nchw.dtype),
        grid_spec=pltpu.PrefetchScalarGridSpec(
            num_scalar_prefetch=0,
            grid=(N,),
            in_specs=in_specs,
            out_specs=pl.BlockSpec((1, nc, HW), lambda n: (n, 0, 0)),
            scratch_shapes=[pltpu.VMEM((9 * ctot, HW), jnp.bfloat16)],
        ),
        compiler_params=pltpu.CompilerParams(
            dimension_semantics=("parallel",),
            vmem_limit_bytes=32 * 1024 * 1024,
        ),
    )(x2, *ws, *bs)
    return out.reshape(N, C, H, W)


# ---------------------------------------------------------------------------
# Parameter generation / packing
# ---------------------------------------------------------------------------
def init_rrdb_params(key, nc, gc):
    """Deterministic synthetic params, PyTorch OIHW layout: 3 blocks x 5 convs."""
    blocks = []
    in_chs = [nc, nc + gc, nc + 2 * gc, nc + 3 * gc, nc + 4 * gc]
    out_chs = [gc, gc, gc, gc, nc]
    for _ in range(3):
        block = []
        for ci, co in zip(in_chs, out_chs):
            key, kw, kb = jax.random.split(key, 3)
            w = jax.random.normal(kw, (co, ci, 3, 3), jnp.float32) * (1.0 / (9 * ci)) ** 0.5
            b = jax.random.normal(kb, (co,), jnp.float32) * 0.01
            block.append((w, b))
        blocks.append(block)
    return blocks


def _pack_weight(w_oihw, group_sizes):
    """OIHW -> (Cout, 9*Cin) bf16 with K ordered [group][tap ky*3+kx][channel],
    matching the tap-slab row layout used inside the kernel."""
    co = w_oihw.shape[0]
    pieces, start = [], 0
    for sz in group_sizes:
        blk = w_oihw[:, start:start + sz, :, :]        # (co, sz, 3, 3)
        blk = jnp.transpose(blk, (0, 2, 3, 1))         # (co, 3, 3, sz)
        pieces.append(blk.reshape(co, 9 * sz))
        start += sz
    return jnp.concatenate(pieces, axis=1).astype(jnp.bfloat16)


def pack_rrdb_params(params, nc, gc):
    group_sizes_all = [nc, gc, gc, gc, gc]
    ws, bs = [], []
    for block in params:
        for i, (w, b) in enumerate(block):
            ws.append(_pack_weight(w, group_sizes_all[:i + 1]))
            bs.append(jnp.asarray(b, jnp.float32).reshape(-1, 1))
    return tuple(ws), tuple(bs)


# ---------------------------------------------------------------------------
# Plain-JAX fp32 reference (matches the PyTorch module)
# ---------------------------------------------------------------------------
def _ref_conv(x, w_oihw, b, relu):
    y = jax.lax.conv_general_dilated(
        x, w_oihw, window_strides=(1, 1), padding=((1, 1), (1, 1)),
        dimension_numbers=("NCHW", "OIHW", "NCHW"))
    y = y + b[None, :, None, None]
    return jnp.maximum(y, 0.0) if relu else y


def _ref_rdb(x, block_params):
    (w1, b1), (w2, b2), (w3, b3), (w4, b4), (w5, b5) = block_params
    x1 = _ref_conv(x, w1, b1, True)
    x2 = _ref_conv(jnp.concatenate([x, x1], 1), w2, b2, True)
    x3 = _ref_conv(jnp.concatenate([x, x1, x2], 1), w3, b3, True)
    x4 = _ref_conv(jnp.concatenate([x, x1, x2, x3], 1), w4, b4, True)
    x5 = _ref_conv(jnp.concatenate([x, x1, x2, x3, x4], 1), w5, b5, False)
    return 0.2 * x5 + x


def _ref_rrdb(x, params):
    out = x
    for block in params:
        out = _ref_rdb(out, block)
    return 0.2 * out + x


# ---------------------------------------------------------------------------
if __name__ == "__main__":
    N, nc, gc, H, W = 2, 16, 8, 16, 16

    key = jax.random.PRNGKey(0)
    key, kx = jax.random.split(key)
    x = jax.random.normal(kx, (N, nc, H, W), jnp.float32)   # NCHW like PyTorch
    params = init_rrdb_params(key, nc, gc)
    ws, bs = pack_rrdb_params(params, nc, gc)

    out = jax.block_until_ready(rrdb_forward(x, ws, bs))
    ref = jax.block_until_ready(_ref_rrdb(x, params))

    assert out.shape == (N, nc, H, W)
    max_err = float(jnp.max(jnp.abs(out - ref)))
    # bf16 MXU inputs (fp32 accumulation, fp32 skip paths) -> slightly looser
    # tolerance than a pure-fp32 run.
    assert jnp.allclose(out, ref, atol=2e-2, rtol=2e-2), max_err

    print("KERNEL_OK")
</pallas_src>

<mosaic_0001>
module attributes {stable_mosaic.version = 11 : i64} {
  func.func @_rrdb_kernel(%arg0: i32, %arg1: memref<1x16x256xf32, #tpu.memory_space<vmem>>, %arg2: memref<8x144xbf16, #tpu.memory_space<vmem>>, %arg3: memref<8x216xbf16, #tpu.memory_space<vmem>>, %arg4: memref<8x288xbf16, #tpu.memory_space<vmem>>, %arg5: memref<8x360xbf16, #tpu.memory_space<vmem>>, %arg6: memref<16x432xbf16, #tpu.memory_space<vmem>>, %arg7: memref<8x144xbf16, #tpu.memory_space<vmem>>, %arg8: memref<8x216xbf16, #tpu.memory_space<vmem>>, %arg9: memref<8x288xbf16, #tpu.memory_space<vmem>>, %arg10: memref<8x360xbf16, #tpu.memory_space<vmem>>, %arg11: memref<16x432xbf16, #tpu.memory_space<vmem>>, %arg12: memref<8x144xbf16, #tpu.memory_space<vmem>>, %arg13: memref<8x216xbf16, #tpu.memory_space<vmem>>, %arg14: memref<8x288xbf16, #tpu.memory_space<vmem>>, %arg15: memref<8x360xbf16, #tpu.memory_space<vmem>>, %arg16: memref<16x432xbf16, #tpu.memory_space<vmem>>, %arg17: memref<8x1xf32, #tpu.memory_space<vmem>>, %arg18: memref<8x1xf32, #tpu.memory_space<vmem>>, %arg19: memref<8x1xf32, #tpu.memory_space<vmem>>, %arg20: memref<8x1xf32, #tpu.memory_space<vmem>>, %arg21: memref<16x1xf32, #tpu.memory_space<vmem>>, %arg22: memref<8x1xf32, #tpu.memory_space<vmem>>, %arg23: memref<8x1xf32, #tpu.memory_space<vmem>>, %arg24: memref<8x1xf32, #tpu.memory_space<vmem>>, %arg25: memref<8x1xf32, #tpu.memory_space<vmem>>, %arg26: memref<16x1xf32, #tpu.memory_space<vmem>>, %arg27: memref<8x1xf32, #tpu.memory_space<vmem>>, %arg28: memref<8x1xf32, #tpu.memory_space<vmem>>, %arg29: memref<8x1xf32, #tpu.memory_space<vmem>>, %arg30: memref<8x1xf32, #tpu.memory_space<vmem>>, %arg31: memref<16x1xf32, #tpu.memory_space<vmem>>, %arg32: memref<1x16x256xf32, #tpu.memory_space<vmem>>, %arg33: memref<432x256xbf16, #tpu.memory_space<vmem>>) attributes {dimension_semantics = [#tpu.dimension_semantics<parallel>], iteration_bounds = array<i64: 2>, scalar_prefetch = 0 : i64, scratch_operands = 1 : i64, tpu.core_type = #tpu.core_type<tc>, window_params = [{transform_indices = @transform_0, window_bounds = array<i64: 1, 16, 256>}, {pipeline_mode = #tpu.pipeline_mode<synchronous>, transform_indices = @transform_1, window_bounds = array<i64: 8, 144>}, {pipeline_mode = #tpu.pipeline_mode<synchronous>, transform_indices = @transform_2, window_bounds = array<i64: 8, 216>}, {pipeline_mode = #tpu.pipeline_mode<synchronous>, transform_indices = @transform_3, window_bounds = array<i64: 8, 288>}, {pipeline_mode = #tpu.pipeline_mode<synchronous>, transform_indices = @transform_4, window_bounds = array<i64: 8, 360>}, {pipeline_mode = #tpu.pipeline_mode<synchronous>, transform_indices = @transform_5, window_bounds = array<i64: 16, 432>}, {pipeline_mode = #tpu.pipeline_mode<synchronous>, transform_indices = @transform_6, window_bounds = array<i64: 8, 144>}, {pipeline_mode = #tpu.pipeline_mode<synchronous>, transform_indices = @transform_7, window_bounds = array<i64: 8, 216>}, {pipeline_mode = #tpu.pipeline_mode<synchronous>, transform_indices = @transform_8, window_bounds = array<i64: 8, 288>}, {pipeline_mode = #tpu.pipeline_mode<synchronous>, transform_indices = @transform_9, window_bounds = array<i64: 8, 360>}, {pipeline_mode = #tpu.pipeline_mode<synchronous>, transform_indices = @transform_10, window_bounds = array<i64: 16, 432>}, {pipeline_mode = #tpu.pipeline_mode<synchronous>, transform_indices = @transform_11, window_bounds = array<i64: 8, 144>}, {pipeline_mode = #tpu.pipeline_mode<synchronous>, transform_indices = @transform_12, window_bounds = array<i64: 8, 216>}, {pipeline_mode = #tpu.pipeline_mode<synchronous>, transform_indices = @transform_13, window_bounds = array<i64: 8, 288>}, {pipeline_mode = #tpu.pipeline_mode<synchronous>, transform_indices = @transform_14, window_bounds = array<i64: 8, 360>}, {pipeline_mode = #tpu.pipeline_mode<synchronous>, transform_indices = @transform_15, window_bounds = array<i64: 16, 432>}, {pipeline_mode = #tpu.pipeline_mode<synchronous>, transform_indices = @transform_16, window_bounds = array<i64: 8, 1>}, {pipeline_mode = #tpu.pipeline_mode<synchronous>, transform_indices = @transform_17, window_bounds = array<i64: 8, 1>}, {pipeline_mode = #tpu.pipeline_mode<synchronous>, transform_indices = @transform_18, window_bounds = array<i64: 8, 1>}, {pipeline_mode = #tpu.pipeline_mode<synchronous>, transform_indices = @transform_19, window_bounds = array<i64: 8, 1>}, {pipeline_mode = #tpu.pipeline_mode<synchronous>, transform_indices = @transform_20, window_bounds = array<i64: 16, 1>}, {pipeline_mode = #tpu.pipeline_mode<synchronous>, transform_indices = @transform_21, window_bounds = array<i64: 8, 1>}, {pipeline_mode = #tpu.pipeline_mode<synchronous>, transform_indices = @transform_22, window_bounds = array<i64: 8, 1>}, {pipeline_mode = #tpu.pipeline_mode<synchronous>, transform_indices = @transform_23, window_bounds = array<i64: 8, 1>}, {pipeline_mode = #tpu.pipeline_mode<synchronous>, transform_indices = @transform_24, window_bounds = array<i64: 8, 1>}, {pipeline_mode = #tpu.pipeline_mode<synchronous>, transform_indices = @transform_25, window_bounds = array<i64: 16, 1>}, {pipeline_mode = #tpu.pipeline_mode<synchronous>, transform_indices = @transform_26, window_bounds = array<i64: 8, 1>}, {pipeline_mode = #tpu.pipeline_mode<synchronous>, transform_indices = @transform_27, window_bounds = array<i64: 8, 1>}, {pipeline_mode = #tpu.pipeline_mode<synchronous>, transform_indices = @transform_28, window_bounds = array<i64: 8, 1>}, {pipeline_mode = #tpu.pipeline_mode<synchronous>, transform_indices = @transform_29, window_bounds = array<i64: 8, 1>}, {pipeline_mode = #tpu.pipeline_mode<synchronous>, transform_indices = @transform_30, window_bounds = array<i64: 16, 1>}, {transform_indices = @transform_31, window_bounds = array<i64: 1, 16, 256>}]} {
    %0 = tpu.iota {dimensions = array<i32: 1>} : vector<1x256xi32>
    %c16_i32 = arith.constant 16 : i32
    %c0_i32 = arith.constant 0 : i32
    %1 = arith.cmpi eq, %c16_i32, %c0_i32 : i32
    %c1_i32 = arith.constant 1 : i32
    %2 = arith.select %1, %c1_i32, %c16_i32 : i32
    %3 = vector.broadcast %2 : i32 to vector<1x256xi32>
    %4 = arith.remsi %0, %3 : vector<1x256xi32>
    %c0_i32_0 = arith.constant 0 : i32
    %5 = vector.broadcast %c0_i32_0 : i32 to vector<1x256xi32>
    %6 = arith.cmpi ne, %4, %5 : vector<1x256xi32>
    %c0_i32_1 = arith.constant 0 : i32
    %7 = vector.broadcast %c0_i32_1 : i32 to vector<1x256xi32>
    %8 = arith.cmpi slt, %4, %7 : vector<1x256xi32>
    %c0_i32_2 = arith.constant 0 : i32
    %9 = arith.cmpi slt, %2, %c0_i32_2 : i32
    %10 = vector.broadcast %9 : i1 to vector<1x256xi1>
    %11 = vector.broadcast %10 : vector<1x256xi1> to vector<1x256xi1>
    %12 = arith.xori %8, %11 : vector<1x256xi1>
    %13 = arith.andi %12, %6 : vector<1x256xi1>
    %14 = vector.broadcast %2 : i32 to vector<1x256xi32>
    %15 = arith.addi %4, %14 : vector<1x256xi32>
    %16 = arith.select %13, %15, %4 : vector<1x256xi1>, vector<1x256xi32>
    %c1_i32_3 = arith.constant 1 : i32
    %17 = vector.broadcast %c1_i32_3 : i32 to vector<1x256xi32>
    %18 = arith.cmpi sge, %16, %17 : vector<1x256xi32>
    %c14_i32 = arith.constant 14 : i32
    %19 = vector.broadcast %c14_i32 : i32 to vector<1x256xi32>
    %20 = arith.cmpi sle, %16, %19 : vector<1x256xi32>
    %cst = arith.constant 0.000000e+00 : bf16
    %21 = vector.broadcast %cst : bf16 to vector<16x17xbf16>
    %cst_4 = arith.constant 0.000000e+00 : bf16
    %22 = vector.broadcast %cst_4 : bf16 to vector<8x17xbf16>
    %c0 = arith.constant 0 : index
    %c0_5 = arith.constant 0 : index
    %c0_6 = arith.constant 0 : index
    %23 = vector.load %arg1[%c0, %c0_5, %c0_6] : memref<1x16x256xf32, #tpu.memory_space<vmem>>, vector<1x16x256xf32>
    %24 = vector.shape_cast %23 : vector<1x16x256xf32> to vector<16x256xf32>
    %25 = arith.truncf %24 : vector<16x256xf32> to vector<16x256xbf16>
    %26 = tpu.concatenate %21, %25, %21 in 1 : vector<16x17xbf16>, vector<16x256xbf16>, vector<16x17xbf16> -> vector<16x290xbf16>
    %27 = vector.extract_strided_slice %26 {offsets = [0, 0], sizes = [16, 256], strides = [1, 1]} : vector<16x290xbf16> to vector<16x256xbf16>
    %c0_i32_7 = arith.constant 0 : i32
    %28 = arith.sitofp %c0_i32_7 : i32 to bf16
    %29 = vector.shape_cast %18 : vector<1x256xi1> to vector<1x256xi1>
    %30 = vector.broadcast %29 : vector<1x256xi1> to vector<16x256xi1>
    %31 = vector.broadcast %28 : bf16 to vector<16x256xbf16>
    %32 = arith.select %30, %27, %31 : vector<16x256xi1>, vector<16x256xbf16>
    %c0_8 = arith.constant 0 : index
    %c0_9 = arith.constant 0 : index
    %33 = vector.load %arg33[%c0_8, %c0_9] : memref<432x256xbf16, #tpu.memory_space<vmem>>, vector<16x256xbf16>
    tpu.vector_store %arg33[%c0_8, %c0_9], %32 {strides = array<i32>} : memref<432x256xbf16, #tpu.memory_space<vmem>>, vector<16x256xbf16>,
    %34 = vector.extract_strided_slice %26 {offsets = [0, 1], sizes = [16, 256], strides = [1, 1]} : vector<16x290xbf16> to vector<16x256xbf16>
    %c16 = arith.constant 16 : index
    %c0_10 = arith.constant 0 : index
    %35 = vector.load %arg33[%c16, %c0_10] : memref<432x256xbf16, #tpu.memory_space<vmem>>, vector<16x256xbf16>
    tpu.vector_store %arg33[%c16, %c0_10], %34 {strides = array<i32>} : memref<432x256xbf16, #tpu.memory_space<vmem>>, vector<16x256xbf16>,
    %36 = vector.extract_strided_slice %26 {offsets = [0, 2], sizes = [16, 256], strides = [1, 1]} : vector<16x290xbf16> to vector<16x256xbf16>
    %c0_i32_11 = arith.constant 0 : i32
    %37 = arith.sitofp %c0_i32_11 : i32 to bf16
    %38 = vector.shape_cast %20 : vector<1x256xi1> to vector<1x256xi1>
    %39 = vector.broadcast %38 : vector<1x256xi1> to vector<16x256xi1>
    %40 = vector.broadcast %37 : bf16 to vector<16x256xbf16>
    %41 = arith.select %39, %36, %40 : vector<16x256xi1>, vector<16x256xbf16>
    %c32 = arith.constant 32 : index
    %c0_12 = arith.constant 0 : index
    %42 = vector.load %arg33[%c32, %c0_12] : memref<432x256xbf16, #tpu.memory_space<vmem>>, vector<16x256xbf16>
    tpu.vector_store %arg33[%c32, %c0_12], %41 {strides = array<i32>} : memref<432x256xbf16, #tpu.memory_space<vmem>>, vector<16x256xbf16>,
    %43 = vector.extract_strided_slice %26 {offsets = [0, 16], sizes = [16, 256], strides = [1, 1]} : vector<16x290xbf16> to vector<16x256xbf16>
    %c0_i32_13 = arith.constant 0 : i32
    %44 = arith.sitofp %c0_i32_13 : i32 to bf16
    %45 = vector.shape_cast %18 : vector<1x256xi1> to vector<1x256xi1>
    %46 = vector.broadcast %45 : vector<1x256xi1> to vector<16x256xi1>
    %47 = vector.broadcast %44 : bf16 to vector<16x256xbf16>
    %48 = arith.select %46, %43, %47 : vector<16x256xi1>, vector<16x256xbf16>
    %c48 = arith.constant 48 : index
    %c0_14 = arith.constant 0 : index
    %49 = vector.load %arg33[%c48, %c0_14] : memref<432x256xbf16, #tpu.memory_space<vmem>>, vector<16x256xbf16>
    tpu.vector_store %arg33[%c48, %c0_14], %48 {strides = array<i32>} : memref<432x256xbf16, #tpu.memory_space<vmem>>, vector<16x256xbf16>,
    %50 = vector.extract_strided_slice %26 {offsets = [0, 17], sizes = [16, 256], strides = [1, 1]} : vector<16x290xbf16> to vector<16x256xbf16>
    %c64 = arith.constant 64 : index
    %c0_15 = arith.constant 0 : index
    %51 = vector.load %arg33[%c64, %c0_15] : memref<432x256xbf16, #tpu.memory_space<vmem>>, vector<16x256xbf16>
    tpu.vector_store %arg33[%c64, %c0_15], %50 {strides = array<i32>} : memref<432x256xbf16, #tpu.memory_space<vmem>>, vector<16x256xbf16>,
    %52 = vector.extract_strided_slice %26 {offsets = [0, 18], sizes = [16, 256], strides = [1, 1]} : vector<16x290xbf16> to vector<16x256xbf16>
    %c0_i32_16 = arith.constant 0 : i32
    %53 = arith.sitofp %c0_i32_16 : i32 to bf16
    %54 = vector.shape_cast %20 : vector<1x256xi1> to vector<1x256xi1>
    %55 = vector.broadcast %54 : vector<1x256xi1> to vector<16x256xi1>
    %56 = vector.broadcast %53 : bf16 to vector<16x256xbf16>
    %57 = arith.select %55, %52, %56 : vector<16x256xi1>, vector<16x256xbf16>
    %c80 = arith.constant 80 : index
    %c0_17 = arith.constant 0 : index
    %58 = vector.load %arg33[%c80, %c0_17] : memref<432x256xbf16, #tpu.memory_space<vmem>>, vector<16x256xbf16>
    tpu.vector_store %arg33[%c80, %c0_17], %57 {strides = array<i32>} : memref<432x256xbf16, #tpu.memory_space<vmem>>, vector<16x256xbf16>,
    %59 = vector.extract_strided_slice %26 {offsets = [0, 32], sizes = [16, 256], strides = [1, 1]} : vector<16x290xbf16> to vector<16x256xbf16>
    %c0_i32_18 = arith.constant 0 : i32
    %60 = arith.sitofp %c0_i32_18 : i32 to bf16
    %61 = vector.shape_cast %18 : vector<1x256xi1> to vector<1x256xi1>
    %62 = vector.broadcast %61 : vector<1x256xi1> to vector<16x256xi1>
    %63 = vector.broadcast %60 : bf16 to vector<16x256xbf16>
    %64 = arith.select %62, %59, %63 : vector<16x256xi1>, vector<16x256xbf16>
    %c96 = arith.constant 96 : index
    %c0_19 = arith.constant 0 : index
    %65 = vector.load %arg33[%c96, %c0_19] : memref<432x256xbf16, #tpu.memory_space<vmem>>, vector<16x256xbf16>
    tpu.vector_store %arg33[%c96, %c0_19], %64 {strides = array<i32>} : memref<432x256xbf16, #tpu.memory_space<vmem>>, vector<16x256xbf16>,
    %66 = vector.extract_strided_slice %26 {offsets = [0, 33], sizes = [16, 256], strides = [1, 1]} : vector<16x290xbf16> to vector<16x256xbf16>
    %c112 = arith.constant 112 : index
    %c0_20 = arith.constant 0 : index
    %67 = vector.load %arg33[%c112, %c0_20] : memref<432x256xbf16, #tpu.memory_space<vmem>>, vector<16x256xbf16>
    tpu.vector_store %arg33[%c112, %c0_20], %66 {strides = array<i32>} : memref<432x256xbf16, #tpu.memory_space<vmem>>, vector<16x256xbf16>,
    %68 = vector.extract_strided_slice %26 {offsets = [0, 34], sizes = [16, 256], strides = [1, 1]} : vector<16x290xbf16> to vector<16x256xbf16>
    %c0_i32_21 = arith.constant 0 : i32
    %69 = arith.sitofp %c0_i32_21 : i32 to bf16
    %70 = vector.shape_cast %20 : vector<1x256xi1> to vector<1x256xi1>
    %71 = vector.broadcast %70 : vector<1x256xi1> to vector<16x256xi1>
    %72 = vector.broadcast %69 : bf16 to vector<16x256xbf16>
    %73 = arith.select %71, %68, %72 : vector<16x256xi1>, vector<16x256xbf16>
    %c128 = arith.constant 128 : index
    %c0_22 = arith.constant 0 : index
    %74 = vector.load %arg33[%c128, %c0_22] : memref<432x256xbf16, #tpu.memory_space<vmem>>, vector<16x256xbf16>
    tpu.vector_store %arg33[%c128, %c0_22], %73 {strides = array<i32>} : memref<432x256xbf16, #tpu.memory_space<vmem>>, vector<16x256xbf16>,
    %c0_23 = arith.constant 0 : index
    %c0_24 = arith.constant 0 : index
    %75 = vector.load %arg2[%c0_23, %c0_24] : memref<8x144xbf16, #tpu.memory_space<vmem>>, vector<8x144xbf16>
    %c0_25 = arith.constant 0 : index
    %c0_26 = arith.constant 0 : index
    %76 = vector.load %arg17[%c0_25, %c0_26] : memref<8x1xf32, #tpu.memory_space<vmem>>, vector<8x1xf32>
    %c0_27 = arith.constant 0 : index
    %c0_28 = arith.constant 0 : index
    %77 = vector.load %arg33[%c0_27, %c0_28] : memref<432x256xbf16, #tpu.memory_space<vmem>>, vector<144x256xbf16>
    %cst_29 = arith.constant dense<0.000000e+00> : vector<8x256xf32>
    %78 = tpu.matmul %75, %77, %cst_29 {dimension_numbers = #tpu.dot_dimension_numbers<[1], [0], [0], [1], [0, 0, 1, 1], [], []>} : vector<8x144xbf16>, vector<144x256xbf16>, vector<8x256xf32> -> vector<8x256xf32>
    %79 = vector.broadcast %76 : vector<8x1xf32> to vector<8x256xf32>
    %80 = arith.addf %78, %79 : vector<8x256xf32>
    %cst_30 = arith.constant 0.000000e+00 : f32
    %81 = vector.broadcast %cst_30 : f32 to vector<8x256xf32>
    %82 = arith.maximumf %80, %81 : vector<8x256xf32>
    %83 = arith.truncf %82 : vector<8x256xf32> to vector<8x256xbf16>
    %84 = tpu.concatenate %22, %83, %22 in 1 : vector<8x17xbf16>, vector<8x256xbf16>, vector<8x17xbf16> -> vector<8x290xbf16>
    %85 = vector.extract_strided_slice %84 {offsets = [0, 0], sizes = [8, 256], strides = [1, 1]} : vector<8x290xbf16> to vector<8x256xbf16>
    %c0_i32_31 = arith.constant 0 : i32
    %86 = arith.sitofp %c0_i32_31 : i32 to bf16
    %87 = vector.shape_cast %18 : vector<1x256xi1> to vector<1x256xi1>
    %88 = vector.broadcast %87 : vector<1x256xi1> to vector<8x256xi1>
    %89 = vector.broadcast %86 : bf16 to vector<8x256xbf16>
    %90 = arith.select %88, %85, %89 : vector<8x256xi1>, vector<8x256xbf16>
    %c144 = arith.constant 144 : index
    %c0_32 = arith.constant 0 : index
    %91 = vector.load %arg33[%c144, %c0_32] : memref<432x256xbf16, #tpu.memory_space<vmem>>, vector<8x256xbf16>
    tpu.vector_store %arg33[%c144, %c0_32], %90 {strides = array<i32>} : memref<432x256xbf16, #tpu.memory_space<vmem>>, vector<8x256xbf16>,
    %92 = vector.extract_strided_slice %84 {offsets = [0, 1], sizes = [8, 256], strides = [1, 1]} : vector<8x290xbf16> to vector<8x256xbf16>
    %c152 = arith.constant 152 : index
    %c0_33 = arith.constant 0 : index
    %93 = vector.load %arg33[%c152, %c0_33] : memref<432x256xbf16, #tpu.memory_space<vmem>>, vector<8x256xbf16>
    tpu.vector_store %arg33[%c152, %c0_33], %92 {strides = array<i32>} : memref<432x256xbf16, #tpu.memory_space<vmem>>, vector<8x256xbf16>,
    %94 = vector.extract_strided_slice %84 {offsets = [0, 2], sizes = [8, 256], strides = [1, 1]} : vector<8x290xbf16> to vector<8x256xbf16>
    %c0_i32_34 = arith.constant 0 : i32
    %95 = arith.sitofp %c0_i32_34 : i32 to bf16
    %96 = vector.shape_cast %20 : vector<1x256xi1> to vector<1x256xi1>
    %97 = vector.broadcast %96 : vector<1x256xi1> to vector<8x256xi1>
    %98 = vector.broadcast %95 : bf16 to vector<8x256xbf16>
    %99 = arith.select %97, %94, %98 : vector<8x256xi1>, vector<8x256xbf16>
    %c160 = arith.constant 160 : index
    %c0_35 = arith.constant 0 : index
    %100 = vector.load %arg33[%c160, %c0_35] : memref<432x256xbf16, #tpu.memory_space<vmem>>, vector<8x256xbf16>
    tpu.vector_store %arg33[%c160, %c0_35], %99 {strides = array<i32>} : memref<432x256xbf16, #tpu.memory_space<vmem>>, vector<8x256xbf16>,
    %101 = vector.extract_strided_slice %84 {offsets = [0, 16], sizes = [8, 256], strides = [1, 1]} : vector<8x290xbf16> to vector<8x256xbf16>
    %c0_i32_36 = arith.constant 0 : i32
    %102 = arith.sitofp %c0_i32_36 : i32 to bf16
    %103 = vector.shape_cast %18 : vector<1x256xi1> to vector<1x256xi1>
    %104 = vector.broadcast %103 : vector<1x256xi1> to vector<8x256xi1>
    %105 = vector.broadcast %102 : bf16 to vector<8x256xbf16>
    %106 = arith.select %104, %101, %105 : vector<8x256xi1>, vector<8x256xbf16>
    %c168 = arith.constant 168 : index
    %c0_37 = arith.constant 0 : index
    %107 = vector.load %arg33[%c168, %c0_37] : memref<432x256xbf16, #tpu.memory_space<vmem>>, vector<8x256xbf16>
    tpu.vector_store %arg33[%c168, %c0_37], %106 {strides = array<i32>} : memref<432x256xbf16, #tpu.memory_space<vmem>>, vector<8x256xbf16>,
    %108 = vector.extract_strided_slice %84 {offsets = [0, 17], sizes = [8, 256], strides = [1, 1]} : vector<8x290xbf16> to vector<8x256xbf16>
    %c176 = arith.constant 176 : index
    %c0_38 = arith.constant 0 : index
    %109 = vector.load %arg33[%c176, %c0_38] : memref<432x256xbf16, #tpu.memory_space<vmem>>, vector<8x256xbf16>
    tpu.vector_store %arg33[%c176, %c0_38], %108 {strides = array<i32>} : memref<432x256xbf16, #tpu.memory_space<vmem>>, vector<8x256xbf16>,
    %110 = vector.extract_strided_slice %84 {offsets = [0, 18], sizes = [8, 256], strides = [1, 1]} : vector<8x290xbf16> to vector<8x256xbf16>
    %c0_i32_39 = arith.constant 0 : i32
    %111 = arith.sitofp %c0_i32_39 : i32 to bf16
    %112 = vector.shape_cast %20 : vector<1x256xi1> to vector<1x256xi1>
    %113 = vector.broadcast %112 : vector<1x256xi1> to vector<8x256xi1>
    %114 = vector.broadcast %111 : bf16 to vector<8x256xbf16>
    %115 = arith.select %113, %110, %114 : vector<8x256xi1>, vector<8x256xbf16>
    %c184 = arith.constant 184 : index
    %c0_40 = arith.constant 0 : index
    %116 = vector.load %arg33[%c184, %c0_40] : memref<432x256xbf16, #tpu.memory_space<vmem>>, vector<8x256xbf16>
    tpu.vector_store %arg33[%c184, %c0_40], %115 {strides = array<i32>} : memref<432x256xbf16, #tpu.memory_space<vmem>>, vector<8x256xbf16>,
    %117 = vector.extract_strided_slice %84 {offsets = [0, 32], sizes = [8, 256], strides = [1, 1]} : vector<8x290xbf16> to vector<8x256xbf16>
    %c0_i32_41 = arith.constant 0 : i32
    %118 = arith.sitofp %c0_i32_41 : i32 to bf16
    %119 = vector.shape_cast %18 : vector<1x256xi1> to vector<1x256xi1>
    %120 = vector.broadcast %119 : vector<1x256xi1> to vector<8x256xi1>
    %121 = vector.broadcast %118 : bf16 to vector<8x256xbf16>
    %122 = arith.select %120, %117, %121 : vector<8x256xi1>, vector<8x256xbf16>
    %c192 = arith.constant 192 : index
    %c0_42 = arith.constant 0 : index
    %123 = vector.load %arg33[%c192, %c0_42] : memref<432x256xbf16, #tpu.memory_space<vmem>>, vector<8x256xbf16>
    tpu.vector_store %arg33[%c192, %c0_42], %122 {strides = array<i32>} : memref<432x256xbf16, #tpu.memory_space<vmem>>, vector<8x256xbf16>,
    %124 = vector.extract_strided_slice %84 {offsets = [0, 33], sizes = [8, 256], strides = [1, 1]} : vector<8x290xbf16> to vector<8x256xbf16>
    %c200 = arith.constant 200 : index
    %c0_43 = arith.constant 0 : index
    %125 = vector.load %arg33[%c200, %c0_43] : memref<432x256xbf16, #tpu.memory_space<vmem>>, vector<8x256xbf16>
    tpu.vector_store %arg33[%c200, %c0_43], %124 {strides = array<i32>} : memref<432x256xbf16, #tpu.memory_space<vmem>>, vector<8x256xbf16>,
    %126 = vector.extract_strided_slice %84 {offsets = [0, 34], sizes = [8, 256], strides = [1, 1]} : vector<8x290xbf16> to vector<8x256xbf16>
    %c0_i32_44 = arith.constant 0 : i32
    %127 = arith.sitofp %c0_i32_44 : i32 to bf16
    %128 = vector.shape_cast %20 : vector<1x256xi1> to vector<1x256xi1>
    %129 = vector.broadcast %128 : vector<1x256xi1> to vector<8x256xi1>
    %130 = vector.broadcast %127 : bf16 to vector<8x256xbf16>
    %131 = arith.select %129, %126, %130 : vector<8x256xi1>, vector<8x256xbf16>
    %c208 = arith.constant 208 : index
    %c0_45 = arith.constant 0 : index
    %132 = vector.load %arg33[%c208, %c0_45] : memref<432x256xbf16, #tpu.memory_space<vmem>>, vector<8x256xbf16>
    tpu.vector_store %arg33[%c208, %c0_45], %131 {strides = array<i32>} : memref<432x256xbf16, #tpu.memory_space<vmem>>, vector<8x256xbf16>,
    %c0_46 = arith.constant 0 : index
    %c0_47 = arith.constant 0 : index
    %133 = vector.load %arg3[%c0_46, %c0_47] : memref<8x216xbf16, #tpu.memory_space<vmem>>, vector<8x216xbf16>
    %c0_48 = arith.constant 0 : index
    %c0_49 = arith.constant 0 : index
    %134 = vector.load %arg18[%c0_48, %c0_49] : memref<8x1xf32, #tpu.memory_space<vmem>>, vector<8x1xf32>
    %c0_50 = arith.constant 0 : index
    %c0_51 = arith.constant 0 : index
    %135 = vector.load %arg33[%c0_50, %c0_51] : memref<432x256xbf16, #tpu.memory_space<vmem>>, vector<216x256xbf16>
    %cst_52 = arith.constant dense<0.000000e+00> : vector<8x256xf32>
    %136 = tpu.matmul %133, %135, %cst_52 {dimension_numbers = #tpu.dot_dimension_numbers<[1], [0], [0], [1], [0, 0, 1, 1], [], []>} : vector<8x216xbf16>, vector<216x256xbf16>, vector<8x256xf32> -> vector<8x256xf32>
    %137 = vector.broadcast %134 : vector<8x1xf32> to vector<8x256xf32>
    %138 = arith.addf %136, %137 : vector<8x256xf32>
    %cst_53 = arith.constant 0.000000e+00 : f32
    %139 = vector.broadcast %cst_53 : f32 to vector<8x256xf32>
    %140 = arith.maximumf %138, %139 : vector<8x256xf32>
    %141 = arith.truncf %140 : vector<8x256xf32> to vector<8x256xbf16>
    %142 = tpu.concatenate %22, %141, %22 in 1 : vector<8x17xbf16>, vector<8x256xbf16>, vector<8x17xbf16> -> vector<8x290xbf16>
    %143 = vector.extract_strided_slice %142 {offsets = [0, 0], sizes = [8, 256], strides = [1, 1]} : vector<8x290xbf16> to vector<8x256xbf16>
    %c0_i32_54 = arith.constant 0 : i32
    %144 = arith.sitofp %c0_i32_54 : i32 to bf16
    %145 = vector.shape_cast %18 : vector<1x256xi1> to vector<1x256xi1>
    %146 = vector.broadcast %145 : vector<1x256xi1> to vector<8x256xi1>
    %147 = vector.broadcast %144 : bf16 to vector<8x256xbf16>
    %148 = arith.select %146, %143, %147 : vector<8x256xi1>, vector<8x256xbf16>
    %c216 = arith.constant 216 : index
    %c0_55 = arith.constant 0 : index
    %149 = vector.load %arg33[%c216, %c0_55] : memref<432x256xbf16, #tpu.memory_space<vmem>>, vector<8x256xbf16>
    tpu.vector_store %arg33[%c216, %c0_55], %148 {strides = array<i32>} : memref<432x256xbf16, #tpu.memory_space<vmem>>, vector<8x256xbf16>,
    %150 = vector.extract_strided_slice %142 {offsets = [0, 1], sizes = [8, 256], strides = [1, 1]} : vector<8x290xbf16> to vector<8x256xbf16>
    %c224 = arith.constant 224 : index
    %c0_56 = arith.constant 0 : index
    %151 = vector.load %arg33[%c224, %c0_56] : memref<432x256xbf16, #tpu.memory_space<vmem>>, vector<8x256xbf16>
    tpu.vector_store %arg33[%c224, %c0_56], %150 {strides = array<i32>} : memref<432x256xbf16, #tpu.memory_space<vmem>>, vector<8x256xbf16>,
    %152 = vector.extract_strided_slice %142 {offsets = [0, 2], sizes = [8, 256], strides = [1, 1]} : vector<8x290xbf16> to vector<8x256xbf16>
    %c0_i32_57 = arith.constant 0 : i32
    %153 = arith.sitofp %c0_i32_57 : i32 to bf16
    %154 = vector.shape_cast %20 : vector<1x256xi1> to vector<1x256xi1>
    %155 = vector.broadcast %154 : vector<1x256xi1> to vector<8x256xi1>
    %156 = vector.broadcast %153 : bf16 to vector<8x256xbf16>
    %157 = arith.select %155, %152, %156 : vector<8x256xi1>, vector<8x256xbf16>
    %c232 = arith.constant 232 : index
    %c0_58 = arith.constant 0 : index
    %158 = vector.load %arg33[%c232, %c0_58] : memref<432x256xbf16, #tpu.memory_space<vmem>>, vector<8x256xbf16>
    tpu.vector_store %arg33[%c232, %c0_58], %157 {strides = array<i32>} : memref<432x256xbf16, #tpu.memory_space<vmem>>, vector<8x256xbf16>,
    %159 = vector.extract_strided_slice %142 {offsets = [0, 16], sizes = [8, 256], strides = [1, 1]} : vector<8x290xbf16> to vector<8x256xbf16>
    %c0_i32_59 = arith.constant 0 : i32
    %160 = arith.sitofp %c0_i32_59 : i32 to bf16
    %161 = vector.shape_cast %18 : vector<1x256xi1> to vector<1x256xi1>
    %162 = vector.broadcast %161 : vector<1x256xi1> to vector<8x256xi1>
    %163 = vector.broadcast %160 : bf16 to vector<8x256xbf16>
    %164 = arith.select %162, %159, %163 : vector<8x256xi1>, vector<8x256xbf16>
    %c240 = arith.constant 240 : index
    %c0_60 = arith.constant 0 : index
    %165 = vector.load %arg33[%c240, %c0_60] : memref<432x256xbf16, #tpu.memory_space<vmem>>, vector<8x256xbf16>
    tpu.vector_store %arg33[%c240, %c0_60], %164 {strides = array<i32>} : memref<432x256xbf16, #tpu.memory_space<vmem>>, vector<8x256xbf16>,
    %166 = vector.extract_strided_slice %142 {offsets = [0, 17], sizes = [8, 256], strides = [1, 1]} : vector<8x290xbf16> to vector<8x256xbf16>
    %c248 = arith.constant 248 : index
    %c0_61 = arith.constant 0 : index
    %167 = vector.load %arg33[%c248, %c0_61] : memref<432x256xbf16, #tpu.memory_space<vmem>>, vector<8x256xbf16>
    tpu.vector_store %arg33[%c248, %c0_61], %166 {strides = array<i32>} : memref<432x256xbf16, #tpu.memory_space<vmem>>, vector<8x256xbf16>,
    %168 = vector.extract_strided_slice %142 {offsets = [0, 18], sizes = [8, 256], strides = [1, 1]} : vector<8x290xbf16> to vector<8x256xbf16>
    %c0_i32_62 = arith.constant 0 : i32
    %169 = arith.sitofp %c0_i32_62 : i32 to bf16
    %170 = vector.shape_cast %20 : vector<1x256xi1> to vector<1x256xi1>
    %171 = vector.broadcast %170 : vector<1x256xi1> to vector<8x256xi1>
    %172 = vector.broadcast %169 : bf16 to vector<8x256xbf16>
    %173 = arith.select %171, %168, %172 : vector<8x256xi1>, vector<8x256xbf16>
    %c256 = arith.constant 256 : index
    %c0_63 = arith.constant 0 : index
    %174 = vector.load %arg33[%c256, %c0_63] : memref<432x256xbf16, #tpu.memory_space<vmem>>, vector<8x256xbf16>
    tpu.vector_store %arg33[%c256, %c0_63], %173 {strides = array<i32>} : memref<432x256xbf16, #tpu.memory_space<vmem>>, vector<8x256xbf16>,
    %175 = vector.extract_strided_slice %142 {offsets = [0, 32], sizes = [8, 256], strides = [1, 1]} : vector<8x290xbf16> to vector<8x256xbf16>
    %c0_i32_64 = arith.constant 0 : i32
    %176 = arith.sitofp %c0_i32_64 : i32 to bf16
    %177 = vector.shape_cast %18 : vector<1x256xi1> to vector<1x256xi1>
    %178 = vector.broadcast %177 : vector<1x256xi1> to vector<8x256xi1>
    %179 = vector.broadcast %176 : bf16 to vector<8x256xbf16>
    %180 = arith.select %178, %175, %179 : vector<8x256xi1>, vector<8x256xbf16>
    %c264 = arith.constant 264 : index
    %c0_65 = arith.constant 0 : index
    %181 = vector.load %arg33[%c264, %c0_65] : memref<432x256xbf16, #tpu.memory_space<vmem>>, vector<8x256xbf16>
    tpu.vector_store %arg33[%c264, %c0_65], %180 {strides = array<i32>} : memref<432x256xbf16, #tpu.memory_space<vmem>>, vector<8x256xbf16>,
    %182 = vector.extract_strided_slice %142 {offsets = [0, 33], sizes = [8, 256], strides = [1, 1]} : vector<8x290xbf16> to vector<8x256xbf16>
    %c272 = arith.constant 272 : index
    %c0_66 = arith.constant 0 : index
    %183 = vector.load %arg33[%c272, %c0_66] : memref<432x256xbf16, #tpu.memory_space<vmem>>, vector<8x256xbf16>
    tpu.vector_store %arg33[%c272, %c0_66], %182 {strides = array<i32>} : memref<432x256xbf16, #tpu.memory_space<vmem>>, vector<8x256xbf16>,
    %184 = vector.extract_strided_slice %142 {offsets = [0, 34], sizes = [8, 256], strides = [1, 1]} : vector<8x290xbf16> to vector<8x256xbf16>
    %c0_i32_67 = arith.constant 0 : i32
    %185 = arith.sitofp %c0_i32_67 : i32 to bf16
    %186 = vector.shape_cast %20 : vector<1x256xi1> to vector<1x256xi1>
    %187 = vector.broadcast %186 : vector<1x256xi1> to vector<8x256xi1>
    %188 = vector.broadcast %185 : bf16 to vector<8x256xbf16>
    %189 = arith.select %187, %184, %188 : vector<8x256xi1>, vector<8x256xbf16>
    %c280 = arith.constant 280 : index
    %c0_68 = arith.constant 0 : index
    %190 = vector.load %arg33[%c280, %c0_68] : memref<432x256xbf16, #tpu.memory_space<vmem>>, vector<8x256xbf16>
    tpu.vector_store %arg33[%c280, %c0_68], %189 {strides = array<i32>} : memref<432x256xbf16, #tpu.memory_space<vmem>>, vector<8x256xbf16>,
    %c0_69 = arith.constant 0 : index
    %c0_70 = arith.constant 0 : index
    %191 = vector.load %arg4[%c0_69, %c0_70] : memref<8x288xbf16, #tpu.memory_space<vmem>>, vector<8x288xbf16>
    %c0_71 = arith.constant 0 : index
    %c0_72 = arith.constant 0 : index
    %192 = vector.load %arg19[%c0_71, %c0_72] : memref<8x1xf32, #tpu.memory_space<vmem>>, vector<8x1xf32>
    %c0_73 = arith.constant 0 : index
    %c0_74 = arith.constant 0 : index
    %193 = vector.load %arg33[%c0_73, %c0_74] : memref<432x256xbf16, #tpu.memory_space<vmem>>, vector<288x256xbf16>
    %cst_75 = arith.constant dense<0.000000e+00> : vector<8x256xf32>
    %194 = tpu.matmul %191, %193, %cst_75 {dimension_numbers = #tpu.dot_dimension_numbers<[1], [0], [0], [1], [0, 0, 1, 1], [], []>} : vector<8x288xbf16>, vector<288x256xbf16>, vector<8x256xf32> -> vector<8x256xf32>
    %195 = vector.broadcast %192 : vector<8x1xf32> to vector<8x256xf32>
    %196 = arith.addf %194, %195 : vector<8x256xf32>
    %cst_76 = arith.constant 0.000000e+00 : f32
    %197 = vector.broadcast %cst_76 : f32 to vector<8x256xf32>
    %198 = arith.maximumf %196, %197 : vector<8x256xf32>
    %199 = arith.truncf %198 : vector<8x256xf32> to vector<8x256xbf16>
    %200 = tpu.concatenate %22, %199, %22 in 1 : vector<8x17xbf16>, vector<8x256xbf16>, vector<8x17xbf16> -> vector<8x290xbf16>
    %201 = vector.extract_strided_slice %200 {offsets = [0, 0], sizes = [8, 256], strides = [1, 1]} : vector<8x290xbf16> to vector<8x256xbf16>
    %c0_i32_77 = arith.constant 0 : i32
    %202 = arith.sitofp %c0_i32_77 : i32 to bf16
    %203 = vector.shape_cast %18 : vector<1x256xi1> to vector<1x256xi1>
    %204 = vector.broadcast %203 : vector<1x256xi1> to vector<8x256xi1>
    %205 = vector.broadcast %202 : bf16 to vector<8x256xbf16>
    %206 = arith.select %204, %201, %205 : vector<8x256xi1>, vector<8x256xbf16>
    %c288 = arith.constant 288 : index
    %c0_78 = arith.constant 0 : index
    %207 = vector.load %arg33[%c288, %c0_78] : memref<432x256xbf16, #tpu.memory_space<vmem>>, vector<8x256xbf16>
    tpu.vector_store %arg33[%c288, %c0_78], %206 {strides = array<i32>} : memref<432x256xbf16, #tpu.memory_space<vmem>>, vector<8x256xbf16>,
    %208 = vector.extract_strided_slice %200 {offsets = [0, 1], sizes = [8, 256], strides = [1, 1]} : vector<8x290xbf16> to vector<8x256xbf16>
    %c296 = arith.constant 296 : index
    %c0_79 = arith.constant 0 : index
    %209 = vector.load %arg33[%c296, %c0_79] : memref<432x256xbf16, #tpu.memory_space<vmem>>, vector<8x256xbf16>
    tpu.vector_store %arg33[%c296, %c0_79], %208 {strides = array<i32>} : memref<432x256xbf16, #tpu.memory_space<vmem>>, vector<8x256xbf16>,
    %210 = vector.extract_strided_slice %200 {offsets = [0, 2], sizes = [8, 256], strides = [1, 1]} : vector<8x290xbf16> to vector<8x256xbf16>
    %c0_i32_80 = arith.constant 0 : i32
    %211 = arith.sitofp %c0_i32_80 : i32 to bf16
    %212 = vector.shape_cast %20 : vector<1x256xi1> to vector<1x256xi1>
    %213 = vector.broadcast %212 : vector<1x256xi1> to vector<8x256xi1>
    %214 = vector.broadcast %211 : bf16 to vector<8x256xbf16>
    %215 = arith.select %213, %210, %214 : vector<8x256xi1>, vector<8x256xbf16>
    %c304 = arith.constant 304 : index
    %c0_81 = arith.constant 0 : index
    %216 = vector.load %arg33[%c304, %c0_81] : memref<432x256xbf16, #tpu.memory_space<vmem>>, vector<8x256xbf16>
    tpu.vector_store %arg33[%c304, %c0_81], %215 {strides = array<i32>} : memref<432x256xbf16, #tpu.memory_space<vmem>>, vector<8x256xbf16>,
    %217 = vector.extract_strided_slice %200 {offsets = [0, 16], sizes = [8, 256], strides = [1, 1]} : vector<8x290xbf16> to vector<8x256xbf16>
    %c0_i32_82 = arith.constant 0 : i32
    %218 = arith.sitofp %c0_i32_82 : i32 to bf16
    %219 = vector.shape_cast %18 : vector<1x256xi1> to vector<1x256xi1>
    %220 = vector.broadcast %219 : vector<1x256xi1> to vector<8x256xi1>
    %221 = vector.broadcast %218 : bf16 to vector<8x256xbf16>
    %222 = arith.select %220, %217, %221 : vector<8x256xi1>, vector<8x256xbf16>
    %c312 = arith.constant 312 : index
    %c0_83 = arith.constant 0 : index
    %223 = vector.load %arg33[%c312, %c0_83] : memref<432x256xbf16, #tpu.memory_space<vmem>>, vector<8x256xbf16>
    tpu.vector_store %arg33[%c312, %c0_83], %222 {strides = array<i32>} : memref<432x256xbf16, #tpu.memory_space<vmem>>, vector<8x256xbf16>,
    %224 = vector.extract_strided_slice %200 {offsets = [0, 17], sizes = [8, 256], strides = [1, 1]} : vector<8x290xbf16> to vector<8x256xbf16>
    %c320 = arith.constant 320 : index
    %c0_84 = arith.constant 0 : index
    %225 = vector.load %arg33[%c320, %c0_84] : memref<432x256xbf16, #tpu.memory_space<vmem>>, vector<8x256xbf16>
    tpu.vector_store %arg33[%c320, %c0_84], %224 {strides = array<i32>} : memref<432x256xbf16, #tpu.memory_space<vmem>>, vector<8x256xbf16>,
    %226 = vector.extract_strided_slice %200 {offsets = [0, 18], sizes = [8, 256], strides = [1, 1]} : vector<8x290xbf16> to vector<8x256xbf16>
    %c0_i32_85 = arith.constant 0 : i32
    %227 = arith.sitofp %c0_i32_85 : i32 to bf16
    %228 = vector.shape_cast %20 : vector<1x256xi1> to vector<1x256xi1>
    %229 = vector.broadcast %228 : vector<1x256xi1> to vector<8x256xi1>
    %230 = vector.broadcast %227 : bf16 to vector<8x256xbf16>
    %231 = arith.select %229, %226, %230 : vector<8x256xi1>, vector<8x256xbf16>
    %c328 = arith.constant 328 : index
    %c0_86 = arith.constant 0 : index
    %232 = vector.load %arg33[%c328, %c0_86] : memref<432x256xbf16, #tpu.memory_space<vmem>>, vector<8x256xbf16>
    tpu.vector_store %arg33[%c328, %c0_86], %231 {strides = array<i32>} : memref<432x256xbf16, #tpu.memory_space<vmem>>, vector<8x256xbf16>,
    %233 = vector.extract_strided_slice %200 {offsets = [0, 32], sizes = [8, 256], strides = [1, 1]} : vector<8x290xbf16> to vector<8x256xbf16>
    %c0_i32_87 = arith.constant 0 : i32
    %234 = arith.sitofp %c0_i32_87 : i32 to bf16
    %235 = vector.shape_cast %18 : vector<1x256xi1> to vector<1x256xi1>
    %236 = vector.broadcast %235 : vector<1x256xi1> to vector<8x256xi1>
    %237 = vector.broadcast %234 : bf16 to vector<8x256xbf16>
    %238 = arith.select %236, %233, %237 : vector<8x256xi1>, vector<8x256xbf16>
    %c336 = arith.constant 336 : index
    %c0_88 = arith.constant 0 : index
    %239 = vector.load %arg33[%c336, %c0_88] : memref<432x256xbf16, #tpu.memory_space<vmem>>, vector<8x256xbf16>
    tpu.vector_store %arg33[%c336, %c0_88], %238 {strides = array<i32>} : memref<432x256xbf16, #tpu.memory_space<vmem>>, vector<8x256xbf16>,
    %240 = vector.extract_strided_slice %200 {offsets = [0, 33], sizes = [8, 256], strides = [1, 1]} : vector<8x290xbf16> to vector<8x256xbf16>
    %c344 = arith.constant 344 : index
    %c0_89 = arith.constant 0 : index
    %241 = vector.load %arg33[%c344, %c0_89] : memref<432x256xbf16, #tpu.memory_space<vmem>>, vector<8x256xbf16>
    tpu.vector_store %arg33[%c344, %c0_89], %240 {strides = array<i32>} : memref<432x256xbf16, #tpu.memory_space<vmem>>, vector<8x256xbf16>,
    %242 = vector.extract_strided_slice %200 {offsets = [0, 34], sizes = [8, 256], strides = [1, 1]} : vector<8x290xbf16> to vector<8x256xbf16>
    %c0_i32_90 = arith.constant 0 : i32
    %243 = arith.sitofp %c0_i32_90 : i32 to bf16
    %244 = vector.shape_cast %20 : vector<1x256xi1> to vector<1x256xi1>
    %245 = vector.broadcast %244 : vector<1x256xi1> to vector<8x256xi1>
    %246 = vector.broadcast %243 : bf16 to vector<8x256xbf16>
    %247 = arith.select %245, %242, %246 : vector<8x256xi1>, vector<8x256xbf16>
    %c352 = arith.constant 352 : index
    %c0_91 = arith.constant 0 : index
    %248 = vector.load %arg33[%c352, %c0_91] : memref<432x256xbf16, #tpu.memory_space<vmem>>, vector<8x256xbf16>
    tpu.vector_store %arg33[%c352, %c0_91], %247 {strides = array<i32>} : memref<432x256xbf16, #tpu.memory_space<vmem>>, vector<8x256xbf16>,
    %c0_92 = arith.constant 0 : index
    %c0_93 = arith.constant 0 : index
    %249 = vector.load %arg5[%c0_92, %c0_93] : memref<8x360xbf16, #tpu.memory_space<vmem>>, vector<8x360xbf16>
    %c0_94 = arith.constant 0 : index
    %c0_95 = arith.constant 0 : index
    %250 = vector.load %arg20[%c0_94, %c0_95] : memref<8x1xf32, #tpu.memory_space<vmem>>, vector<8x1xf32>
    %c0_96 = arith.constant 0 : index
    %c0_97 = arith.constant 0 : index
    %251 = vector.load %arg33[%c0_96, %c0_97] : memref<432x256xbf16, #tpu.memory_space<vmem>>, vector<360x256xbf16>
    %cst_98 = arith.constant dense<0.000000e+00> : vector<8x256xf32>
    %252 = tpu.matmul %249, %251, %cst_98 {dimension_numbers = #tpu.dot_dimension_numbers<[1], [0], [0], [1], [0, 0, 1, 1], [], []>} : vector<8x360xbf16>, vector<360x256xbf16>, vector<8x256xf32> -> vector<8x256xf32>
    %253 = vector.broadcast %250 : vector<8x1xf32> to vector<8x256xf32>
    %254 = arith.addf %252, %253 : vector<8x256xf32>
    %cst_99 = arith.constant 0.000000e+00 : f32
    %255 = vector.broadcast %cst_99 : f32 to vector<8x256xf32>
    %256 = arith.maximumf %254, %255 : vector<8x256xf32>
    %257 = arith.truncf %256 : vector<8x256xf32> to vector<8x256xbf16>
    %258 = tpu.concatenate %22, %257, %22 in 1 : vector<8x17xbf16>, vector<8x256xbf16>, vector<8x17xbf16> -> vector<8x290xbf16>
    %259 = vector.extract_strided_slice %258 {offsets = [0, 0], sizes = [8, 256], strides = [1, 1]} : vector<8x290xbf16> to vector<8x256xbf16>
    %c0_i32_100 = arith.constant 0 : i32
    %260 = arith.sitofp %c0_i32_100 : i32 to bf16
    %261 = vector.shape_cast %18 : vector<1x256xi1> to vector<1x256xi1>
    %262 = vector.broadcast %261 : vector<1x256xi1> to vector<8x256xi1>
    %263 = vector.broadcast %260 : bf16 to vector<8x256xbf16>
    %264 = arith.select %262, %259, %263 : vector<8x256xi1>, vector<8x256xbf16>
    %c360 = arith.constant 360 : index
    %c0_101 = arith.constant 0 : index
    %265 = vector.load %arg33[%c360, %c0_101] : memref<432x256xbf16, #tpu.memory_space<vmem>>, vector<8x256xbf16>
    tpu.vector_store %arg33[%c360, %c0_101], %264 {strides = array<i32>} : memref<432x256xbf16, #tpu.memory_space<vmem>>, vector<8x256xbf16>,
    %266 = vector.extract_strided_slice %258 {offsets = [0, 1], sizes = [8, 256], strides = [1, 1]} : vector<8x290xbf16> to vector<8x256xbf16>
    %c368 = arith.constant 368 : index
    %c0_102 = arith.constant 0 : index
    %267 = vector.load %arg33[%c368, %c0_102] : memref<432x256xbf16, #tpu.memory_space<vmem>>, vector<8x256xbf16>
    tpu.vector_store %arg33[%c368, %c0_102], %266 {strides = array<i32>} : memref<432x256xbf16, #tpu.memory_space<vmem>>, vector<8x256xbf16>,
    %268 = vector.extract_strided_slice %258 {offsets = [0, 2], sizes = [8, 256], strides = [1, 1]} : vector<8x290xbf16> to vector<8x256xbf16>
    %c0_i32_103 = arith.constant 0 : i32
    %269 = arith.sitofp %c0_i32_103 : i32 to bf16
    %270 = vector.shape_cast %20 : vector<1x256xi1> to vector<1x256xi1>
    %271 = vector.broadcast %270 : vector<1x256xi1> to vector<8x256xi1>
    %272 = vector.broadcast %269 : bf16 to vector<8x256xbf16>
    %273 = arith.select %271, %268, %272 : vector<8x256xi1>, vector<8x256xbf16>
    %c376 = arith.constant 376 : index
    %c0_104 = arith.constant 0 : index
    %274 = vector.load %arg33[%c376, %c0_104] : memref<432x256xbf16, #tpu.memory_space<vmem>>, vector<8x256xbf16>
    tpu.vector_store %arg33[%c376, %c0_104], %273 {strides = array<i32>} : memref<432x256xbf16, #tpu.memory_space<vmem>>, vector<8x256xbf16>,
    %275 = vector.extract_strided_slice %258 {offsets = [0, 16], sizes = [8, 256], strides = [1, 1]} : vector<8x290xbf16> to vector<8x256xbf16>
    %c0_i32_105 = arith.constant 0 : i32
    %276 = arith.sitofp %c0_i32_105 : i32 to bf16
    %277 = vector.shape_cast %18 : vector<1x256xi1> to vector<1x256xi1>
    %278 = vector.broadcast %277 : vector<1x256xi1> to vector<8x256xi1>
    %279 = vector.broadcast %276 : bf16 to vector<8x256xbf16>
    %280 = arith.select %278, %275, %279 : vector<8x256xi1>, vector<8x256xbf16>
    %c384 = arith.constant 384 : index
    %c0_106 = arith.constant 0 : index
    %281 = vector.load %arg33[%c384, %c0_106] : memref<432x256xbf16, #tpu.memory_space<vmem>>, vector<8x256xbf16>
    tpu.vector_store %arg33[%c384, %c0_106], %280 {strides = array<i32>} : memref<432x256xbf16, #tpu.memory_space<vmem>>, vector<8x256xbf16>,
    %282 = vector.extract_strided_slice %258 {offsets = [0, 17], sizes = [8, 256], strides = [1, 1]} : vector<8x290xbf16> to vector<8x256xbf16>
    %c392 = arith.constant 392 : index
    %c0_107 = arith.constant 0 : index
    %283 = vector.load %arg33[%c392, %c0_107] : memref<432x256xbf16, #tpu.memory_space<vmem>>, vector<8x256xbf16>
    tpu.vector_store %arg33[%c392, %c0_107], %282 {strides = array<i32>} : memref<432x256xbf16, #tpu.memory_space<vmem>>, vector<8x256xbf16>,
    %284 = vector.extract_strided_slice %258 {offsets = [0, 18], sizes = [8, 256], strides = [1, 1]} : vector<8x290xbf16> to vector<8x256xbf16>
    %c0_i32_108 = arith.constant 0 : i32
    %285 = arith.sitofp %c0_i32_108 : i32 to bf16
    %286 = vector.shape_cast %20 : vector<1x256xi1> to vector<1x256xi1>
    %287 = vector.broadcast %286 : vector<1x256xi1> to vector<8x256xi1>
    %288 = vector.broadcast %285 : bf16 to vector<8x256xbf16>
    %289 = arith.select %287, %284, %288 : vector<8x256xi1>, vector<8x256xbf16>
    %c400 = arith.constant 400 : index
    %c0_109 = arith.constant 0 : index
    %290 = vector.load %arg33[%c400, %c0_109] : memref<432x256xbf16, #tpu.memory_space<vmem>>, vector<8x256xbf16>
    tpu.vector_store %arg33[%c400, %c0_109], %289 {strides = array<i32>} : memref<432x256xbf16, #tpu.memory_space<vmem>>, vector<8x256xbf16>,
    %291 = vector.extract_strided_slice %258 {offsets = [0, 32], sizes = [8, 256], strides = [1, 1]} : vector<8x290xbf16> to vector<8x256xbf16>
    %c0_i32_110 = arith.constant 0 : i32
    %292 = arith.sitofp %c0_i32_110 : i32 to bf16
    %293 = vector.shape_cast %18 : vector<1x256xi1> to vector<1x256xi1>
    %294 = vector.broadcast %293 : vector<1x256xi1> to vector<8x256xi1>
    %295 = vector.broadcast %292 : bf16 to vector<8x256xbf16>
    %296 = arith.select %294, %291, %295 : vector<8x256xi1>, vector<8x256xbf16>
    %c408 = arith.constant 408 : index
    %c0_111 = arith.constant 0 : index
    %297 = vector.load %arg33[%c408, %c0_111] : memref<432x256xbf16, #tpu.memory_space<vmem>>, vector<8x256xbf16>
    tpu.vector_store %arg33[%c408, %c0_111], %296 {strides = array<i32>} : memref<432x256xbf16, #tpu.memory_space<vmem>>, vector<8x256xbf16>,
    %298 = vector.extract_strided_slice %258 {offsets = [0, 33], sizes = [8, 256], strides = [1, 1]} : vector<8x290xbf16> to vector<8x256xbf16>
    %c416 = arith.constant 416 : index
    %c0_112 = arith.constant 0 : index
    %299 = vector.load %arg33[%c416, %c0_112] : memref<432x256xbf16, #tpu.memory_space<vmem>>, vector<8x256xbf16>
    tpu.vector_store %arg33[%c416, %c0_112], %298 {strides = array<i32>} : memref<432x256xbf16, #tpu.memory_space<vmem>>, vector<8x256xbf16>,
    %300 = vector.extract_strided_slice %258 {offsets = [0, 34], sizes = [8, 256], strides = [1, 1]} : vector<8x290xbf16> to vector<8x256xbf16>
    %c0_i32_113 = arith.constant 0 : i32
    %301 = arith.sitofp %c0_i32_113 : i32 to bf16
    %302 = vector.shape_cast %20 : vector<1x256xi1> to vector<1x256xi1>
    %303 = vector.broadcast %302 : vector<1x256xi1> to vector<8x256xi1>
    %304 = vector.broadcast %301 : bf16 to vector<8x256xbf16>
    %305 = arith.select %303, %300, %304 : vector<8x256xi1>, vector<8x256xbf16>
    %c424 = arith.constant 424 : index
    %c0_114 = arith.constant 0 : index
    %306 = vector.load %arg33[%c424, %c0_114] : memref<432x256xbf16, #tpu.memory_space<vmem>>, vector<8x256xbf16>
    tpu.vector_store %arg33[%c424, %c0_114], %305 {strides = array<i32>} : memref<432x256xbf16, #tpu.memory_space<vmem>>, vector<8x256xbf16>,
    %c0_115 = arith.constant 0 : index
    %c0_116 = arith.constant 0 : index
    %307 = vector.load %arg6[%c0_115, %c0_116] : memref<16x432xbf16, #tpu.memory_space<vmem>>, vector<16x432xbf16>
    %c0_117 = arith.constant 0 : index
    %c0_118 = arith.constant 0 : index
    %308 = vector.load %arg21[%c0_117, %c0_118] : memref<16x1xf32, #tpu.memory_space<vmem>>, vector<16x1xf32>
    %c0_119 = arith.constant 0 : index
    %c0_120 = arith.constant 0 : index
    %309 = vector.load %arg33[%c0_119, %c0_120] : memref<432x256xbf16, #tpu.memory_space<vmem>>, vector<432x256xbf16>
    %cst_121 = arith.constant dense<0.000000e+00> : vector<16x256xf32>
    %310 = tpu.matmul %307, %309, %cst_121 {dimension_numbers = #tpu.dot_dimension_numbers<[1], [0], [0], [1], [0, 0, 1, 1], [], []>} : vector<16x432xbf16>, vector<432x256xbf16>, vector<16x256xf32> -> vector<16x256xf32>
    %311 = vector.broadcast %308 : vector<16x1xf32> to vector<16x256xf32>
    %312 = arith.addf %310, %311 : vector<16x256xf32>
    %cst_122 = arith.constant 2.000000e-01 : f32
    %313 = vector.broadcast %cst_122 : f32 to vector<16x256xf32>
    %314 = arith.mulf %313, %312 : vector<16x256xf32>
    %315 = arith.addf %24, %314 : vector<16x256xf32>
    %316 = arith.truncf %315 : vector<16x256xf32> to vector<16x256xbf16>
    %317 = tpu.concatenate %21, %316, %21 in 1 : vector<16x17xbf16>, vector<16x256xbf16>, vector<16x17xbf16> -> vector<16x290xbf16>
    %318 = vector.extract_strided_slice %317 {offsets = [0, 0], sizes = [16, 256], strides = [1, 1]} : vector<16x290xbf16> to vector<16x256xbf16>
    %c0_i32_123 = arith.constant 0 : i32
    %319 = arith.sitofp %c0_i32_123 : i32 to bf16
    %320 = vector.shape_cast %18 : vector<1x256xi1> to vector<1x256xi1>
    %321 = vector.broadcast %320 : vector<1x256xi1> to vector<16x256xi1>
    %322 = vector.broadcast %319 : bf16 to vector<16x256xbf16>
    %323 = arith.select %321, %318, %322 : vector<16x256xi1>, vector<16x256xbf16>
    %c0_124 = arith.constant 0 : index
    %c0_125 = arith.constant 0 : index
    %324 = vector.load %arg33[%c0_124, %c0_125] : memref<432x256xbf16, #tpu.memory_space<vmem>>, vector<16x256xbf16>
    tpu.vector_store %arg33[%c0_124, %c0_125], %323 {strides = array<i32>} : memref<432x256xbf16, #tpu.memory_space<vmem>>, vector<16x256xbf16>,
    %325 = vector.extract_strided_slice %317 {offsets = [0, 1], sizes = [16, 256], strides = [1, 1]} : vector<16x290xbf16> to vector<16x256xbf16>
    %c16_126 = arith.constant 16 : index
    %c0_127 = arith.constant 0 : index
    %326 = vector.load %arg33[%c16_126, %c0_127] : memref<432x256xbf16, #tpu.memory_space<vmem>>, vector<16x256xbf16>
    tpu.vector_store %arg33[%c16_126, %c0_127], %325 {strides = array<i32>} : memref<432x256xbf16, #tpu.memory_space<vmem>>, vector<16x256xbf16>,
    %327 = vector.extract_strided_slice %317 {offsets = [0, 2], sizes = [16, 256], strides = [1, 1]} : vector<16x290xbf16> to vector<16x256xbf16>
    %c0_i32_128 = arith.constant 0 : i32
    %328 = arith.sitofp %c0_i32_128 : i32 to bf16
    %329 = vector.shape_cast %20 : vector<1x256xi1> to vector<1x256xi1>
    %330 = vector.broadcast %329 : vector<1x256xi1> to vector<16x256xi1>
    %331 = vector.broadcast %328 : bf16 to vector<16x256xbf16>
    %332 = arith.select %330, %327, %331 : vector<16x256xi1>, vector<16x256xbf16>
    %c32_129 = arith.constant 32 : index
    %c0_130 = arith.constant 0 : index
    %333 = vector.load %arg33[%c32_129, %c0_130] : memref<432x256xbf16, #tpu.memory_space<vmem>>, vector<16x256xbf16>
    tpu.vector_store %arg33[%c32_129, %c0_130], %332 {strides = array<i32>} : memref<432x256xbf16, #tpu.memory_space<vmem>>, vector<16x256xbf16>,
    %334 = vector.extract_strided_slice %317 {offsets = [0, 16], sizes = [16, 256], strides = [1, 1]} : vector<16x290xbf16> to vector<16x256xbf16>
    %c0_i32_131 = arith.constant 0 : i32
    %335 = arith.sitofp %c0_i32_131 : i32 to bf16
    %336 = vector.shape_cast %18 : vector<1x256xi1> to vector<1x256xi1>
    %337 = vector.broadcast %336 : vector<1x256xi1> to vector<16x256xi1>
    %338 = vector.broadcast %335 : bf16 to vector<16x256xbf16>
    %339 = arith.select %337, %334, %338 : vector<16x256xi1>, vector<16x256xbf16>
    %c48_132 = arith.constant 48 : index
    %c0_133 = arith.constant 0 : index
    %340 = vector.load %arg33[%c48_132, %c0_133] : memref<432x256xbf16, #tpu.memory_space<vmem>>, vector<16x256xbf16>
    tpu.vector_store %arg33[%c48_132, %c0_133], %339 {strides = array<i32>} : memref<432x256xbf16, #tpu.memory_space<vmem>>, vector<16x256xbf16>,
    %341 = vector.extract_strided_slice %317 {offsets = [0, 17], sizes = [16, 256], strides = [1, 1]} : vector<16x290xbf16> to vector<16x256xbf16>
    %c64_134 = arith.constant 64 : index
    %c0_135 = arith.constant 0 : index
    %342 = vector.load %arg33[%c64_134, %c0_135] : memref<432x256xbf16, #tpu.memory_space<vmem>>, vector<16x256xbf16>
    tpu.vector_store %arg33[%c64_134, %c0_135], %341 {strides = array<i32>} : memref<432x256xbf16, #tpu.memory_space<vmem>>, vector<16x256xbf16>,
    %343 = vector.extract_strided_slice %317 {offsets = [0, 18], sizes = [16, 256], strides = [1, 1]} : vector<16x290xbf16> to vector<16x256xbf16>
    %c0_i32_136 = arith.constant 0 : i32
    %344 = arith.sitofp %c0_i32_136 : i32 to bf16
    %345 = vector.shape_cast %20 : vector<1x256xi1> to vector<1x256xi1>
    %346 = vector.broadcast %345 : vector<1x256xi1> to vector<16x256xi1>
    %347 = vector.broadcast %344 : bf16 to vector<16x256xbf16>
    %348 = arith.select %346, %343, %347 : vector<16x256xi1>, vector<16x256xbf16>
    %c80_137 = arith.constant 80 : index
    %c0_138 = arith.constant 0 : index
    %349 = vector.load %arg33[%c80_137, %c0_138] : memref<432x256xbf16, #tpu.memory_space<vmem>>, vector<16x256xbf16>
    tpu.vector_store %arg33[%c80_137, %c0_138], %348 {strides = array<i32>} : memref<432x256xbf16, #tpu.memory_space<vmem>>, vector<16x256xbf16>,
    %350 = vector.extract_strided_slice %317 {offsets = [0, 32], sizes = [16, 256], strides = [1, 1]} : vector<16x290xbf16> to vector<16x256xbf16>
    %c0_i32_139 = arith.constant 0 : i32
    %351 = arith.sitofp %c0_i32_139 : i32 to bf16
    %352 = vector.shape_cast %18 : vector<1x256xi1> to vector<1x256xi1>
    %353 = vector.broadcast %352 : vector<1x256xi1> to vector<16x256xi1>
    %354 = vector.broadcast %351 : bf16 to vector<16x256xbf16>
    %355 = arith.select %353, %350, %354 : vector<16x256xi1>, vector<16x256xbf16>
    %c96_140 = arith.constant 96 : index
    %c0_141 = arith.constant 0 : index
    %356 = vector.load %arg33[%c96_140, %c0_141] : memref<432x256xbf16, #tpu.memory_space<vmem>>, vector<16x256xbf16>
    tpu.vector_store %arg33[%c96_140, %c0_141], %355 {strides = array<i32>} : memref<432x256xbf16, #tpu.memory_space<vmem>>, vector<16x256xbf16>,
    %357 = vector.extract_strided_slice %317 {offsets = [0, 33], sizes = [16, 256], strides = [1, 1]} : vector<16x290xbf16> to vector<16x256xbf16>
    %c112_142 = arith.constant 112 : index
    %c0_143 = arith.constant 0 : index
    %358 = vector.load %arg33[%c112_142, %c0_143] : memref<432x256xbf16, #tpu.memory_space<vmem>>, vector<16x256xbf16>
    tpu.vector_store %arg33[%c112_142, %c0_143], %357 {strides = array<i32>} : memref<432x256xbf16, #tpu.memory_space<vmem>>, vector<16x256xbf16>,
    %359 = vector.extract_strided_slice %317 {offsets = [0, 34], sizes = [16, 256], strides = [1, 1]} : vector<16x290xbf16> to vector<16x256xbf16>
    %c0_i32_144 = arith.constant 0 : i32
    %360 = arith.sitofp %c0_i32_144 : i32 to bf16
    %361 = vector.shape_cast %20 : vector<1x256xi1> to vector<1x256xi1>
    %362 = vector.broadcast %361 : vector<1x256xi1> to vector<16x256xi1>
    %363 = vector.broadcast %360 : bf16 to vector<16x256xbf16>
    %364 = arith.select %362, %359, %363 : vector<16x256xi1>, vector<16x256xbf16>
    %c128_145 = arith.constant 128 : index
    %c0_146 = arith.constant 0 : index
    %365 = vector.load %arg33[%c128_145, %c0_146] : memref<432x256xbf16, #tpu.memory_space<vmem>>, vector<16x256xbf16>
    tpu.vector_store %arg33[%c128_145, %c0_146], %364 {strides = array<i32>} : memref<432x256xbf16, #tpu.memory_space<vmem>>, vector<16x256xbf16>,
    %c0_147 = arith.constant 0 : index
    %c0_148 = arith.constant 0 : index
    %366 = vector.load %arg7[%c0_147, %c0_148] : memref<8x144xbf16, #tpu.memory_space<vmem>>, vector<8x144xbf16>
    %c0_149 = arith.constant 0 : index
    %c0_150 = arith.constant 0 : index
    %367 = vector.load %arg22[%c0_149, %c0_150] : memref<8x1xf32, #tpu.memory_space<vmem>>, vector<8x1xf32>
    %c0_151 = arith.constant 0 : index
    %c0_152 = arith.constant 0 : index
    %368 = vector.load %arg33[%c0_151, %c0_152] : memref<432x256xbf16, #tpu.memory_space<vmem>>, vector<144x256xbf16>
    %cst_153 = arith.constant dense<0.000000e+00> : vector<8x256xf32>
    %369 = tpu.matmul %366, %368, %cst_153 {dimension_numbers = #tpu.dot_dimension_numbers<[1], [0], [0], [1], [0, 0, 1, 1], [], []>} : vector<8x144xbf16>, vector<144x256xbf16>, vector<8x256xf32> -> vector<8x256xf32>
    %370 = vector.broadcast %367 : vector<8x1xf32> to vector<8x256xf32>
    %371 = arith.addf %369, %370 : vector<8x256xf32>
    %cst_154 = arith.constant 0.000000e+00 : f32
    %372 = vector.broadcast %cst_154 : f32 to vector<8x256xf32>
    %373 = arith.maximumf %371, %372 : vector<8x256xf32>
    %374 = arith.truncf %373 : vector<8x256xf32> to vector<8x256xbf16>
    %375 = tpu.concatenate %22, %374, %22 in 1 : vector<8x17xbf16>, vector<8x256xbf16>, vector<8x17xbf16> -> vector<8x290xbf16>
    %376 = vector.extract_strided_slice %375 {offsets = [0, 0], sizes = [8, 256], strides = [1, 1]} : vector<8x290xbf16> to vector<8x256xbf16>
    %c0_i32_155 = arith.constant 0 : i32
    %377 = arith.sitofp %c0_i32_155 : i32 to bf16
    %378 = vector.shape_cast %18 : vector<1x256xi1> to vector<1x256xi1>
    %379 = vector.broadcast %378 : vector<1x256xi1> to vector<8x256xi1>
    %380 = vector.broadcast %377 : bf16 to vector<8x256xbf16>
    %381 = arith.select %379, %376, %380 : vector<8x256xi1>, vector<8x256xbf16>
    %c144_156 = arith.constant 144 : index
    %c0_157 = arith.constant 0 : index
    %382 = vector.load %arg33[%c144_156, %c0_157] : memref<432x256xbf16, #tpu.memory_space<vmem>>, vector<8x256xbf16>
    tpu.vector_store %arg33[%c144_156, %c0_157], %381 {strides = array<i32>} : memref<432x256xbf16, #tpu.memory_space<vmem>>, vector<8x256xbf16>,
    %383 = vector.extract_strided_slice %375 {offsets = [0, 1], sizes = [8, 256], strides = [1, 1]} : vector<8x290xbf16> to vector<8x256xbf16>
    %c152_158 = arith.constant 152 : index
    %c0_159 = arith.constant 0 : index
    %384 = vector.load %arg33[%c152_158, %c0_159] : memref<432x256xbf16, #tpu.memory_space<vmem>>, vector<8x256xbf16>
    tpu.vector_store %arg33[%c152_158, %c0_159], %383 {strides = array<i32>} : memref<432x256xbf16, #tpu.memory_space<vmem>>, vector<8x256xbf16>,
    %385 = vector.extract_strided_slice %375 {offsets = [0, 2], sizes = [8, 256], strides = [1, 1]} : vector<8x290xbf16> to vector<8x256xbf16>
    %c0_i32_160 = arith.constant 0 : i32
    %386 = arith.sitofp %c0_i32_160 : i32 to bf16
    %387 = vector.shape_cast %20 : vector<1x256xi1> to vector<1x256xi1>
    %388 = vector.broadcast %387 : vector<1x256xi1> to vector<8x256xi1>
    %389 = vector.broadcast %386 : bf16 to vector<8x256xbf16>
    %390 = arith.select %388, %385, %389 : vector<8x256xi1>, vector<8x256xbf16>
    %c160_161 = arith.constant 160 : index
    %c0_162 = arith.constant 0 : index
    %391 = vector.load %arg33[%c160_161, %c0_162] : memref<432x256xbf16, #tpu.memory_space<vmem>>, vector<8x256xbf16>
    tpu.vector_store %arg33[%c160_161, %c0_162], %390 {strides = array<i32>} : memref<432x256xbf16, #tpu.memory_space<vmem>>, vector<8x256xbf16>,
    %392 = vector.extract_strided_slice %375 {offsets = [0, 16], sizes = [8, 256], strides = [1, 1]} : vector<8x290xbf16> to vector<8x256xbf16>
    %c0_i32_163 = arith.constant 0 : i32
    %393 = arith.sitofp %c0_i32_163 : i32 to bf16
    %394 = vector.shape_cast %18 : vector<1x256xi1> to vector<1x256xi1>
    %395 = vector.broadcast %394 : vector<1x256xi1> to vector<8x256xi1>
    %396 = vector.broadcast %393 : bf16 to vector<8x256xbf16>
    %397 = arith.select %395, %392, %396 : vector<8x256xi1>, vector<8x256xbf16>
    %c168_164 = arith.constant 168 : index
    %c0_165 = arith.constant 0 : index
    %398 = vector.load %arg33[%c168_164, %c0_165] : memref<432x256xbf16, #tpu.memory_space<vmem>>, vector<8x256xbf16>
    tpu.vector_store %arg33[%c168_164, %c0_165], %397 {strides = array<i32>} : memref<432x256xbf16, #tpu.memory_space<vmem>>, vector<8x256xbf16>,
    %399 = vector.extract_strided_slice %375 {offsets = [0, 17], sizes = [8, 256], strides = [1, 1]} : vector<8x290xbf16> to vector<8x256xbf16>
    %c176_166 = arith.constant 176 : index
    %c0_167 = arith.constant 0 : index
    %400 = vector.load %arg33[%c176_166, %c0_167] : memref<432x256xbf16, #tpu.memory_space<vmem>>, vector<8x256xbf16>
    tpu.vector_store %arg33[%c176_166, %c0_167], %399 {strides = array<i32>} : memref<432x256xbf16, #tpu.memory_space<vmem>>, vector<8x256xbf16>,
    %401 = vector.extract_strided_slice %375 {offsets = [0, 18], sizes = [8, 256], strides = [1, 1]} : vector<8x290xbf16> to vector<8x256xbf16>
    %c0_i32_168 = arith.constant 0 : i32
    %402 = arith.sitofp %c0_i32_168 : i32 to bf16
    %403 = vector.shape_cast %20 : vector<1x256xi1> to vector<1x256xi1>
    %404 = vector.broadcast %403 : vector<1x256xi1> to vector<8x256xi1>
    %405 = vector.broadcast %402 : bf16 to vector<8x256xbf16>
    %406 = arith.select %404, %401, %405 : vector<8x256xi1>, vector<8x256xbf16>
    %c184_169 = arith.constant 184 : index
    %c0_170 = arith.constant 0 : index
    %407 = vector.load %arg33[%c184_169, %c0_170] : memref<432x256xbf16, #tpu.memory_space<vmem>>, vector<8x256xbf16>
    tpu.vector_store %arg33[%c184_169, %c0_170], %406 {strides = array<i32>} : memref<432x256xbf16, #tpu.memory_space<vmem>>, vector<8x256xbf16>,
    %408 = vector.extract_strided_slice %375 {offsets = [0, 32], sizes = [8, 256], strides = [1, 1]} : vector<8x290xbf16> to vector<8x256xbf16>
    %c0_i32_171 = arith.constant 0 : i32
    %409 = arith.sitofp %c0_i32_171 : i32 to bf16
    %410 = vector.shape_cast %18 : vector<1x256xi1> to vector<1x256xi1>
    %411 = vector.broadcast %410 : vector<1x256xi1> to vector<8x256xi1>
    %412 = vector.broadcast %409 : bf16 to vector<8x256xbf16>
    %413 = arith.select %411, %408, %412 : vector<8x256xi1>, vector<8x256xbf16>
    %c192_172 = arith.constant 192 : index
    %c0_173 = arith.constant 0 : index
    %414 = vector.load %arg33[%c192_172, %c0_173] : memref<432x256xbf16, #tpu.memory_space<vmem>>, vector<8x256xbf16>
    tpu.vector_store %arg33[%c192_172, %c0_173], %413 {strides = array<i32>} : memref<432x256xbf16, #tpu.memory_space<vmem>>, vector<8x256xbf16>,
    %415 = vector.extract_strided_slice %375 {offsets = [0, 33], sizes = [8, 256], strides = [1, 1]} : vector<8x290xbf16> to vector<8x256xbf16>
    %c200_174 = arith.constant 200 : index
    %c0_175 = arith.constant 0 : index
    %416 = vector.load %arg33[%c200_174, %c0_175] : memref<432x256xbf16, #tpu.memory_space<vmem>>, vector<8x256xbf16>
    tpu.vector_store %arg33[%c200_174, %c0_175], %415 {strides = array<i32>} : memref<432x256xbf16, #tpu.memory_space<vmem>>, vector<8x256xbf16>,
    %417 = vector.extract_strided_slice %375 {offsets = [0, 34], sizes = [8, 256], strides = [1, 1]} : vector<8x290xbf16> to vector<8x256xbf16>
    %c0_i32_176 = arith.constant 0 : i32
    %418 = arith.sitofp %c0_i32_176 : i32 to bf16
    %419 = vector.shape_cast %20 : vector<1x256xi1> to vector<1x256xi1>
    %420 = vector.broadcast %419 : vector<1x256xi1> to vector<8x256xi1>
    %421 = vector.broadcast %418 : bf16 to vector<8x256xbf16>
    %422 = arith.select %420, %417, %421 : vector<8x256xi1>, vector<8x256xbf16>
    %c208_177 = arith.constant 208 : index
    %c0_178 = arith.constant 0 : index
    %423 = vector.load %arg33[%c208_177, %c0_178] : memref<432x256xbf16, #tpu.memory_space<vmem>>, vector<8x256xbf16>
    tpu.vector_store %arg33[%c208_177, %c0_178], %422 {strides = array<i32>} : memref<432x256xbf16, #tpu.memory_space<vmem>>, vector<8x256xbf16>,
    %c0_179 = arith.constant 0 : index
    %c0_180 = arith.constant 0 : index
    %424 = vector.load %arg8[%c0_179, %c0_180] : memref<8x216xbf16, #tpu.memory_space<vmem>>, vector<8x216xbf16>
    %c0_181 = arith.constant 0 : index
    %c0_182 = arith.constant 0 : index
    %425 = vector.load %arg23[%c0_181, %c0_182] : memref<8x1xf32, #tpu.memory_space<vmem>>, vector<8x1xf32>
    %c0_183 = arith.constant 0 : index
    %c0_184 = arith.constant 0 : index
    %426 = vector.load %arg33[%c0_183, %c0_184] : memref<432x256xbf16, #tpu.memory_space<vmem>>, vector<216x256xbf16>
    %cst_185 = arith.constant dense<0.000000e+00> : vector<8x256xf32>
    %427 = tpu.matmul %424, %426, %cst_185 {dimension_numbers = #tpu.dot_dimension_numbers<[1], [0], [0], [1], [0, 0, 1, 1], [], []>} : vector<8x216xbf16>, vector<216x256xbf16>, vector<8x256xf32> -> vector<8x256xf32>
    %428 = vector.broadcast %425 : vector<8x1xf32> to vector<8x256xf32>
    %429 = arith.addf %427, %428 : vector<8x256xf32>
    %cst_186 = arith.constant 0.000000e+00 : f32
    %430 = vector.broadcast %cst_186 : f32 to vector<8x256xf32>
    %431 = arith.maximumf %429, %430 : vector<8x256xf32>
    %432 = arith.truncf %431 : vector<8x256xf32> to vector<8x256xbf16>
    %433 = tpu.concatenate %22, %432, %22 in 1 : vector<8x17xbf16>, vector<8x256xbf16>, vector<8x17xbf16> -> vector<8x290xbf16>
    %434 = vector.extract_strided_slice %433 {offsets = [0, 0], sizes = [8, 256], strides = [1, 1]} : vector<8x290xbf16> to vector<8x256xbf16>
    %c0_i32_187 = arith.constant 0 : i32
    %435 = arith.sitofp %c0_i32_187 : i32 to bf16
    %436 = vector.shape_cast %18 : vector<1x256xi1> to vector<1x256xi1>
    %437 = vector.broadcast %436 : vector<1x256xi1> to vector<8x256xi1>
    %438 = vector.broadcast %435 : bf16 to vector<8x256xbf16>
    %439 = arith.select %437, %434, %438 : vector<8x256xi1>, vector<8x256xbf16>
    %c216_188 = arith.constant 216 : index
    %c0_189 = arith.constant 0 : index
    %440 = vector.load %arg33[%c216_188, %c0_189] : memref<432x256xbf16, #tpu.memory_space<vmem>>, vector<8x256xbf16>
    tpu.vector_store %arg33[%c216_188, %c0_189], %439 {strides = array<i32>} : memref<432x256xbf16, #tpu.memory_space<vmem>>, vector<8x256xbf16>,
    %441 = vector.extract_strided_slice %433 {offsets = [0, 1], sizes = [8, 256], strides = [1, 1]} : vector<8x290xbf16> to vector<8x256xbf16>
    %c224_190 = arith.constant 224 : index
    %c0_191 = arith.constant 0 : index
    %442 = vector.load %arg33[%c224_190, %c0_191] : memref<432x256xbf16, #tpu.memory_space<vmem>>, vector<8x256xbf16>
    tpu.vector_store %arg33[%c224_190, %c0_191], %441 {strides = array<i32>} : memref<432x256xbf16, #tpu.memory_space<vmem>>, vector<8x256xbf16>,
    %443 = vector.extract_strided_slice %433 {offsets = [0, 2], sizes = [8, 256], strides = [1, 1]} : vector<8x290xbf16> to vector<8x256xbf16>
    %c0_i32_192 = arith.constant 0 : i32
    %444 = arith.sitofp %c0_i32_192 : i32 to bf16
    %445 = vector.shape_cast %20 : vector<1x256xi1> to vector<1x256xi1>
    %446 = vector.broadcast %445 : vector<1x256xi1> to vector<8x256xi1>
    %447 = vector.broadcast %444 : bf16 to vector<8x256xbf16>
    %448 = arith.select %446, %443, %447 : vector<8x256xi1>, vector<8x256xbf16>
    %c232_193 = arith.constant 232 : index
    %c0_194 = arith.constant 0 : index
    %449 = vector.load %arg33[%c232_193, %c0_194] : memref<432x256xbf16, #tpu.memory_space<vmem>>, vector<8x256xbf16>
    tpu.vector_store %arg33[%c232_193, %c0_194], %448 {strides = array<i32>} : memref<432x256xbf16, #tpu.memory_space<vmem>>, vector<8x256xbf16>,
    %450 = vector.extract_strided_slice %433 {offsets = [0, 16], sizes = [8, 256], strides = [1, 1]} : vector<8x290xbf16> to vector<8x256xbf16>
    %c0_i32_195 = arith.constant 0 : i32
    %451 = arith.sitofp %c0_i32_195 : i32 to bf16
    %452 = vector.shape_cast %18 : vector<1x256xi1> to vector<1x256xi1>
    %453 = vector.broadcast %452 : vector<1x256xi1> to vector<8x256xi1>
    %454 = vector.broadcast %451 : bf16 to vector<8x256xbf16>
    %455 = arith.select %453, %450, %454 : vector<8x256xi1>, vector<8x256xbf16>
    %c240_196 = arith.constant 240 : index
    %c0_197 = arith.constant 0 : index
    %456 = vector.load %arg33[%c240_196, %c0_197] : memref<432x256xbf16, #tpu.memory_space<vmem>>, vector<8x256xbf16>
    tpu.vector_store %arg33[%c240_196, %c0_197], %455 {strides = array<i32>} : memref<432x256xbf16, #tpu.memory_space<vmem>>, vector<8x256xbf16>,
    %457 = vector.extract_strided_slice %433 {offsets = [0, 17], sizes = [8, 256], strides = [1, 1]} : vector<8x290xbf16> to vector<8x256xbf16>
    %c248_198 = arith.constant 248 : index
    %c0_199 = arith.constant 0 : index
    %458 = vector.load %arg33[%c248_198, %c0_199] : memref<432x256xbf16, #tpu.memory_space<vmem>>, vector<8x256xbf16>
    tpu.vector_store %arg33[%c248_198, %c0_199], %457 {strides = array<i32>} : memref<432x256xbf16, #tpu.memory_space<vmem>>, vector<8x256xbf16>,
    %459 = vector.extract_strided_slice %433 {offsets = [0, 18], sizes = [8, 256], strides = [1, 1]} : vector<8x290xbf16> to vector<8x256xbf16>
    %c0_i32_200 = arith.constant 0 : i32
    %460 = arith.sitofp %c0_i32_200 : i32 to bf16
    %461 = vector.shape_cast %20 : vector<1x256xi1> to vector<1x256xi1>
    %462 = vector.broadcast %461 : vector<1x256xi1> to vector<8x256xi1>
    %463 = vector.broadcast %460 : bf16 to vector<8x256xbf16>
    %464 = arith.select %462, %459, %463 : vector<8x256xi1>, vector<8x256xbf16>
    %c256_201 = arith.constant 256 : index
    %c0_202 = arith.constant 0 : index
    %465 = vector.load %arg33[%c256_201, %c0_202] : memref<432x256xbf16, #tpu.memory_space<vmem>>, vector<8x256xbf16>
    tpu.vector_store %arg33[%c256_201, %c0_202], %464 {strides = array<i32>} : memref<432x256xbf16, #tpu.memory_space<vmem>>, vector<8x256xbf16>,
    %466 = vector.extract_strided_slice %433 {offsets = [0, 32], sizes = [8, 256], strides = [1, 1]} : vector<8x290xbf16> to vector<8x256xbf16>
    %c0_i32_203 = arith.constant 0 : i32
    %467 = arith.sitofp %c0_i32_203 : i32 to bf16
    %468 = vector.shape_cast %18 : vector<1x256xi1> to vector<1x256xi1>
    %469 = vector.broadcast %468 : vector<1x256xi1> to vector<8x256xi1>
    %470 = vector.broadcast %467 : bf16 to vector<8x256xbf16>
    %471 = arith.select %469, %466, %470 : vector<8x256xi1>, vector<8x256xbf16>
    %c264_204 = arith.constant 264 : index
    %c0_205 = arith.constant 0 : index
    %472 = vector.load %arg33[%c264_204, %c0_205] : memref<432x256xbf16, #tpu.memory_space<vmem>>, vector<8x256xbf16>
    tpu.vector_store %arg33[%c264_204, %c0_205], %471 {strides = array<i32>} : memref<432x256xbf16, #tpu.memory_space<vmem>>, vector<8x256xbf16>,
    %473 = vector.extract_strided_slice %433 {offsets = [0, 33], sizes = [8, 256], strides = [1, 1]} : vector<8x290xbf16> to vector<8x256xbf16>
    %c272_206 = arith.constant 272 : index
    %c0_207 = arith.constant 0 : index
    %474 = vector.load %arg33[%c272_206, %c0_207] : memref<432x256xbf16, #tpu.memory_space<vmem>>, vector<8x256xbf16>
    tpu.vector_store %arg33[%c272_206, %c0_207], %473 {strides = array<i32>} : memref<432x256xbf16, #tpu.memory_space<vmem>>, vector<8x256xbf16>,
    %475 = vector.extract_strided_slice %433 {offsets = [0, 34], sizes = [8, 256], strides = [1, 1]} : vector<8x290xbf16> to vector<8x256xbf16>
    %c0_i32_208 = arith.constant 0 : i32
    %476 = arith.sitofp %c0_i32_208 : i32 to bf16
    %477 = vector.shape_cast %20 : vector<1x256xi1> to vector<1x256xi1>
    %478 = vector.broadcast %477 : vector<1x256xi1> to vector<8x256xi1>
    %479 = vector.broadcast %476 : bf16 to vector<8x256xbf16>
    %480 = arith.select %478, %475, %479 : vector<8x256xi1>, vector<8x256xbf16>
    %c280_209 = arith.constant 280 : index
    %c0_210 = arith.constant 0 : index
    %481 = vector.load %arg33[%c280_209, %c0_210] : memref<432x256xbf16, #tpu.memory_space<vmem>>, vector<8x256xbf16>
    tpu.vector_store %arg33[%c280_209, %c0_210], %480 {strides = array<i32>} : memref<432x256xbf16, #tpu.memory_space<vmem>>, vector<8x256xbf16>,
    %c0_211 = arith.constant 0 : index
    %c0_212 = arith.constant 0 : index
    %482 = vector.load %arg9[%c0_211, %c0_212] : memref<8x288xbf16, #tpu.memory_space<vmem>>, vector<8x288xbf16>
    %c0_213 = arith.constant 0 : index
    %c0_214 = arith.constant 0 : index
    %483 = vector.load %arg24[%c0_213, %c0_214] : memref<8x1xf32, #tpu.memory_space<vmem>>, vector<8x1xf32>
    %c0_215 = arith.constant 0 : index
    %c0_216 = arith.constant 0 : index
    %484 = vector.load %arg33[%c0_215, %c0_216] : memref<432x256xbf16, #tpu.memory_space<vmem>>, vector<288x256xbf16>
    %cst_217 = arith.constant dense<0.000000e+00> : vector<8x256xf32>
    %485 = tpu.matmul %482, %484, %cst_217 {dimension_numbers = #tpu.dot_dimension_numbers<[1], [0], [0], [1], [0, 0, 1, 1], [], []>} : vector<8x288xbf16>, vector<288x256xbf16>, vector<8x256xf32> -> vector<8x256xf32>
    %486 = vector.broadcast %483 : vector<8x1xf32> to vector<8x256xf32>
    %487 = arith.addf %485, %486 : vector<8x256xf32>
    %cst_218 = arith.constant 0.000000e+00 : f32
    %488 = vector.broadcast %cst_218 : f32 to vector<8x256xf32>
    %489 = arith.maximumf %487, %488 : vector<8x256xf32>
    %490 = arith.truncf %489 : vector<8x256xf32> to vector<8x256xbf16>
    %491 = tpu.concatenate %22, %490, %22 in 1 : vector<8x17xbf16>, vector<8x256xbf16>, vector<8x17xbf16> -> vector<8x290xbf16>
    %492 = vector.extract_strided_slice %491 {offsets = [0, 0], sizes = [8, 256], strides = [1, 1]} : vector<8x290xbf16> to vector<8x256xbf16>
    %c0_i32_219 = arith.constant 0 : i32
    %493 = arith.sitofp %c0_i32_219 : i32 to bf16
    %494 = vector.shape_cast %18 : vector<1x256xi1> to vector<1x256xi1>
    %495 = vector.broadcast %494 : vector<1x256xi1> to vector<8x256xi1>
    %496 = vector.broadcast %493 : bf16 to vector<8x256xbf16>
    %497 = arith.select %495, %492, %496 : vector<8x256xi1>, vector<8x256xbf16>
    %c288_220 = arith.constant 288 : index
    %c0_221 = arith.constant 0 : index
    %498 = vector.load %arg33[%c288_220, %c0_221] : memref<432x256xbf16, #tpu.memory_space<vmem>>, vector<8x256xbf16>
    tpu.vector_store %arg33[%c288_220, %c0_221], %497 {strides = array<i32>} : memref<432x256xbf16, #tpu.memory_space<vmem>>, vector<8x256xbf16>,
    %499 = vector.extract_strided_slice %491 {offsets = [0, 1], sizes = [8, 256], strides = [1, 1]} : vector<8x290xbf16> to vector<8x256xbf16>
    %c296_222 = arith.constant 296 : index
    %c0_223 = arith.constant 0 : index
    %500 = vector.load %arg33[%c296_222, %c0_223] : memref<432x256xbf16, #tpu.memory_space<vmem>>, vector<8x256xbf16>
    tpu.vector_store %arg33[%c296_222, %c0_223], %499 {strides = array<i32>} : memref<432x256xbf16, #tpu.memory_space<vmem>>, vector<8x256xbf16>,
    %501 = vector.extract_strided_slice %491 {offsets = [0, 2], sizes = [8, 256], strides = [1, 1]} : vector<8x290xbf16> to vector<8x256xbf16>
    %c0_i32_224 = arith.constant 0 : i32
    %502 = arith.sitofp %c0_i32_224 : i32 to bf16
    %503 = vector.shape_cast %20 : vector<1x256xi1> to vector<1x256xi1>
    %504 = vector.broadcast %503 : vector<1x256xi1> to vector<8x256xi1>
    %505 = vector.broadcast %502 : bf16 to vector<8x256xbf16>
    %506 = arith.select %504, %501, %505 : vector<8x256xi1>, vector<8x256xbf16>
    %c304_225 = arith.constant 304 : index
    %c0_226 = arith.constant 0 : index
    %507 = vector.load %arg33[%c304_225, %c0_226] : memref<432x256xbf16, #tpu.memory_space<vmem>>, vector<8x256xbf16>
    tpu.vector_store %arg33[%c304_225, %c0_226], %506 {strides = array<i32>} : memref<432x256xbf16, #tpu.memory_space<vmem>>, vector<8x256xbf16>,
    %508 = vector.extract_strided_slice %491 {offsets = [0, 16], sizes = [8, 256], strides = [1, 1]} : vector<8x290xbf16> to vector<8x256xbf16>
    %c0_i32_227 = arith.constant 0 : i32
    %509 = arith.sitofp %c0_i32_227 : i32 to bf16
    %510 = vector.shape_cast %18 : vector<1x256xi1> to vector<1x256xi1>
    %511 = vector.broadcast %510 : vector<1x256xi1> to vector<8x256xi1>
    %512 = vector.broadcast %509 : bf16 to vector<8x256xbf16>
    %513 = arith.select %511, %508, %512 : vector<8x256xi1>, vector<8x256xbf16>
    %c312_228 = arith.constant 312 : index
    %c0_229 = arith.constant 0 : index
    %514 = vector.load %arg33[%c312_228, %c0_229] : memref<432x256xbf16, #tpu.memory_space<vmem>>, vector<8x256xbf16>
    tpu.vector_store %arg33[%c312_228, %c0_229], %513 {strides = array<i32>} : memref<432x256xbf16, #tpu.memory_space<vmem>>, vector<8x256xbf16>,
    %515 = vector.extract_strided_slice %491 {offsets = [0, 17], sizes = [8, 256], strides = [1, 1]} : vector<8x290xbf16> to vector<8x256xbf16>
    %c320_230 = arith.constant 320 : index
    %c0_231 = arith.constant 0 : index
    %516 = vector.load %arg33[%c320_230, %c0_231] : memref<432x256xbf16, #tpu.memory_space<vmem>>, vector<8x256xbf16>
    tpu.vector_store %arg33[%c320_230, %c0_231], %515 {strides = array<i32>} : memref<432x256xbf16, #tpu.memory_space<vmem>>, vector<8x256xbf16>,
    %517 = vector.extract_strided_slice %491 {offsets = [0, 18], sizes = [8, 256], strides = [1, 1]} : vector<8x290xbf16> to vector<8x256xbf16>
    %c0_i32_232 = arith.constant 0 : i32
    %518 = arith.sitofp %c0_i32_232 : i32 to bf16
    %519 = vector.shape_cast %20 : vector<1x256xi1> to vector<1x256xi1>
    %520 = vector.broadcast %519 : vector<1x256xi1> to vector<8x256xi1>
    %521 = vector.broadcast %518 : bf16 to vector<8x256xbf16>
    %522 = arith.select %520, %517, %521 : vector<8x256xi1>, vector<8x256xbf16>
    %c328_233 = arith.constant 328 : index
    %c0_234 = arith.constant 0 : index
    %523 = vector.load %arg33[%c328_233, %c0_234] : memref<432x256xbf16, #tpu.memory_space<vmem>>, vector<8x256xbf16>
    tpu.vector_store %arg33[%c328_233, %c0_234], %522 {strides = array<i32>} : memref<432x256xbf16, #tpu.memory_space<vmem>>, vector<8x256xbf16>,
    %524 = vector.extract_strided_slice %491 {offsets = [0, 32], sizes = [8, 256], strides = [1, 1]} : vector<8x290xbf16> to vector<8x256xbf16>
    %c0_i32_235 = arith.constant 0 : i32
    %525 = arith.sitofp %c0_i32_235 : i32 to bf16
    %526 = vector.shape_cast %18 : vector<1x256xi1> to vector<1x256xi1>
    %527 = vector.broadcast %526 : vector<1x256xi1> to vector<8x256xi1>
    %528 = vector.broadcast %525 : bf16 to vector<8x256xbf16>
    %529 = arith.select %527, %524, %528 : vector<8x256xi1>, vector<8x256xbf16>
    %c336_236 = arith.constant 336 : index
    %c0_237 = arith.constant 0 : index
    %530 = vector.load %arg33[%c336_236, %c0_237] : memref<432x256xbf16, #tpu.memory_space<vmem>>, vector<8x256xbf16>
    tpu.vector_store %arg33[%c336_236, %c0_237], %529 {strides = array<i32>} : memref<432x256xbf16, #tpu.memory_space<vmem>>, vector<8x256xbf16>,
    %531 = vector.extract_strided_slice %491 {offsets = [0, 33], sizes = [8, 256], strides = [1, 1]} : vector<8x290xbf16> to vector<8x256xbf16>
    %c344_238 = arith.constant 344 : index
    %c0_239 = arith.constant 0 : index
    %532 = vector.load %arg33[%c344_238, %c0_239] : memref<432x256xbf16, #tpu.memory_space<vmem>>, vector<8x256xbf16>
    tpu.vector_store %arg33[%c344_238, %c0_239], %531 {strides = array<i32>} : memref<432x256xbf16, #tpu.memory_space<vmem>>, vector<8x256xbf16>,
    %533 = vector.extract_strided_slice %491 {offsets = [0, 34], sizes = [8, 256], strides = [1, 1]} : vector<8x290xbf16> to vector<8x256xbf16>
    %c0_i32_240 = arith.constant 0 : i32
    %534 = arith.sitofp %c0_i32_240 : i32 to bf16
    %535 = vector.shape_cast %20 : vector<1x256xi1> to vector<1x256xi1>
    %536 = vector.broadcast %535 : vector<1x256xi1> to vector<8x256xi1>
    %537 = vector.broadcast %534 : bf16 to vector<8x256xbf16>
    %538 = arith.select %536, %533, %537 : vector<8x256xi1>, vector<8x256xbf16>
    %c352_241 = arith.constant 352 : index
    %c0_242 = arith.constant 0 : index
    %539 = vector.load %arg33[%c352_241, %c0_242] : memref<432x256xbf16, #tpu.memory_space<vmem>>, vector<8x256xbf16>
    tpu.vector_store %arg33[%c352_241, %c0_242], %538 {strides = array<i32>} : memref<432x256xbf16, #tpu.memory_space<vmem>>, vector<8x256xbf16>,
    %c0_243 = arith.constant 0 : index
    %c0_244 = arith.constant 0 : index
    %540 = vector.load %arg10[%c0_243, %c0_244] : memref<8x360xbf16, #tpu.memory_space<vmem>>, vector<8x360xbf16>
    %c0_245 = arith.constant 0 : index
    %c0_246 = arith.constant 0 : index
    %541 = vector.load %arg25[%c0_245, %c0_246] : memref<8x1xf32, #tpu.memory_space<vmem>>, vector<8x1xf32>
    %c0_247 = arith.constant 0 : index
    %c0_248 = arith.constant 0 : index
    %542 = vector.load %arg33[%c0_247, %c0_248] : memref<432x256xbf16, #tpu.memory_space<vmem>>, vector<360x256xbf16>
    %cst_249 = arith.constant dense<0.000000e+00> : vector<8x256xf32>
    %543 = tpu.matmul %540, %542, %cst_249 {dimension_numbers = #tpu.dot_dimension_numbers<[1], [0], [0], [1], [0, 0, 1, 1], [], []>} : vector<8x360xbf16>, vector<360x256xbf16>, vector<8x256xf32> -> vector<8x256xf32>
    %544 = vector.broadcast %541 : vector<8x1xf32> to vector<8x256xf32>
    %545 = arith.addf %543, %544 : vector<8x256xf32>
    %cst_250 = arith.constant 0.000000e+00 : f32
    %546 = vector.broadcast %cst_250 : f32 to vector<8x256xf32>
    %547 = arith.maximumf %545, %546 : vector<8x256xf32>
    %548 = arith.truncf %547 : vector<8x256xf32> to vector<8x256xbf16>
    %549 = tpu.concatenate %22, %548, %22 in 1 : vector<8x17xbf16>, vector<8x256xbf16>, vector<8x17xbf16> -> vector<8x290xbf16>
    %550 = vector.extract_strided_slice %549 {offsets = [0, 0], sizes = [8, 256], strides = [1, 1]} : vector<8x290xbf16> to vector<8x256xbf16>
    %c0_i32_251 = arith.constant 0 : i32
    %551 = arith.sitofp %c0_i32_251 : i32 to bf16
    %552 = vector.shape_cast %18 : vector<1x256xi1> to vector<1x256xi1>
    %553 = vector.broadcast %552 : vector<1x256xi1> to vector<8x256xi1>
    %554 = vector.broadcast %551 : bf16 to vector<8x256xbf16>
    %555 = arith.select %553, %550, %554 : vector<8x256xi1>, vector<8x256xbf16>
    %c360_252 = arith.constant 360 : index
    %c0_253 = arith.constant 0 : index
    %556 = vector.load %arg33[%c360_252, %c0_253] : memref<432x256xbf16, #tpu.memory_space<vmem>>, vector<8x256xbf16>
    tpu.vector_store %arg33[%c360_252, %c0_253], %555 {strides = array<i32>} : memref<432x256xbf16, #tpu.memory_space<vmem>>, vector<8x256xbf16>,
    %557 = vector.extract_strided_slice %549 {offsets = [0, 1], sizes = [8, 256], strides = [1, 1]} : vector<8x290xbf16> to vector<8x256xbf16>
    %c368_254 = arith.constant 368 : index
    %c0_255 = arith.constant 0 : index
    %558 = vector.load %arg33[%c368_254, %c0_255] : memref<432x256xbf16, #tpu.memory_space<vmem>>, vector<8x256xbf16>
    tpu.vector_store %arg33[%c368_254, %c0_255], %557 {strides = array<i32>} : memref<432x256xbf16, #tpu.memory_space<vmem>>, vector<8x256xbf16>,
    %559 = vector.extract_strided_slice %549 {offsets = [0, 2], sizes = [8, 256], strides = [1, 1]} : vector<8x290xbf16> to vector<8x256xbf16>
    %c0_i32_256 = arith.constant 0 : i32
    %560 = arith.sitofp %c0_i32_256 : i32 to bf16
    %561 = vector.shape_cast %20 : vector<1x256xi1> to vector<1x256xi1>
    %562 = vector.broadcast %561 : vector<1x256xi1> to vector<8x256xi1>
    %563 = vector.broadcast %560 : bf16 to vector<8x256xbf16>
    %564 = arith.select %562, %559, %563 : vector<8x256xi1>, vector<8x256xbf16>
    %c376_257 = arith.constant 376 : index
    %c0_258 = arith.constant 0 : index
    %565 = vector.load %arg33[%c376_257, %c0_258] : memref<432x256xbf16, #tpu.memory_space<vmem>>, vector<8x256xbf16>
    tpu.vector_store %arg33[%c376_257, %c0_258], %564 {strides = array<i32>} : memref<432x256xbf16, #tpu.memory_space<vmem>>, vector<8x256xbf16>,
    %566 = vector.extract_strided_slice %549 {offsets = [0, 16], sizes = [8, 256], strides = [1, 1]} : vector<8x290xbf16> to vector<8x256xbf16>
    %c0_i32_259 = arith.constant 0 : i32
    %567 = arith.sitofp %c0_i32_259 : i32 to bf16
    %568 = vector.shape_cast %18 : vector<1x256xi1> to vector<1x256xi1>
    %569 = vector.broadcast %568 : vector<1x256xi1> to vector<8x256xi1>
    %570 = vector.broadcast %567 : bf16 to vector<8x256xbf16>
    %571 = arith.select %569, %566, %570 : vector<8x256xi1>, vector<8x256xbf16>
    %c384_260 = arith.constant 384 : index
    %c0_261 = arith.constant 0 : index
    %572 = vector.load %arg33[%c384_260, %c0_261] : memref<432x256xbf16, #tpu.memory_space<vmem>>, vector<8x256xbf16>
    tpu.vector_store %arg33[%c384_260, %c0_261], %571 {strides = array<i32>} : memref<432x256xbf16, #tpu.memory_space<vmem>>, vector<8x256xbf16>,
    %573 = vector.extract_strided_slice %549 {offsets = [0, 17], sizes = [8, 256], strides = [1, 1]} : vector<8x290xbf16> to vector<8x256xbf16>
    %c392_262 = arith.constant 392 : index
    %c0_263 = arith.constant 0 : index
    %574 = vector.load %arg33[%c392_262, %c0_263] : memref<432x256xbf16, #tpu.memory_space<vmem>>, vector<8x256xbf16>
    tpu.vector_store %arg33[%c392_262, %c0_263], %573 {strides = array<i32>} : memref<432x256xbf16, #tpu.memory_space<vmem>>, vector<8x256xbf16>,
    %575 = vector.extract_strided_slice %549 {offsets = [0, 18], sizes = [8, 256], strides = [1, 1]} : vector<8x290xbf16> to vector<8x256xbf16>
    %c0_i32_264 = arith.constant 0 : i32
    %576 = arith.sitofp %c0_i32_264 : i32 to bf16
    %577 = vector.shape_cast %20 : vector<1x256xi1> to vector<1x256xi1>
    %578 = vector.broadcast %577 : vector<1x256xi1> to vector<8x256xi1>
    %579 = vector.broadcast %576 : bf16 to vector<8x256xbf16>
    %580 = arith.select %578, %575, %579 : vector<8x256xi1>, vector<8x256xbf16>
    %c400_265 = arith.constant 400 : index
    %c0_266 = arith.constant 0 : index
    %581 = vector.load %arg33[%c400_265, %c0_266] : memref<432x256xbf16, #tpu.memory_space<vmem>>, vector<8x256xbf16>
    tpu.vector_store %arg33[%c400_265, %c0_266], %580 {strides = array<i32>} : memref<432x256xbf16, #tpu.memory_space<vmem>>, vector<8x256xbf16>,
    %582 = vector.extract_strided_slice %549 {offsets = [0, 32], sizes = [8, 256], strides = [1, 1]} : vector<8x290xbf16> to vector<8x256xbf16>
    %c0_i32_267 = arith.constant 0 : i32
    %583 = arith.sitofp %c0_i32_267 : i32 to bf16
    %584 = vector.shape_cast %18 : vector<1x256xi1> to vector<1x256xi1>
    %585 = vector.broadcast %584 : vector<1x256xi1> to vector<8x256xi1>
    %586 = vector.broadcast %583 : bf16 to vector<8x256xbf16>
    %587 = arith.select %585, %582, %586 : vector<8x256xi1>, vector<8x256xbf16>
    %c408_268 = arith.constant 408 : index
    %c0_269 = arith.constant 0 : index
    %588 = vector.load %arg33[%c408_268, %c0_269] : memref<432x256xbf16, #tpu.memory_space<vmem>>, vector<8x256xbf16>
    tpu.vector_store %arg33[%c408_268, %c0_269], %587 {strides = array<i32>} : memref<432x256xbf16, #tpu.memory_space<vmem>>, vector<8x256xbf16>,
    %589 = vector.extract_strided_slice %549 {offsets = [0, 33], sizes = [8, 256], strides = [1, 1]} : vector<8x290xbf16> to vector<8x256xbf16>
    %c416_270 = arith.constant 416 : index
    %c0_271 = arith.constant 0 : index
    %590 = vector.load %arg33[%c416_270, %c0_271] : memref<432x256xbf16, #tpu.memory_space<vmem>>, vector<8x256xbf16>
    tpu.vector_store %arg33[%c416_270, %c0_271], %589 {strides = array<i32>} : memref<432x256xbf16, #tpu.memory_space<vmem>>, vector<8x256xbf16>,
    %591 = vector.extract_strided_slice %549 {offsets = [0, 34], sizes = [8, 256], strides = [1, 1]} : vector<8x290xbf16> to vector<8x256xbf16>
    %c0_i32_272 = arith.constant 0 : i32
    %592 = arith.sitofp %c0_i32_272 : i32 to bf16
    %593 = vector.shape_cast %20 : vector<1x256xi1> to vector<1x256xi1>
    %594 = vector.broadcast %593 : vector<1x256xi1> to vector<8x256xi1>
    %595 = vector.broadcast %592 : bf16 to vector<8x256xbf16>
    %596 = arith.select %594, %591, %595 : vector<8x256xi1>, vector<8x256xbf16>
    %c424_273 = arith.constant 424 : index
    %c0_274 = arith.constant 0 : index
    %597 = vector.load %arg33[%c424_273, %c0_274] : memref<432x256xbf16, #tpu.memory_space<vmem>>, vector<8x256xbf16>
    tpu.vector_store %arg33[%c424_273, %c0_274], %596 {strides = array<i32>} : memref<432x256xbf16, #tpu.memory_space<vmem>>, vector<8x256xbf16>,
    %c0_275 = arith.constant 0 : index
    %c0_276 = arith.constant 0 : index
    %598 = vector.load %arg11[%c0_275, %c0_276] : memref<16x432xbf16, #tpu.memory_space<vmem>>, vector<16x432xbf16>
    %c0_277 = arith.constant 0 : index
    %c0_278 = arith.constant 0 : index
    %599 = vector.load %arg26[%c0_277, %c0_278] : memref<16x1xf32, #tpu.memory_space<vmem>>, vector<16x1xf32>
    %c0_279 = arith.constant 0 : index
    %c0_280 = arith.constant 0 : index
    %600 = vector.load %arg33[%c0_279, %c0_280] : memref<432x256xbf16, #tpu.memory_space<vmem>>, vector<432x256xbf16>
    %cst_281 = arith.constant dense<0.000000e+00> : vector<16x256xf32>
    %601 = tpu.matmul %598, %600, %cst_281 {dimension_numbers = #tpu.dot_dimension_numbers<[1], [0], [0], [1], [0, 0, 1, 1], [], []>} : vector<16x432xbf16>, vector<432x256xbf16>, vector<16x256xf32> -> vector<16x256xf32>
    %602 = vector.broadcast %599 : vector<16x1xf32> to vector<16x256xf32>
    %603 = arith.addf %601, %602 : vector<16x256xf32>
    %cst_282 = arith.constant 2.000000e-01 : f32
    %604 = vector.broadcast %cst_282 : f32 to vector<16x256xf32>
    %605 = arith.mulf %604, %603 : vector<16x256xf32>
    %606 = arith.addf %315, %605 : vector<16x256xf32>
    %607 = arith.truncf %606 : vector<16x256xf32> to vector<16x256xbf16>
    %608 = tpu.concatenate %21, %607, %21 in 1 : vector<16x17xbf16>, vector<16x256xbf16>, vector<16x17xbf16> -> vector<16x290xbf16>
    %609 = vector.extract_strided_slice %608 {offsets = [0, 0], sizes = [16, 256], strides = [1, 1]} : vector<16x290xbf16> to vector<16x256xbf16>
    %c0_i32_283 = arith.constant 0 : i32
    %610 = arith.sitofp %c0_i32_283 : i32 to bf16
    %611 = vector.shape_cast %18 : vector<1x256xi1> to vector<1x256xi1>
    %612 = vector.broadcast %611 : vector<1x256xi1> to vector<16x256xi1>
    %613 = vector.broadcast %610 : bf16 to vector<16x256xbf16>
    %614 = arith.select %612, %609, %613 : vector<16x256xi1>, vector<16x256xbf16>
    %c0_284 = arith.constant 0 : index
    %c0_285 = arith.constant 0 : index
    %615 = vector.load %arg33[%c0_284, %c0_285] : memref<432x256xbf16, #tpu.memory_space<vmem>>, vector<16x256xbf16>
    tpu.vector_store %arg33[%c0_284, %c0_285], %614 {strides = array<i32>} : memref<432x256xbf16, #tpu.memory_space<vmem>>, vector<16x256xbf16>,
    %616 = vector.extract_strided_slice %608 {offsets = [0, 1], sizes = [16, 256], strides = [1, 1]} : vector<16x290xbf16> to vector<16x256xbf16>
    %c16_286 = arith.constant 16 : index
    %c0_287 = arith.constant 0 : index
    %617 = vector.load %arg33[%c16_286, %c0_287] : memref<432x256xbf16, #tpu.memory_space<vmem>>, vector<16x256xbf16>
    tpu.vector_store %arg33[%c16_286, %c0_287], %616 {strides = array<i32>} : memref<432x256xbf16, #tpu.memory_space<vmem>>, vector<16x256xbf16>,
    %618 = vector.extract_strided_slice %608 {offsets = [0, 2], sizes = [16, 256], strides = [1, 1]} : vector<16x290xbf16> to vector<16x256xbf16>
    %c0_i32_288 = arith.constant 0 : i32
    %619 = arith.sitofp %c0_i32_288 : i32 to bf16
    %620 = vector.shape_cast %20 : vector<1x256xi1> to vector<1x256xi1>
    %621 = vector.broadcast %620 : vector<1x256xi1> to vector<16x256xi1>
    %622 = vector.broadcast %619 : bf16 to vector<16x256xbf16>
    %623 = arith.select %621, %618, %622 : vector<16x256xi1>, vector<16x256xbf16>
    %c32_289 = arith.constant 32 : index
    %c0_290 = arith.constant 0 : index
    %624 = vector.load %arg33[%c32_289, %c0_290] : memref<432x256xbf16, #tpu.memory_space<vmem>>, vector<16x256xbf16>
    tpu.vector_store %arg33[%c32_289, %c0_290], %623 {strides = array<i32>} : memref<432x256xbf16, #tpu.memory_space<vmem>>, vector<16x256xbf16>,
    %625 = vector.extract_strided_slice %608 {offsets = [0, 16], sizes = [16, 256], strides = [1, 1]} : vector<16x290xbf16> to vector<16x256xbf16>
    %c0_i32_291 = arith.constant 0 : i32
    %626 = arith.sitofp %c0_i32_291 : i32 to bf16
    %627 = vector.shape_cast %18 : vector<1x256xi1> to vector<1x256xi1>
    %628 = vector.broadcast %627 : vector<1x256xi1> to vector<16x256xi1>
    %629 = vector.broadcast %626 : bf16 to vector<16x256xbf16>
    %630 = arith.select %628, %625, %629 : vector<16x256xi1>, vector<16x256xbf16>
    %c48_292 = arith.constant 48 : index
    %c0_293 = arith.constant 0 : index
    %631 = vector.load %arg33[%c48_292, %c0_293] : memref<432x256xbf16, #tpu.memory_space<vmem>>, vector<16x256xbf16>
    tpu.vector_store %arg33[%c48_292, %c0_293], %630 {strides = array<i32>} : memref<432x256xbf16, #tpu.memory_space<vmem>>, vector<16x256xbf16>,
    %632 = vector.extract_strided_slice %608 {offsets = [0, 17], sizes = [16, 256], strides = [1, 1]} : vector<16x290xbf16> to vector<16x256xbf16>
    %c64_294 = arith.constant 64 : index
    %c0_295 = arith.constant 0 : index
    %633 = vector.load %arg33[%c64_294, %c0_295] : memref<432x256xbf16, #tpu.memory_space<vmem>>, vector<16x256xbf16>
    tpu.vector_store %arg33[%c64_294, %c0_295], %632 {strides = array<i32>} : memref<432x256xbf16, #tpu.memory_space<vmem>>, vector<16x256xbf16>,
    %634 = vector.extract_strided_slice %608 {offsets = [0, 18], sizes = [16, 256], strides = [1, 1]} : vector<16x290xbf16> to vector<16x256xbf16>
    %c0_i32_296 = arith.constant 0 : i32
    %635 = arith.sitofp %c0_i32_296 : i32 to bf16
    %636 = vector.shape_cast %20 : vector<1x256xi1> to vector<1x256xi1>
    %637 = vector.broadcast %636 : vector<1x256xi1> to vector<16x256xi1>
    %638 = vector.broadcast %635 : bf16 to vector<16x256xbf16>
    %639 = arith.select %637, %634, %638 : vector<16x256xi1>, vector<16x256xbf16>
    %c80_297 = arith.constant 80 : index
    %c0_298 = arith.constant 0 : index
    %640 = vector.load %arg33[%c80_297, %c0_298] : memref<432x256xbf16, #tpu.memory_space<vmem>>, vector<16x256xbf16>
    tpu.vector_store %arg33[%c80_297, %c0_298], %639 {strides = array<i32>} : memref<432x256xbf16, #tpu.memory_space<vmem>>, vector<16x256xbf16>,
    %641 = vector.extract_strided_slice %608 {offsets = [0, 32], sizes = [16, 256], strides = [1, 1]} : vector<16x290xbf16> to vector<16x256xbf16>
    %c0_i32_299 = arith.constant 0 : i32
    %642 = arith.sitofp %c0_i32_299 : i32 to bf16
    %643 = vector.shape_cast %18 : vector<1x256xi1> to vector<1x256xi1>
    %644 = vector.broadcast %643 : vector<1x256xi1> to vector<16x256xi1>
    %645 = vector.broadcast %642 : bf16 to vector<16x256xbf16>
    %646 = arith.select %644, %641, %645 : vector<16x256xi1>, vector<16x256xbf16>
    %c96_300 = arith.constant 96 : index
    %c0_301 = arith.constant 0 : index
    %647 = vector.load %arg33[%c96_300, %c0_301] : memref<432x256xbf16, #tpu.memory_space<vmem>>, vector<16x256xbf16>
    tpu.vector_store %arg33[%c96_300, %c0_301], %646 {strides = array<i32>} : memref<432x256xbf16, #tpu.memory_space<vmem>>, vector<16x256xbf16>,
    %648 = vector.extract_strided_slice %608 {offsets = [0, 33], sizes = [16, 256], strides = [1, 1]} : vector<16x290xbf16> to vector<16x256xbf16>
    %c112_302 = arith.constant 112 : index
    %c0_303 = arith.constant 0 : index
    %649 = vector.load %arg33[%c112_302, %c0_303] : memref<432x256xbf16, #tpu.memory_space<vmem>>, vector<16x256xbf16>
    tpu.vector_store %arg33[%c112_302, %c0_303], %648 {strides = array<i32>} : memref<432x256xbf16, #tpu.memory_space<vmem>>, vector<16x256xbf16>,
    %650 = vector.extract_strided_slice %608 {offsets = [0, 34], sizes = [16, 256], strides = [1, 1]} : vector<16x290xbf16> to vector<16x256xbf16>
    %c0_i32_304 = arith.constant 0 : i32
    %651 = arith.sitofp %c0_i32_304 : i32 to bf16
    %652 = vector.shape_cast %20 : vector<1x256xi1> to vector<1x256xi1>
    %653 = vector.broadcast %652 : vector<1x256xi1> to vector<16x256xi1>
    %654 = vector.broadcast %651 : bf16 to vector<16x256xbf16>
    %655 = arith.select %653, %650, %654 : vector<16x256xi1>, vector<16x256xbf16>
    %c128_305 = arith.constant 128 : index
    %c0_306 = arith.constant 0 : index
    %656 = vector.load %arg33[%c128_305, %c0_306] : memref<432x256xbf16, #tpu.memory_space<vmem>>, vector<16x256xbf16>
    tpu.vector_store %arg33[%c128_305, %c0_306], %655 {strides = array<i32>} : memref<432x256xbf16, #tpu.memory_space<vmem>>, vector<16x256xbf16>,
    %c0_307 = arith.constant 0 : index
    %c0_308 = arith.constant 0 : index
    %657 = vector.load %arg12[%c0_307, %c0_308] : memref<8x144xbf16, #tpu.memory_space<vmem>>, vector<8x144xbf16>
    %c0_309 = arith.constant 0 : index
    %c0_310 = arith.constant 0 : index
    %658 = vector.load %arg27[%c0_309, %c0_310] : memref<8x1xf32, #tpu.memory_space<vmem>>, vector<8x1xf32>
    %c0_311 = arith.constant 0 : index
    %c0_312 = arith.constant 0 : index
    %659 = vector.load %arg33[%c0_311, %c0_312] : memref<432x256xbf16, #tpu.memory_space<vmem>>, vector<144x256xbf16>
    %cst_313 = arith.constant dense<0.000000e+00> : vector<8x256xf32>
    %660 = tpu.matmul %657, %659, %cst_313 {dimension_numbers = #tpu.dot_dimension_numbers<[1], [0], [0], [1], [0, 0, 1, 1], [], []>} : vector<8x144xbf16>, vector<144x256xbf16>, vector<8x256xf32> -> vector<8x256xf32>
    %661 = vector.broadcast %658 : vector<8x1xf32> to vector<8x256xf32>
    %662 = arith.addf %660, %661 : vector<8x256xf32>
    %cst_314 = arith.constant 0.000000e+00 : f32
    %663 = vector.broadcast %cst_314 : f32 to vector<8x256xf32>
    %664 = arith.maximumf %662, %663 : vector<8x256xf32>
    %665 = arith.truncf %664 : vector<8x256xf32> to vector<8x256xbf16>
    %666 = tpu.concatenate %22, %665, %22 in 1 : vector<8x17xbf16>, vector<8x256xbf16>, vector<8x17xbf16> -> vector<8x290xbf16>
    %667 = vector.extract_strided_slice %666 {offsets = [0, 0], sizes = [8, 256], strides = [1, 1]} : vector<8x290xbf16> to vector<8x256xbf16>
    %c0_i32_315 = arith.constant 0 : i32
    %668 = arith.sitofp %c0_i32_315 : i32 to bf16
    %669 = vector.shape_cast %18 : vector<1x256xi1> to vector<1x256xi1>
    %670 = vector.broadcast %669 : vector<1x256xi1> to vector<8x256xi1>
    %671 = vector.broadcast %668 : bf16 to vector<8x256xbf16>
    %672 = arith.select %670, %667, %671 : vector<8x256xi1>, vector<8x256xbf16>
    %c144_316 = arith.constant 144 : index
    %c0_317 = arith.constant 0 : index
    %673 = vector.load %arg33[%c144_316, %c0_317] : memref<432x256xbf16, #tpu.memory_space<vmem>>, vector<8x256xbf16>
    tpu.vector_store %arg33[%c144_316, %c0_317], %672 {strides = array<i32>} : memref<432x256xbf16, #tpu.memory_space<vmem>>, vector<8x256xbf16>,
    %674 = vector.extract_strided_slice %666 {offsets = [0, 1], sizes = [8, 256], strides = [1, 1]} : vector<8x290xbf16> to vector<8x256xbf16>
    %c152_318 = arith.constant 152 : index
    %c0_319 = arith.constant 0 : index
    %675 = vector.load %arg33[%c152_318, %c0_319] : memref<432x256xbf16, #tpu.memory_space<vmem>>, vector<8x256xbf16>
    tpu.vector_store %arg33[%c152_318, %c0_319], %674 {strides = array<i32>} : memref<432x256xbf16, #tpu.memory_space<vmem>>, vector<8x256xbf16>,
    %676 = vector.extract_strided_slice %666 {offsets = [0, 2], sizes = [8, 256], strides = [1, 1]} : vector<8x290xbf16> to vector<8x256xbf16>
    %c0_i32_320 = arith.constant 0 : i32
    %677 = arith.sitofp %c0_i32_320 : i32 to bf16
    %678 = vector.shape_cast %20 : vector<1x256xi1> to vector<1x256xi1>
    %679 = vector.broadcast %678 : vector<1x256xi1> to vector<8x256xi1>
    %680 = vector.broadcast %677 : bf16 to vector<8x256xbf16>
    %681 = arith.select %679, %676, %680 : vector<8x256xi1>, vector<8x256xbf16>
    %c160_321 = arith.constant 160 : index
    %c0_322 = arith.constant 0 : index
    %682 = vector.load %arg33[%c160_321, %c0_322] : memref<432x256xbf16, #tpu.memory_space<vmem>>, vector<8x256xbf16>
    tpu.vector_store %arg33[%c160_321, %c0_322], %681 {strides = array<i32>} : memref<432x256xbf16, #tpu.memory_space<vmem>>, vector<8x256xbf16>,
    %683 = vector.extract_strided_slice %666 {offsets = [0, 16], sizes = [8, 256], strides = [1, 1]} : vector<8x290xbf16> to vector<8x256xbf16>
    %c0_i32_323 = arith.constant 0 : i32
    %684 = arith.sitofp %c0_i32_323 : i32 to bf16
    %685 = vector.shape_cast %18 : vector<1x256xi1> to vector<1x256xi1>
    %686 = vector.broadcast %685 : vector<1x256xi1> to vector<8x256xi1>
    %687 = vector.broadcast %684 : bf16 to vector<8x256xbf16>
    %688 = arith.select %686, %683, %687 : vector<8x256xi1>, vector<8x256xbf16>
    %c168_324 = arith.constant 168 : index
    %c0_325 = arith.constant 0 : index
    %689 = vector.load %arg33[%c168_324, %c0_325] : memref<432x256xbf16, #tpu.memory_space<vmem>>, vector<8x256xbf16>
    tpu.vector_store %arg33[%c168_324, %c0_325], %688 {strides = array<i32>} : memref<432x256xbf16, #tpu.memory_space<vmem>>, vector<8x256xbf16>,
    %690 = vector.extract_strided_slice %666 {offsets = [0, 17], sizes = [8, 256], strides = [1, 1]} : vector<8x290xbf16> to vector<8x256xbf16>
    %c176_326 = arith.constant 176 : index
    %c0_327 = arith.constant 0 : index
    %691 = vector.load %arg33[%c176_326, %c0_327] : memref<432x256xbf16, #tpu.memory_space<vmem>>, vector<8x256xbf16>
    tpu.vector_store %arg33[%c176_326, %c0_327], %690 {strides = array<i32>} : memref<432x256xbf16, #tpu.memory_space<vmem>>, vector<8x256xbf16>,
    %692 = vector.extract_strided_slice %666 {offsets = [0, 18], sizes = [8, 256], strides = [1, 1]} : vector<8x290xbf16> to vector<8x256xbf16>
    %c0_i32_328 = arith.constant 0 : i32
    %693 = arith.sitofp %c0_i32_328 : i32 to bf16
    %694 = vector.shape_cast %20 : vector<1x256xi1> to vector<1x256xi1>
    %695 = vector.broadcast %694 : vector<1x256xi1> to vector<8x256xi1>
    %696 = vector.broadcast %693 : bf16 to vector<8x256xbf16>
    %697 = arith.select %695, %692, %696 : vector<8x256xi1>, vector<8x256xbf16>
    %c184_329 = arith.constant 184 : index
    %c0_330 = arith.constant 0 : index
    %698 = vector.load %arg33[%c184_329, %c0_330] : memref<432x256xbf16, #tpu.memory_space<vmem>>, vector<8x256xbf16>
    tpu.vector_store %arg33[%c184_329, %c0_330], %697 {strides = array<i32>} : memref<432x256xbf16, #tpu.memory_space<vmem>>, vector<8x256xbf16>,
    %699 = vector.extract_strided_slice %666 {offsets = [0, 32], sizes = [8, 256], strides = [1, 1]} : vector<8x290xbf16> to vector<8x256xbf16>
    %c0_i32_331 = arith.constant 0 : i32
    %700 = arith.sitofp %c0_i32_331 : i32 to bf16
    %701 = vector.shape_cast %18 : vector<1x256xi1> to vector<1x256xi1>
    %702 = vector.broadcast %701 : vector<1x256xi1> to vector<8x256xi1>
    %703 = vector.broadcast %700 : bf16 to vector<8x256xbf16>
    %704 = arith.select %702, %699, %703 : vector<8x256xi1>, vector<8x256xbf16>
    %c192_332 = arith.constant 192 : index
    %c0_333 = arith.constant 0 : index
    %705 = vector.load %arg33[%c192_332, %c0_333] : memref<432x256xbf16, #tpu.memory_space<vmem>>, vector<8x256xbf16>
    tpu.vector_store %arg33[%c192_332, %c0_333], %704 {strides = array<i32>} : memref<432x256xbf16, #tpu.memory_space<vmem>>, vector<8x256xbf16>,
    %706 = vector.extract_strided_slice %666 {offsets = [0, 33], sizes = [8, 256], strides = [1, 1]} : vector<8x290xbf16> to vector<8x256xbf16>
    %c200_334 = arith.constant 200 : index
    %c0_335 = arith.constant 0 : index
    %707 = vector.load %arg33[%c200_334, %c0_335] : memref<432x256xbf16, #tpu.memory_space<vmem>>, vector<8x256xbf16>
    tpu.vector_store %arg33[%c200_334, %c0_335], %706 {strides = array<i32>} : memref<432x256xbf16, #tpu.memory_space<vmem>>, vector<8x256xbf16>,
    %708 = vector.extract_strided_slice %666 {offsets = [0, 34], sizes = [8, 256], strides = [1, 1]} : vector<8x290xbf16> to vector<8x256xbf16>
    %c0_i32_336 = arith.constant 0 : i32
    %709 = arith.sitofp %c0_i32_336 : i32 to bf16
    %710 = vector.shape_cast %20 : vector<1x256xi1> to vector<1x256xi1>
    %711 = vector.broadcast %710 : vector<1x256xi1> to vector<8x256xi1>
    %712 = vector.broadcast %709 : bf16 to vector<8x256xbf16>
    %713 = arith.select %711, %708, %712 : vector<8x256xi1>, vector<8x256xbf16>
    %c208_337 = arith.constant 208 : index
    %c0_338 = arith.constant 0 : index
    %714 = vector.load %arg33[%c208_337, %c0_338] : memref<432x256xbf16, #tpu.memory_space<vmem>>, vector<8x256xbf16>
    tpu.vector_store %arg33[%c208_337, %c0_338], %713 {strides = array<i32>} : memref<432x256xbf16, #tpu.memory_space<vmem>>, vector<8x256xbf16>,
    %c0_339 = arith.constant 0 : index
    %c0_340 = arith.constant 0 : index
    %715 = vector.load %arg13[%c0_339, %c0_340] : memref<8x216xbf16, #tpu.memory_space<vmem>>, vector<8x216xbf16>
    %c0_341 = arith.constant 0 : index
    %c0_342 = arith.constant 0 : index
    %716 = vector.load %arg28[%c0_341, %c0_342] : memref<8x1xf32, #tpu.memory_space<vmem>>, vector<8x1xf32>
    %c0_343 = arith.constant 0 : index
    %c0_344 = arith.constant 0 : index
    %717 = vector.load %arg33[%c0_343, %c0_344] : memref<432x256xbf16, #tpu.memory_space<vmem>>, vector<216x256xbf16>
    %cst_345 = arith.constant dense<0.000000e+00> : vector<8x256xf32>
    %718 = tpu.matmul %715, %717, %cst_345 {dimension_numbers = #tpu.dot_dimension_numbers<[1], [0], [0], [1], [0, 0, 1, 1], [], []>} : vector<8x216xbf16>, vector<216x256xbf16>, vector<8x256xf32> -> vector<8x256xf32>
    %719 = vector.broadcast %716 : vector<8x1xf32> to vector<8x256xf32>
    %720 = arith.addf %718, %719 : vector<8x256xf32>
    %cst_346 = arith.constant 0.000000e+00 : f32
    %721 = vector.broadcast %cst_346 : f32 to vector<8x256xf32>
    %722 = arith.maximumf %720, %721 : vector<8x256xf32>
    %723 = arith.truncf %722 : vector<8x256xf32> to vector<8x256xbf16>
    %724 = tpu.concatenate %22, %723, %22 in 1 : vector<8x17xbf16>, vector<8x256xbf16>, vector<8x17xbf16> -> vector<8x290xbf16>
    %725 = vector.extract_strided_slice %724 {offsets = [0, 0], sizes = [8, 256], strides = [1, 1]} : vector<8x290xbf16> to vector<8x256xbf16>
    %c0_i32_347 = arith.constant 0 : i32
    %726 = arith.sitofp %c0_i32_347 : i32 to bf16
    %727 = vector.shape_cast %18 : vector<1x256xi1> to vector<1x256xi1>
    %728 = vector.broadcast %727 : vector<1x256xi1> to vector<8x256xi1>
    %729 = vector.broadcast %726 : bf16 to vector<8x256xbf16>
    %730 = arith.select %728, %725, %729 : vector<8x256xi1>, vector<8x256xbf16>
    %c216_348 = arith.constant 216 : index
    %c0_349 = arith.constant 0 : index
    %731 = vector.load %arg33[%c216_348, %c0_349] : memref<432x256xbf16, #tpu.memory_space<vmem>>, vector<8x256xbf16>
    tpu.vector_store %arg33[%c216_348, %c0_349], %730 {strides = array<i32>} : memref<432x256xbf16, #tpu.memory_space<vmem>>, vector<8x256xbf16>,
    %732 = vector.extract_strided_slice %724 {offsets = [0, 1], sizes = [8, 256], strides = [1, 1]} : vector<8x290xbf16> to vector<8x256xbf16>
    %c224_350 = arith.constant 224 : index
    %c0_351 = arith.constant 0 : index
    %733 = vector.load %arg33[%c224_350, %c0_351] : memref<432x256xbf16, #tpu.memory_space<vmem>>, vector<8x256xbf16>
    tpu.vector_store %arg33[%c224_350, %c0_351], %732 {strides = array<i32>} : memref<432x256xbf16, #tpu.memory_space<vmem>>, vector<8x256xbf16>,
    %734 = vector.extract_strided_slice %724 {offsets = [0, 2], sizes = [8, 256], strides = [1, 1]} : vector<8x290xbf16> to vector<8x256xbf16>
    %c0_i32_352 = arith.constant 0 : i32
    %735 = arith.sitofp %c0_i32_352 : i32 to bf16
    %736 = vector.shape_cast %20 : vector<1x256xi1> to vector<1x256xi1>
    %737 = vector.broadcast %736 : vector<1x256xi1> to vector<8x256xi1>
    %738 = vector.broadcast %735 : bf16 to vector<8x256xbf16>
    %739 = arith.select %737, %734, %738 : vector<8x256xi1>, vector<8x256xbf16>
    %c232_353 = arith.constant 232 : index
    %c0_354 = arith.constant 0 : index
    %740 = vector.load %arg33[%c232_353, %c0_354] : memref<432x256xbf16, #tpu.memory_space<vmem>>, vector<8x256xbf16>
    tpu.vector_store %arg33[%c232_353, %c0_354], %739 {strides = array<i32>} : memref<432x256xbf16, #tpu.memory_space<vmem>>, vector<8x256xbf16>,
    %741 = vector.extract_strided_slice %724 {offsets = [0, 16], sizes = [8, 256], strides = [1, 1]} : vector<8x290xbf16> to vector<8x256xbf16>
    %c0_i32_355 = arith.constant 0 : i32
    %742 = arith.sitofp %c0_i32_355 : i32 to bf16
    %743 = vector.shape_cast %18 : vector<1x256xi1> to vector<1x256xi1>
    %744 = vector.broadcast %743 : vector<1x256xi1> to vector<8x256xi1>
    %745 = vector.broadcast %742 : bf16 to vector<8x256xbf16>
    %746 = arith.select %744, %741, %745 : vector<8x256xi1>, vector<8x256xbf16>
    %c240_356 = arith.constant 240 : index
    %c0_357 = arith.constant 0 : index
    %747 = vector.load %arg33[%c240_356, %c0_357] : memref<432x256xbf16, #tpu.memory_space<vmem>>, vector<8x256xbf16>
    tpu.vector_store %arg33[%c240_356, %c0_357], %746 {strides = array<i32>} : memref<432x256xbf16, #tpu.memory_space<vmem>>, vector<8x256xbf16>,
    %748 = vector.extract_strided_slice %724 {offsets = [0, 17], sizes = [8, 256], strides = [1, 1]} : vector<8x290xbf16> to vector<8x256xbf16>
    %c248_358 = arith.constant 248 : index
    %c0_359 = arith.constant 0 : index
    %749 = vector.load %arg33[%c248_358, %c0_359] : memref<432x256xbf16, #tpu.memory_space<vmem>>, vector<8x256xbf16>
    tpu.vector_store %arg33[%c248_358, %c0_359], %748 {strides = array<i32>} : memref<432x256xbf16, #tpu.memory_space<vmem>>, vector<8x256xbf16>,
    %750 = vector.extract_strided_slice %724 {offsets = [0, 18], sizes = [8, 256], strides = [1, 1]} : vector<8x290xbf16> to vector<8x256xbf16>
    %c0_i32_360 = arith.constant 0 : i32
    %751 = arith.sitofp %c0_i32_360 : i32 to bf16
    %752 = vector.shape_cast %20 : vector<1x256xi1> to vector<1x256xi1>
    %753 = vector.broadcast %752 : vector<1x256xi1> to vector<8x256xi1>
    %754 = vector.broadcast %751 : bf16 to vector<8x256xbf16>
    %755 = arith.select %753, %750, %754 : vector<8x256xi1>, vector<8x256xbf16>
    %c256_361 = arith.constant 256 : index
    %c0_362 = arith.constant 0 : index
    %756 = vector.load %arg33[%c256_361, %c0_362] : memref<432x256xbf16, #tpu.memory_space<vmem>>, vector<8x256xbf16>
    tpu.vector_store %arg33[%c256_361, %c0_362], %755 {strides = array<i32>} : memref<432x256xbf16, #tpu.memory_space<vmem>>, vector<8x256xbf16>,
    %757 = vector.extract_strided_slice %724 {offsets = [0, 32], sizes = [8, 256], strides = [1, 1]} : vector<8x290xbf16> to vector<8x256xbf16>
    %c0_i32_363 = arith.constant 0 : i32
    %758 = arith.sitofp %c0_i32_363 : i32 to bf16
    %759 = vector.shape_cast %18 : vector<1x256xi1> to vector<1x256xi1>
    %760 = vector.broadcast %759 : vector<1x256xi1> to vector<8x256xi1>
    %761 = vector.broadcast %758 : bf16 to vector<8x256xbf16>
    %762 = arith.select %760, %757, %761 : vector<8x256xi1>, vector<8x256xbf16>
    %c264_364 = arith.constant 264 : index
    %c0_365 = arith.constant 0 : index
    %763 = vector.load %arg33[%c264_364, %c0_365] : memref<432x256xbf16, #tpu.memory_space<vmem>>, vector<8x256xbf16>
    tpu.vector_store %arg33[%c264_364, %c0_365], %762 {strides = array<i32>} : memref<432x256xbf16, #tpu.memory_space<vmem>>, vector<8x256xbf16>,
    %764 = vector.extract_strided_slice %724 {offsets = [0, 33], sizes = [8, 256], strides = [1, 1]} : vector<8x290xbf16> to vector<8x256xbf16>
    %c272_366 = arith.constant 272 : index
    %c0_367 = arith.constant 0 : index
    %765 = vector.load %arg33[%c272_366, %c0_367] : memref<432x256xbf16, #tpu.memory_space<vmem>>, vector<8x256xbf16>
    tpu.vector_store %arg33[%c272_366, %c0_367], %764 {strides = array<i32>} : memref<432x256xbf16, #tpu.memory_space<vmem>>, vector<8x256xbf16>,
    %766 = vector.extract_strided_slice %724 {offsets = [0, 34], sizes = [8, 256], strides = [1, 1]} : vector<8x290xbf16> to vector<8x256xbf16>
    %c0_i32_368 = arith.constant 0 : i32
    %767 = arith.sitofp %c0_i32_368 : i32 to bf16
    %768 = vector.shape_cast %20 : vector<1x256xi1> to vector<1x256xi1>
    %769 = vector.broadcast %768 : vector<1x256xi1> to vector<8x256xi1>
    %770 = vector.broadcast %767 : bf16 to vector<8x256xbf16>
    %771 = arith.select %769, %766, %770 : vector<8x256xi1>, vector<8x256xbf16>
    %c280_369 = arith.constant 280 : index
    %c0_370 = arith.constant 0 : index
    %772 = vector.load %arg33[%c280_369, %c0_370] : memref<432x256xbf16, #tpu.memory_space<vmem>>, vector<8x256xbf16>
    tpu.vector_store %arg33[%c280_369, %c0_370], %771 {strides = array<i32>} : memref<432x256xbf16, #tpu.memory_space<vmem>>, vector<8x256xbf16>,
    %c0_371 = arith.constant 0 : index
    %c0_372 = arith.constant 0 : index
    %773 = vector.load %arg14[%c0_371, %c0_372] : memref<8x288xbf16, #tpu.memory_space<vmem>>, vector<8x288xbf16>
    %c0_373 = arith.constant 0 : index
    %c0_374 = arith.constant 0 : index
    %774 = vector.load %arg29[%c0_373, %c0_374] : memref<8x1xf32, #tpu.memory_space<vmem>>, vector<8x1xf32>
    %c0_375 = arith.constant 0 : index
    %c0_376 = arith.constant 0 : index
    %775 = vector.load %arg33[%c0_375, %c0_376] : memref<432x256xbf16, #tpu.memory_space<vmem>>, vector<288x256xbf16>
    %cst_377 = arith.constant dense<0.000000e+00> : vector<8x256xf32>
    %776 = tpu.matmul %773, %775, %cst_377 {dimension_numbers = #tpu.dot_dimension_numbers<[1], [0], [0], [1], [0, 0, 1, 1], [], []>} : vector<8x288xbf16>, vector<288x256xbf16>, vector<8x256xf32> -> vector<8x256xf32>
    %777 = vector.broadcast %774 : vector<8x1xf32> to vector<8x256xf32>
    %778 = arith.addf %776, %777 : vector<8x256xf32>
    %cst_378 = arith.constant 0.000000e+00 : f32
    %779 = vector.broadcast %cst_378 : f32 to vector<8x256xf32>
    %780 = arith.maximumf %778, %779 : vector<8x256xf32>
    %781 = arith.truncf %780 : vector<8x256xf32> to vector<8x256xbf16>
    %782 = tpu.concatenate %22, %781, %22 in 1 : vector<8x17xbf16>, vector<8x256xbf16>, vector<8x17xbf16> -> vector<8x290xbf16>
    %783 = vector.extract_strided_slice %782 {offsets = [0, 0], sizes = [8, 256], strides = [1, 1]} : vector<8x290xbf16> to vector<8x256xbf16>
    %c0_i32_379 = arith.constant 0 : i32
    %784 = arith.sitofp %c0_i32_379 : i32 to bf16
    %785 = vector.shape_cast %18 : vector<1x256xi1> to vector<1x256xi1>
    %786 = vector.broadcast %785 : vector<1x256xi1> to vector<8x256xi1>
    %787 = vector.broadcast %784 : bf16 to vector<8x256xbf16>
    %788 = arith.select %786, %783, %787 : vector<8x256xi1>, vector<8x256xbf16>
    %c288_380 = arith.constant 288 : index
    %c0_381 = arith.constant 0 : index
    %789 = vector.load %arg33[%c288_380, %c0_381] : memref<432x256xbf16, #tpu.memory_space<vmem>>, vector<8x256xbf16>
    tpu.vector_store %arg33[%c288_380, %c0_381], %788 {strides = array<i32>} : memref<432x256xbf16, #tpu.memory_space<vmem>>, vector<8x256xbf16>,
    %790 = vector.extract_strided_slice %782 {offsets = [0, 1], sizes = [8, 256], strides = [1, 1]} : vector<8x290xbf16> to vector<8x256xbf16>
    %c296_382 = arith.constant 296 : index
    %c0_383 = arith.constant 0 : index
    %791 = vector.load %arg33[%c296_382, %c0_383] : memref<432x256xbf16, #tpu.memory_space<vmem>>, vector<8x256xbf16>
    tpu.vector_store %arg33[%c296_382, %c0_383], %790 {strides = array<i32>} : memref<432x256xbf16, #tpu.memory_space<vmem>>, vector<8x256xbf16>,
    %792 = vector.extract_strided_slice %782 {offsets = [0, 2], sizes = [8, 256], strides = [1, 1]} : vector<8x290xbf16> to vector<8x256xbf16>
    %c0_i32_384 = arith.constant 0 : i32
    %793 = arith.sitofp %c0_i32_384 : i32 to bf16
    %794 = vector.shape_cast %20 : vector<1x256xi1> to vector<1x256xi1>
    %795 = vector.broadcast %794 : vector<1x256xi1> to vector<8x256xi1>
    %796 = vector.broadcast %793 : bf16 to vector<8x256xbf16>
    %797 = arith.select %795, %792, %796 : vector<8x256xi1>, vector<8x256xbf16>
    %c304_385 = arith.constant 304 : index
    %c0_386 = arith.constant 0 : index
    %798 = vector.load %arg33[%c304_385, %c0_386] : memref<432x256xbf16, #tpu.memory_space<vmem>>, vector<8x256xbf16>
    tpu.vector_store %arg33[%c304_385, %c0_386], %797 {strides = array<i32>} : memref<432x256xbf16, #tpu.memory_space<vmem>>, vector<8x256xbf16>,
    %799 = vector.extract_strided_slice %782 {offsets = [0, 16], sizes = [8, 256], strides = [1, 1]} : vector<8x290xbf16> to vector<8x256xbf16>
    %c0_i32_387 = arith.constant 0 : i32
    %800 = arith.sitofp %c0_i32_387 : i32 to bf16
    %801 = vector.shape_cast %18 : vector<1x256xi1> to vector<1x256xi1>
    %802 = vector.broadcast %801 : vector<1x256xi1> to vector<8x256xi1>
    %803 = vector.broadcast %800 : bf16 to vector<8x256xbf16>
    %804 = arith.select %802, %799, %803 : vector<8x256xi1>, vector<8x256xbf16>
    %c312_388 = arith.constant 312 : index
    %c0_389 = arith.constant 0 : index
    %805 = vector.load %arg33[%c312_388, %c0_389] : memref<432x256xbf16, #tpu.memory_space<vmem>>, vector<8x256xbf16>
    tpu.vector_store %arg33[%c312_388, %c0_389], %804 {strides = array<i32>} : memref<432x256xbf16, #tpu.memory_space<vmem>>, vector<8x256xbf16>,
    %806 = vector.extract_strided_slice %782 {offsets = [0, 17], sizes = [8, 256], strides = [1, 1]} : vector<8x290xbf16> to vector<8x256xbf16>
    %c320_390 = arith.constant 320 : index
    %c0_391 = arith.constant 0 : index
    %807 = vector.load %arg33[%c320_390, %c0_391] : memref<432x256xbf16, #tpu.memory_space<vmem>>, vector<8x256xbf16>
    tpu.vector_store %arg33[%c320_390, %c0_391], %806 {strides = array<i32>} : memref<432x256xbf16, #tpu.memory_space<vmem>>, vector<8x256xbf16>,
    %808 = vector.extract_strided_slice %782 {offsets = [0, 18], sizes = [8, 256], strides = [1, 1]} : vector<8x290xbf16> to vector<8x256xbf16>
    %c0_i32_392 = arith.constant 0 : i32
    %809 = arith.sitofp %c0_i32_392 : i32 to bf16
    %810 = vector.shape_cast %20 : vector<1x256xi1> to vector<1x256xi1>
    %811 = vector.broadcast %810 : vector<1x256xi1> to vector<8x256xi1>
    %812 = vector.broadcast %809 : bf16 to vector<8x256xbf16>
    %813 = arith.select %811, %808, %812 : vector<8x256xi1>, vector<8x256xbf16>
    %c328_393 = arith.constant 328 : index
    %c0_394 = arith.constant 0 : index
    %814 = vector.load %arg33[%c328_393, %c0_394] : memref<432x256xbf16, #tpu.memory_space<vmem>>, vector<8x256xbf16>
    tpu.vector_store %arg33[%c328_393, %c0_394], %813 {strides = array<i32>} : memref<432x256xbf16, #tpu.memory_space<vmem>>, vector<8x256xbf16>,
    %815 = vector.extract_strided_slice %782 {offsets = [0, 32], sizes = [8, 256], strides = [1, 1]} : vector<8x290xbf16> to vector<8x256xbf16>
    %c0_i32_395 = arith.constant 0 : i32
    %816 = arith.sitofp %c0_i32_395 : i32 to bf16
    %817 = vector.shape_cast %18 : vector<1x256xi1> to vector<1x256xi1>
    %818 = vector.broadcast %817 : vector<1x256xi1> to vector<8x256xi1>
    %819 = vector.broadcast %816 : bf16 to vector<8x256xbf16>
    %820 = arith.select %818, %815, %819 : vector<8x256xi1>, vector<8x256xbf16>
    %c336_396 = arith.constant 336 : index
    %c0_397 = arith.constant 0 : index
    %821 = vector.load %arg33[%c336_396, %c0_397] : memref<432x256xbf16, #tpu.memory_space<vmem>>, vector<8x256xbf16>
    tpu.vector_store %arg33[%c336_396, %c0_397], %820 {strides = array<i32>} : memref<432x256xbf16, #tpu.memory_space<vmem>>, vector<8x256xbf16>,
    %822 = vector.extract_strided_slice %782 {offsets = [0, 33], sizes = [8, 256], strides = [1, 1]} : vector<8x290xbf16> to vector<8x256xbf16>
    %c344_398 = arith.constant 344 : index
    %c0_399 = arith.constant 0 : index
    %823 = vector.load %arg33[%c344_398, %c0_399] : memref<432x256xbf16, #tpu.memory_space<vmem>>, vector<8x256xbf16>
    tpu.vector_store %arg33[%c344_398, %c0_399], %822 {strides = array<i32>} : memref<432x256xbf16, #tpu.memory_space<vmem>>, vector<8x256xbf16>,
    %824 = vector.extract_strided_slice %782 {offsets = [0, 34], sizes = [8, 256], strides = [1, 1]} : vector<8x290xbf16> to vector<8x256xbf16>
    %c0_i32_400 = arith.constant 0 : i32
    %825 = arith.sitofp %c0_i32_400 : i32 to bf16
    %826 = vector.shape_cast %20 : vector<1x256xi1> to vector<1x256xi1>
    %827 = vector.broadcast %826 : vector<1x256xi1> to vector<8x256xi1>
    %828 = vector.broadcast %825 : bf16 to vector<8x256xbf16>
    %829 = arith.select %827, %824, %828 : vector<8x256xi1>, vector<8x256xbf16>
    %c352_401 = arith.constant 352 : index
    %c0_402 = arith.constant 0 : index
    %830 = vector.load %arg33[%c352_401, %c0_402] : memref<432x256xbf16, #tpu.memory_space<vmem>>, vector<8x256xbf16>
    tpu.vector_store %arg33[%c352_401, %c0_402], %829 {strides = array<i32>} : memref<432x256xbf16, #tpu.memory_space<vmem>>, vector<8x256xbf16>,
    %c0_403 = arith.constant 0 : index
    %c0_404 = arith.constant 0 : index
    %831 = vector.load %arg15[%c0_403, %c0_404] : memref<8x360xbf16, #tpu.memory_space<vmem>>, vector<8x360xbf16>
    %c0_405 = arith.constant 0 : index
    %c0_406 = arith.constant 0 : index
    %832 = vector.load %arg30[%c0_405, %c0_406] : memref<8x1xf32, #tpu.memory_space<vmem>>, vector<8x1xf32>
    %c0_407 = arith.constant 0 : index
    %c0_408 = arith.constant 0 : index
    %833 = vector.load %arg33[%c0_407, %c0_408] : memref<432x256xbf16, #tpu.memory_space<vmem>>, vector<360x256xbf16>
    %cst_409 = arith.constant dense<0.000000e+00> : vector<8x256xf32>
    %834 = tpu.matmul %831, %833, %cst_409 {dimension_numbers = #tpu.dot_dimension_numbers<[1], [0], [0], [1], [0, 0, 1, 1], [], []>} : vector<8x360xbf16>, vector<360x256xbf16>, vector<8x256xf32> -> vector<8x256xf32>
    %835 = vector.broadcast %832 : vector<8x1xf32> to vector<8x256xf32>
    %836 = arith.addf %834, %835 : vector<8x256xf32>
    %cst_410 = arith.constant 0.000000e+00 : f32
    %837 = vector.broadcast %cst_410 : f32 to vector<8x256xf32>
    %838 = arith.maximumf %836, %837 : vector<8x256xf32>
    %839 = arith.truncf %838 : vector<8x256xf32> to vector<8x256xbf16>
    %840 = tpu.concatenate %22, %839, %22 in 1 : vector<8x17xbf16>, vector<8x256xbf16>, vector<8x17xbf16> -> vector<8x290xbf16>
    %841 = vector.extract_strided_slice %840 {offsets = [0, 0], sizes = [8, 256], strides = [1, 1]} : vector<8x290xbf16> to vector<8x256xbf16>
    %c0_i32_411 = arith.constant 0 : i32
    %842 = arith.sitofp %c0_i32_411 : i32 to bf16
    %843 = vector.shape_cast %18 : vector<1x256xi1> to vector<1x256xi1>
    %844 = vector.broadcast %843 : vector<1x256xi1> to vector<8x256xi1>
    %845 = vector.broadcast %842 : bf16 to vector<8x256xbf16>
    %846 = arith.select %844, %841, %845 : vector<8x256xi1>, vector<8x256xbf16>
    %c360_412 = arith.constant 360 : index
    %c0_413 = arith.constant 0 : index
    %847 = vector.load %arg33[%c360_412, %c0_413] : memref<432x256xbf16, #tpu.memory_space<vmem>>, vector<8x256xbf16>
    tpu.vector_store %arg33[%c360_412, %c0_413], %846 {strides = array<i32>} : memref<432x256xbf16, #tpu.memory_space<vmem>>, vector<8x256xbf16>,
    %848 = vector.extract_strided_slice %840 {offsets = [0, 1], sizes = [8, 256], strides = [1, 1]} : vector<8x290xbf16> to vector<8x256xbf16>
    %c368_414 = arith.constant 368 : index
    %c0_415 = arith.constant 0 : index
    %849 = vector.load %arg33[%c368_414, %c0_415] : memref<432x256xbf16, #tpu.memory_space<vmem>>, vector<8x256xbf16>
    tpu.vector_store %arg33[%c368_414, %c0_415], %848 {strides = array<i32>} : memref<432x256xbf16, #tpu.memory_space<vmem>>, vector<8x256xbf16>,
    %850 = vector.extract_strided_slice %840 {offsets = [0, 2], sizes = [8, 256], strides = [1, 1]} : vector<8x290xbf16> to vector<8x256xbf16>
    %c0_i32_416 = arith.constant 0 : i32
    %851 = arith.sitofp %c0_i32_416 : i32 to bf16
    %852 = vector.shape_cast %20 : vector<1x256xi1> to vector<1x256xi1>
    %853 = vector.broadcast %852 : vector<1x256xi1> to vector<8x256xi1>
    %854 = vector.broadcast %851 : bf16 to vector<8x256xbf16>
    %855 = arith.select %853, %850, %854 : vector<8x256xi1>, vector<8x256xbf16>
    %c376_417 = arith.constant 376 : index
    %c0_418 = arith.constant 0 : index
    %856 = vector.load %arg33[%c376_417, %c0_418] : memref<432x256xbf16, #tpu.memory_space<vmem>>, vector<8x256xbf16>
    tpu.vector_store %arg33[%c376_417, %c0_418], %855 {strides = array<i32>} : memref<432x256xbf16, #tpu.memory_space<vmem>>, vector<8x256xbf16>,
    %857 = vector.extract_strided_slice %840 {offsets = [0, 16], sizes = [8, 256], strides = [1, 1]} : vector<8x290xbf16> to vector<8x256xbf16>
    %c0_i32_419 = arith.constant 0 : i32
    %858 = arith.sitofp %c0_i32_419 : i32 to bf16
    %859 = vector.shape_cast %18 : vector<1x256xi1> to vector<1x256xi1>
    %860 = vector.broadcast %859 : vector<1x256xi1> to vector<8x256xi1>
    %861 = vector.broadcast %858 : bf16 to vector<8x256xbf16>
    %862 = arith.select %860, %857, %861 : vector<8x256xi1>, vector<8x256xbf16>
    %c384_420 = arith.constant 384 : index
    %c0_421 = arith.constant 0 : index
    %863 = vector.load %arg33[%c384_420, %c0_421] : memref<432x256xbf16, #tpu.memory_space<vmem>>, vector<8x256xbf16>
    tpu.vector_store %arg33[%c384_420, %c0_421], %862 {strides = array<i32>} : memref<432x256xbf16, #tpu.memory_space<vmem>>, vector<8x256xbf16>,
    %864 = vector.extract_strided_slice %840 {offsets = [0, 17], sizes = [8, 256], strides = [1, 1]} : vector<8x290xbf16> to vector<8x256xbf16>
    %c392_422 = arith.constant 392 : index
    %c0_423 = arith.constant 0 : index
    %865 = vector.load %arg33[%c392_422, %c0_423] : memref<432x256xbf16, #tpu.memory_space<vmem>>, vector<8x256xbf16>
    tpu.vector_store %arg33[%c392_422, %c0_423], %864 {strides = array<i32>} : memref<432x256xbf16, #tpu.memory_space<vmem>>, vector<8x256xbf16>,
    %866 = vector.extract_strided_slice %840 {offsets = [0, 18], sizes = [8, 256], strides = [1, 1]} : vector<8x290xbf16> to vector<8x256xbf16>
    %c0_i32_424 = arith.constant 0 : i32
    %867 = arith.sitofp %c0_i32_424 : i32 to bf16
    %868 = vector.shape_cast %20 : vector<1x256xi1> to vector<1x256xi1>
    %869 = vector.broadcast %868 : vector<1x256xi1> to vector<8x256xi1>
    %870 = vector.broadcast %867 : bf16 to vector<8x256xbf16>
    %871 = arith.select %869, %866, %870 : vector<8x256xi1>, vector<8x256xbf16>
    %c400_425 = arith.constant 400 : index
    %c0_426 = arith.constant 0 : index
    %872 = vector.load %arg33[%c400_425, %c0_426] : memref<432x256xbf16, #tpu.memory_space<vmem>>, vector<8x256xbf16>
    tpu.vector_store %arg33[%c400_425, %c0_426], %871 {strides = array<i32>} : memref<432x256xbf16, #tpu.memory_space<vmem>>, vector<8x256xbf16>,
    %873 = vector.extract_strided_slice %840 {offsets = [0, 32], sizes = [8, 256], strides = [1, 1]} : vector<8x290xbf16> to vector<8x256xbf16>
    %c0_i32_427 = arith.constant 0 : i32
    %874 = arith.sitofp %c0_i32_427 : i32 to bf16
    %875 = vector.shape_cast %18 : vector<1x256xi1> to vector<1x256xi1>
    %876 = vector.broadcast %875 : vector<1x256xi1> to vector<8x256xi1>
    %877 = vector.broadcast %874 : bf16 to vector<8x256xbf16>
    %878 = arith.select %876, %873, %877 : vector<8x256xi1>, vector<8x256xbf16>
    %c408_428 = arith.constant 408 : index
    %c0_429 = arith.constant 0 : index
    %879 = vector.load %arg33[%c408_428, %c0_429] : memref<432x256xbf16, #tpu.memory_space<vmem>>, vector<8x256xbf16>
    tpu.vector_store %arg33[%c408_428, %c0_429], %878 {strides = array<i32>} : memref<432x256xbf16, #tpu.memory_space<vmem>>, vector<8x256xbf16>,
    %880 = vector.extract_strided_slice %840 {offsets = [0, 33], sizes = [8, 256], strides = [1, 1]} : vector<8x290xbf16> to vector<8x256xbf16>
    %c416_430 = arith.constant 416 : index
    %c0_431 = arith.constant 0 : index
    %881 = vector.load %arg33[%c416_430, %c0_431] : memref<432x256xbf16, #tpu.memory_space<vmem>>, vector<8x256xbf16>
    tpu.vector_store %arg33[%c416_430, %c0_431], %880 {strides = array<i32>} : memref<432x256xbf16, #tpu.memory_space<vmem>>, vector<8x256xbf16>,
    %882 = vector.extract_strided_slice %840 {offsets = [0, 34], sizes = [8, 256], strides = [1, 1]} : vector<8x290xbf16> to vector<8x256xbf16>
    %c0_i32_432 = arith.constant 0 : i32
    %883 = arith.sitofp %c0_i32_432 : i32 to bf16
    %884 = vector.shape_cast %20 : vector<1x256xi1> to vector<1x256xi1>
    %885 = vector.broadcast %884 : vector<1x256xi1> to vector<8x256xi1>
    %886 = vector.broadcast %883 : bf16 to vector<8x256xbf16>
    %887 = arith.select %885, %882, %886 : vector<8x256xi1>, vector<8x256xbf16>
    %c424_433 = arith.constant 424 : index
    %c0_434 = arith.constant 0 : index
    %888 = vector.load %arg33[%c424_433, %c0_434] : memref<432x256xbf16, #tpu.memory_space<vmem>>, vector<8x256xbf16>
    tpu.vector_store %arg33[%c424_433, %c0_434], %887 {strides = array<i32>} : memref<432x256xbf16, #tpu.memory_space<vmem>>, vector<8x256xbf16>,
    %c0_435 = arith.constant 0 : index
    %c0_436 = arith.constant 0 : index
    %889 = vector.load %arg16[%c0_435, %c0_436] : memref<16x432xbf16, #tpu.memory_space<vmem>>, vector<16x432xbf16>
    %c0_437 = arith.constant 0 : index
    %c0_438 = arith.constant 0 : index
    %890 = vector.load %arg31[%c0_437, %c0_438] : memref<16x1xf32, #tpu.memory_space<vmem>>, vector<16x1xf32>
    %c0_439 = arith.constant 0 : index
    %c0_440 = arith.constant 0 : index
    %891 = vector.load %arg33[%c0_439, %c0_440] : memref<432x256xbf16, #tpu.memory_space<vmem>>, vector<432x256xbf16>
    %cst_441 = arith.constant dense<0.000000e+00> : vector<16x256xf32>
    %892 = tpu.matmul %889, %891, %cst_441 {dimension_numbers = #tpu.dot_dimension_numbers<[1], [0], [0], [1], [0, 0, 1, 1], [], []>} : vector<16x432xbf16>, vector<432x256xbf16>, vector<16x256xf32> -> vector<16x256xf32>
    %893 = vector.broadcast %890 : vector<16x1xf32> to vector<16x256xf32>
    %894 = arith.addf %892, %893 : vector<16x256xf32>
    %cst_442 = arith.constant 2.000000e-01 : f32
    %895 = vector.broadcast %cst_442 : f32 to vector<16x256xf32>
    %896 = arith.mulf %895, %894 : vector<16x256xf32>
    %897 = arith.addf %606, %896 : vector<16x256xf32>
    %cst_443 = arith.constant 2.000000e-01 : f32
    %898 = vector.broadcast %cst_443 : f32 to vector<16x256xf32>
    %899 = arith.mulf %898, %897 : vector<16x256xf32>
    %900 = arith.addf %24, %899 : vector<16x256xf32>
    %c0_444 = arith.constant 0 : index
    %c0_445 = arith.constant 0 : index
    %c0_446 = arith.constant 0 : index
    %901 = vector.load %arg32[%c0_444, %c0_445, %c0_446] : memref<1x16x256xf32, #tpu.memory_space<vmem>>, vector<1x16x256xf32>
    %902 = vector.shape_cast %901 : vector<1x16x256xf32> to vector<16x256xf32>
    %903 = vector.shape_cast %900 : vector<16x256xf32> to vector<1x16x256xf32>
    tpu.vector_store %arg32[%c0_444, %c0_445, %c0_446], %903 {strides = array<i32>} : memref<1x16x256xf32, #tpu.memory_space<vmem>>, vector<1x16x256xf32>,
    return
  }
  func.func @transform_0(%arg0: i32) -> (i32, i32, i32) {
    %c0_i32 = arith.constant 0 : i32
    %c0_i32_0 = arith.constant 0 : i32
    %c0_i32_1 = arith.constant 0 : i32
    return %arg0, %c0_i32, %c0_i32_0 : i32, i32, i32
  }
  func.func @transform_1(%arg0: i32) -> (i32, i32) {
    %c0_i32 = arith.constant 0 : i32
    %c0_i32_0 = arith.constant 0 : i32
    %c0_i32_1 = arith.constant 0 : i32
    return %c0_i32, %c0_i32_0 : i32, i32
  }
  func.func @transform_2(%arg0: i32) -> (i32, i32) {
    %c0_i32 = arith.constant 0 : i32
    %c0_i32_0 = arith.constant 0 : i32
    %c0_i32_1 = arith.constant 0 : i32
    return %c0_i32, %c0_i32_0 : i32, i32
  }
  func.func @transform_3(%arg0: i32) -> (i32, i32) {
    %c0_i32 = arith.constant 0 : i32
    %c0_i32_0 = arith.constant 0 : i32
    %c0_i32_1 = arith.constant 0 : i32
    return %c0_i32, %c0_i32_0 : i32, i32
  }
  func.func @transform_4(%arg0: i32) -> (i32, i32) {
    %c0_i32 = arith.constant 0 : i32
    %c0_i32_0 = arith.constant 0 : i32
    %c0_i32_1 = arith.constant 0 : i32
    return %c0_i32, %c0_i32_0 : i32, i32
  }
  func.func @transform_5(%arg0: i32) -> (i32, i32) {
    %c0_i32 = arith.constant 0 : i32
    %c0_i32_0 = arith.constant 0 : i32
    %c0_i32_1 = arith.constant 0 : i32
    return %c0_i32, %c0_i32_0 : i32, i32
  }
  func.func @transform_6(%arg0: i32) -> (i32, i32) {
    %c0_i32 = arith.constant 0 : i32
    %c0_i32_0 = arith.constant 0 : i32
    %c0_i32_1 = arith.constant 0 : i32
    return %c0_i32, %c0_i32_0 : i32, i32
  }
  func.func @transform_7(%arg0: i32) -> (i32, i32) {
    %c0_i32 = arith.constant 0 : i32
    %c0_i32_0 = arith.constant 0 : i32
    %c0_i32_1 = arith.constant 0 : i32
    return %c0_i32, %c0_i32_0 : i32, i32
  }
  func.func @transform_8(%arg0: i32) -> (i32, i32) {
    %c0_i32 = arith.constant 0 : i32
    %c0_i32_0 = arith.constant 0 : i32
    %c0_i32_1 = arith.constant 0 : i32
    return %c0_i32, %c0_i32_0 : i32, i32
  }
  func.func @transform_9(%arg0: i32) -> (i32, i32) {
    %c0_i32 = arith.constant 0 : i32
    %c0_i32_0 = arith.constant 0 : i32
    %c0_i32_1 = arith.constant 0 : i32
    return %c0_i32, %c0_i32_0 : i32, i32
  }
  func.func @transform_10(%arg0: i32) -> (i32, i32) {
    %c0_i32 = arith.constant 0 : i32
    %c0_i32_0 = arith.constant 0 : i32
    %c0_i32_1 = arith.constant 0 : i32
    return %c0_i32, %c0_i32_0 : i32, i32
  }
  func.func @transform_11(%arg0: i32) -> (i32, i32) {
    %c0_i32 = arith.constant 0 : i32
    %c0_i32_0 = arith.constant 0 : i32
    %c0_i32_1 = arith.constant 0 : i32
    return %c0_i32, %c0_i32_0 : i32, i32
  }
  func.func @transform_12(%arg0: i32) -> (i32, i32) {
    %c0_i32 = arith.constant 0 : i32
    %c0_i32_0 = arith.constant 0 : i32
    %c0_i32_1 = arith.constant 0 : i32
    return %c0_i32, %c0_i32_0 : i32, i32
  }
  func.func @transform_13(%arg0: i32) -> (i32, i32) {
    %c0_i32 = arith.constant 0 : i32
    %c0_i32_0 = arith.constant 0 : i32
    %c0_i32_1 = arith.constant 0 : i32
    return %c0_i32, %c0_i32_0 : i32, i32
  }
  func.func @transform_14(%arg0: i32) -> (i32, i32) {
    %c0_i32 = arith.constant 0 : i32
    %c0_i32_0 = arith.constant 0 : i32
    %c0_i32_1 = arith.constant 0 : i32
    return %c0_i32, %c0_i32_0 : i32, i32
  }
  func.func @transform_15(%arg0: i32) -> (i32, i32) {
    %c0_i32 = arith.constant 0 : i32
    %c0_i32_0 = arith.constant 0 : i32
    %c0_i32_1 = arith.constant 0 : i32
    return %c0_i32, %c0_i32_0 : i32, i32
  }
  func.func @transform_16(%arg0: i32) -> (i32, i32) {
    %c0_i32 = arith.constant 0 : i32
    %c0_i32_0 = arith.constant 0 : i32
    %c0_i32_1 = arith.constant 0 : i32
    return %c0_i32, %c0_i32_0 : i32, i32
  }
  func.func @transform_17(%arg0: i32) -> (i32, i32) {
    %c0_i32 = arith.constant 0 : i32
    %c0_i32_0 = arith.constant 0 : i32
    %c0_i32_1 = arith.constant 0 : i32
    return %c0_i32, %c0_i32_0 : i32, i32
  }
  func.func @transform_18(%arg0: i32) -> (i32, i32) {
    %c0_i32 = arith.constant 0 : i32
    %c0_i32_0 = arith.constant 0 : i32
    %c0_i32_1 = arith.constant 0 : i32
    return %c0_i32, %c0_i32_0 : i32, i32
  }
  func.func @transform_19(%arg0: i32) -> (i32, i32) {
    %c0_i32 = arith.constant 0 : i32
    %c0_i32_0 = arith.constant 0 : i32
    %c0_i32_1 = arith.constant 0 : i32
    return %c0_i32, %c0_i32_0 : i32, i32
  }
  func.func @transform_20(%arg0: i32) -> (i32, i32) {
    %c0_i32 = arith.constant 0 : i32
    %c0_i32_0 = arith.constant 0 : i32
    %c0_i32_1 = arith.constant 0 : i32
    return %c0_i32, %c0_i32_0 : i32, i32
  }
  func.func @transform_21(%arg0: i32) -> (i32, i32) {
    %c0_i32 = arith.constant 0 : i32
    %c0_i32_0 = arith.constant 0 : i32
    %c0_i32_1 = arith.constant 0 : i32
    return %c0_i32, %c0_i32_0 : i32, i32
  }
  func.func @transform_22(%arg0: i32) -> (i32, i32) {
    %c0_i32 = arith.constant 0 : i32
    %c0_i32_0 = arith.constant 0 : i32
    %c0_i32_1 = arith.constant 0 : i32
    return %c0_i32, %c0_i32_0 : i32, i32
  }
  func.func @transform_23(%arg0: i32) -> (i32, i32) {
    %c0_i32 = arith.constant 0 : i32
    %c0_i32_0 = arith.constant 0 : i32
    %c0_i32_1 = arith.constant 0 : i32
    return %c0_i32, %c0_i32_0 : i32, i32
  }
  func.func @transform_24(%arg0: i32) -> (i32, i32) {
    %c0_i32 = arith.constant 0 : i32
    %c0_i32_0 = arith.constant 0 : i32
    %c0_i32_1 = arith.constant 0 : i32
    return %c0_i32, %c0_i32_0 : i32, i32
  }
  func.func @transform_25(%arg0: i32) -> (i32, i32) {
    %c0_i32 = arith.constant 0 : i32
    %c0_i32_0 = arith.constant 0 : i32
    %c0_i32_1 = arith.constant 0 : i32
    return %c0_i32, %c0_i32_0 : i32, i32
  }
  func.func @transform_26(%arg0: i32) -> (i32, i32) {
    %c0_i32 = arith.constant 0 : i32
    %c0_i32_0 = arith.constant 0 : i32
    %c0_i32_1 = arith.constant 0 : i32
    return %c0_i32, %c0_i32_0 : i32, i32
  }
  func.func @transform_27(%arg0: i32) -> (i32, i32) {
    %c0_i32 = arith.constant 0 : i32
    %c0_i32_0 = arith.constant 0 : i32
    %c0_i32_1 = arith.constant 0 : i32
    return %c0_i32, %c0_i32_0 : i32, i32
  }
  func.func @transform_28(%arg0: i32) -> (i32, i32) {
    %c0_i32 = arith.constant 0 : i32
    %c0_i32_0 = arith.constant 0 : i32
    %c0_i32_1 = arith.constant 0 : i32
    return %c0_i32, %c0_i32_0 : i32, i32
  }
  func.func @transform_29(%arg0: i32) -> (i32, i32) {
    %c0_i32 = arith.constant 0 : i32
    %c0_i32_0 = arith.constant 0 : i32
    %c0_i32_1 = arith.constant 0 : i32
    return %c0_i32, %c0_i32_0 : i32, i32
  }
  func.func @transform_30(%arg0: i32) -> (i32, i32) {
    %c0_i32 = arith.constant 0 : i32
    %c0_i32_0 = arith.constant 0 : i32
    %c0_i32_1 = arith.constant 0 : i32
    return %c0_i32, %c0_i32_0 : i32, i32
  }
  func.func @transform_31(%arg0: i32) -> (i32, i32, i32) {
    %c0_i32 = arith.constant 0 : i32
    %c0_i32_0 = arith.constant 0 : i32
    %c0_i32_1 = arith.constant 0 : i32
    return %arg0, %c0_i32, %c0_i32_0 : i32, i32, i32
  }
}

</mosaic_0001>

<bundles_post_ra>
// kernel: rrdb_forward.1
= control target key start
LH: loop header
LB: loop body
LE: loop exit
PB: predicated region body
PF: predicated region fallthrough
CT: control target
= control target key end

     0   :  { %s9697_s6 = smov 1   ;;  %s9698_s10 = smov 2   ;;  %s12394_s0 = inlined_call_operand.smem [shape: u32[32], index: -1, kind: input, shape index: {}] }
   0x1   :  { %s9751_s5 = sld [smem:[%s12394_s0]]   ;;  %s9699_s14 = smov 3  }
   0x2   :  { %s9756_s9 = sld [smem:[%s12394_s0 + %s9697_s6]]   ;;  %s9700_s18 = smov 4  }
   0x3   :  { %s9761_s13 = sld [smem:[%s12394_s0 + %s9698_s10]]   ;;  %s9701_s22 = smov 5  }
   0x4   :  { %s9766_s17 = sld [smem:[%s12394_s0 + %s9699_s14]]   ;;  %s9702_s26 = smov 6  }
   0x5   :  { %s9771_s21 = sld [smem:[%s12394_s0 + %s9700_s18]]   ;;  %s9703_s30 = smov 7  }
   0x6   :  { %s9776_s25 = sld [smem:[%s12394_s0 + %s9701_s22]]   ;;  %s9704_s4 = smov 8  }
   0x7   :  { %12520 = sst [smem:[#allocation3_spill]] %s9751_s5  ;;  %s9705_s10 = smov 9  }
   0x8   :  { %s9781_s29 = sld [smem:[%s12394_s0 + %s9702_s26]]   ;;  %s9706_s15 = smov 10  }
   0x9   :  { %s9786_s3 = sld [smem:[%s12394_s0 + %s9703_s30]]   ;;  %s9707_s20 = smov 11  }
   0xa   :  { %s9791_s8 = sld [smem:[%s12394_s0 + %s9704_s4]]   ;;  %s9708_s26 = smov 12  }
   0xb   :  { %s9796_s14 = sld [smem:[%s12394_s0 + %s9705_s10]]   ;;  %s9709_s1 = smov 13  }
   0xc   :  { %s9801_s19 = sld [smem:[%s12394_s0 + %s9706_s15]]   ;;  %s9710_s7 = smov 14  }
   0xd   :  { %s9806_s24 = sld [smem:[%s12394_s0 + %s9707_s20]]   ;;  %s9711_s15 = smov 15  }
   0xe   :  { %s9811_s30 = sld [smem:[%s12394_s0 + %s9708_s26]]   ;;  %s9712_s22 = smov 16  }
   0xf   :  { %12521 = sst [smem:[#allocation4_spill]] %s9786_s3  ;;  %s9713_s28 = smov 17  }
  0x10   :  { %12522 = sst [smem:[#allocation5_spill]] %s9791_s8 }
  0x11   :  { %12523 = sst [smem:[#allocation6_spill]] %s9796_s14 }
  0x12   :  { %12524 = sst [smem:[#allocation7_spill]] %s9801_s19 }
  0x13   :  { %12525 = sst [smem:[#allocation8_spill]] %s9806_s24 }
  0x14   :  { %12526 = sst [smem:[#allocation9_spill]] %s9811_s30 }
  0x15   :  { %s9816_s6 = sld [smem:[%s12394_s0 + %s9709_s1]]  }
  0x16   :  { %s9821_s12 = sld [smem:[%s12394_s0 + %s9710_s7]]   ;;  %s9714_s7 = smov 18  }
  0x17   :  { %s9826_s20 = sld [smem:[%s12394_s0 + %s9711_s15]]   ;;  %s9715_s15 = smov 19  }
  0x18   :  { %s9831_s27 = sld [smem:[%s12394_s0 + %s9712_s22]]   ;;  %s9716_s22 = smov 20  }
  0x19   :  { %s9836_s4 = sld [smem:[%s12394_s0 + %s9713_s28]]   ;;  %s9717_s28 = smov 21  }
  0x1a   :  { %s9856_s30 = sld [smem:[%s12394_s0 + %s9717_s28]]   ;;  %s9721_s28 = smov 25  }
  0x1b   :  { %12527 = sst [smem:[#allocation10_spill]] %s9816_s6 }
  0x1c   :  { %12528 = sst [smem:[#allocation11_spill]] %s9821_s12 }
  0x1d   :  { %12529 = sst [smem:[#allocation12_spill]] %s9826_s20 }
  0x1e   :  { %s9841_s12 = sld [smem:[%s12394_s0 + %s9714_s7]]   ;;  %s9718_s7 = smov 22  }
  0x1f   :  { %12530 = sst [smem:[#allocation13_spill]] %s9836_s4 }
  0x20   :  { %s9846_s20 = sld [smem:[%s12394_s0 + %s9715_s15]]   ;;  %s9719_s15 = smov 23  }
  0x21   :  { %s9851_s6 = sld [smem:[%s12394_s0 + %s9716_s22]]   ;;  %s9720_s22 = smov 24  }
  0x22   :  { %s9861_s24 = sld [smem:[%s12394_s0 + %s9718_s7]]   ;;  %s9722_s7 = smov 26  }
  0x23   :  { %s9866_s19 = sld [smem:[%s12394_s0 + %s9719_s15]]   ;;  %s9723_s15 = smov 27  }
  0x24   :  { %s9871_s14 = sld [smem:[%s12394_s0 + %s9720_s22]]   ;;  %s9724_s22 = smov 28  }
  0x25   :  { %s9876_s8 = sld [smem:[%s12394_s0 + %s9721_s28]]   ;;  %s9725_s28 = smov 29  }
  0x27   :  { %12531 = sst [smem:[#allocation14_spill]] %s9851_s6 }
  0x28   :  { %12532 = sst [smem:[#allocation15_spill]] %s9861_s24 }
  0x29   :  { %12533 = sst [smem:[#allocation16_spill]] %s9866_s19 }
  0x2a   :  { %12534 = sst [smem:[#allocation17_spill]] %s9871_s14 }
  0x2b   :  { %12535 = sst [smem:[#allocation18_spill]] %s9876_s8 }
  0x2c   :  { %s9881_s24 = sld [smem:[%s12394_s0 + %s9722_s7]]   ;;  %s9726_s7 = smov 30  }
  0x2d   :  { %s9886_s19 = sld [smem:[%s12394_s0 + %s9723_s15]]   ;;  %s9727_s15 = smov 31  }
  0x2e   :  { %s9891_s14 = sld [smem:[%s12394_s0 + %s9724_s22]]   ;;  %s9908_s22 = smov 0  }
  0x2f   :  { %s9896_s8 = sld [smem:[%s12394_s0 + %s9725_s28]]  }
  0x32   :  { %12536 = sst [smem:[#allocation19_spill]] %s9881_s24 }
  0x33   :  { %12537 = sst [smem:[#allocation20_spill]] %s9886_s19 }
  0x34   :  { %s9901_s24 = sld [smem:[%s12394_s0 + %s9726_s7]]  }
  0x35   :  { %s9906_s19 = sld [smem:[%s12394_s0 + %s9727_s15]]  }
  0x36 LB: > { %s12538_s6 = sld [smem:[#allocation14_spill]]  ;;  %s8694_s23 = sadd.s32 4294967295, %s9695_s22   ;;  %s9695_s22 = sphi %s9908_s22, %s73_s22  }
  0x37   : > { %p8698_p0 = scmp.ge.s32.totalorder %s9695_s22, 1  ;;  %p869_p1 = scmp.lt.s32.totalorder %s9695_s22, 3 }
  0x39   : > { %p870_p2 = pnand %p8698_p0, %p869_p1 }
  0x3b   : > { %873 = sbr.rel (%p870_p2) target bundleno = 7397 (0x1ce5), region = 144 }
  0x40   : > { %p949_p3 = scmp.lt.s32.totalorder %s8694_s23, 1  ;;  %s12539_s5 = sld [smem:[#allocation3_spill]]  ;;  %v962_v0 = vlaneseq  ;;  %v12420_v1 = vmov 0   ;;  %vm1005_vm6 = vcmask 138240   ;;  %vm12402_vm7 = vcmask 261120  }
  0x41   : > { %9631 = vset.pattern.permute.xlu0 %v12420_v1  ;;  %9632 = vset.pattern.permute.xlu1 %v12420_v1  ;;  %s12489_s28 = smov 17   ;;  %s9730_s1 = smov 32   ;;  %vm1211_vm11 = vcmask 146432   ;;  %vm12406_vm15 = vcmask 130048  }
  0x42   : > { %s12918_s23 = smov (!%p949_p3, %s8694_s23), 1  ;;  %v963_v2 = vand.u32 127, %v962_v0  ;;  %v1023_v3 = vshrl.u32 %v962_v0, 7  ;;  %s9731_s2 = smov 18  }
  0x43   : > { %s12452_s0 = sshll.u32 %s12918_s23, 5  ;;  %s9732_s7 = smov 16  }
  0x44   : > { %v964_v4 = vadd.s32 128, %v963_v2  ;;  %v969_v5 = vand.u32 15, %v963_v2  ;;  %v1024_v11 = vsub.s32 0, %v1023_v3  ;;  %v1028_v14 = vsub.s32 4, %v1023_v3  ;;  %s9733_s10 = smov 2   ;;  %s9734_s11 = smov 34  }
  0x45   : > { %s12487_s15 = smov 95   ;;  %s12469_s16 = smov 111  }
  0x46   : > { %s9924_s26 = scalar_lea.vmem %s12539_s5, %s12452_s0  ;;  %v976_v8 = vand.u32 15, %v964_v4  ;;  %vm989_vm0 = vcmp.ge.s32.totalorder %v969_v5, 1  ;;  %vm991_vm1 = vcmp.le.s32.totalorder %v969_v5, 14  ;;  %s12454_s18 = smov 127  }
  0x47   : > { %v993_v6 = vld [vmem:[%s9924_s26] sm:$0xff]  ;;  %v995_v7 = vld [vmem:[%s9924_s26 + $0x10] sm:$0xff]  ;;  %v994_v9 = vld [vmem:[%s9924_s26 + $0x8] sm:$0xff]  ;;  %s12555_s4 = sld [smem:[#allocation13_spill]] }
  0x48   : > { %v997_v10 = vpack.c.bf16 %v995_v7, %v993_v6  ;;  %v996_v12 = vld [vmem:[%s9924_s26 + $0x18] sm:$0xff]  ;;  %vm990_vm2 = vcmp.ge.s32.totalorder %v976_v8, 1  ;;  %vm992_vm3 = vcmp.le.s32.totalorder %v976_v8, 14  ;;  %s12677_s3 = sld [smem:[#allocation4_spill]] }
  0x49   : > { %vm1020_vm4 = vmpackc.low %vm990_vm2, %vm989_vm0  ;;  %v998_v13 = vpack.c.bf16 %v996_v12, %v994_v9  ;;  %s12679_s0 = sld [smem:[#allocation15_spill]] }
  0x4a   : > { %1001 = vrot.lane.b32.xlu0 %v997_v10, %s12489_s28  ;;  %v1021_v15 = vsel %vm1020_vm4, 65537, %v12420_v1  ;;  %vm1084_vm5 = vmpackc.low %vm992_vm3, %vm991_vm1  ;;  %vm1098_vm3 = vcmask 15360   ;;  %s12819_s5 = sld [smem:[#allocation20_spill]] }
  0x4b   : > { %v9932_v16 = vrot.slane %v1021_v15, %v1024_v11  ;;  %v1085_v17 = vsel %vm1084_vm5, 65537, %v12420_v1  ;;  %v9937_v18 = vrot.slane %v1021_v15, %v1028_v14  ;;  %v10100_v15 = vld [vmem:[%s9756_s9] sm:$0xff] }
  0x4c   : > { %v1089_v19 = vrot.slane %v1085_v17, %v1024_v11  ;;  %v1093_v20 = vrot.slane %v1085_v17, %v1028_v14  ;;  %v8730_v17 = vcombine.high %v10100_v15, %v10100_v15 }
  0x4d   : > { %1253 = vrot.lane.b32.xlu1 %v9932_v16, %s9730_s1 }
  0x4e   : > { %1003 = vrot.lane.b32.xlu0 %v998_v13, %s12489_s28  ;;  %8749 = vmatprep.mubr.msk.bf16.mxu0 %vm12406_vm15, %v8730_v17 }
  0x51   : > { %1255 = vrot.lane.b32.xlu1 %v9937_v18, %s9730_s1  ;;  %s12471_s1 = smov 96  }
  0x52   : > { %1207 = vrot.lane.b32.xlu0 %v1089_v19, %s9731_s2 }
  0x55   : > { %1209 = vrot.lane.b32.xlu1 %v1093_v20, %s9731_s2  ;;  %s12485_s2 = smov 110  }
  0x56   : > { %1140 = vrot.lane.b32.xlu0 %v9932_v16, %s9732_s7 }
  0x59   : > { %1142 = vrot.lane.b32.xlu1 %v9937_v18, %s9732_s7  ;;  %s12492_s7 = smov 112  }
  0x5a   : > { %1094 = vrot.lane.b32.xlu0 %v1089_v19, %s9733_s10 }
  0x5d   : > { %1096 = vrot.lane.b32.xlu1 %v1093_v20, %s9733_s10  ;;  %s12481_s10 = smov 126  }
  0x5e   : > { %1320 = vrot.lane.b32.xlu0 %v1089_v19, %s9734_s11 }
  0x61   : > { %1322 = vrot.lane.b32.xlu1 %v1093_v20, %s9734_s11  ;;  %s12483_s11 = smov 94  }
  0xbc   : > { %v1002_v21 = vpop.permute.xlu0 %1001 }
  0xbd   : > { %v9943_v23 = vsel %vm1005_vm6, 0, %v1002_v21 }
  0xbf   : > { %v9955_v28 = vpop.permute.xlu1 %1253 }
  0xc0   : > { %v1004_v22 = vpop.permute.xlu0 %1003  ;;  %12540 = vst [vmem:[#allocation21_spill] sm:$0xff] %v9955_v28  ;;  %vm12415_vm10 = vcmp.ne.s16.totalorder %v9955_v28, 0 }
  0xc1   : > { %v9946_v24 = vsel %vm1005_vm6, %v1002_v21, %v1004_v22  ;;  %v9949_v25 = vsel %vm1005_vm6, %v1004_v22, 0  ;;  %v1262_v38 = vsel %vm12415_vm10, %v9943_v23, 0  ;;  %v1367_v21 = vld [vmem:[%s9831_s27] sm:$0xff] }
  0xc2   : > { %v8706_v26 = vcombine.low %v9949_v25, %v9949_v25  ;;  %v8705_v27 = vcombine.low %v9943_v23, %v9946_v24  ;;  %v9961_v29 = vcombine.high %v9949_v25, %v9949_v25  ;;  %v9965_v30 = vcombine.high %v9943_v23, %v9946_v24 }
  0xc3   : > { %v9971_v31 = vpop.permute.xlu1 %1255 }
  0xc4   : > { %1301 = vrot.lane.b32.xlu1 %v8706_v26, %s12487_s15  ;;  %1299 = vrot.lane.b32.xlu0 %v8705_v27, %s12487_s15  ;;  %12541 = vst [vmem:[#allocation22_spill] sm:$0xff] %v9971_v31  ;;  %v9978_v32 = vsel %vm12402_vm7, %v9955_v28, %v9971_v31  ;;  %vm12417_vm9 = vcmp.ne.s16.totalorder %v9971_v31, 0  ;;  %v9995_v36 = vpop.permute.xlu0 %1207 }
  0xc5   : > { %12542 = vst [vmem:[#allocation23_spill] sm:$0xff] %v9978_v32  ;;  %vm12416_vm8 = vcmp.ne.s16.totalorder %v9978_v32, 0  ;;  %v1264_v34 = vsel %vm12417_vm9, %v9949_v25, 0  ;;  %12544 = vst [vmem:[#allocation25_spill] sm:$0xff] %v9995_v36  ;;  %vm12418_vm14 = vcmp.ne.s16.totalorder %v9995_v36, 0 }
  0xc6   : > { %v1263_v35 = vsel %vm12416_vm8, %v9946_v24, 0  ;;  %v8722_v39 = vcombine.low %v1264_v34, %v1264_v34  ;;  %v8724_v42 = vcombine.high %v1264_v34, %v1264_v34  ;;  %v1216_v48 = vsel %vm12418_vm14, %v9943_v23, 0 }
  0xc7   : > { %v9987_v33 = vpop.permute.xlu1 %1209  ;;  %v8721_v40 = vcombine.low %v1262_v38, %v1263_v35  ;;  %v8723_v43 = vcombine.high %v1262_v38, %v1263_v35 }
  0xc8   : > { %1305 = vrot.lane.b32.xlu1 %v9961_v29, %s12487_s15  ;;  %1303 = vrot.lane.b32.xlu0 %v9965_v30, %s12487_s15  ;;  %12543 = vst [vmem:[#allocation24_spill] sm:$0xff] %v9987_v33  ;;  %v10001_v37 = vsel %vm1211_vm11, %v9995_v36, %v9987_v33  ;;  %vm1215_vm13 = vcmp.ne.s16.totalorder %v9987_v33, 0  ;;  %v10019_v46 = vpop.permute.xlu0 %1140 }
  0xc9   : > { %12545 = vst [vmem:[#allocation26_spill] sm:$0xff] %v10001_v37  ;;  %vm1214_vm12 = vcmp.ne.s16.totalorder %v10001_v37, 0  ;;  %v1218_v44 = vsel %vm1215_vm13, %v9949_v25, 0  ;;  %12547 = vst [vmem:[#allocation28_spill] sm:$0xff] %v10019_v46  ;;  %vm12403_vm2 = vcmp.ne.s16.totalorder %v10019_v46, 0 }
  0xca   : > { %v1217_v45 = vsel %vm1214_vm12, %v9946_v24, 0  ;;  %v8718_v49 = vcombine.low %v1218_v44, %v1218_v44  ;;  %v8720_v52 = vcombine.high %v1218_v44, %v1218_v44  ;;  %v1149_v58 = vsel %vm12403_vm2, %v9943_v23, 0 }
  0xcb   : > { %v10011_v41 = vpop.permute.xlu1 %1142  ;;  %v8717_v50 = vcombine.low %v1216_v48, %v1217_v45  ;;  %v8719_v53 = vcombine.high %v1216_v48, %v1217_v45 }
  0xcc   : > { %1188 = vrot.lane.b32.xlu1 %v8706_v26, %s12469_s16  ;;  %1186 = vrot.lane.b32.xlu0 %v8705_v27, %s12469_s16  ;;  %12546 = vst [vmem:[#allocation27_spill] sm:$0xff] %v10011_v41  ;;  %v10026_v47 = vsel %vm12406_vm15, %v10019_v46, %v10011_v41  ;;  %vm12405_vm1 = vcmp.ne.s16.totalorder %v10011_v41, 0  ;;  %v10044_v56 = vpop.permute.xlu0 %1094  ;;  %vm12408_vm15 = vcmask 785408  }
  0xcd   : > { %12548 = vst [vmem:[#allocation29_spill] sm:$0xff] %v10026_v47  ;;  %vm12404_vm0 = vcmp.ne.s16.totalorder %v10026_v47, 0  ;;  %v1151_v54 = vsel %vm12405_vm1, %v9949_v25, 0  ;;  %12549 = vst [vmem:[#allocation30_spill] sm:$0xff] %v10044_v56  ;;  %vm12414_vm11 = vcmp.ne.s16.totalorder %v10044_v56, 0  ;;  %vm12407_vm1 = vcmask 777216  }
  0xce   : > { %v1150_v55 = vsel %vm12404_vm0, %v9946_v24, 0  ;;  %v8714_v59 = vcombine.low %v1151_v54, %v1151_v54  ;;  %v8716_v61 = vcombine.high %v1151_v54, %v1151_v54  ;;  %v1103_v2 = vsel %vm12414_vm11, %v9943_v23, 0 }
  0xcf   : > { %v10036_v51 = vpop.permute.xlu1 %1096  ;;  %v8713_v60 = vcombine.low %v1149_v58, %v1150_v55  ;;  %v8715_v62 = vcombine.high %v1149_v58, %v1150_v55  ;;  %vm1358_vm11 = vcmask 769024  }
  0xd0   : > { %1192 = vrot.lane.b32.xlu1 %v9961_v29, %s12469_s16  ;;  %1190 = vrot.lane.b32.xlu0 %v9965_v30, %s12469_s16  ;;  %v10050_v57 = vsel %vm1098_vm3, %v10044_v56, %v10036_v51  ;;  %vm1102_vm5 = vcmp.ne.s16.totalorder %v10036_v51, 0  ;;  %vm1324_vm3 = vcmask 277504   ;;  %v10073_v6 = vpop.permute.xlu0 %1320 }
  0xd1   : > { %12550 = vst [vmem:[#allocation31_spill] sm:$0xff] %v10050_v57  ;;  %vm1101_vm4 = vcmp.ne.s16.totalorder %v10050_v57, 0  ;;  %v1105_v63 = vsel %vm1102_vm5, %v9949_v25, 0  ;;  %12551 = vst [vmem:[#allocation32_spill] sm:$0xff] %v10073_v6  ;;  %vm1326_vm0 = vcmp.ne.s16.totalorder %v10073_v6, 0 }
  0xd2   : > { %v1104_v0 = vsel %vm1101_vm4, %v9946_v24, 0  ;;  %v8710_v4 = vcombine.low %v1105_v63, %v1105_v63  ;;  %v8712_v8 = vcombine.high %v1105_v63, %v1105_v63  ;;  %v1329_v12 = vsel %vm1326_vm0, %v9943_v23, 0 }
  0xd3   : > { %v10071_v3 = vpop.permute.xlu1 %1322  ;;  %v8709_v5 = vcombine.low %v1103_v2, %v1104_v0  ;;  %v8711_v9 = vcombine.high %v1103_v2, %v1104_v0 }
  0xd4   : > { %1060 = vrot.lane.b32.xlu1 %v8706_v26, %s12454_s18  ;;  %1058 = vrot.lane.b32.xlu0 %v8705_v27, %s12454_s18  ;;  %v10079_v7 = vsel %vm1324_vm3, %v10073_v6, %v10071_v3  ;;  %vm1328_vm2 = vcmp.ne.s16.totalorder %v10071_v3, 0  ;;  %vm1070_vm3 = vcmask 1043456   ;;  %v12888_v3 = vld [vmem:[#allocation25_spill] sm:$0xff] }
  0xd5   : > { %vm1327_vm7 = vcmp.ne.s16.totalorder %v10079_v7, 0  ;;  %v1331_v10 = vsel %vm1328_vm2, %v9949_v25, 0 }
  0xd6   : > { %v1330_v11 = vsel %vm1327_vm7, %v9946_v24, 0  ;;  %v8726_v13 = vcombine.low %v1331_v10, %v1331_v10  ;;  %v8728_v19 = vcombine.high %v1331_v10, %v1331_v10 }
  0xd7   : > { %v8725_v14 = vcombine.low %v1329_v12, %v1330_v11  ;;  %v8727_v20 = vcombine.high %v1329_v12, %v1330_v11 }
  0xd8   : > { %1280 = vrot.lane.b32.xlu1 %v8722_v39, %s12471_s1  ;;  %1278 = vrot.lane.b32.xlu0 %v8721_v40, %s12471_s1 }
  0xdc   : > { %1284 = vrot.lane.b32.xlu1 %v8724_v42, %s12471_s1  ;;  %1282 = vrot.lane.b32.xlu0 %v8723_v43, %s12471_s1 }
  0xe0   : > { %1234 = vrot.lane.b32.xlu1 %v8718_v49, %s12485_s2  ;;  %1232 = vrot.lane.b32.xlu0 %v8717_v50, %s12485_s2 }
  0xe4   : > { %1238 = vrot.lane.b32.xlu1 %v8720_v52, %s12485_s2  ;;  %1236 = vrot.lane.b32.xlu0 %v8719_v53, %s12485_s2 }
  0xe8   : > { %1167 = vrot.lane.b32.xlu1 %v8714_v59, %s12492_s7  ;;  %1165 = vrot.lane.b32.xlu0 %v8713_v60, %s12492_s7 }
  0xec   : > { %1171 = vrot.lane.b32.xlu1 %v8716_v61, %s12492_s7  ;;  %1169 = vrot.lane.b32.xlu0 %v8715_v62, %s12492_s7 }
  0xf0   : > { %1121 = vrot.lane.b32.xlu1 %v8710_v4, %s12481_s10  ;;  %1119 = vrot.lane.b32.xlu0 %v8709_v5, %s12481_s10 }
  0xf4   : > { %1125 = vrot.lane.b32.xlu1 %v8712_v8, %s12481_s10  ;;  %1123 = vrot.lane.b32.xlu0 %v8711_v9, %s12481_s10 }
  0xf8   : > { %1064 = vrot.lane.b32.xlu1 %v9961_v29, %s12454_s18  ;;  %1062 = vrot.lane.b32.xlu0 %v9965_v30, %s12454_s18 }
  0xfc   : > { %1347 = vrot.lane.b32.xlu1 %v8726_v13, %s12483_s11  ;;  %1345 = vrot.lane.b32.xlu0 %v8725_v14, %s12483_s11 }
 0x100   : > { %1351 = vrot.lane.b32.xlu1 %v8728_v19, %s12483_s11  ;;  %1349 = vrot.lane.b32.xlu0 %v8727_v20, %s12483_s11 }
 0x104   : > { %1388 = vperm.xlu0 %9631, %v1367_v21  }
 0x136   : > { %v1302_v22 = vpop.permute.xlu1 %1301  ;;  %v1300_v25 = vpop.permute.xlu0 %1299 }
 0x137   : > { %v1308_v26 = vrot.slane %v1302_v22, 4  ;;  %v1307_v27 = vrot.slane %v1300_v25, 4 }
 0x139   : > { %v1311_v34 = vsel %vm1070_vm3, %v1307_v27, %v1308_v26 }
 0x13a   : > { %v1306_v29 = vpop.permute.xlu1 %1305  ;;  %v1304_v30 = vpop.permute.xlu0 %1303  ;;  %v1313_v40 = vsel %vm12407_vm1, %v1300_v25, %v1311_v34 }
 0x13b   : > { %v1310_v35 = vrot.slane %v1306_v29, 4  ;;  %v1309_v38 = vrot.slane %v1304_v30, 4 }
 0x13d   : > { %v1314_v39 = vsel %vm1070_vm3, %v1309_v38, %v1310_v35 }
 0x13e   : > { %v1315_v42 = vsel %vm12407_vm1, %v1304_v30, %v1314_v39  ;;  %v1189_v43 = vpop.permute.xlu1 %1188  ;;  %v1187_v44 = vpop.permute.xlu0 %1186  ;;  %vm12409_vm1 = vcmask 900096  }
 0x13f   : > { %v10114_v45 = vcombine.low %v1313_v40, %v1315_v42  ;;  %v10116_v48 = vcombine.high %v1313_v40, %v1315_v42  ;;  %v1195_v19 = vrot.slane %v1189_v43, 4  ;;  %v1194_v20 = vrot.slane %v1187_v44, 4 }
 0x141   : > { %1491 = vmatprep.subr.bf16.mxu0 %v10116_v48  ;;  %1887 = vmatprep.subr.bf16.mxu1 %v10116_v48  ;;  %v1198_v30 = vsel %vm1070_vm3, %v1194_v20, %v1195_v19 }
 0x142   : > { %v1193_v49 = vpop.permute.xlu1 %1192  ;;  %1492 = vmatpush1.bf16.msra.mxu0 %v10114_v45  ;;  %1888 = vmatpush1.bf16.msra.mxu1 %v10114_v45  ;;  %v1191_v50 = vpop.permute.xlu0 %1190 }
 0x143   : > { %v1197_v4 = vrot.slane %v1193_v49, 4  ;;  %v1196_v5 = vrot.slane %v1191_v50, 4 }
 0x145   : > { %v1201_v25 = vsel %vm1070_vm3, %v1196_v5, %v1197_v4 }
 0x146   : > { %v10122_v52 = vpop.permute.xlu1 %1060  ;;  %v10124_v53 = vpop.permute.xlu0 %1058 }
 0x147   : > { %v1066_v19 = vrot.slane %v10124_v53, 4 }
 0x14a   : > { %v1281_v54 = vpop.permute.xlu1 %1280  ;;  %v1279_v55 = vpop.permute.xlu0 %1278 }
 0x14b   : > { %v1287_v58 = vrot.slane %v1281_v54, 4  ;;  %v1286_v59 = vrot.slane %v1279_v55, 4 }
 0x14d   : > { %v1290_v62 = vsel %vm1070_vm3, %v1286_v59, %v1287_v58 }
 0x14e   : > { %v1285_v60 = vpop.permute.xlu1 %1284  ;;  %v1283_v61 = vpop.permute.xlu0 %1282  ;;  %v1292_v8 = vsel %vm12408_vm15, %v1279_v55, %v1290_v62 }
 0x14f   : > { %v1289_v63 = vrot.slane %v1285_v60, 4  ;;  %v1288_v0 = vrot.slane %v1283_v61, 4 }
 0x151   : > { %v1293_v2 = vsel %vm1070_vm3, %v1288_v0, %v1289_v63 }
 0x152   : > { %v1294_v9 = vsel %vm12408_vm15, %v1283_v61, %v1293_v2  ;;  %v1235_v10 = vpop.permute.xlu1 %1234  ;;  %v1233_v11 = vpop.permute.xlu0 %1232  ;;  %vm12411_vm15 = vcmask 908288  }
 0x153   : > { %v10130_v12 = vcombine.low %v1292_v8, %v1294_v9  ;;  %v10132_v13 = vcombine.high %v1292_v8, %v1294_v9  ;;  %v1241_v14 = vrot.slane %v1235_v10, 4  ;;  %v1240_v17 = vrot.slane %v1233_v11, 4 }
 0x154   : > { %v1202_v35 = vsel %vm12411_vm15, %v1191_v50, %v1201_v25  ;;  %v1200_v58 = vsel %vm12411_vm15, %v1187_v44, %v1198_v30  ;;  %vm12413_vm15 = vcmask 1039360  }
 0x155   : > { %1493 = vmatprep.subr.bf16.mxu0 %v10132_v13  ;;  %1889 = vmatprep.subr.bf16.mxu1 %v10132_v13  ;;  %v1244_v26 = vsel %vm1070_vm3, %v1240_v17, %v1241_v14  ;;  %v10150_v59 = vcombine.high %v1200_v58, %v1202_v35  ;;  %v10159_v44 = vcombine.low %v1200_v58, %v1202_v35  ;;  %v1067_v17 = vrot.slane %v10122_v52, 4 }
 0x156   : > { %v1239_v21 = vpop.permute.xlu1 %1238  ;;  %1494 = vmatpush1.bf16.msra.mxu0 %v10130_v12  ;;  %1890 = vmatpush1.bf16.msra.mxu1 %v10130_v12  ;;  %v1237_v22 = vpop.permute.xlu0 %1236  ;;  %v1246_v38 = vsel %vm12409_vm1, %v1233_v11, %v1244_v26 }
 0x157   : > { %v1243_v27 = vrot.slane %v1239_v21, 4  ;;  %v1242_v29 = vrot.slane %v1237_v22, 4 }
 0x159   : > { %v1247_v34 = vsel %vm1070_vm3, %v1242_v29, %v1243_v27  ;;  %v1071_v29 = vsel %vm1070_vm3, %v1066_v19, %v1067_v17 }
 0x15a   : > { %v1248_v39 = vsel %vm12409_vm1, %v1237_v22, %v1247_v34  ;;  %v1168_v40 = vpop.permute.xlu1 %1167  ;;  %v1166_v42 = vpop.permute.xlu0 %1165  ;;  %vm12410_vm1 = vcmask 916480  }
 0x15b   : > { %v10145_v43 = vcombine.low %v1246_v38, %v1248_v39  ;;  %v10147_v49 = vcombine.high %v1246_v38, %v1248_v39  ;;  %v1174_v54 = vrot.slane %v1168_v40, 4  ;;  %v1173_v55 = vrot.slane %v1166_v42, 4 }
 0x15d   : > { %1495 = vmatprep.subr.bf16.mxu0 %v10147_v49  ;;  %1891 = vmatprep.subr.bf16.mxu1 %v10147_v49  ;;  %v1177_v61 = vsel %vm1070_vm3, %v1173_v55, %v1174_v54  ;;  %v1073_v55 = vsel %vm12413_vm15, %v10124_v53, %v1071_v29 }
 0x15e   : > { %v1172_v50 = vpop.permute.xlu1 %1171  ;;  %1496 = vmatpush1.bf16.msra.mxu0 %v10145_v43  ;;  %1892 = vmatpush1.bf16.msra.mxu1 %v10145_v43  ;;  %v1170_v60 = vpop.permute.xlu0 %1169  ;;  %v1179_v2 = vsel %vm12410_vm1, %v1166_v42, %v1177_v61 }
 0x15f   : > { %v1176_v62 = vrot.slane %v1172_v50, 4  ;;  %v1175_v63 = vrot.slane %v1170_v60, 4  ;;  %1497 = vmatprep.subr.bf16.mxu0 %v10150_v59  ;;  %1893 = vmatprep.subr.bf16.mxu1 %v10150_v59 }
 0x161   : > { %v1180_v0 = vsel %vm1070_vm3, %v1175_v63, %v1176_v62 }
 0x162   : > { %v1181_v4 = vsel %vm12410_vm1, %v1170_v60, %v1180_v0  ;;  %v1122_v5 = vpop.permute.xlu1 %1121  ;;  %1498 = vmatpush1.bf16.msra.mxu0 %v10159_v44  ;;  %1894 = vmatpush1.bf16.msra.mxu1 %v10159_v44  ;;  %v1120_v8 = vpop.permute.xlu0 %1119  ;;  %vm12412_vm1 = vcmask 1031168  }
 0x163   : > { %v10166_v9 = vcombine.low %v1179_v2, %v1181_v4  ;;  %v10168_v10 = vcombine.high %v1179_v2, %v1181_v4  ;;  %v1128_v11 = vrot.slane %v1122_v5, 4  ;;  %v1127_v14 = vrot.slane %v1120_v8, 4 }
 0x165   : > { %1499 = vmatprep.subr.bf16.mxu0 %v10168_v10  ;;  %1895 = vmatprep.subr.bf16.mxu1 %v10168_v10  ;;  %v1131_v22 = vsel %vm1070_vm3, %v1127_v14, %v1128_v11 }
 0x166   : > { %v1126_v20 = vpop.permute.xlu1 %1125  ;;  %1500 = vmatpush1.bf16.msra.mxu0 %v10166_v9  ;;  %1896 = vmatpush1.bf16.msra.mxu1 %v10166_v9  ;;  %v1124_v21 = vpop.permute.xlu0 %1123  ;;  %v1133_v52 = vsel %vm12412_vm1, %v1120_v8, %v1131_v22  ;;  %v8729_v22 = vcombine.low %v10100_v15, %v10100_v15 }
 0x167   : > { %v1130_v25 = vrot.slane %v1126_v20, 4  ;;  %v1129_v26 = vrot.slane %v1124_v21, 4 }
 0x169   : > { %v1134_v27 = vsel %vm1070_vm3, %v1129_v26, %v1130_v25 }
 0x16a   : > { %v1135_v30 = vsel %vm12412_vm1, %v1124_v21, %v1134_v27  ;;  %v1065_v34 = vpop.permute.xlu1 %1064  ;;  %v1063_v35 = vpop.permute.xlu0 %1062  ;;  %vm1031_vm1 = vcmp.ne.s16.totalorder %v9937_v18, 0 }
 0x16b   : > { %v10181_v38 = vcombine.low %v1133_v52, %v1135_v30  ;;  %v10183_v39 = vcombine.high %v1133_v52, %v1135_v30  ;;  %v1069_v40 = vrot.slane %v1065_v34, 4  ;;  %v1068_v42 = vrot.slane %v1063_v35, 4 }
 0x16d   : > { %v1074_v54 = vsel %vm1070_vm3, %v1068_v42, %v1069_v40  ;;  %1501 = vmatprep.subr.bf16.mxu0 %v10183_v39  ;;  %1897 = vmatprep.subr.bf16.mxu1 %v10183_v39 }
 0x16e   : > { %v1075_v58 = vsel %vm12413_vm15, %v1063_v35, %v1074_v54  ;;  %v1348_v50 = vpop.permute.xlu1 %1347  ;;  %1502 = vmatpush1.bf16.msra.mxu0 %v10181_v38  ;;  %1898 = vmatpush1.bf16.msra.mxu1 %v10181_v38  ;;  %v1346_v60 = vpop.permute.xlu0 %1345  ;;  %vm1030_vm15 = vcmp.ne.s16.totalorder %v9932_v16, 0 }
 0x16f   : > { %v10193_v61 = vcombine.low %v1073_v55, %v1075_v58  ;;  %v10195_v62 = vcombine.high %v1073_v55, %v1075_v58  ;;  %v1354_v63 = vrot.slane %v1348_v50, 4  ;;  %v1353_v0 = vrot.slane %v1346_v60, 4 }
 0x170   : > { %v10214_v14 = vsel %vm1030_vm15, %v9943_v23, 0 }
 0x171   : > { %1503 = vmatprep.subr.bf16.mxu0 %v10195_v62  ;;  %1899 = vmatprep.subr.bf16.mxu1 %v10195_v62  ;;  %v1357_v4 = vsel %vm1070_vm3, %v1353_v0, %v1354_v63 }
 0x172   : > { %v1352_v53 = vpop.permute.xlu1 %1351  ;;  %1504 = vmatpush1.bf16.msra.mxu0 %v10193_v61  ;;  %1900 = vmatpush1.bf16.msra.mxu1 %v10193_v61  ;;  %v1350_v2 = vpop.permute.xlu0 %1349  ;;  %v1359_v17 = vsel %vm1358_vm11, %v1346_v60, %v1357_v4 }
 0x173   : > { %v1356_v5 = vrot.slane %v1352_v53, 4  ;;  %v1355_v8 = vrot.slane %v1350_v2, 4  ;;  %9550 = vmatprep.subr.msk.bf16.mxu0 %vm1031_vm1, %v9946_v24  ;;  %9552 = vmatprep.subr.msk.bf16.mxu1 %vm1031_vm1, %v9946_v24 }
 0x175   : > { %v1360_v11 = vsel %vm1070_vm3, %v1355_v8, %v1356_v5 }
 0x176   : > { %v1361_v19 = vsel %vm1358_vm11, %v1350_v2, %v1360_v11  ;;  %1506 = vmatpush1.bf16.msra.mxu0 %v10214_v14  ;;  %1902 = vmatpush1.bf16.msra.mxu1 %v10214_v14 }
 0x177   : > { %v10220_v20 = vcombine.low %v1359_v17, %v1361_v19  ;;  %v10222_v21 = vcombine.high %v1359_v17, %v1361_v19 }
 0x179   : > { %12552 = vst [vmem:[#allocation33_spill] sm:$0xff] %v10220_v20  ;;  %12553 = vst [vmem:[#allocation34_spill] sm:$0xff] %v10222_v21  ;;  %1521 = vmatprep.subr.bf16.mxu0 %v10222_v21 }
 0x17a   : > { %1522 = vmatpush2.bf16.msra.mxu0 %v10220_v20 }
 0x17b   : > { %2335 = vmatprep.subr.bf16.mxu0 %v10116_v48 }
 0x17d   : > { %1524 = vmatmul.mubr.bf16.vlgmr.msra.gmra.mxu0 %v8729_v22 }
 0x17e   : > { %2336 = vmatpush1.bf16.msra.mxu0 %v10114_v45 }
 0x17f   : > { %2337 = vmatprep.subr.bf16.mxu0 %v10132_v13  ;;  %v1389_v23 = vpop.permute.xlu0 %1388 }
 0x182   : > { %2338 = vmatpush1.bf16.msra.mxu0 %v10130_v12 }
 0x183   : > { %2339 = vmatprep.subr.bf16.mxu0 %v10147_v49 }
 0x186   : > { %2340 = vmatpush1.bf16.msra.mxu0 %v10145_v43 }
 0x187   : > { %2341 = vmatprep.subr.bf16.mxu0 %v10150_v59 }
 0x18a   : > { %2342 = vmatpush1.bf16.msra.mxu0 %v10159_v44 }
 0x18b   : > { %2343 = vmatprep.subr.bf16.mxu0 %v10168_v10 }
 0x18e   : > { %2344 = vmatpush1.bf16.msra.mxu0 %v10166_v9 }
 0x18f   : > { %2345 = vmatprep.subr.bf16.mxu0 %v10183_v39 }
 0x192   : > { %2346 = vmatpush1.bf16.msra.mxu0 %v10181_v38 }
 0x193   : > { %2347 = vmatprep.subr.bf16.mxu0 %v10195_v62 }
 0x196   : > { %2348 = vmatpush1.bf16.msra.mxu0 %v10193_v61 }
 0x197   : > { %9554 = vmatprep.subr.msk.bf16.mxu0 %vm1031_vm1, %v9946_v24 }
 0x19a   : > { %2350 = vmatpush1.bf16.msra.mxu0 %v10214_v14 }
 0x23d   : > { %v1525_v15 = vpop.f32.mrf.mxu0 }
 0x23e   : > { %v1526_v25 = vadd.f32 %v1525_v15, %v1389_v23 }
 0x23f   : > { %v1527_v26 = vpop.f32.mrf.mxu0 }
 0x240   : > { %v1532_v27 = vmax.f32 %v1526_v25, 0.0  ;;  %v1528_v29 = vadd.f32 %v1527_v26, %v1389_v23 }
 0x241   : > { %v1529_v52 = vpop.f32.mrf.mxu0 }
 0x242   : > { %v1533_v30 = vmax.f32 %v1528_v29, 0.0  ;;  %v1534_v34 = vpack.c.bf16 %v1532_v27, %v1532_v27 }
 0x243   : > { %v1530_v35 = vpop.f32.mrf.mxu0 }
 0x244   : > { %1538 = vrot.lane.b32.xlu1 %v1534_v34, %s12489_s28  ;;  %v1535_v40 = vpack.c.bf16 %v1533_v30, %v1533_v30 }
 0x248   : > { %1540 = vrot.lane.b32.xlu1 %v1535_v40, %s12489_s28 }
 0x2b6   : > { %v1539_v42 = vpop.permute.xlu1 %1538 }
 0x2b7   : > { %v1545_v55 = vsel %vm1005_vm6, 0, %v1539_v42 }
 0x2b8   : > { %v10259_v2 = vsel %vm1030_vm15, %v1545_v55, 0  ;;  %v1680_v8 = vsel %vm1326_vm0, %v1545_v55, 0  ;;  %v1649_v23 = vsel %vm12415_vm10, %v1545_v55, 0  ;;  %v1628_v29 = vsel %vm12418_vm14, %v1545_v55, 0 }
 0x2b9   : > { %vm12554_vm10 = vcmp.ne.s16.totalorder %v10044_v56, 0  ;;  %vm12558_vm14 = vcmp.ne.s16.totalorder %v10019_v46, 0 }
 0x2ba   : > { %v1541_v54 = vpop.permute.xlu1 %1540  ;;  %v1576_v40 = vsel %vm12554_vm10, %v1545_v55, 0  ;;  %vm12419_vm10 = vcmask 719872  }
 0x2bb   : > { %v1542_v58 = vsel %vm1005_vm6, %v1539_v42, %v1541_v54  ;;  %v1548_v50 = vsel %vm1005_vm6, %v1541_v54, 0 }
 0x2bc   : > { %v8752_v60 = vcombine.low %v1548_v50, %v1548_v50  ;;  %v8751_v63 = vcombine.low %v1545_v55, %v1542_v58  ;;  %v1682_v0 = vsel %vm1328_vm2, %v1548_v50, 0  ;;  %v1681_v53 = vsel %vm1327_vm7, %v1542_v58, 0 }
 0x2bd   : > { %v10263_v4 = vsel %vm1031_vm1, %v1542_v58, 0  ;;  %v8762_v11 = vcombine.low %v1682_v0, %v1682_v0  ;;  %v8761_v17 = vcombine.low %v1680_v8, %v1681_v53  ;;  %v1651_v19 = vsel %vm12417_vm9, %v1548_v50, 0 }
 0x2be   : > { %1672 = vrot.lane.b32.xlu1 %v8752_v60, %s12487_s15  ;;  %1670 = vrot.lane.b32.xlu0 %v8751_v63, %s12487_s15  ;;  %v8750_v5 = vcombine.low %v10259_v2, %v10263_v4  ;;  %v1650_v22 = vsel %vm12416_vm8, %v1542_v58, 0  ;;  %v8760_v15 = vcombine.low %v1651_v19, %v1651_v19  ;;  %v1630_v26 = vsel %vm1215_vm13, %v1548_v50, 0  ;;  %v10306_v19 = vld [vmem:[%s9761_s13] sm:$0xff] }
 0x2bf   : > { %v8759_v25 = vcombine.low %v1649_v23, %v1650_v22  ;;  %v1629_v27 = vsel %vm1214_vm12, %v1542_v58, 0  ;;  %v8758_v52 = vcombine.low %v1630_v26, %v1630_v26  ;;  %v1578_v34 = vsel %vm1102_vm5, %v1548_v50, 0 }
 0x2c0   : > { %v8757_v30 = vcombine.low %v1628_v29, %v1629_v27  ;;  %v1577_v35 = vsel %vm1101_vm4, %v1542_v58, 0  ;;  %v8754_v42 = vcombine.low %v1578_v34, %v1578_v34  ;;  %vm12556_vm8 = vcmp.ne.s16.totalorder %v10011_v41, 0 }
 0x2c1   : > { %v8753_v54 = vcombine.low %v1576_v40, %v1577_v35  ;;  %v1599_v0 = vsel %vm12556_vm8, %v1548_v50, 0  ;;  %vm12557_vm9 = vcmp.ne.s16.totalorder %v10026_v47, 0  ;;  %v1597_v8 = vsel %vm12558_vm14, %v1545_v55, 0  ;;  %v1702_v50 = vld [vmem:[%s12555_s4] sm:$0xff]  ;;  %s12817_s4 = sld [smem:[#allocation9_spill]] }
 0x2c2   : > { %1620 = vrot.lane.b32.xlu1 %v8752_v60, %s12469_s16  ;;  %1618 = vrot.lane.b32.xlu0 %v8751_v63, %s12469_s16  ;;  %v1598_v53 = vsel %vm12557_vm9, %v1542_v58, 0  ;;  %v8764_v58 = vcombine.high %v10306_v19, %v10306_v19  ;;  %vm12559_vm8 = vcmask 777216   ;;  %vm12560_vm9 = vcmask 785408  }
 0x2c3   : > { %vm12561_vm14 = vcmask 908288  }
 0x2c4   : > { %8794 = vmatprep.mubr.msk.bf16.mxu1 %vm12419_vm10, %v8764_v58  ;;  %vm12576_vm10 = vcmp.ne.s16.totalorder %v9955_v28, 0 }
 0x2c6   : > { %1693 = vrot.lane.b32.xlu1 %v8762_v11, %s12483_s11  ;;  %1691 = vrot.lane.b32.xlu0 %v8761_v17, %s12483_s11  ;;  %v8756_v11 = vcombine.low %v1599_v0, %v1599_v0  ;;  %v8755_v17 = vcombine.low %v1597_v8, %v1598_v53 }
 0x2ca   : > { %1662 = vrot.lane.b32.xlu1 %v8760_v15, %s12471_s1  ;;  %1660 = vrot.lane.b32.xlu0 %v8759_v25, %s12471_s1 }
 0x2ce   : > { %1641 = vrot.lane.b32.xlu1 %v8758_v52, %s12485_s2  ;;  %1639 = vrot.lane.b32.xlu0 %v8757_v30, %s12485_s2 }
 0x2d2   : > { %1589 = vrot.lane.b32.xlu1 %v8754_v42, %s12481_s10  ;;  %1587 = vrot.lane.b32.xlu0 %v8753_v54, %s12481_s10 }
 0x2d6   : > { %1610 = vrot.lane.b32.xlu1 %v8756_v11, %s12492_s7  ;;  %1608 = vrot.lane.b32.xlu0 %v8755_v17, %s12492_s7 }
 0x2da   : > { %1568 = vrot.lane.b32.xlu1 %v8752_v60, %s12454_s18  ;;  %1566 = vrot.lane.b32.xlu0 %v8751_v63, %s12454_s18 }
 0x2de   : > { %1732 = vperm.xlu0 %9631, %v1702_v50  }
 0x330   : > { %v1673_v55 = vpop.permute.xlu1 %1672  ;;  %v1671_v22 = vpop.permute.xlu0 %1670 }
 0x331   : > { %v1675_v25 = vrot.slane %v1673_v55, 4  ;;  %v1674_v26 = vrot.slane %v1671_v22, 4 }
 0x333   : > { %v1676_v63 = vsel %vm1070_vm3, %v1674_v26, %v1675_v25 }
 0x334   : > { %v1621_v23 = vpop.permute.xlu1 %1620  ;;  %v1619_v15 = vpop.permute.xlu0 %1618  ;;  %v1677_v50 = vsel %vm12559_vm8, %v1671_v22, %v1676_v63  ;;  %vm12562_vm8 = vcmask 900096  }
 0x335   : > { %v1623_v34 = vrot.slane %v1621_v23, 4  ;;  %v1622_v35 = vrot.slane %v1619_v15, 4 }
 0x337   : > { %v1624_v55 = vsel %vm1070_vm3, %v1622_v35, %v1623_v34 }
 0x338   : > { %v1694_v27 = vpop.permute.xlu1 %1693  ;;  %v1692_v29 = vpop.permute.xlu0 %1691 }
 0x339   : > { %v1696_v52 = vrot.slane %v1694_v27, 4  ;;  %v1695_v30 = vrot.slane %v1692_v29, 4 }
 0x33b   : > { %v1697_v60 = vsel %vm1070_vm3, %v1695_v30, %v1696_v52 }
 0x33c   : > { %v10317_v40 = vsel %vm1358_vm11, %v1692_v29, %v1697_v60  ;;  %v1663_v42 = vpop.permute.xlu1 %1662  ;;  %v1661_v54 = vpop.permute.xlu0 %1660 }
 0x33d   : > { %v1665_v0 = vrot.slane %v1663_v42, 4  ;;  %v1664_v53 = vrot.slane %v1661_v54, 4  ;;  %v8792_v8 = vcombine.high %v10317_v40, %v10317_v40  ;;  %v8791_v11 = vcombine.low %v10317_v40, %v10317_v40 }
 0x33e   : > { %v1625_v42 = vsel %vm12561_vm14, %v1619_v15, %v1624_v55  ;;  %vm12564_vm14 = vcmask 916480  }
 0x33f   : > { %v1666_v17 = vsel %vm1070_vm3, %v1664_v53, %v1665_v0  ;;  %8793 = vmatprep.subr.msk.bf16.mxu1 %vm1070_vm3, %v8792_v8  ;;  %v1882_v58 = vsel %vm1070_vm3, %v8791_v11, 0 }
 0x340   : > { %v1667_v23 = vsel %vm12560_vm9, %v1661_v54, %v1666_v17  ;;  %v1642_v25 = vpop.permute.xlu1 %1641  ;;  %1908 = vmatpush2.bf16.msra.mxu1 %v1882_v58  ;;  %v1640_v26 = vpop.permute.xlu0 %1639  ;;  %vm12563_vm9 = vcmask 1031168  }
 0x341   : > { %v10329_v27 = vcombine.low %v1667_v23, %v1677_v50  ;;  %v10331_v29 = vcombine.high %v1667_v23, %v1677_v50  ;;  %v1644_v52 = vrot.slane %v1642_v25, 4  ;;  %v1643_v30 = vrot.slane %v1640_v26, 4 }
 0x343   : > { %v1645_v60 = vsel %vm1070_vm3, %v1643_v30, %v1644_v52  ;;  %1909 = vmatprep.subr.bf16.mxu1 %v10331_v29 }
 0x344   : > { %v1646_v22 = vsel %vm12562_vm8, %v1640_v26, %v1645_v60  ;;  %v1590_v63 = vpop.permute.xlu1 %1589  ;;  %1910 = vmatpush2.bf16.msra.mxu1 %v10329_v27  ;;  %v1588_v34 = vpop.permute.xlu0 %1587  ;;  %vm12566_vm8 = vcmask 1039360  }
 0x345   : > { %v10338_v35 = vcombine.low %v1625_v42, %v1646_v22  ;;  %v10340_v54 = vcombine.high %v1625_v42, %v1646_v22  ;;  %v1592_v0 = vrot.slane %v1590_v63, 4  ;;  %v1591_v53 = vrot.slane %v1588_v34, 4 }
 0x347   : > { %1911 = vmatprep.subr.bf16.mxu1 %v10340_v54  ;;  %v1593_v15 = vsel %vm1070_vm3, %v1591_v53, %v1592_v0  ;;  %v8763_v53 = vcombine.low %v10306_v19, %v10306_v19 }
 0x348   : > { %v1611_v8 = vpop.permute.xlu1 %1610  ;;  %1912 = vmatpush2.bf16.msra.mxu1 %v10338_v35  ;;  %v1609_v11 = vpop.permute.xlu0 %1608  ;;  %v1594_v55 = vsel %vm12563_vm9, %v1588_v34, %v1593_v15  ;;  %vm12569_vm9 = vcmp.ne.s16.totalorder %v10011_v41, 0 }
 0x349   : > { %v1613_v17 = vrot.slane %v1611_v8, 4  ;;  %v1612_v58 = vrot.slane %v1609_v11, 4 }
 0x34b   : > { %v1614_v50 = vsel %vm1070_vm3, %v1612_v58, %v1613_v17 }
 0x34c   : > { %v1615_v23 = vsel %vm12564_vm14, %v1609_v11, %v1614_v50  ;;  %v1569_v25 = vpop.permute.xlu1 %1568  ;;  %v1567_v26 = vpop.permute.xlu0 %1566  ;;  %vm12570_vm14 = vcmp.ne.s16.totalorder %v10026_v47, 0 }
 0x34d   : > { %v10348_v52 = vcombine.low %v1594_v55, %v1615_v23  ;;  %v10350_v30 = vcombine.high %v1594_v55, %v1615_v23  ;;  %v1571_v60 = vrot.slane %v1569_v25, 4  ;;  %v1570_v42 = vrot.slane %v1567_v26, 4 }
 0x34f   : > { %12565 = vst [vmem:[#allocation35_spill] sm:$0xff] %v10348_v52  ;;  %v1572_v22 = vsel %vm1070_vm3, %v1570_v42, %v1571_v60  ;;  %1913 = vmatprep.subr.bf16.mxu1 %v10350_v30 }
 0x350   : > { %v1573_v63 = vsel %vm12566_vm8, %v1567_v26, %v1572_v22  ;;  %1914 = vmatpush2.bf16.msra.mxu1 %v10348_v52  ;;  %vm12571_vm8 = vcmp.ne.s16.totalorder %v10019_v46, 0 }
 0x351   : > { %v10357_v34 = vcombine.low %v10259_v2, %v1573_v63  ;;  %v10362_v0 = vcombine.high %v8750_v5, %v1573_v63 }
 0x353   : > { %12567 = vst [vmem:[#allocation36_spill] sm:$0xff] %v10357_v34  ;;  %12568 = vst [vmem:[#allocation37_spill] sm:$0xff] %v10362_v0  ;;  %1915 = vmatprep.subr.bf16.mxu1 %v10362_v0 }
 0x354   : > { %1916 = vmatpush2.bf16.msra.mxu1 %v10357_v34 }
 0x355   : > { %1917 = vmatprep.subr.bf16.mxu1 %v10222_v21 }
 0x358   : > { %1918 = vmatpush2.bf16.msra.mxu1 %v10220_v20 }
 0x359   : > { %v1733_v8 = vpop.permute.xlu0 %1732 }
 0x35b   : > { %1920 = vmatmul.mubr.bf16.vlgmr.msra.gmra.mxu1 %v8763_v53 }
 0x35c   : > { %2408 = vmatprep.mubr.bf16.mxu1 %v12420_v1 }
 0x41b   : > { %v1921_v11 = vpop.f32.mrf.mxu1 }
 0x41c   : > { %v1922_v15 = vadd.f32 %v1921_v11, %v1733_v8 }
 0x41d   : > { %v1923_v2 = vpop.f32.mrf.mxu1 }
 0x41e   : > { %v1928_v4 = vmax.f32 %v1922_v15, 0.0  ;;  %v1924_v5 = vadd.f32 %v1923_v2, %v1733_v8 }
 0x41f   : > { %v1925_v17 = vpop.f32.mrf.mxu1 }
 0x420   : > { %v1930_v58 = vpack.c.bf16 %v1928_v4, %v1928_v4  ;;  %v1929_v50 = vmax.f32 %v1924_v5, 0.0 }
 0x421   : > { %v1926_v55 = vpop.f32.mrf.mxu1 }
 0x422   : > { %v1931_v23 = vpack.c.bf16 %v1929_v50, %v1929_v50  ;;  %1934 = vrot.lane.b32.xlu1 %v1930_v58, %s12489_s28 }
 0x424   : > { %1936 = vrot.lane.b32.xlu0 %v1931_v23, %s12489_s28 }
 0x494   : > { %v1935_v19 = vpop.permute.xlu1 %1934 }
 0x495   : > { %v1941_v26 = vsel %vm1005_vm6, 0, %v1935_v19 }
 0x496   : > { %v1937_v25 = vpop.permute.xlu0 %1936  ;;  %v10384_v11 = vsel %vm1030_vm15, %v1941_v26, 0  ;;  %v1993_v4 = vsel %vm12571_vm8, %v1941_v26, 0  ;;  %vm12574_vm8 = vcmp.ne.s16.totalorder %v9971_v31, 0 }
 0x497   : > { %v1938_v60 = vsel %vm1005_vm6, %v1935_v19, %v1937_v25  ;;  %v1944_v42 = vsel %vm1005_vm6, %v1937_v25, 0 }
 0x498   : > { %v8797_v22 = vcombine.low %v1944_v42, %v1944_v42  ;;  %v8796_v63 = vcombine.low %v1941_v26, %v1938_v60  ;;  %v1995_v53 = vsel %vm12569_vm9, %v1944_v42, 0  ;;  %v1994_v8 = vsel %vm12570_vm14, %v1938_v60, 0 }
 0x499   : > { %v10388_v15 = vsel %vm1031_vm1, %v1938_v60, 0  ;;  %v8801_v5 = vcombine.low %v1995_v53, %v1995_v53  ;;  %v8800_v17 = vcombine.low %v1993_v4, %v1994_v8  ;;  %v1974_v58 = vsel %vm1102_vm5, %v1944_v42, 0 }
 0x49a   : > { %2016 = vrot.lane.b32.xlu0 %v8797_v22, %s12469_s16  ;;  %2014 = vrot.lane.b32.xlu1 %v8796_v63, %s12469_s16  ;;  %v1973_v50 = vsel %vm1101_vm4, %v1938_v60, 0  ;;  %vm12572_vm9 = vcmp.ne.s16.totalorder %v10044_v56, 0  ;;  %v8799_v23 = vcombine.low %v1974_v58, %v1974_v58  ;;  %v2078_v25 = vsel %vm1328_vm2, %v1944_v42, 0 }
 0x49b   : > { %v1972_v55 = vsel %vm12572_vm9, %v1941_v26, 0  ;;  %v2077_v53 = vsel %vm1327_vm7, %v1938_v60, 0  ;;  %v2076_v8 = vsel %vm1326_vm0, %v1941_v26, 0  ;;  %v8807_v4 = vcombine.low %v2078_v25, %v2078_v25 }
 0x49c   : > { %v8798_v19 = vcombine.low %v1972_v55, %v1973_v50  ;;  %v2025_v58 = vsel %vm1214_vm12, %v1938_v60, 0  ;;  %vm12573_vm14 = vcmp.ne.s16.totalorder %v9995_v36, 0  ;;  %v2047_v55 = vsel %vm12574_vm8, %v1944_v42, 0 }
 0x49d   : > { %vm12575_vm9 = vcmp.ne.s16.totalorder %v9978_v32, 0  ;;  %v8805_v25 = vcombine.low %v2047_v55, %v2047_v55  ;;  %vm12579_vm8 = vcmask 1039360  }
 0x49e   : > { %1964 = vrot.lane.b32.xlu0 %v8797_v22, %s12454_s18  ;;  %1962 = vrot.lane.b32.xlu1 %v8796_v63, %s12454_s18 }
 0x4a2   : > { %2006 = vrot.lane.b32.xlu0 %v8801_v5, %s12492_s7  ;;  %2004 = vrot.lane.b32.xlu1 %v8800_v17, %s12492_s7  ;;  %v8806_v5 = vcombine.low %v2076_v8, %v2077_v53  ;;  %v2026_v17 = vsel %vm1215_vm13, %v1944_v42, 0  ;;  %v10433_v8 = vld [vmem:[%s9766_s17] sm:$0xff] }
 0x4a3   : > { %v8809_v42 = vcombine.high %v10433_v8, %v10433_v8 }
 0x4a5   : > { %2367 = vmatprep.mubr.bf16.mxu0 %v8809_v42 }
 0x4a6   : > { %1985 = vrot.lane.b32.xlu0 %v8799_v23, %s12481_s10  ;;  %1983 = vrot.lane.b32.xlu1 %v8798_v19, %s12481_s10  ;;  %v2046_v23 = vsel %vm12575_vm9, %v1938_v60, 0  ;;  %v2045_v19 = vsel %vm12576_vm10, %v1941_v26, 0  ;;  %v2099_v60 = vld [vmem:[%s9841_s12] sm:$0xff]  ;;  %vm12577_vm10 = vcmask 908288   ;;  %vm12580_vm9 = vcmask 1031168  }
 0x4a7   : > { %v8804_v53 = vcombine.low %v2045_v19, %v2046_v23 }
 0x4aa   : > { %2068 = vrot.lane.b32.xlu0 %v8797_v22, %s12487_s15  ;;  %2066 = vrot.lane.b32.xlu1 %v8796_v63, %s12487_s15  ;;  %v2024_v22 = vsel %vm12573_vm14, %v1941_v26, 0  ;;  %v8803_v63 = vcombine.low %v2026_v17, %v2026_v17  ;;  %vm12578_vm14 = vcmask 916480  }
 0x4ab   : > { %v8802_v50 = vcombine.low %v2024_v22, %v2025_v58 }
 0x4ae   : > { %2089 = vrot.lane.b32.xlu0 %v8807_v4, %s12483_s11  ;;  %2087 = vrot.lane.b32.xlu1 %v8806_v5, %s12483_s11 }
 0x4b2   : > { %2037 = vrot.lane.b32.xlu0 %v8803_v63, %s12485_s2  ;;  %2035 = vrot.lane.b32.xlu1 %v8802_v50, %s12485_s2 }
 0x4b6   : > { %2058 = vrot.lane.b32.xlu0 %v8805_v25, %s12471_s1  ;;  %2056 = vrot.lane.b32.xlu1 %v8804_v53, %s12471_s1 }
 0x4ba   : > { %2138 = vperm.xlu1 %9632, %v2099_v60  }
 0x50c   : > { %v2017_v4 = vpop.permute.xlu0 %2016  ;;  %v2015_v5 = vpop.permute.xlu1 %2014 }
 0x50d   : > { %v2019_v22 = vrot.slane %v2017_v4, 4  ;;  %v2018_v26 = vrot.slane %v2015_v5, 4 }
 0x50f   : > { %v2020_v19 = vsel %vm1070_vm3, %v2018_v26, %v2019_v22 }
 0x510   : > { %v1965_v17 = vpop.permute.xlu0 %1964  ;;  %v1963_v58 = vpop.permute.xlu1 %1962  ;;  %v2021_v42 = vsel %vm12577_vm10, %v2015_v5, %v2020_v19  ;;  %vm12582_vm10 = vcmask 777216  }
 0x511   : > { %v1967_v63 = vrot.slane %v1965_v17, 4  ;;  %v1966_v50 = vrot.slane %v1963_v58, 4 }
 0x513   : > { %v1968_v60 = vsel %vm1070_vm3, %v1966_v50, %v1967_v63 }
 0x514   : > { %v2007_v55 = vpop.permute.xlu0 %2006  ;;  %v2005_v23 = vpop.permute.xlu1 %2004  ;;  %v1969_v26 = vsel %vm12579_vm8, %v1963_v58, %v1968_v60  ;;  %vm12584_vm8 = vcmask 785408  }
 0x515   : > { %v2009_v25 = vrot.slane %v2007_v55, 4  ;;  %v2008_v53 = vrot.slane %v2005_v23, 4 }
 0x517   : > { %v2010_v1 = vsel %vm1070_vm3, %v2008_v53, %v2009_v25 }
 0x518   : > { %v2011_v2 = vsel %vm12578_vm14, %v2005_v23, %v2010_v1  ;;  %v1986_v46 = vpop.permute.xlu0 %1985  ;;  %v1984_v47 = vpop.permute.xlu1 %1983  ;;  %vm12583_vm14 = vcmask 900096  }
 0x519   : > { %v10443_v4 = vcombine.low %v2011_v2, %v2021_v42  ;;  %v1988_v17 = vrot.slane %v1986_v46, 4  ;;  %v1987_v41 = vrot.slane %v1984_v47, 4  ;;  %v10445_v56 = vcombine.high %v2011_v2, %v2021_v42 }
 0x51a   : > { %v10468_v42 = vcombine.low %v10317_v40, %v10384_v11 }
 0x51b   : > { %v1989_v22 = vsel %vm1070_vm3, %v1987_v41, %v1988_v17  ;;  %2351 = vmatprep.subr.bf16.mxu0 %v10445_v56  ;;  %v12581_v41 = vcombine.low %v10384_v11, %v10388_v15 }
 0x51c   : > { %v1990_v5 = vsel %vm12580_vm9, %v1984_v47, %v1989_v22  ;;  %v2069_v55 = vpop.permute.xlu0 %2068  ;;  %2352 = vmatpush2.bf16.msra.mxu0 %v10443_v4  ;;  %v2067_v1 = vpop.permute.xlu1 %2066  ;;  %vm12585_vm9 = vcmask 261120  }
 0x51d   : > { %v10452_v63 = vcombine.low %v1969_v26, %v1990_v5  ;;  %v2071_v50 = vrot.slane %v2069_v55, 4  ;;  %v2070_v23 = vrot.slane %v2067_v1, 4  ;;  %v10454_v46 = vcombine.high %v1969_v26, %v1990_v5 }
 0x51e   : > { %v10461_v2 = vcombine.high %v10317_v40, %v12581_v41 }
 0x51f   : > { %2353 = vmatprep.subr.bf16.mxu0 %v10454_v46  ;;  %v2072_v19 = vsel %vm1070_vm3, %v2070_v23, %v2071_v50 }
 0x520   : > { %v2090_v58 = vpop.permute.xlu0 %2089  ;;  %2354 = vmatpush2.bf16.msra.mxu0 %v10452_v63  ;;  %v2088_v47 = vpop.permute.xlu1 %2087  ;;  %v2073_v15 = vsel %vm12582_vm10, %v2067_v1, %v2072_v19  ;;  %vm12587_vm10 = vcmp.ne.s16.totalorder %v9971_v31, 0 }
 0x521   : > { %v2092_v25 = vrot.slane %v2090_v58, 4  ;;  %v2091_v53 = vrot.slane %v2088_v47, 4  ;;  %2355 = vmatprep.subr.bf16.mxu0 %v10461_v2 }
 0x523   : > { %v2093_v60 = vsel %vm1070_vm3, %v2091_v53, %v2092_v25 }
 0x524   : > { %v2094_v17 = vsel %vm1358_vm11, %v2088_v47, %v2093_v60  ;;  %v2038_v22 = vpop.permute.xlu0 %2037  ;;  %v2036_v26 = vpop.permute.xlu1 %2035  ;;  %2356 = vmatpush2.bf16.msra.mxu0 %v10468_v42 }
 0x525   : > { %v10474_v5 = vcombine.low %v2073_v15, %v2094_v17  ;;  %v2040_v55 = vrot.slane %v2038_v22, 4  ;;  %v2039_v50 = vrot.slane %v2036_v26, 4  ;;  %2357 = vmatprep.subr.bf16.mxu0 %v10331_v29  ;;  %v10477_v23 = vcombine.high %v2073_v15, %v2094_v17  ;;  %v9637_v15 = vld [vmem:[%s9766_s17 + $0x8] ss:$0 sps:$4 sm:$0xff]  }
 0x526   : > { %v8808_v17 = vcombine.low %v10433_v8, %v10433_v8  ;;  %v12586_v22 = vmov 0   ;;  %v2586_v8 = vld [vmem:[%s9771_s21] sm:$0xff] }
 0x527   : > { %2388 = vmatprep.subr.bf16.mxu1 %v10477_v23  ;;  %v2041_v1 = vsel %vm1070_vm3, %v2039_v50, %v2040_v55  ;;  %v8862_v55 = vcombine.high %v2586_v8, %v2586_v8 }
 0x528   : > { %v2059_v40 = vpop.permute.xlu0 %2058  ;;  %2389 = vmatpush1.bf16.msra.mxu1 %v10474_v5  ;;  %v2057_v11 = vpop.permute.xlu1 %2056  ;;  %2358 = vmatpush2.bf16.msra.mxu0 %v10329_v27  ;;  %v2042_v19 = vsel %vm12583_vm14, %v2036_v26, %v2041_v1  ;;  %v8861_v26 = vcombine.low %v2586_v8, %v2586_v8  ;;  %vm12588_vm14 = vcmp.ne.s16.totalorder %v9978_v32, 0 }
 0x529   : > { %v2061_v41 = vrot.slane %v2059_v40, 4  ;;  %v2060_v58 = vrot.slane %v2057_v11, 4  ;;  %2359 = vmatprep.subr.bf16.mxu0 %v10340_v54 }
 0x52b   : > { %v2062_v47 = vsel %vm1070_vm3, %v2060_v58, %v2061_v41 }
 0x52c   : > { %v2063_v25 = vsel %vm12584_vm8, %v2057_v11, %v2062_v47  ;;  %2360 = vmatpush2.bf16.msra.mxu0 %v10338_v35  ;;  %vm12589_vm8 = vcmp.ne.s16.totalorder %v9955_v28, 0 }
 0x52d   : > { %v10488_v53 = vcombine.low %v2042_v19, %v2063_v25  ;;  %2361 = vmatprep.subr.bf16.mxu0 %v10350_v30  ;;  %v10491_v60 = vcombine.high %v2042_v19, %v2063_v25 }
 0x52f   : > { %2390 = vmatprep.subr.bf16.mxu1 %v10491_v60 }
 0x530   : > { %2362 = vmatpush2.bf16.msra.mxu0 %v10348_v52  ;;  %2391 = vmatpush1.bf16.msra.mxu1 %v10488_v53 }
 0x531   : > { %2363 = vmatprep.subr.bf16.mxu0 %v10362_v0  ;;  %2884 = vmatprep.subr.bf16.mxu1 %v10116_v48 }
 0x533   : > { %8847 = vmatmul.mubr.msk.bf16.vlgmr.msra.gmra.mxu1 %vm12585_vm9, %v9637_v15  ;;  %vm12590_vm9 = vcmp.ne.s16.totalorder %v9995_v36, 0 }
 0x534   : > { %2364 = vmatpush2.bf16.msra.mxu0 %v10357_v34  ;;  %2885 = vmatpush1.bf16.msra.mxu1 %v10114_v45 }
 0x535   : > { %2365 = vmatprep.subr.bf16.mxu0 %v10222_v21  ;;  %2886 = vmatprep.subr.bf16.mxu1 %v10132_v13  ;;  %v2139_v1 = vpop.permute.xlu1 %2138 }
 0x536   : > { %2916 = vmatprep.mubr.bf16.mxu1 %v8862_v55 }
 0x538   : > { %2366 = vmatpush2.bf16.msra.mxu0 %v10220_v20  ;;  %2887 = vmatpush1.bf16.msra.mxu1 %v10130_v12 }
 0x539   : > { %2888 = vmatprep.subr.bf16.mxu1 %v10147_v49 }
 0x53b   : > { %2368 = vmatmul.mubr.bf16.vlgmr.msra.gmra.mxu0 %v8808_v17 }
 0x53c   : > { %2889 = vmatpush1.bf16.msra.mxu1 %v10145_v43  ;;  %2957 = vmatprep.mubr.bf16.mxu0 %v12586_v22 }
 0x53d   : > { %2890 = vmatprep.subr.bf16.mxu1 %v10150_v59 }
 0x540   : > { %2891 = vmatpush1.bf16.msra.mxu1 %v10159_v44 }
 0x541   : > { %2892 = vmatprep.subr.bf16.mxu1 %v10168_v10 }
 0x544   : > { %2893 = vmatpush1.bf16.msra.mxu1 %v10166_v9 }
 0x545   : > { %2894 = vmatprep.subr.bf16.mxu1 %v10183_v39 }
 0x548   : > { %2895 = vmatpush1.bf16.msra.mxu1 %v10181_v38 }
 0x549   : > { %2896 = vmatprep.subr.bf16.mxu1 %v10195_v62 }
 0x54c   : > { %2897 = vmatpush1.bf16.msra.mxu1 %v10193_v61 }
 0x54d   : > { %9556 = vmatprep.subr.msk.bf16.mxu1 %vm1031_vm1, %v9946_v24 }
 0x550   : > { %2899 = vmatpush1.bf16.msra.mxu1 %v10214_v14 }
 0x551   : > { %2900 = vmatprep.subr.bf16.mxu1 %v10445_v56 }
 0x554   : > { %2901 = vmatpush2.bf16.msra.mxu1 %v10443_v4 }
 0x555   : > { %2902 = vmatprep.subr.bf16.mxu1 %v10454_v46 }
 0x558   : > { %2903 = vmatpush2.bf16.msra.mxu1 %v10452_v63 }
 0x559   : > { %2904 = vmatprep.subr.bf16.mxu1 %v10461_v2 }
 0x55c   : > { %2905 = vmatpush2.bf16.msra.mxu1 %v10468_v42 }
 0x55d   : > { %2906 = vmatprep.subr.bf16.mxu1 %v10331_v29 }
 0x560   : > { %2907 = vmatpush2.bf16.msra.mxu1 %v10329_v27 }
 0x561   : > { %2908 = vmatprep.subr.bf16.mxu1 %v10340_v54 }
 0x564   : > { %2909 = vmatpush2.bf16.msra.mxu1 %v10338_v35 }
 0x565   : > { %2910 = vmatprep.subr.bf16.mxu1 %v10350_v30 }
 0x568   : > { %2911 = vmatpush2.bf16.msra.mxu1 %v10348_v52 }
 0x569   : > { %2912 = vmatprep.subr.bf16.mxu1 %v10362_v0 }
 0x56c   : > { %2913 = vmatpush2.bf16.msra.mxu1 %v10357_v34 }
 0x56d   : > { %2914 = vmatprep.subr.bf16.mxu1 %v10222_v21 }
 0x570   : > { %2915 = vmatpush2.bf16.msra.mxu1 %v10220_v20 }
 0x573   : > { %2917 = vmatmul.mubr.bf16.vlgmr.msra.gmra.mxu1 %v8861_v26 }
 0x5f3   : > { %v2410_v50 = vpop.f32.mrf.mxu1 }
 0x5f5   : > { %v2412_v40 = vpop.f32.mrf.mxu1 }
 0x5f7   : > { %v2414_v11 = vpop.f32.mrf.mxu1 }
 0x5f9   : > { %v2415_v41 = vpop.f32.mrf.mxu1 }
 0x5fb   : > { %v2369_v58 = vpop.f32.mrf.mxu0 }
 0x5fc   : > { %v2370_v47 = vadd.f32 %v2369_v58, %v2139_v1 }
 0x5fd   : > { %v2371_v19 = vpop.f32.mrf.mxu0 }
 0x5fe   : > { %v2411_v25 = vadd.f32 %v2410_v50, %v2370_v47  ;;  %v2372_v15 = vadd.f32 %v2371_v19, %v2139_v1 }
 0x5ff   : > { %v2373_v17 = vpop.f32.mrf.mxu0 }
 0x600   : > { %v2417_v22 = vmax.f32 %v2411_v25, 0.0  ;;  %v2413_v21 = vadd.f32 %v2412_v40, %v2372_v15 }
 0x601   : > { %v2374_v34 = vpop.f32.mrf.mxu0 }
 0x602   : > { %v2419_v20 = vpack.c.bf16 %v2417_v22, %v2417_v22  ;;  %v2418_v0 = vmax.f32 %v2413_v21, 0.0 }
 0x604   : > { %v2420_v52 = vpack.c.bf16 %v2418_v0, %v2418_v0  ;;  %2423 = vrot.lane.b32.xlu0 %v2419_v20, %s12489_s28  ;;  %v12597_v0 = vld [vmem:[#allocation28_spill] sm:$0xff] }
 0x606   : > { %2425 = vrot.lane.b32.xlu1 %v2420_v52, %s12489_s28 }
 0x633   : > { %v10597_v32 = vpop.f32.mrf.mxu1 }
 0x676   : > { %v2424_v8 = vpop.permute.xlu0 %2423 }
 0x677   : > { %v2430_v55 = vsel %vm1005_vm6, 0, %v2424_v8 }
 0x678   : > { %v2426_v26 = vpop.permute.xlu1 %2425  ;;  %v10553_v52 = vsel %vm1030_vm15, %v2430_v55, 0  ;;  %v2565_v22 = vsel %vm1326_vm0, %v2430_v55, 0  ;;  %v2534_v25 = vsel %vm12589_vm8, %v2430_v55, 0 }
 0x679   : > { %v2427_v11 = vsel %vm1005_vm6, %v2424_v8, %v2426_v26  ;;  %v2433_v50 = vsel %vm1005_vm6, %v2426_v26, 0 }
 0x67a   : > { %v8850_v1 = vcombine.low %v2433_v50, %v2433_v50  ;;  %v8849_v41 = vcombine.low %v2430_v55, %v2427_v11  ;;  %v2567_v21 = vsel %vm1328_vm2, %v2433_v50, 0  ;;  %v2566_v20 = vsel %vm1327_vm7, %v2427_v11, 0 }
 0x67b   : > { %v10557_v34 = vsel %vm1031_vm1, %v2427_v11, 0  ;;  %v8860_v40 = vcombine.low %v2567_v21, %v2567_v21  ;;  %v8859_v58 = vcombine.low %v2565_v22, %v2566_v20  ;;  %v2536_v47 = vsel %vm12587_vm10, %v2433_v50, 0 }
 0x67c   : > { %2557 = vrot.lane.b32.xlu1 %v8850_v1, %s12487_s15  ;;  %2555 = vrot.lane.b32.xlu0 %v8849_v41, %s12487_s15  ;;  %v2535_v19 = vsel %vm12588_vm14, %v2427_v11, 0  ;;  %v8858_v15 = vcombine.low %v2536_v47, %v2536_v47  ;;  %v2515_v8 = vsel %vm1215_vm13, %v2433_v50, 0  ;;  %v2514_v26 = vsel %vm1214_vm12, %v2427_v11, 0  ;;  %v12591_v47 = vld [vmem:[#allocation30_spill] sm:$0xff] }
 0x67d   : > { %v8857_v17 = vcombine.low %v2534_v25, %v2535_v19  ;;  %v2513_v21 = vsel %vm12590_vm9, %v2430_v55, 0  ;;  %v8856_v20 = vcombine.low %v2515_v8, %v2515_v8  ;;  %vm12592_vm10 = vcmp.ne.s16.totalorder %v12591_v47, 0 }
 0x67e   : > { %v8855_v22 = vcombine.low %v2513_v21, %v2514_v26  ;;  %v2461_v19 = vsel %vm12592_vm10, %v2430_v55, 0  ;;  %v12595_v26 = vld [vmem:[#allocation29_spill] sm:$0xff]  ;;  %vm12598_vm9 = vcmp.ne.s16.totalorder %v12597_v0, 0  ;;  %vm12600_vm10 = vcmask 777216  }
 0x67f   : > { %vm12596_vm8 = vcmp.ne.s16.totalorder %v12595_v26, 0 }
 0x680   : > { %2505 = vrot.lane.b32.xlu1 %v8850_v1, %s12469_s16  ;;  %2503 = vrot.lane.b32.xlu0 %v8849_v41, %s12469_s16  ;;  %v2483_v21 = vsel %vm12596_vm8, %v2427_v11, 0  ;;  %vm12602_vm8 = vcmask 908288  }
 0x684   : > { %2578 = vrot.lane.b32.xlu1 %v8860_v40, %s12483_s11  ;;  %2576 = vrot.lane.b32.xlu0 %v8859_v58, %s12483_s11  ;;  %v2463_v40 = vsel %vm1102_vm5, %v2433_v50, 0  ;;  %v2462_v58 = vsel %vm1101_vm4, %v2427_v11, 0 }
 0x685   : > { %v8852_v25 = vcombine.low %v2463_v40, %v2463_v40  ;;  %v10601_v40 = vpop.f32.mrf.mxu1 }
 0x687   : > { %v2922_v11 = vpop.f32.mrf.mxu1 }
 0x688   : > { %2547 = vrot.lane.b32.xlu1 %v8858_v15, %s12471_s1  ;;  %2545 = vrot.lane.b32.xlu0 %v8857_v17, %s12471_s1  ;;  %v8851_v15 = vcombine.low %v2461_v19, %v2462_v58  ;;  %v12593_v17 = vld [vmem:[#allocation27_spill] sm:$0xff] }
 0x689   : > { %vm12594_vm14 = vcmp.ne.s16.totalorder %v12593_v17, 0  ;;  %v2923_v58 = vpop.f32.mrf.mxu1 }
 0x68a   : > { %v2484_v8 = vsel %vm12594_vm14, %v2433_v50, 0  ;;  %v2588_v50 = vld [vmem:[%s9846_s20] sm:$0xff]  ;;  %vm12601_vm14 = vcmask 785408  }
 0x68c   : > { %2526 = vrot.lane.b32.xlu1 %v8856_v20, %s12485_s2  ;;  %2524 = vrot.lane.b32.xlu0 %v8855_v22, %s12485_s2  ;;  %v2482_v20 = vsel %vm12598_vm9, %v2430_v55, 0  ;;  %v8854_v22 = vcombine.low %v2484_v8, %v2484_v8  ;;  %vm12603_vm9 = vcmask 900096  }
 0x68d   : > { %v8853_v28 = vcombine.low %v2482_v20, %v2483_v21 }
 0x690   : > { %2474 = vrot.lane.b32.xlu1 %v8852_v25, %s12481_s10  ;;  %2472 = vrot.lane.b32.xlu0 %v8851_v15, %s12481_s10 }
 0x694   : > { %2495 = vrot.lane.b32.xlu1 %v8854_v22, %s12492_s7  ;;  %2493 = vrot.lane.b32.xlu0 %v8853_v28, %s12492_s7 }
 0x698   : > { %2453 = vrot.lane.b32.xlu1 %v8850_v1, %s12454_s18  ;;  %2451 = vrot.lane.b32.xlu0 %v8849_v41, %s12454_s18 }
 0x69c   : > { %2636 = vperm.xlu0 %9631, %v2588_v50  }
 0x6ee   : > { %v2558_v19 = vpop.permute.xlu1 %2557  ;;  %v2556_v55 = vpop.permute.xlu0 %2555 }
 0x6ef   : > { %v2560_v8 = vrot.slane %v2558_v19, 4  ;;  %v2559_v21 = vrot.slane %v2556_v55, 4 }
 0x6f1   : > { %v2561_v1 = vsel %vm1070_vm3, %v2559_v21, %v2560_v8 }
 0x6f2   : > { %v2506_v25 = vpop.permute.xlu1 %2505  ;;  %v2504_v15 = vpop.permute.xlu0 %2503 }
 0x6f3   : > { %v2508_v17 = vrot.slane %v2506_v25, 4  ;;  %v2507_v41 = vrot.slane %v2504_v15, 4  ;;  %v2562_v25 = vsel %vm12600_vm10, %v2556_v55, %v2561_v1  ;;  %vm12605_vm10 = vcmask 1031168  }
 0x6f6   : > { %v2579_v20 = vpop.permute.xlu1 %2578  ;;  %v2577_v22 = vpop.permute.xlu0 %2576 }
 0x6f7   : > { %v2581_v0 = vrot.slane %v2579_v20, 4  ;;  %v2580_v28 = vrot.slane %v2577_v22, 4 }
 0x6f9   : > { %v2582_v26 = vsel %vm1070_vm3, %v2580_v28, %v2581_v0 }
 0x6fa   : > { %v10609_v11 = vsel %vm1358_vm11, %v2577_v22, %v2582_v26  ;;  %v2548_v50 = vpop.permute.xlu1 %2547  ;;  %v2546_v58 = vpop.permute.xlu0 %2545  ;;  %v2509_v26 = vsel %vm1070_vm3, %v2507_v41, %v2508_v17 }
 0x6fb   : > { %12599 = vst [vmem:[#allocation38_spill] sm:$0xff] %v10609_v11  ;;  %v2550_v31 = vrot.slane %v2548_v50, 4  ;;  %v2549_v36 = vrot.slane %v2546_v58, 4  ;;  %v8909_v19 = vcombine.high %v10609_v11, %v10609_v11  ;;  %v8908_v20 = vcombine.low %v10609_v11, %v10609_v11 }
 0x6fd   : > { %v2551_v37 = vsel %vm1070_vm3, %v2549_v36, %v2550_v31  ;;  %8910 = vmatprep.subr.msk.bf16.mxu0 %vm1070_vm3, %v8909_v19  ;;  %v2879_v0 = vsel %vm1070_vm3, %v8908_v20, 0  ;;  %v2510_v36 = vsel %vm12602_vm8, %v2504_v15, %v2509_v26  ;;  %vm12607_vm8 = vcmask 1039360  }
 0x6fe   : > { %v2552_v8 = vsel %vm12601_vm14, %v2546_v58, %v2551_v37  ;;  %v2527_v21 = vpop.permute.xlu1 %2526  ;;  %2928 = vmatpush1.bf16.msra.mxu0 %v2879_v0  ;;  %v2525_v22 = vpop.permute.xlu0 %2524  ;;  %vm12606_vm14 = vcmask 916480  }
 0x6ff   : > { %v10621_v28 = vcombine.low %v2552_v8, %v2562_v25  ;;  %v2529_v50 = vrot.slane %v2527_v21, 4  ;;  %v2528_v33 = vrot.slane %v2525_v22, 4  ;;  %v10623_v11 = vcombine.high %v2552_v8, %v2562_v25 }
 0x701   : > { %v2530_v31 = vsel %vm1070_vm3, %v2528_v33, %v2529_v50  ;;  %2929 = vmatprep.subr.bf16.mxu0 %v10623_v11 }
 0x702   : > { %v2531_v55 = vsel %vm12603_vm9, %v2525_v22, %v2530_v31  ;;  %v2475_v17 = vpop.permute.xlu1 %2474  ;;  %2930 = vmatpush1.bf16.msra.mxu0 %v10621_v28  ;;  %v2473_v37 = vpop.permute.xlu0 %2472  ;;  %vm12450_vm9 = vcmask 850944  }
 0x703   : > { %v10630_v1 = vcombine.low %v2510_v36, %v2531_v55  ;;  %v2477_v41 = vrot.slane %v2475_v17, 4  ;;  %v2476_v58 = vrot.slane %v2473_v37, 4  ;;  %v10632_v19 = vcombine.high %v2510_v36, %v2531_v55 }
 0x705   : > { %12604 = vst [vmem:[#allocation39_spill] sm:$0xff] %v10630_v1  ;;  %2931 = vmatprep.subr.bf16.mxu0 %v10632_v19  ;;  %v2478_v15 = vsel %vm1070_vm3, %v2476_v58, %v2477_v41  ;;  %v12608_v58 = vcombine.low %v10553_v52, %v10557_v34 }
 0x706   : > { %v2496_v20 = vpop.permute.xlu1 %2495  ;;  %2932 = vmatpush1.bf16.msra.mxu0 %v10630_v1  ;;  %v2494_v33 = vpop.permute.xlu0 %2493  ;;  %v2479_v8 = vsel %vm12605_vm10, %v2473_v37, %v2478_v15  ;;  %vm12614_vm10 = vcmp.ne.s16.totalorder %v12591_v47, 0 }
 0x707   : > { %v2498_v0 = vrot.slane %v2496_v20, 4  ;;  %v2497_v25 = vrot.slane %v2494_v33, 4 }
 0x709   : > { %v2499_v26 = vsel %vm1070_vm3, %v2497_v25, %v2498_v0 }
 0x70a   : > { %v2500_v21 = vsel %vm12606_vm14, %v2494_v33, %v2499_v26  ;;  %v2454_v22 = vpop.permute.xlu1 %2453  ;;  %v2452_v50 = vpop.permute.xlu0 %2451 }
 0x70b   : > { %v10640_v31 = vcombine.low %v2479_v8, %v2500_v21  ;;  %v2456_v36 = vrot.slane %v2454_v22, 4  ;;  %v2455_v55 = vrot.slane %v2452_v50, 4  ;;  %v10642_v17 = vcombine.high %v2479_v8, %v2500_v21 }
 0x70d   : > { %v2457_v1 = vsel %vm1070_vm3, %v2455_v55, %v2456_v36  ;;  %2933 = vmatprep.subr.bf16.mxu0 %v10642_v17 }
 0x70e   : > { %v2458_v41 = vsel %vm12607_vm8, %v2452_v50, %v2457_v1  ;;  %2934 = vmatpush1.bf16.msra.mxu0 %v10640_v31  ;;  %v9642_v1 = vld [vmem:[%s9771_s21 + $0x8] ss:$0 sps:$4 sm:$0xff]  }
 0x70f   : > { %v10649_v37 = vcombine.low %v10553_v52, %v2458_v41  ;;  %v10654_v20 = vcombine.high %v12608_v58, %v2458_v41 }
 0x711   : > { %2935 = vmatprep.subr.bf16.mxu0 %v10654_v20 }
 0x712   : > { %2936 = vmatpush1.bf16.msra.mxu0 %v10649_v37 }
 0x713   : > { %2937 = vmatprep.subr.bf16.mxu0 %v10477_v23 }
 0x716   : > { %2938 = vmatpush1.bf16.msra.mxu0 %v10474_v5 }
 0x717   : > { %2939 = vmatprep.subr.bf16.mxu0 %v10491_v60 }
 0x71a   : > { %2940 = vmatpush1.bf16.msra.mxu0 %v10488_v53 }
 0x71b   : > { %3498 = vmatprep.subr.bf16.mxu0 %v10116_v48  ;;  %v12612_v48 = vld [vmem:[#allocation34_spill] sm:$0xff] }
 0x71d   : > { %8911 = vmatmul.mubr.msk.bf16.vlgmr.msra.gmra.mxu0 %vm12450_vm9, %v9642_v1  ;;  %v12617_v1 = vld [vmem:[#allocation25_spill] sm:$0xff] }
 0x71e   : > { %3499 = vmatpush1.bf16.msra.mxu0 %v10114_v45  ;;  %v12611_v45 = vld [vmem:[#allocation36_spill] sm:$0xff]  ;;  %vm12618_vm14 = vcmp.ne.s16.totalorder %v12617_v1, 0 }
 0x71f   : > { %3500 = vmatprep.subr.bf16.mxu0 %v10132_v13  ;;  %v9643_v13 = vld [vmem:[%s9776_s25] ss:$16 sps:$4 sm:$0xff]  }
 0x722   : > { %3501 = vmatpush1.bf16.msra.mxu0 %v10130_v12  ;;  %v12613_v12 = vld [vmem:[#allocation33_spill] sm:$0xff] }
 0x723   : > { %3502 = vmatprep.subr.bf16.mxu0 %v10147_v49  ;;  %v2637_v49 = vpop.permute.xlu0 %2636 }
 0x726   : > { %3503 = vmatpush1.bf16.msra.mxu0 %v10145_v43  ;;  %v9645_v43 = vld [vmem:[%s9776_s25 + $0x4] ss:$16 sps:$4 sm:$0xff]  }
 0x727   : > { %3504 = vmatprep.subr.bf16.mxu0 %v10150_v59  ;;  %3530 = vmatprep.mubr.bf16.mxu0 %v9645_v43  ;;  %v2919_v59 = vadd.f32 %v10597_v32, %v2637_v49 }
 0x72a   : > { %3505 = vmatpush1.bf16.msra.mxu0 %v10159_v44 }
 0x72b   : > { %3506 = vmatprep.subr.bf16.mxu0 %v10168_v10  ;;  %v2921_v10 = vadd.f32 %v10601_v40, %v2637_v49  ;;  %v12623_v49 = vld [vmem:[#allocation21_spill] sm:$0xff] }
 0x72c   : > { %vm12624_vm9 = vcmp.ne.s16.totalorder %v12623_v49, 0 }
 0x72e   : > { %3507 = vmatpush1.bf16.msra.mxu0 %v10166_v9 }
 0x72f   : > { %3508 = vmatprep.subr.bf16.mxu0 %v10183_v39 }
 0x732   : > { %3509 = vmatpush1.bf16.msra.mxu0 %v10181_v38 }
 0x733   : > { %3510 = vmatprep.subr.bf16.mxu0 %v10195_v62 }
 0x736   : > { %3511 = vmatpush1.bf16.msra.mxu0 %v10193_v61 }
 0x737   : > { %9558 = vmatprep.subr.msk.bf16.mxu0 %vm1031_vm1, %v9946_v24  ;;  %v12609_v24 = vld [vmem:[#allocation35_spill] sm:$0xff] }
 0x73a   : > { %3513 = vmatpush1.bf16.msra.mxu0 %v10214_v14 }
 0x73b   : > { %3514 = vmatprep.subr.bf16.mxu0 %v10445_v56  ;;  %v12610_v56 = vld [vmem:[#allocation37_spill] sm:$0xff] }
 0x73e   : > { %3515 = vmatpush2.bf16.msra.mxu0 %v10443_v4 }
 0x73f   : > { %3516 = vmatprep.subr.bf16.mxu0 %v10454_v46 }
 0x742   : > { %3517 = vmatpush2.bf16.msra.mxu0 %v10452_v63 }
 0x743   : > { %3518 = vmatprep.subr.bf16.mxu0 %v10461_v2 }
 0x746   : > { %3519 = vmatpush2.bf16.msra.mxu0 %v10468_v42 }
 0x747   : > { %3520 = vmatprep.subr.bf16.mxu0 %v10331_v29 }
 0x74a   : > { %3521 = vmatpush2.bf16.msra.mxu0 %v10329_v27 }
 0x74b   : > { %3522 = vmatprep.subr.bf16.mxu0 %v10340_v54 }
 0x74e   : > { %3523 = vmatpush2.bf16.msra.mxu0 %v10338_v35 }
 0x74f   : > { %3524 = vmatprep.subr.bf16.mxu0 %v10350_v30 }
 0x752   : > { %3525 = vmatpush2.bf16.msra.mxu0 %v12609_v24 }
 0x753   : > { %3526 = vmatprep.subr.bf16.mxu0 %v12610_v56 }
 0x756   : > { %3527 = vmatpush2.bf16.msra.mxu0 %v12611_v45 }
 0x757   : > { %3528 = vmatprep.subr.bf16.mxu0 %v12612_v48  ;;  %v12619_v48 = vld [vmem:[#allocation22_spill] sm:$0xff] }
 0x758   : > { %vm12620_vm8 = vcmp.ne.s16.totalorder %v12619_v48, 0 }
 0x75a   : > { %3529 = vmatpush2.bf16.msra.mxu0 %v12613_v12 }
 0x75d   : > { %3531 = vmatmul.mubr.bf16.vlgmr.msra.gmra.mxu0 %v9643_v13  ;;  %v12621_v13 = vld [vmem:[#allocation23_spill] sm:$0xff] }
 0x7dd   : > { %v2959_v44 = vpop.f32.mrf.mxu0 }
 0x7de   : > { %v2960_v9 = vadd.f32 %v2959_v44, %v2919_v59 }
 0x7df   : > { %v2961_v38 = vpop.f32.mrf.mxu0 }
 0x7e0   : > { %v2966_v39 = vmax.f32 %v2960_v9, 0.0  ;;  %v2962_v61 = vadd.f32 %v2961_v38, %v2921_v10  ;;  %v12625_v10 = vld [vmem:[#allocation27_spill] sm:$0xff] }
 0x7e1   : > { %v2963_v62 = vpop.f32.mrf.mxu0 }
 0x7e2   : > { %v2968_v14 = vpack.c.bf16 %v2966_v39, %v2966_v39  ;;  %v2967_v27 = vmax.f32 %v2962_v61, 0.0  ;;  %v12627_v39 = vld [vmem:[#allocation29_spill] sm:$0xff]  ;;  %v12629_v62 = vld [vmem:[#allocation28_spill] sm:$0xff] }
 0x7e3   : > { %v2964_v29 = vpop.f32.mrf.mxu0 }
 0x7e4   : > { %v2969_v35 = vpack.c.bf16 %v2967_v27, %v2967_v27  ;;  %2972 = vrot.lane.b32.xlu1 %v2968_v14, %s12489_s28 }
 0x7e6   : > { %2974 = vrot.lane.b32.xlu0 %v2969_v35, %s12489_s28  ;;  %v3140_v35 = vld [vmem:[%s12538_s6 + $0x8] sm:$0xff] }
 0x856   : > { %v2973_v54 = vpop.permute.xlu1 %2972 }
 0x857   : > { %v2979_v32 = vsel %vm1005_vm6, 0, %v2973_v54 }
 0x858   : > { %v2975_v30 = vpop.permute.xlu0 %2974  ;;  %v3010_v34 = vsel %vm12614_vm10, %v2979_v32, 0  ;;  %v10717_v15 = vsel %vm1030_vm15, %v2979_v32, 0  ;;  %v3114_v21 = vsel %vm1326_vm0, %v2979_v32, 0  ;;  %v3062_v24 = vsel %vm12618_vm14, %v2979_v32, 0 }
 0x859   : > { %v2976_v4 = vsel %vm1005_vm6, %v2973_v54, %v2975_v30  ;;  %v2982_v63 = vsel %vm1005_vm6, %v2975_v30, 0  ;;  %vm12622_vm10 = vcmp.ne.s16.totalorder %v12621_v13, 0  ;;  %v3083_v59 = vsel %vm12624_vm9, %v2979_v32, 0  ;;  %v3139_v54 = vld [vmem:[%s12538_s6] sm:$0xff]  ;;  %v9646_v30 = vld [vmem:[%s9776_s25 + $0xc] ss:$16 sps:$4 sm:$0xff]  }
 0x85a   : > { %v8914_v46 = vcombine.low %v2982_v63, %v2982_v63  ;;  %v8913_v2 = vcombine.low %v2979_v32, %v2976_v4  ;;  %v3012_v42 = vsel %vm1102_vm5, %v2982_v63, 0  ;;  %v3011_v52 = vsel %vm1101_vm4, %v2976_v4, 0  ;;  %s12823_s6 = smov 112  }
 0x85b   : > { %v8916_v40 = vcombine.low %v3012_v42, %v3012_v42  ;;  %v8915_v33 = vcombine.low %v3010_v34, %v3011_v52  ;;  %v2985_v0 = vsel %vm1031_vm1, %v2976_v4, 0  ;;  %v3116_v26 = vsel %vm1328_vm2, %v2982_v63, 0 }
 0x85c   : > { %3002 = vrot.lane.b32.xlu0 %v8914_v46, %s12454_s18  ;;  %3000 = vrot.lane.b32.xlu1 %v8913_v2, %s12454_s18  ;;  %v8912_v25 = vcombine.low %v10717_v15, %v2985_v0  ;;  %v3115_v8 = vsel %vm1327_vm7, %v2976_v4, 0  ;;  %v8924_v22 = vcombine.low %v3116_v26, %v3116_v26  ;;  %v3064_v55 = vsel %vm1215_vm13, %v2982_v63, 0 }
 0x85d   : > { %v8923_v50 = vcombine.low %v3114_v21, %v3115_v8  ;;  %v3063_v58 = vsel %vm1214_vm12, %v2976_v4, 0  ;;  %v8920_v56 = vcombine.low %v3064_v55, %v3064_v55  ;;  %v3085_v12 = vsel %vm12620_vm8, %v2982_v63, 0  ;;  %v12633_v55 = vld [vmem:[#allocation38_spill] sm:$0xff] }
 0x85e   : > { %v8919_v45 = vcombine.low %v3062_v24, %v3063_v58  ;;  %v3084_v43 = vsel %vm12622_vm10, %v2976_v4, 0  ;;  %v8922_v44 = vcombine.low %v3085_v12, %v3085_v12  ;;  %vm12626_vm14 = vcmp.ne.s16.totalorder %v12625_v10, 0 }
 0x85f   : > { %v8921_v9 = vcombine.low %v3083_v59, %v3084_v43  ;;  %v3033_v38 = vsel %vm12626_vm14, %v2982_v63, 0  ;;  %vm12628_vm8 = vcmp.ne.s16.totalorder %v12627_v39, 0  ;;  %vm12630_vm10 = vcmp.ne.s16.totalorder %v12629_v62, 0 }
 0x860   : > { %3023 = vrot.lane.b32.xlu0 %v8916_v40, %s12481_s10  ;;  %3021 = vrot.lane.b32.xlu1 %v8915_v33, %s12481_s10  ;;  %v3032_v61 = vsel %vm12628_vm8, %v2976_v4, 0  ;;  %v3031_v14 = vsel %vm12630_vm10, %v2979_v32, 0  ;;  %v8918_v27 = vcombine.low %v3033_v38, %v3033_v38  ;;  %vm12451_vm9 = vcmask 392192  }
 0x861   : > { %v8917_v29 = vcombine.low %v3031_v14, %v3032_v61  ;;  %8983 = vmatprep.mubr.msk.bf16.mxu1 %vm12451_vm9, %v9646_v30  ;;  %vm12631_vm14 = vcmask 1039360   ;;  %vm12632_vm8 = vcmask 1031168   ;;  %v8974_v58 = vcombine.high %v12633_v55, %v8912_v25 }
 0x862   : > { %vm12635_vm10 = vcmask 777216   ;;  %vm12639_vm9 = vcmask 916480  }
 0x864   : > { %3106 = vrot.lane.b32.xlu0 %v8914_v46, %s12487_s15  ;;  %3104 = vrot.lane.b32.xlu1 %v8913_v2, %s12487_s15 }
 0x868   : > { %3127 = vrot.lane.b32.xlu0 %v8924_v22, %s12483_s11  ;;  %3125 = vrot.lane.b32.xlu1 %v8923_v50, %s12483_s11 }
 0x86c   : > { %3075 = vrot.lane.b32.xlu0 %v8920_v56, %s12485_s2  ;;  %3073 = vrot.lane.b32.xlu1 %v8919_v45, %s12485_s2  ;;  %v9557_v45 = vcombine.low %v12633_v55, %v10717_v15 }
 0x870   : > { %3096 = vrot.lane.b32.xlu0 %v8922_v44, %s12471_s1  ;;  %3094 = vrot.lane.b32.xlu1 %v8921_v9, %s12471_s1  ;;  %v12634_v9 = vld [vmem:[#allocation39_spill] sm:$0xff] }
 0x874   : > { %3044 = vrot.lane.b32.xlu0 %v8918_v27, %s12492_s7  ;;  %3042 = vrot.lane.b32.xlu1 %v8917_v29, %s12492_s7 }
 0x878   : > { %3054 = vrot.lane.b32.xlu0 %v8914_v46, %s12469_s16  ;;  %3052 = vrot.lane.b32.xlu1 %v8913_v2, %s12469_s16 }
 0x87c   : > { %3202 = vperm.xlu0 %9631, %v3140_v35   ;;  %3197 = vperm.xlu1 %9632, %v3139_v54  }
 0x8ce   : > { %v3003_v4 = vpop.permute.xlu0 %3002  ;;  %v3001_v32 = vpop.permute.xlu1 %3000 }
 0x8cf   : > { %v3005_v63 = vrot.slane %v3003_v4, 4  ;;  %v3004_v42 = vrot.slane %v3001_v32, 4 }
 0x8d1   : > { %v3006_v40 = vsel %vm1070_vm3, %v3004_v42, %v3005_v63 }
 0x8d2   : > { %v3024_v52 = vpop.permute.xlu0 %3023  ;;  %v3022_v34 = vpop.permute.xlu1 %3021  ;;  %v3007_v0 = vsel %vm12631_vm14, %v3001_v32, %v3006_v40  ;;  %vm12636_vm14 = vcmask 785408  }
 0x8d3   : > { %v3026_v33 = vrot.slane %v3024_v52, 4  ;;  %v3025_v46 = vrot.slane %v3022_v34, 4 }
 0x8d5   : > { %v3027_v2 = vsel %vm1070_vm3, %v3025_v46, %v3026_v33 }
 0x8d6   : > { %v3028_v26 = vsel %vm12632_vm8, %v3022_v34, %v3027_v2  ;;  %v3107_v8 = vpop.permute.xlu0 %3106  ;;  %v3105_v21 = vpop.permute.xlu1 %3104  ;;  %vm12637_vm8 = vcmask 900096  }
 0x8d7   : > { %v8975_v22 = vcombine.low %v3007_v0, %v3028_v26  ;;  %v8976_v50 = vcombine.high %v3007_v0, %v3028_v26  ;;  %v3109_v14 = vrot.slane %v3107_v8, 4 }
 0x8d9   : > { %3541 = vmatprep.subr.bf16.mxu1 %v8976_v50 }
 0x8da   : > { %v3128_v24 = vpop.permute.xlu0 %3127  ;;  %3542 = vmatpush1.bf16.msra.mxu1 %v8975_v22  ;;  %v3126_v56 = vpop.permute.xlu1 %3125 }
 0x8db   : > { %3543 = vmatprep.subr.bf16.mxu1 %v8974_v58  ;;  %v3130_v15 = vrot.slane %v3128_v24, 4  ;;  %v3129_v61 = vrot.slane %v3126_v56, 4  ;;  %v3532_v22 = vpop.f32.mrf.mxu0 }
 0x8dd   : > { %v3534_v50 = vpop.f32.mrf.mxu0 }
 0x8de   : > { %v3076_v12 = vpop.permute.xlu0 %3075  ;;  %v3074_v43 = vpop.permute.xlu1 %3073  ;;  %3544 = vmatpush1.bf16.msra.mxu1 %v9557_v45 }
 0x8df   : > { %3545 = vmatprep.subr.bf16.mxu1 %v10623_v11  ;;  %v3108_v11 = vrot.slane %v3105_v21, 4  ;;  %v3078_v54 = vrot.slane %v3076_v12, 4  ;;  %v3536_v58 = vpop.f32.mrf.mxu0 }
 0x8e1   : > { %v3110_v35 = vsel %vm1070_vm3, %v3108_v11, %v3109_v14 }
 0x8e2   : > { %3546 = vmatpush1.bf16.msra.mxu1 %v10621_v28  ;;  %v3097_v59 = vpop.permute.xlu0 %3096  ;;  %v3095_v44 = vpop.permute.xlu1 %3094  ;;  %v3131_v28 = vsel %vm1070_vm3, %v3129_v61, %v3130_v15  ;;  %v3111_v32 = vsel %vm12635_vm10, %v3105_v21, %v3110_v35  ;;  %vm12638_vm10 = vcmask 908288   ;;  %v9648_v21 = vld [vmem:[%s9776_s25 + $0x8] ss:$16 sps:$4 sm:$0xff]   ;;  %v9682_v35 = vld [vmem:[%s9924_s26 + $0x10] sm:$0xff] }
 0x8e3   : > { %3547 = vmatprep.subr.bf16.mxu1 %v10632_v19  ;;  %v3099_v19 = vrot.slane %v3097_v59, 4  ;;  %v3098_v27 = vrot.slane %v3095_v44, 4  ;;  %v3132_v30 = vsel %vm1358_vm11, %v3126_v56, %v3131_v28  ;;  %v3538_v59 = vpop.f32.mrf.mxu0 }
 0x8e4   : > { %v8982_v52 = vcombine.high %v3111_v32, %v3132_v30  ;;  %v8981_v40 = vcombine.low %v3111_v32, %v3132_v30  ;;  %v9683_v30 = vld [vmem:[%s9924_s26 + $0x8] sm:$0xff] }
 0x8e6   : > { %3548 = vmatpush1.bf16.msra.mxu1 %v12634_v9  ;;  %v3045_v25 = vpop.permute.xlu0 %3044  ;;  %v3043_v38 = vpop.permute.xlu1 %3042 }
 0x8e7   : > { %3549 = vmatprep.subr.bf16.mxu1 %v10642_v17  ;;  %v3047_v63 = vrot.slane %v3045_v25, 4  ;;  %v3046_v42 = vrot.slane %v3043_v38, 4 }
 0x8ea   : > { %3550 = vmatpush1.bf16.msra.mxu1 %v10640_v31  ;;  %v3055_v29 = vpop.permute.xlu0 %3054  ;;  %v3053_v17 = vpop.permute.xlu1 %3052  ;;  %v3077_v31 = vrot.slane %v3074_v43, 4 }
 0x8eb   : > { %3551 = vmatprep.subr.bf16.mxu1 %v10654_v20  ;;  %v3100_v20 = vsel %vm1070_vm3, %v3098_v27, %v3099_v19  ;;  %v3057_v4 = vrot.slane %v3055_v29, 4  ;;  %v9681_v29 = vld [vmem:[%s9924_s26] sm:$0xff] }
 0x8ec   : > { %v3101_v34 = vsel %vm12636_vm14, %v3095_v44, %v3100_v20  ;;  %vm12646_vm14 = vcmp.ne.s16.totalorder %v12621_v13, 0 }
 0x8ee   : > { %3552 = vmatpush1.bf16.msra.mxu1 %v10649_v37  ;;  %v3056_v37 = vrot.slane %v3053_v17, 4 }
 0x8ef   : > { %3553 = vmatprep.subr.bf16.mxu1 %v10477_v23  ;;  %v3079_v23 = vsel %vm1070_vm3, %v3077_v31, %v3078_v54 }
 0x8f0   : > { %v3080_v33 = vsel %vm12637_vm8, %v3074_v43, %v3079_v23  ;;  %vm12647_vm8 = vcmp.ne.s16.totalorder %v12623_v49, 0 }
 0x8f1   : > { %v8980_v46 = vcombine.high %v3080_v33, %v3101_v34  ;;  %v8979_v0 = vcombine.low %v3080_v33, %v3101_v34 }
 0x8f2   : > { %3554 = vmatpush1.bf16.msra.mxu1 %v10474_v5  ;;  %v3058_v5 = vsel %vm1070_vm3, %v3056_v37, %v3057_v4  ;;  %v9684_v37 = vld [vmem:[%s9924_s26 + $0x18] sm:$0xff] }
 0x8f3   : > { %3555 = vmatprep.subr.bf16.mxu1 %v10491_v60  ;;  %v3048_v60 = vsel %vm1070_vm3, %v3046_v42, %v3047_v63  ;;  %v3059_v2 = vsel %vm12638_vm10, %v3053_v17, %v3058_v5  ;;  %vm12648_vm10 = vcmp.ne.s16.totalorder %v12617_v1, 0 }
 0x8f4   : > { %v3049_v26 = vsel %vm12639_vm9, %v3043_v38, %v3048_v60  ;;  %vm12645_vm9 = vcmp.ne.s16.totalorder %v12619_v48, 0 }
 0x8f5   : > { %v8978_v8 = vcombine.high %v3049_v26, %v3059_v2 }
 0x8f6   : > { %3556 = vmatpush1.bf16.msra.mxu1 %v10488_v53  ;;  %v8977_v53 = vcombine.low %v3049_v26, %v3059_v2 }
 0x8f7   : > { %3567 = vmatprep.subr.bf16.mxu1 %v8982_v52  ;;  %v3198_v55 = vpop.permute.xlu1 %3197  ;;  %v3203_v56 = vpop.permute.xlu0 %3202 }
 0x8f8   : > { %v3533_v24 = vadd.f32 %v3532_v22, %v3198_v55  ;;  %v3535_v43 = vadd.f32 %v3534_v50, %v3198_v55  ;;  %v3537_v25 = vadd.f32 %v3536_v58, %v3203_v56  ;;  %v3539_v14 = vadd.f32 %v3538_v59, %v3203_v56 }
 0x8fa   : > { %3568 = vmatpush2.bf16.msra.mxu1 %v8981_v40 }
 0x8fb   : > { %3569 = vmatprep.subr.bf16.mxu1 %v8980_v46 }
 0x8fe   : > { %3570 = vmatpush2.bf16.msra.mxu1 %v8979_v0 }
 0x8ff   : > { %3571 = vmatprep.subr.bf16.mxu1 %v8978_v8 }
 0x902   : > { %3572 = vmatpush2.bf16.msra.mxu1 %v8977_v53 }
 0x905   : > { %3574 = vmatmul.mubr.bf16.vlgmr.msra.gmra.mxu1 %v9648_v21 }
 0x9c5   : > { %v3575_v45 = vpop.f32.mrf.mxu1 }
 0x9c6   : > { %v3576_v12 = vadd.f32 %v3575_v45, %v3533_v24 }
 0x9c7   : > { %v3577_v44 = vpop.f32.mrf.mxu1 }
 0x9c8   : > { %v3578_v9 = vadd.f32 %v3577_v44, %v3535_v43  ;;  %v3584_v15 = vmul.f32 0.2, %v3576_v12 }
 0x9c9   : > { %v3579_v38 = vpop.f32.mrf.mxu1 }
 0x9ca   : > { %v3580_v61 = vadd.f32 %v3579_v38, %v3537_v25  ;;  %v3585_v28 = vmul.f32 0.2, %v3578_v9  ;;  %v10797_v17 = vadd.f32 %v9681_v29, %v3584_v15 }
 0x9cb   : > { %v3581_v11 = vpop.f32.mrf.mxu1 }
 0x9cc   : > { %v3586_v19 = vmul.f32 0.2, %v3580_v61  ;;  %v3582_v27 = vadd.f32 %v3581_v11, %v3539_v14  ;;  %12640 = vst [vmem:[#allocation35_spill] sm:$0xff] %v10797_v17  ;;  %v10803_v20 = vadd.f32 %v9683_v30, %v3585_v28 }
 0x9ce   : > { %v10800_v54 = vadd.f32 %v9682_v35, %v3586_v19  ;;  %v3587_v31 = vmul.f32 0.2, %v3582_v27  ;;  %12642 = vst [vmem:[#allocation36_spill] sm:$0xff] %v10803_v20 }
 0x9d0   : > { %12641 = vst [vmem:[#allocation37_spill] sm:$0xff] %v10800_v54  ;;  %v3592_v4 = vpack.c.bf16 %v10800_v54, %v10797_v17  ;;  %v10808_v32 = vadd.f32 %v9684_v37, %v3587_v31 }
 0x9d2   : > { %12643 = vst [vmem:[#allocation34_spill] sm:$0xff] %v10808_v32  ;;  %v3593_v23 = vpack.c.bf16 %v10808_v32, %v10803_v20  ;;  %3596 = vrot.lane.b32.xlu1 %v3592_v4, %s12489_s28 }
 0x9d4   : > { %3598 = vrot.lane.b32.xlu0 %v3593_v23, %s12489_s28  ;;  %v10894_v23 = vld [vmem:[%s9781_s29] sm:$0xff] }
 0xa44   : > { %v3597_v63 = vpop.permute.xlu1 %3596 }
 0xa45   : > { %v10815_v52 = vsel %vm1005_vm6, 0, %v3597_v63 }
 0xa46   : > { %v3599_v42 = vpop.permute.xlu0 %3598  ;;  %v3782_v26 = vsel %vm12647_vm8, %v10815_v52, 0  ;;  %v3746_v58 = vsel %vm12648_vm10, %v10815_v52, 0  ;;  %vm12651_vm8 = vcmp.ne.s16.totalorder %v12629_v62, 0  ;;  %vm12652_vm10 = vcmp.ne.s16.totalorder %v12591_v47, 0 }
 0xa47   : > { %v10818_v34 = vsel %vm1005_vm6, %v3597_v63, %v3599_v42  ;;  %v3606_v5 = vsel %vm1005_vm6, %v3599_v42, 0  ;;  %v3690_v44 = vsel %vm12651_vm8, %v10815_v52, 0  ;;  %v3654_v11 = vsel %vm12652_vm10, %v10815_v52, 0 }
 0xa48   : > { %12644 = vst [vmem:[#allocation33_spill] sm:$0xff] %v10818_v34  ;;  %v8987_v40 = vcombine.low %v3606_v5, %v3606_v5  ;;  %v8986_v33 = vcombine.low %v10815_v52, %v10818_v34  ;;  %v8989_v60 = vcombine.high %v3606_v5, %v3606_v5  ;;  %v8988_v46 = vcombine.high %v10815_v52, %v10818_v34 }
 0xa49   : > { %v3784_v2 = vsel %vm12645_vm9, %v3606_v5, 0  ;;  %v3783_v0 = vsel %vm12646_vm14, %v10818_v34, 0  ;;  %v3748_v50 = vsel %vm1215_vm13, %v3606_v5, 0  ;;  %v3747_v55 = vsel %vm1214_vm12, %v10818_v34, 0 }
 0xa4a   : > { %3820 = vrot.lane.b32.xlu0 %v8987_v40, %s12487_s15  ;;  %3818 = vrot.lane.b32.xlu1 %v8986_v33, %s12487_s15  ;;  %v9003_v8 = vcombine.low %v3784_v2, %v3784_v2  ;;  %v9002_v53 = vcombine.low %v3782_v26, %v3783_v0  ;;  %v9005_v21 = vcombine.high %v3784_v2, %v3784_v2  ;;  %vm12649_vm9 = vcmp.ne.s16.totalorder %v12625_v10, 0 }
 0xa4b   : > { %v9004_v22 = vcombine.high %v3782_v26, %v3783_v0  ;;  %v8999_v24 = vcombine.low %v3748_v50, %v3748_v50  ;;  %v8998_v56 = vcombine.low %v3746_v58, %v3747_v55  ;;  %v9001_v45 = vcombine.high %v3748_v50, %v3748_v50 }
 0xa4c   : > { %v9000_v12 = vcombine.high %v3746_v58, %v3747_v55  ;;  %v3692_v43 = vsel %vm12649_vm9, %v3606_v5, 0  ;;  %vm12650_vm14 = vcmp.ne.s16.totalorder %v12627_v39, 0  ;;  %v3656_v61 = vsel %vm1102_vm5, %v3606_v5, 0 }
 0xa4d   : > { %v3691_v59 = vsel %vm12650_vm14, %v10818_v34, 0  ;;  %v8995_v9 = vcombine.low %v3692_v43, %v3692_v43  ;;  %v8997_v38 = vcombine.high %v3692_v43, %v3692_v43  ;;  %v3655_v14 = vsel %vm1101_vm4, %v10818_v34, 0 }
 0xa4e   : > { %3824 = vrot.lane.b32.xlu0 %v8989_v60, %s12487_s15  ;;  %3822 = vrot.lane.b32.xlu1 %v8988_v46, %s12487_s15  ;;  %v8994_v25 = vcombine.low %v3690_v44, %v3691_v59  ;;  %v8996_v15 = vcombine.high %v3690_v44, %v3691_v59  ;;  %v8991_v28 = vcombine.low %v3656_v61, %v3656_v61  ;;  %v3840_v35 = vsel %vm1328_vm2, %v3606_v5, 0 }
 0xa4f   : > { %v8990_v19 = vcombine.low %v3654_v11, %v3655_v14  ;;  %v8993_v27 = vcombine.high %v3656_v61, %v3656_v61  ;;  %v8992_v29 = vcombine.high %v3654_v11, %v3655_v14  ;;  %v3839_v31 = vsel %vm1327_vm7, %v10818_v34, 0 }
 0xa50   : > { %v3838_v30 = vsel %vm1326_vm0, %v10815_v52, 0  ;;  %v9007_v4 = vcombine.low %v3840_v35, %v3840_v35  ;;  %v9011_v63 = vcombine.high %v10894_v23, %v10894_v23  ;;  %v9009_v42 = vcombine.high %v3840_v35, %v3840_v35 }
 0xa51   : > { %v9006_v37 = vcombine.low %v3838_v30, %v3839_v31  ;;  %v9008_v5 = vcombine.high %v3838_v30, %v3839_v31  ;;  %vm12653_vm9 = vcmask 130048   ;;  %vm12654_vm14 = vcmask 777216  }
 0xa52   : > { %3728 = vrot.lane.b32.xlu0 %v8987_v40, %s12469_s16  ;;  %3726 = vrot.lane.b32.xlu1 %v8986_v33, %s12469_s16  ;;  %vm12655_vm8 = vmmov %vm12654_vm14  ;;  %vm12656_vm10 = vcmask 785408  }
 0xa53   : > { %9030 = vmatprep.mubr.msk.bf16.mxu1 %vm12653_vm9, %v9011_v63  ;;  %vm12657_vm9 = vmmov %vm12656_vm10 }
 0xa56   : > { %3732 = vrot.lane.b32.xlu0 %v8989_v60, %s12469_s16  ;;  %3730 = vrot.lane.b32.xlu1 %v8988_v46, %s12469_s16 }
 0xa5a   : > { %3636 = vrot.lane.b32.xlu0 %v8987_v40, %s12454_s18  ;;  %3634 = vrot.lane.b32.xlu1 %v8986_v33, %s12454_s18  ;;  %v3875_v40 = vld [vmem:[%s9856_s30] sm:$0xff] }
 0xa5e   : > { %3800 = vrot.lane.b32.xlu0 %v9003_v8, %s12471_s1  ;;  %3798 = vrot.lane.b32.xlu1 %v9002_v53, %s12471_s1 }
 0xa62   : > { %3804 = vrot.lane.b32.xlu0 %v9005_v21, %s12471_s1  ;;  %3802 = vrot.lane.b32.xlu1 %v9004_v22, %s12471_s1 }
 0xa66   : > { %3764 = vrot.lane.b32.xlu0 %v8999_v24, %s12485_s2  ;;  %3762 = vrot.lane.b32.xlu1 %v8998_v56, %s12485_s2 }
 0xa6a   : > { %3768 = vrot.lane.b32.xlu0 %v9001_v45, %s12485_s2  ;;  %3766 = vrot.lane.b32.xlu1 %v9000_v12, %s12485_s2 }
 0xa6e   : > { %3708 = vrot.lane.b32.xlu0 %v8995_v9, %s12492_s7  ;;  %3706 = vrot.lane.b32.xlu1 %v8994_v25, %s12492_s7 }
 0xa72   : > { %3712 = vrot.lane.b32.xlu0 %v8997_v38, %s12492_s7  ;;  %3710 = vrot.lane.b32.xlu1 %v8996_v15, %s12492_s7 }
 0xa76   : > { %3672 = vrot.lane.b32.xlu0 %v8991_v28, %s12481_s10  ;;  %3670 = vrot.lane.b32.xlu1 %v8990_v19, %s12481_s10 }
 0xa7a   : > { %3676 = vrot.lane.b32.xlu0 %v8993_v27, %s12481_s10  ;;  %3674 = vrot.lane.b32.xlu1 %v8992_v29, %s12481_s10 }
 0xa7e   : > { %3640 = vrot.lane.b32.xlu0 %v8989_v60, %s12454_s18  ;;  %3638 = vrot.lane.b32.xlu1 %v8988_v46, %s12454_s18 }
 0xa82   : > { %3856 = vrot.lane.b32.xlu0 %v9007_v4, %s12483_s11  ;;  %3854 = vrot.lane.b32.xlu1 %v9006_v37, %s12483_s11 }
 0xa86   : > { %3860 = vrot.lane.b32.xlu0 %v9009_v42, %s12483_s11  ;;  %3858 = vrot.lane.b32.xlu1 %v9008_v5, %s12483_s11 }
 0xa8a   : > { %3896 = vperm.xlu1 %9632, %v3875_v40  }
 0xabc   : > { %v3821_v33 = vpop.permute.xlu0 %3820  ;;  %v3819_v60 = vpop.permute.xlu1 %3818 }
 0xabd   : > { %v3827_v46 = vrot.slane %v3821_v33, 4  ;;  %v3826_v2 = vrot.slane %v3819_v60, 4 }
 0xabf   : > { %v3830_v8 = vsel %vm1070_vm3, %v3826_v2, %v3827_v46 }
 0xac0   : > { %v3825_v0 = vpop.permute.xlu0 %3824  ;;  %v3823_v26 = vpop.permute.xlu1 %3822  ;;  %v3831_v50 = vsel %vm12654_vm14, %v3819_v60, %v3830_v8  ;;  %vm12658_vm14 = vcmask 908288  }
 0xac1   : > { %v3829_v53 = vrot.slane %v3825_v0, 4  ;;  %v3828_v21 = vrot.slane %v3823_v26, 4 }
 0xac3   : > { %v3832_v22 = vsel %vm1070_vm3, %v3828_v21, %v3829_v53 }
 0xac4   : > { %v3833_v55 = vsel %vm12655_vm8, %v3823_v26, %v3832_v22  ;;  %v3729_v58 = vpop.permute.xlu0 %3728  ;;  %v3727_v24 = vpop.permute.xlu1 %3726  ;;  %vm12659_vm8 = vcmask 900096  }
 0xac5   : > { %v10908_v56 = vcombine.low %v3831_v50, %v3833_v55  ;;  %v10910_v45 = vcombine.high %v3831_v50, %v3833_v55  ;;  %v3735_v33 = vrot.slane %v3729_v58, 4  ;;  %v3734_v60 = vrot.slane %v3727_v24, 4 }
 0xac7   : > { %3998 = vmatprep.subr.bf16.mxu1 %v10910_v45  ;;  %4392 = vmatprep.subr.bf16.mxu0 %v10910_v45  ;;  %v3738_v21 = vsel %vm1070_vm3, %v3734_v60, %v3735_v33 }
 0xac8   : > { %v3733_v12 = vpop.permute.xlu0 %3732  ;;  %3999 = vmatpush1.bf16.msra.mxu1 %v10908_v56  ;;  %4393 = vmatpush1.bf16.msra.mxu0 %v10908_v56  ;;  %v3731_v43 = vpop.permute.xlu1 %3730 }
 0xac9   : > { %v3737_v29 = vrot.slane %v3733_v12, 4  ;;  %v3736_v35 = vrot.slane %v3731_v43, 4 }
 0xacb   : > { %v3740_v0 = vsel %vm1070_vm3, %v3736_v35, %v3737_v29 }
 0xacc   : > { %v10916_v59 = vpop.permute.xlu0 %3636  ;;  %v10918_v44 = vpop.permute.xlu1 %3634  ;;  %v3741_v50 = vsel %vm12658_vm14, %v3731_v43, %v3740_v0 }
 0xad0   : > { %v3801_v9 = vpop.permute.xlu0 %3800  ;;  %v3799_v25 = vpop.permute.xlu1 %3798 }
 0xad1   : > { %v3807_v38 = vrot.slane %v3801_v9, 4  ;;  %v3806_v15 = vrot.slane %v3799_v25, 4 }
 0xad3   : > { %v3810_v11 = vsel %vm1070_vm3, %v3806_v15, %v3807_v38 }
 0xad4   : > { %v3805_v61 = vpop.permute.xlu0 %3804  ;;  %v3803_v14 = vpop.permute.xlu1 %3802  ;;  %v3811_v31 = vsel %vm12656_vm10, %v3799_v25, %v3810_v11  ;;  %vm12660_vm10 = vmmov %vm12659_vm8 }
 0xad5   : > { %v3809_v28 = vrot.slane %v3805_v61, 4  ;;  %v3808_v19 = vrot.slane %v3803_v14, 4 }
 0xad7   : > { %v3812_v27 = vsel %vm1070_vm3, %v3808_v19, %v3809_v28 }
 0xad8   : > { %v3813_v30 = vsel %vm12657_vm9, %v3803_v14, %v3812_v27  ;;  %v3765_v4 = vpop.permute.xlu0 %3764  ;;  %v3763_v37 = vpop.permute.xlu1 %3762  ;;  %vm12661_vm9 = vmmov %vm12658_vm14  ;;  %vm12662_vm14 = vcmask 916480  }
 0xad9   : > { %v10924_v63 = vcombine.low %v3811_v31, %v3813_v30  ;;  %v10926_v42 = vcombine.high %v3811_v31, %v3813_v30  ;;  %v3771_v5 = vrot.slane %v3765_v4, 4  ;;  %v3770_v40 = vrot.slane %v3763_v37, 4 }
 0xada   : > { %v3739_v14 = vsel %vm12661_vm9, %v3727_v24, %v3738_v21 }
 0xadb   : > { %4000 = vmatprep.subr.bf16.mxu1 %v10926_v42  ;;  %4394 = vmatprep.subr.bf16.mxu0 %v10926_v42  ;;  %v3774_v26 = vsel %vm1070_vm3, %v3770_v40, %v3771_v5  ;;  %v10944_v11 = vcombine.high %v3739_v14, %v3741_v50  ;;  %v10953_v24 = vcombine.low %v3739_v14, %v3741_v50 }
 0xadc   : > { %v3769_v46 = vpop.permute.xlu0 %3768  ;;  %4001 = vmatpush1.bf16.msra.mxu1 %v10924_v63  ;;  %4395 = vmatpush1.bf16.msra.mxu0 %v10924_v63  ;;  %v3767_v2 = vpop.permute.xlu1 %3766  ;;  %v3775_v55 = vsel %vm12659_vm8, %v3763_v37, %v3774_v26  ;;  %vm12663_vm8 = vmmov %vm12662_vm14 }
 0xadd   : > { %v3773_v8 = vrot.slane %v3769_v46, 4  ;;  %v3772_v53 = vrot.slane %v3767_v2, 4  ;;  %v3643_v46 = vrot.slane %v10916_v59, 4 }
 0xadf   : > { %v3776_v22 = vsel %vm1070_vm3, %v3772_v53, %v3773_v8 }
 0xae0   : > { %v3777_v58 = vsel %vm12660_vm10, %v3767_v2, %v3776_v22  ;;  %v3709_v12 = vpop.permute.xlu0 %3708  ;;  %v3707_v9 = vpop.permute.xlu1 %3706  ;;  %v3642_v2 = vrot.slane %v10918_v44, 4  ;;  %vm12664_vm10 = vcmask 1031168  }
 0xae1   : > { %v10939_v25 = vcombine.low %v3775_v55, %v3777_v58  ;;  %v10941_v38 = vcombine.high %v3775_v55, %v3777_v58  ;;  %v3715_v15 = vrot.slane %v3709_v12, 4  ;;  %v3714_v61 = vrot.slane %v3707_v9, 4  ;;  %vm12665_vm9 = vmmov %vm12664_vm10 }
 0xae2   : > { %v3646_v50 = vsel %vm1070_vm3, %v3642_v2, %v3643_v46 }
 0xae3   : > { %4002 = vmatprep.subr.bf16.mxu1 %v10941_v38  ;;  %4396 = vmatprep.subr.bf16.mxu0 %v10941_v38  ;;  %v3718_v19 = vsel %vm1070_vm3, %v3714_v61, %v3715_v15 }
 0xae4   : > { %v3713_v43 = vpop.permute.xlu0 %3712  ;;  %4003 = vmatpush1.bf16.msra.mxu1 %v10939_v25  ;;  %4397 = vmatpush1.bf16.msra.mxu0 %v10939_v25  ;;  %v3711_v28 = vpop.permute.xlu1 %3710  ;;  %v3719_v31 = vsel %vm12662_vm14, %v3707_v9, %v3718_v19  ;;  %vm12666_vm14 = vcmask 1039360  }
 0xae5   : > { %v3717_v27 = vrot.slane %v3713_v43, 4  ;;  %v3716_v29 = vrot.slane %v3711_v28, 4  ;;  %4004 = vmatprep.subr.bf16.mxu1 %v10944_v11  ;;  %4398 = vmatprep.subr.bf16.mxu0 %v10944_v11 }
 0xae7   : > { %v3720_v35 = vsel %vm1070_vm3, %v3716_v29, %v3717_v27 }
 0xae8   : > { %v3721_v30 = vsel %vm12663_vm8, %v3711_v28, %v3720_v35  ;;  %v3673_v4 = vpop.permute.xlu0 %3672  ;;  %4005 = vmatpush1.bf16.msra.mxu1 %v10953_v24  ;;  %4399 = vmatpush1.bf16.msra.mxu0 %v10953_v24  ;;  %v3671_v37 = vpop.permute.xlu1 %3670  ;;  %v3647_v28 = vsel %vm12666_vm14, %v10918_v44, %v3646_v50  ;;  %vm12667_vm8 = vmmov %vm12666_vm14  ;;  %vm12675_vm14 = vcmp.ne.s16.totalorder %v12623_v49, 0 }
 0xae9   : > { %v10960_v5 = vcombine.low %v3719_v31, %v3721_v30  ;;  %v10962_v40 = vcombine.high %v3719_v31, %v3721_v30  ;;  %v3679_v33 = vrot.slane %v3673_v4, 4  ;;  %v3678_v60 = vrot.slane %v3671_v37, 4 }
 0xaeb   : > { %4006 = vmatprep.subr.bf16.mxu1 %v10962_v40  ;;  %4400 = vmatprep.subr.bf16.mxu0 %v10962_v40  ;;  %v3682_v8 = vsel %vm1070_vm3, %v3678_v60, %v3679_v33 }
 0xaec   : > { %v3677_v0 = vpop.permute.xlu0 %3676  ;;  %4007 = vmatpush1.bf16.msra.mxu1 %v10960_v5  ;;  %4401 = vmatpush1.bf16.msra.mxu0 %v10960_v5  ;;  %v3675_v26 = vpop.permute.xlu1 %3674  ;;  %v3683_v55 = vsel %vm12664_vm10, %v3671_v37, %v3682_v8  ;;  %vm12673_vm10 = vcmp.ne.s16.totalorder %v12619_v48, 0 }
 0xaed   : > { %v3681_v53 = vrot.slane %v3677_v0, 4  ;;  %v3680_v21 = vrot.slane %v3675_v26, 4  ;;  %v11006_v0 = vsel %vm1030_vm15, %v10815_v52, 0 }
 0xaee   : > { %12670 = vst [vmem:[#allocation40_spill] sm:$0xff] %v11006_v0 }
 0xaef   : > { %v3684_v22 = vsel %vm1070_vm3, %v3680_v21, %v3681_v53 }
 0xaf0   : > { %v3685_v59 = vsel %vm12665_vm9, %v3675_v26, %v3684_v22  ;;  %v3641_v58 = vpop.permute.xlu0 %3640  ;;  %v3639_v12 = vpop.permute.xlu1 %3638  ;;  %v9010_v22 = vcombine.low %v10894_v23, %v10894_v23  ;;  %vm12674_vm9 = vcmp.ne.s16.totalorder %v12621_v13, 0 }
 0xaf1   : > { %v10975_v9 = vcombine.low %v3683_v55, %v3685_v59  ;;  %v10977_v15 = vcombine.high %v3683_v55, %v3685_v59  ;;  %v3645_v61 = vrot.slane %v3641_v58, 4  ;;  %v3644_v14 = vrot.slane %v3639_v12, 4 }
 0xaf3   : > { %v3648_v43 = vsel %vm1070_vm3, %v3644_v14, %v3645_v61  ;;  %4008 = vmatprep.subr.bf16.mxu1 %v10977_v15  ;;  %4402 = vmatprep.subr.bf16.mxu0 %v10977_v15 }
 0xaf4   : > { %v3649_v19 = vsel %vm12667_vm8, %v3639_v12, %v3648_v43  ;;  %v3857_v27 = vpop.permute.xlu0 %3856  ;;  %4009 = vmatpush1.bf16.msra.mxu1 %v10975_v9  ;;  %4403 = vmatpush1.bf16.msra.mxu0 %v10975_v9  ;;  %v3855_v29 = vpop.permute.xlu1 %3854  ;;  %vm12676_vm8 = vcmp.ne.s16.totalorder %v12617_v1, 0 }
 0xaf5   : > { %v10987_v35 = vcombine.low %v3647_v28, %v3649_v19  ;;  %v10989_v31 = vcombine.high %v3647_v28, %v3649_v19  ;;  %v3863_v30 = vrot.slane %v3857_v27, 4  ;;  %v3862_v4 = vrot.slane %v3855_v29, 4 }
 0xaf7   : > { %12668 = vst [vmem:[#allocation38_spill] sm:$0xff] %v10987_v35  ;;  %12669 = vst [vmem:[#allocation39_spill] sm:$0xff] %v10989_v31  ;;  %4010 = vmatprep.subr.bf16.mxu1 %v10989_v31  ;;  %4404 = vmatprep.subr.bf16.mxu0 %v10989_v31  ;;  %v3866_v33 = vsel %vm1070_vm3, %v3862_v4, %v3863_v30 }
 0xaf8   : > { %v3861_v37 = vpop.permute.xlu0 %3860  ;;  %4011 = vmatpush1.bf16.msra.mxu1 %v10987_v35  ;;  %4405 = vmatpush1.bf16.msra.mxu0 %v10987_v35  ;;  %v3859_v44 = vpop.permute.xlu1 %3858  ;;  %v3867_v26 = vsel %vm1358_vm11, %v3855_v29, %v3866_v33 }
 0xaf9   : > { %v3865_v60 = vrot.slane %v3861_v37, 4  ;;  %v3864_v46 = vrot.slane %v3859_v44, 4  ;;  %9559 = vmatprep.subr.msk.bf16.mxu1 %vm1031_vm1, %v10818_v34  ;;  %9561 = vmatprep.subr.msk.bf16.mxu0 %vm1031_vm1, %v10818_v34 }
 0xafb   : > { %v3868_v2 = vsel %vm1070_vm3, %v3864_v46, %v3865_v60 }
 0xafc   : > { %v3869_v8 = vsel %vm1358_vm11, %v3859_v44, %v3868_v2  ;;  %4013 = vmatpush1.bf16.msra.mxu1 %v11006_v0  ;;  %4407 = vmatpush1.bf16.msra.mxu0 %v11006_v0 }
 0xafd   : > { %v11012_v53 = vcombine.low %v3867_v26, %v3869_v8  ;;  %v11014_v21 = vcombine.high %v3867_v26, %v3869_v8 }
 0xaff   : > { %12671 = vst [vmem:[#allocation41_spill] sm:$0xff] %v11012_v53  ;;  %12672 = vst [vmem:[#allocation42_spill] sm:$0xff] %v11014_v21  ;;  %4028 = vmatprep.subr.bf16.mxu1 %v11014_v21 }
 0xb00   : > { %4029 = vmatpush2.bf16.msra.mxu1 %v11012_v53 }
 0xb01   : > { %4839 = vmatprep.subr.bf16.mxu1 %v10910_v45 }
 0xb03   : > { %4031 = vmatmul.mubr.bf16.vlgmr.msra.gmra.mxu1 %v9010_v22 }
 0xb04   : > { %4840 = vmatpush1.bf16.msra.mxu1 %v10908_v56 }
 0xb05   : > { %4841 = vmatprep.subr.bf16.mxu1 %v10926_v42  ;;  %v3897_v52 = vpop.permute.xlu1 %3896 }
 0xb08   : > { %4842 = vmatpush1.bf16.msra.mxu1 %v10924_v63 }
 0xb09   : > { %4843 = vmatprep.subr.bf16.mxu1 %v10941_v38 }
 0xb0c   : > { %4844 = vmatpush1.bf16.msra.mxu1 %v10939_v25 }
 0xb0d   : > { %4845 = vmatprep.subr.bf16.mxu1 %v10944_v11 }
 0xb10   : > { %4846 = vmatpush1.bf16.msra.mxu1 %v10953_v24 }
 0xb11   : > { %4847 = vmatprep.subr.bf16.mxu1 %v10962_v40 }
 0xb14   : > { %4848 = vmatpush1.bf16.msra.mxu1 %v10960_v5 }
 0xb15   : > { %4849 = vmatprep.subr.bf16.mxu1 %v10977_v15 }
 0xb18   : > { %4850 = vmatpush1.bf16.msra.mxu1 %v10975_v9 }
 0xb19   : > { %4851 = vmatprep.subr.bf16.mxu1 %v10989_v31 }
 0xb1c   : > { %4852 = vmatpush1.bf16.msra.mxu1 %v10987_v35 }
 0xb1d   : > { %9563 = vmatprep.subr.msk.bf16.mxu1 %vm1031_vm1, %v10818_v34 }
 0xb20   : > { %4854 = vmatpush1.bf16.msra.mxu1 %v11006_v0 }
 0xbc3   : > { %v4032_v23 = vpop.f32.mrf.mxu1 }
 0xbc4   : > { %v4033_v50 = vadd.f32 %v4032_v23, %v3897_v52 }
 0xbc5   : > { %v4034_v55 = vpop.f32.mrf.mxu1 }
 0xbc6   : > { %v4039_v59 = vmax.f32 %v4033_v50, 0.0  ;;  %v4035_v58 = vadd.f32 %v4034_v55, %v3897_v52 }
 0xbc7   : > { %v4036_v12 = vpop.f32.mrf.mxu1 }
 0xbc8   : > { %v4041_v61 = vpack.c.bf16 %v4039_v59, %v4039_v59  ;;  %v4040_v14 = vmax.f32 %v4035_v58, 0.0 }
 0xbc9   : > { %v4037_v43 = vpop.f32.mrf.mxu1 }
 0xbca   : > { %v4042_v28 = vpack.c.bf16 %v4040_v14, %v4040_v14  ;;  %4045 = vrot.lane.b32.xlu0 %v4041_v61, %s12489_s28 }
 0xbcc   : > { %4047 = vrot.lane.b32.xlu1 %v4042_v28, %s12489_s28 }
 0xc3c   : > { %v4046_v19 = vpop.permute.xlu0 %4045 }
 0xc3d   : > { %v4052_v29 = vsel %vm1005_vm6, 0, %v4046_v19 }
 0xc3e   : > { %v4048_v27 = vpop.permute.xlu1 %4047  ;;  %v11051_v46 = vsel %vm1030_vm15, %v4052_v29, 0  ;;  %v4187_v8 = vsel %vm1326_vm0, %v4052_v29, 0  ;;  %v4156_v55 = vsel %vm12675_vm14, %v4052_v29, 0  ;;  %v4135_v14 = vsel %vm12676_vm8, %v4052_v29, 0 }
 0xc3f   : > { %v4049_v30 = vsel %vm1005_vm6, %v4046_v19, %v4048_v27  ;;  %v4055_v4 = vsel %vm1005_vm6, %v4048_v27, 0  ;;  %vm12681_vm14 = vcmp.ne.s16.totalorder %v12627_v39, 0  ;;  %vm12682_vm8 = vcmp.ne.s16.totalorder %v12629_v62, 0 }
 0xc40   : > { %v9033_v37 = vcombine.low %v4055_v4, %v4055_v4  ;;  %v9032_v44 = vcombine.low %v4052_v29, %v4049_v30  ;;  %v4189_v33 = vsel %vm1328_vm2, %v4055_v4, 0  ;;  %v4188_v60 = vsel %vm1327_vm7, %v4049_v30, 0 }
 0xc41   : > { %v11055_v2 = vsel %vm1031_vm1, %v4049_v30, 0  ;;  %v9043_v22 = vcombine.low %v4189_v33, %v4189_v33  ;;  %v9042_v52 = vcombine.low %v4187_v8, %v4188_v60  ;;  %v4158_v23 = vsel %vm12673_vm10, %v4055_v4, 0 }
 0xc42   : > { %4179 = vrot.lane.b32.xlu1 %v9033_v37, %s12487_s15  ;;  %4177 = vrot.lane.b32.xlu0 %v9032_v44, %s12487_s15  ;;  %v4157_v50 = vsel %vm12674_vm9, %v4049_v30, 0  ;;  %v9041_v59 = vcombine.low %v4158_v23, %v4158_v23  ;;  %v4137_v12 = vsel %vm1215_vm13, %v4055_v4, 0  ;;  %v4136_v61 = vsel %vm1214_vm12, %v4049_v30, 0 }
 0xc43   : > { %v9040_v58 = vcombine.low %v4156_v55, %v4157_v50  ;;  %v9039_v43 = vcombine.low %v4137_v12, %v4137_v12  ;;  %v9038_v28 = vcombine.low %v4135_v14, %v4136_v61  ;;  %v4085_v19 = vsel %vm1102_vm5, %v4055_v4, 0 }
 0xc44   : > { %v4084_v27 = vsel %vm1101_vm4, %v4049_v30, 0  ;;  %vm12678_vm10 = vcmp.ne.s16.totalorder %v12591_v47, 0  ;;  %v9035_v60 = vcombine.low %v4085_v19, %v4085_v19  ;;  %vm12680_vm9 = vcmp.ne.s16.totalorder %v12625_v10, 0 }
 0xc45   : > { %v4083_v33 = vsel %vm12678_vm10, %v4052_v29, 0  ;;  %v4104_v23 = vsel %vm12682_vm8, %v4052_v29, 0  ;;  %vm12683_vm10 = vcmask 719872   ;;  %vm12686_vm8 = vcmask 908288  }
 0xc46   : > { %4127 = vrot.lane.b32.xlu1 %v9033_v37, %s12469_s16  ;;  %4125 = vrot.lane.b32.xlu0 %v9032_v44, %s12469_s16  ;;  %v9034_v8 = vcombine.low %v4083_v33, %v4084_v27 }
 0xc4a   : > { %4200 = vrot.lane.b32.xlu1 %v9043_v22, %s12483_s11  ;;  %4198 = vrot.lane.b32.xlu0 %v9042_v52, %s12483_s11  ;;  %v4106_v22 = vsel %vm12680_vm9, %v4055_v4, 0  ;;  %v4105_v52 = vsel %vm12681_vm14, %v4049_v30, 0  ;;  %v4209_v4 = vld [vmem:[%s12679_s0] sm:$0xff]  ;;  %vm12684_vm9 = vcmask 777216   ;;  %vm12685_vm14 = vcmask 785408   ;;  %s12699_s0 = sld [smem:[#allocation16_spill]] }
 0xc4b   : > { %v9037_v50 = vcombine.low %v4106_v22, %v4106_v22  ;;  %v9036_v55 = vcombine.low %v4104_v23, %v4105_v52 }
 0xc4e   : > { %4169 = vrot.lane.b32.xlu1 %v9041_v59, %s12471_s1  ;;  %4167 = vrot.lane.b32.xlu0 %v9040_v58, %s12471_s1  ;;  %v11098_v59 = vld [vmem:[%s12677_s3] sm:$0xff]  ;;  %s12793_s3 = smov 94  }
 0xc4f   : > { %v9045_v30 = vcombine.high %v11098_v59, %v11098_v59 }
 0xc51   : > { %9075 = vmatprep.mubr.msk.bf16.mxu0 %vm12683_vm10, %v9045_v30  ;;  %vm12687_vm10 = vcmask 900096  }
 0xc52   : > { %4148 = vrot.lane.b32.xlu1 %v9039_v43, %s12485_s2  ;;  %4146 = vrot.lane.b32.xlu0 %v9038_v28, %s12485_s2 }
 0xc56   : > { %4096 = vrot.lane.b32.xlu1 %v9035_v60, %s12481_s10  ;;  %4094 = vrot.lane.b32.xlu0 %v9034_v8, %s12481_s10 }
 0xc5a   : > { %4117 = vrot.lane.b32.xlu1 %v9037_v50, %s12492_s7  ;;  %4115 = vrot.lane.b32.xlu0 %v9036_v55, %s12492_s7 }
 0xc5e   : > { %4075 = vrot.lane.b32.xlu1 %v9033_v37, %s12454_s18  ;;  %4073 = vrot.lane.b32.xlu0 %v9032_v44, %s12454_s18 }
 0xc62   : > { %4239 = vperm.xlu0 %9631, %v4209_v4  }
 0xcb4   : > { %v4180_v29 = vpop.permute.xlu1 %4179  ;;  %v4178_v58 = vpop.permute.xlu0 %4177 }
 0xcb5   : > { %v4182_v14 = vrot.slane %v4180_v29, 4  ;;  %v4181_v43 = vrot.slane %v4178_v58, 4 }
 0xcb7   : > { %v4183_v44 = vsel %vm1070_vm3, %v4181_v43, %v4182_v14 }
 0xcb8   : > { %v4128_v12 = vpop.permute.xlu1 %4127  ;;  %v4126_v61 = vpop.permute.xlu0 %4125  ;;  %v4184_v14 = vsel %vm12684_vm9, %v4178_v58, %v4183_v44  ;;  %vm12688_vm9 = vcmask 1031168  }
 0xcb9   : > { %v4130_v60 = vrot.slane %v4128_v12, 4  ;;  %v4129_v8 = vrot.slane %v4126_v61, 4 }
 0xcbb   : > { %v4131_v43 = vsel %vm1070_vm3, %v4129_v8, %v4130_v60 }
 0xcbc   : > { %v4201_v28 = vpop.permute.xlu1 %4200  ;;  %v4199_v19 = vpop.permute.xlu0 %4198 }
 0xcbd   : > { %v4203_v27 = vrot.slane %v4201_v28, 4  ;;  %v4202_v33 = vrot.slane %v4199_v19, 4 }
 0xcbf   : > { %v4204_v37 = vsel %vm1070_vm3, %v4202_v33, %v4203_v27 }
 0xcc0   : > { %v11109_v22 = vsel %vm1358_vm11, %v4199_v19, %v4204_v37  ;;  %v4170_v52 = vpop.permute.xlu1 %4169  ;;  %v4168_v23 = vpop.permute.xlu0 %4167 }
 0xcc1   : > { %v4172_v50 = vrot.slane %v4170_v52, 4  ;;  %v4171_v55 = vrot.slane %v4168_v23, 4  ;;  %v9073_v30 = vcombine.high %v11109_v22, %v11109_v22  ;;  %v9072_v4 = vcombine.low %v11109_v22, %v11109_v22 }
 0xcc3   : > { %v4173_v29 = vsel %vm1070_vm3, %v4171_v55, %v4172_v50  ;;  %9074 = vmatprep.subr.msk.bf16.mxu0 %vm1070_vm3, %v9073_v30  ;;  %v4387_v12 = vsel %vm1070_vm3, %v9072_v4, 0  ;;  %v4132_v55 = vsel %vm12686_vm8, %v4126_v61, %v4131_v43  ;;  %vm12691_vm8 = vcmask 1039360  }
 0xcc4   : > { %v4174_v28 = vsel %vm12685_vm14, %v4168_v23, %v4173_v29  ;;  %v4149_v19 = vpop.permute.xlu1 %4148  ;;  %4413 = vmatpush2.bf16.msra.mxu0 %v4387_v12  ;;  %v4147_v27 = vpop.permute.xlu0 %4146  ;;  %vm12689_vm14 = vcmask 916480  }
 0xcc5   : > { %v11121_v33 = vcombine.low %v4174_v28, %v4184_v14  ;;  %v11123_v37 = vcombine.high %v4174_v28, %v4184_v14  ;;  %v4151_v52 = vrot.slane %v4149_v19, 4  ;;  %v4150_v26 = vrot.slane %v4147_v27, 4 }
 0xcc7   : > { %v4152_v50 = vsel %vm1070_vm3, %v4150_v26, %v4151_v52  ;;  %4414 = vmatprep.subr.bf16.mxu0 %v11123_v37 }
 0xcc8   : > { %v4153_v58 = vsel %vm12687_vm10, %v4147_v27, %v4152_v50  ;;  %v4097_v44 = vpop.permute.xlu1 %4096  ;;  %4415 = vmatpush2.bf16.msra.mxu0 %v11121_v33  ;;  %v4095_v60 = vpop.permute.xlu0 %4094  ;;  %vm12695_vm10 = vcmp.ne.s16.totalorder %v12625_v10, 0 }
 0xcc9   : > { %v11130_v8 = vcombine.low %v4132_v55, %v4153_v58  ;;  %v11132_v23 = vcombine.high %v4132_v55, %v4153_v58  ;;  %v4099_v30 = vrot.slane %v4097_v44, 4  ;;  %v4098_v4 = vrot.slane %v4095_v60, 4 }
 0xccb   : > { %4416 = vmatprep.subr.bf16.mxu0 %v11132_v23  ;;  %v4100_v61 = vsel %vm1070_vm3, %v4098_v4, %v4099_v30  ;;  %v12693_v4 = vcombine.low %v11051_v46, %v11055_v2 }
 0xccc   : > { %v4118_v29 = vpop.permute.xlu1 %4117  ;;  %4417 = vmatpush2.bf16.msra.mxu0 %v11130_v8  ;;  %v4116_v26 = vpop.permute.xlu0 %4115  ;;  %v4101_v28 = vsel %vm12688_vm9, %v4095_v60, %v4100_v61  ;;  %vm12696_vm9 = vcmp.ne.s16.totalorder %v12627_v39, 0 }
 0xccd   : > { %v4120_v12 = vrot.slane %v4118_v29, 4  ;;  %v4119_v14 = vrot.slane %v4116_v26, 4 }
 0xccf   : > { %v4121_v43 = vsel %vm1070_vm3, %v4119_v14, %v4120_v12 }
 0xcd0   : > { %v4122_v19 = vsel %vm12689_vm14, %v4116_v26, %v4121_v43  ;;  %v4076_v27 = vpop.permute.xlu1 %4075  ;;  %v4074_v52 = vpop.permute.xlu0 %4073  ;;  %v9044_v26 = vcombine.low %v11098_v59, %v11098_v59  ;;  %vm12697_vm14 = vcmp.ne.s16.totalorder %v12629_v62, 0 }
 0xcd1   : > { %v11140_v50 = vcombine.low %v4101_v28, %v4122_v19  ;;  %v11142_v55 = vcombine.high %v4101_v28, %v4122_v19  ;;  %v4078_v58 = vrot.slane %v4076_v27, 4  ;;  %v4077_v44 = vrot.slane %v4074_v52, 4 }
 0xcd3   : > { %12690 = vst [vmem:[#allocation43_spill] sm:$0xff] %v11140_v50  ;;  %v4079_v32 = vsel %vm1070_vm3, %v4077_v44, %v4078_v58  ;;  %4418 = vmatprep.subr.bf16.mxu0 %v11142_v55 }
 0xcd4   : > { %v4080_v30 = vsel %vm12691_vm8, %v4074_v52, %v4079_v32  ;;  %4419 = vmatpush2.bf16.msra.mxu0 %v11140_v50  ;;  %vm12698_vm8 = vcmp.ne.s16.totalorder %v12591_v47, 0 }
 0xcd5   : > { %v11149_v60 = vcombine.low %v11051_v46, %v4080_v30  ;;  %v11154_v29 = vcombine.high %v12693_v4, %v4080_v30 }
 0xcd7   : > { %12692 = vst [vmem:[#allocation44_spill] sm:$0xff] %v11149_v60  ;;  %12694 = vst [vmem:[#allocation45_spill] sm:$0xff] %v11154_v29  ;;  %4420 = vmatprep.subr.bf16.mxu0 %v11154_v29 }
 0xcd8   : > { %4421 = vmatpush2.bf16.msra.mxu0 %v11149_v60 }
 0xcd9   : > { %4422 = vmatprep.subr.bf16.mxu0 %v11014_v21 }
 0xcdc   : > { %4423 = vmatpush2.bf16.msra.mxu0 %v11012_v53 }
 0xcdd   : > { %5387 = vmatprep.subr.bf16.mxu0 %v10910_v45  ;;  %v4240_v32 = vpop.permute.xlu0 %4239 }
 0xcdf   : > { %4425 = vmatmul.mubr.bf16.vlgmr.msra.gmra.mxu0 %v9044_v26 }
 0xce0   : > { %5388 = vmatpush1.bf16.msra.mxu0 %v10908_v56 }
 0xce1   : > { %5389 = vmatprep.subr.bf16.mxu0 %v10926_v42 }
 0xce4   : > { %5390 = vmatpush1.bf16.msra.mxu0 %v10924_v63 }
 0xce5   : > { %5391 = vmatprep.subr.bf16.mxu0 %v10941_v38 }
 0xce8   : > { %5392 = vmatpush1.bf16.msra.mxu0 %v10939_v25 }
 0xce9   : > { %5393 = vmatprep.subr.bf16.mxu0 %v10944_v11 }
 0xcec   : > { %5394 = vmatpush1.bf16.msra.mxu0 %v10953_v24 }
 0xced   : > { %5395 = vmatprep.subr.bf16.mxu0 %v10962_v40 }
 0xcf0   : > { %5396 = vmatpush1.bf16.msra.mxu0 %v10960_v5 }
 0xcf1   : > { %5397 = vmatprep.subr.bf16.mxu0 %v10977_v15 }
 0xcf4   : > { %5398 = vmatpush1.bf16.msra.mxu0 %v10975_v9 }
 0xcf5   : > { %5399 = vmatprep.subr.bf16.mxu0 %v10989_v31 }
 0xcf8   : > { %5400 = vmatpush1.bf16.msra.mxu0 %v10987_v35 }
 0xcf9   : > { %9565 = vmatprep.subr.msk.bf16.mxu0 %vm1031_vm1, %v10818_v34 }
 0xcfc   : > { %5402 = vmatpush1.bf16.msra.mxu0 %v11006_v0 }
 0xd9f   : > { %v4426_v46 = vpop.f32.mrf.mxu0 }
 0xda0   : > { %v4427_v2 = vadd.f32 %v4426_v46, %v4240_v32 }
 0xda1   : > { %v4428_v59 = vpop.f32.mrf.mxu0 }
 0xda2   : > { %v4433_v61 = vmax.f32 %v4427_v2, 0.0  ;;  %v4429_v12 = vadd.f32 %v4428_v59, %v4240_v32 }
 0xda3   : > { %v4430_v14 = vpop.f32.mrf.mxu0 }
 0xda4   : > { %v4435_v43 = vpack.c.bf16 %v4433_v61, %v4433_v61  ;;  %v4434_v28 = vmax.f32 %v4429_v12, 0.0 }
 0xda5   : > { %v4431_v19 = vpop.f32.mrf.mxu0 }
 0xda6   : > { %v4436_v27 = vpack.c.bf16 %v4434_v28, %v4434_v28  ;;  %4439 = vrot.lane.b32.xlu1 %v4435_v43, %s12489_s28 }
 0xda8   : > { %4441 = vrot.lane.b32.xlu0 %v4436_v27, %s12489_s28 }
 0xe18   : > { %v4440_v52 = vpop.permute.xlu1 %4439 }
 0xe19   : > { %v4446_v44 = vsel %vm1005_vm6, 0, %v4440_v52 }
 0xe1a   : > { %v4442_v58 = vpop.permute.xlu0 %4441  ;;  %v11193_v59 = vsel %vm1030_vm15, %v4446_v44, 0  ;;  %v4498_v14 = vsel %vm12697_vm14, %v4446_v44, 0  ;;  %vm12703_vm14 = vcmp.ne.s16.totalorder %v12621_v13, 0 }
 0xe1b   : > { %v4443_v30 = vsel %vm1005_vm6, %v4440_v52, %v4442_v58  ;;  %v4449_v4 = vsel %vm1005_vm6, %v4442_v58, 0  ;;  %v4477_v52 = vsel %vm12698_vm8, %v4446_v44, 0  ;;  %vm12704_vm8 = vcmp.ne.s16.totalorder %v12623_v49, 0 }
 0xe1c   : > { %v9078_v26 = vcombine.low %v4449_v4, %v4449_v4  ;;  %v9077_v46 = vcombine.low %v4446_v44, %v4443_v30  ;;  %v4500_v32 = vsel %vm12695_vm10, %v4449_v4, 0  ;;  %v4499_v2 = vsel %vm12696_vm9, %v4443_v30, 0 }
 0xe1d   : > { %v11197_v61 = vsel %vm1031_vm1, %v4443_v30, 0  ;;  %v9082_v43 = vcombine.low %v4500_v32, %v4500_v32  ;;  %v9081_v28 = vcombine.low %v4498_v14, %v4499_v2  ;;  %v4479_v19 = vsel %vm1102_vm5, %v4449_v4, 0 }
 0xe1e   : > { %4521 = vrot.lane.b32.xlu0 %v9078_v26, %s12469_s16  ;;  %4519 = vrot.lane.b32.xlu1 %v9077_v46, %s12469_s16  ;;  %v4478_v27 = vsel %vm1101_vm4, %v4443_v30, 0  ;;  %v9080_v58 = vcombine.low %v4479_v19, %v4479_v19  ;;  %v4583_v32 = vsel %vm1328_vm2, %v4449_v4, 0  ;;  %v4582_v2 = vsel %vm1327_vm7, %v4443_v30, 0 }
 0xe1f   : > { %v9079_v12 = vcombine.low %v4477_v52, %v4478_v27  ;;  %v4581_v14 = vsel %vm1326_vm0, %v4446_v44, 0  ;;  %v4531_v19 = vsel %vm1215_vm13, %v4449_v4, 0  ;;  %vm12701_vm10 = vcmp.ne.s16.totalorder %v12617_v1, 0 }
 0xe20   : > { %vm12702_vm9 = vcmp.ne.s16.totalorder %v12619_v48, 0 }
 0xe21   : > { %v4552_v52 = vsel %vm12702_vm9, %v4449_v4, 0  ;;  %vm12706_vm9 = vcmask 916480  }
 0xe22   : > { %4469 = vrot.lane.b32.xlu0 %v9078_v26, %s12454_s18  ;;  %4467 = vrot.lane.b32.xlu1 %v9077_v46, %s12454_s18  ;;  %s12700_s18 = sld [smem:[#allocation5_spill]] }
 0xe26   : > { %4511 = vrot.lane.b32.xlu0 %v9082_v43, %s12492_s7  ;;  %4509 = vrot.lane.b32.xlu1 %v9081_v28, %s12492_s7  ;;  %v9088_v43 = vcombine.low %v4583_v32, %v4583_v32  ;;  %v9087_v28 = vcombine.low %v4581_v14, %v4582_v2  ;;  %v4550_v32 = vsel %vm12704_vm8, %v4446_v44, 0  ;;  %v9086_v2 = vcombine.low %v4552_v52, %v4552_v52 }
 0xe27   : > { %vm12708_vm8 = vcmask 1031168  }
 0xe2a   : > { %4490 = vrot.lane.b32.xlu0 %v9080_v58, %s12481_s10  ;;  %4488 = vrot.lane.b32.xlu1 %v9079_v12, %s12481_s10  ;;  %v4530_v12 = vsel %vm1214_vm12, %v4443_v30, 0  ;;  %v4551_v58 = vsel %vm12703_vm14, %v4443_v30, 0  ;;  %vm12707_vm14 = vcmask 1039360  }
 0xe2b   : > { %v9085_v14 = vcombine.low %v4550_v32, %v4551_v58 }
 0xe2e   : > { %4573 = vrot.lane.b32.xlu0 %v9078_v26, %s12487_s15  ;;  %4571 = vrot.lane.b32.xlu1 %v9077_v46, %s12487_s15  ;;  %v4529_v26 = vsel %vm12701_vm10, %v4446_v44, 0  ;;  %v9084_v46 = vcombine.low %v4531_v19, %v4531_v19  ;;  %vm12705_vm10 = vcmask 908288  }
 0xe2f   : > { %v9083_v27 = vcombine.low %v4529_v26, %v4530_v12 }
 0xe32   : > { %4594 = vrot.lane.b32.xlu0 %v9088_v43, %s12483_s11  ;;  %4592 = vrot.lane.b32.xlu1 %v9087_v28, %s12483_s11  ;;  %v4604_v43 = vld [vmem:[%s12699_s0] sm:$0xff]  ;;  %s12712_s0 = sld [smem:[#allocation6_spill]] }
 0xe33   : > { %v11243_v28 = vld [vmem:[%s12700_s18] sm:$0xff] }
 0xe34   : > { %v9090_v30 = vcombine.high %v11243_v28, %v11243_v28 }
 0xe36   : > { %4542 = vrot.lane.b32.xlu0 %v9084_v46, %s12485_s2  ;;  %4540 = vrot.lane.b32.xlu1 %v9083_v27, %s12485_s2 }
 0xe37   : > { %4871 = vmatprep.mubr.bf16.mxu1 %v9090_v30 }
 0xe3a   : > { %4563 = vrot.lane.b32.xlu0 %v9086_v2, %s12471_s1  ;;  %4561 = vrot.lane.b32.xlu1 %v9085_v14, %s12471_s1 }
 0xe3e   : > { %4643 = vperm.xlu1 %9632, %v4604_v43  }
 0xe90   : > { %v4522_v4 = vpop.permute.xlu0 %4521  ;;  %v4520_v19 = vpop.permute.xlu1 %4519 }
 0xe91   : > { %v4524_v46 = vrot.slane %v4522_v4, 4  ;;  %v4523_v44 = vrot.slane %v4520_v19, 4 }
 0xe93   : > { %v4525_v2 = vsel %vm1070_vm3, %v4523_v44, %v4524_v46 }
 0xe94   : > { %v4470_v12 = vpop.permute.xlu0 %4469  ;;  %v4468_v26 = vpop.permute.xlu1 %4467  ;;  %v4526_v54 = vsel %vm12705_vm10, %v4520_v19, %v4525_v2  ;;  %vm12710_vm10 = vcmask 777216  }
 0xe95   : > { %v4472_v27 = vrot.slane %v4470_v12, 4  ;;  %v4471_v52 = vrot.slane %v4468_v26, 4 }
 0xe97   : > { %v4473_v30 = vsel %vm1070_vm3, %v4471_v52, %v4472_v27  ;;  %v11281_v52 = vcombine.low %v11109_v22, %v11193_v59 }
 0xe98   : > { %v4512_v58 = vpop.permute.xlu0 %4511  ;;  %v4510_v32 = vpop.permute.xlu1 %4509 }
 0xe99   : > { %v4514_v14 = vrot.slane %v4512_v58, 4  ;;  %v4513_v20 = vrot.slane %v4510_v32, 4 }
 0xe9b   : > { %v4515_v43 = vsel %vm1070_vm3, %v4513_v20, %v4514_v14  ;;  %v4474_v20 = vsel %vm12707_vm14, %v4468_v26, %v4473_v30  ;;  %vm12713_vm14 = vcmask 900096  }
 0xe9c   : > { %v4516_v17 = vsel %vm12706_vm9, %v4510_v32, %v4515_v43  ;;  %v4491_v0 = vpop.permute.xlu0 %4490  ;;  %v4489_v34 = vpop.permute.xlu1 %4488  ;;  %vm12711_vm9 = vcmask 785408  }
 0xe9d   : > { %v11252_v4 = vcombine.low %v4516_v17, %v4526_v54  ;;  %v4493_v12 = vrot.slane %v4491_v0, 4  ;;  %v4492_v35 = vrot.slane %v4489_v34, 4  ;;  %v11254_v31 = vcombine.high %v4516_v17, %v4526_v54 }
 0xe9e   : > { %v12709_v54 = vcombine.low %v11193_v59, %v11197_v61 }
 0xe9f   : > { %v4494_v46 = vsel %vm1070_vm3, %v4492_v35, %v4493_v12  ;;  %4855 = vmatprep.subr.bf16.mxu1 %v11254_v31  ;;  %5403 = vmatprep.subr.bf16.mxu0 %v11254_v31 }
 0xea0   : > { %v4495_v19 = vsel %vm12708_vm8, %v4489_v34, %v4494_v46  ;;  %v4574_v44 = vpop.permute.xlu0 %4573  ;;  %4856 = vmatpush2.bf16.msra.mxu1 %v11252_v4  ;;  %5404 = vmatpush2.bf16.msra.mxu0 %v11252_v4  ;;  %v4572_v27 = vpop.permute.xlu1 %4571  ;;  %v11273_v35 = vcombine.high %v11109_v22, %v12709_v54  ;;  %vm12715_vm8 = vcmask 261120  }
 0xea1   : > { %v11263_v0 = vcombine.low %v4474_v20, %v4495_v19  ;;  %v11265_v17 = vcombine.high %v4474_v20, %v4495_v19  ;;  %v4576_v14 = vrot.slane %v4574_v44, 4  ;;  %v4575_v43 = vrot.slane %v4572_v27, 4 }
 0xea3   : > { %4857 = vmatprep.subr.bf16.mxu1 %v11265_v17  ;;  %5405 = vmatprep.subr.bf16.mxu0 %v11265_v17  ;;  %v4577_v20 = vsel %vm1070_vm3, %v4575_v43, %v4576_v14 }
 0xea4   : > { %4858 = vmatpush2.bf16.msra.mxu1 %v11263_v0  ;;  %5406 = vmatpush2.bf16.msra.mxu0 %v11263_v0  ;;  %v4595_v34 = vpop.permute.xlu0 %4594  ;;  %v4593_v26 = vpop.permute.xlu1 %4592 }
 0xea5   : > { %4859 = vmatprep.subr.bf16.mxu1 %v11273_v35  ;;  %5407 = vmatprep.subr.bf16.mxu0 %v11273_v35  ;;  %v4597_v22 = vrot.slane %v4595_v34, 4  ;;  %v4596_v59 = vrot.slane %v4593_v26, 4 }
 0xea7   : > { %v4598_v30 = vsel %vm1070_vm3, %v4596_v59, %v4597_v22  ;;  %v4578_v22 = vsel %vm12710_vm10, %v4572_v27, %v4577_v20  ;;  %vm12716_vm10 = vcmp.ne.s16.totalorder %v12619_v48, 0 }
 0xea8   : > { %4860 = vmatpush2.bf16.msra.mxu1 %v11281_v52  ;;  %5408 = vmatpush2.bf16.msra.mxu0 %v11281_v52  ;;  %v4543_v61 = vpop.permute.xlu0 %4542  ;;  %v4541_v58 = vpop.permute.xlu1 %4540  ;;  %v4599_v34 = vsel %vm1358_vm11, %v4593_v26, %v4598_v30  ;;  %v9089_v26 = vcombine.low %v11243_v28, %v11243_v28  ;;  %v12714_v30 = vmov 0  }
 0xea9   : > { %4861 = vmatprep.subr.bf16.mxu1 %v11123_v37  ;;  %5409 = vmatprep.subr.bf16.mxu0 %v11123_v37  ;;  %v4545_v19 = vrot.slane %v4543_v61, 4  ;;  %v4544_v54 = vrot.slane %v4541_v58, 4  ;;  %v11317_v14 = vcombine.low %v4578_v22, %v4599_v34 }
 0xeab   : > { %v4546_v59 = vsel %vm1070_vm3, %v4544_v54, %v4545_v19 }
 0xeac   : > { %4862 = vmatpush2.bf16.msra.mxu1 %v11121_v33  ;;  %5410 = vmatpush2.bf16.msra.mxu0 %v11121_v33  ;;  %v4564_v32 = vpop.permute.xlu0 %4563  ;;  %v4562_v2 = vpop.permute.xlu1 %4561  ;;  %v4547_v27 = vsel %vm12713_vm14, %v4541_v58, %v4546_v59  ;;  %vm12718_vm14 = vcmp.ne.s16.totalorder %v12623_v49, 0 }
 0xead   : > { %4863 = vmatprep.subr.bf16.mxu1 %v11132_v23  ;;  %5411 = vmatprep.subr.bf16.mxu0 %v11132_v23  ;;  %v4566_v12 = vrot.slane %v4564_v32, 4  ;;  %v4565_v46 = vrot.slane %v4562_v2, 4  ;;  %v11309_v32 = vcombine.high %v4578_v22, %v4599_v34 }
 0xeaf   : > { %v4567_v44 = vsel %vm1070_vm3, %v4565_v46, %v4566_v12  ;;  %v5090_v12 = vld [vmem:[%s12712_s0] sm:$0xff] }
 0xeb0   : > { %4864 = vmatpush2.bf16.msra.mxu1 %v11130_v8  ;;  %5412 = vmatpush2.bf16.msra.mxu0 %v11130_v8  ;;  %v4568_v61 = vsel %vm12711_vm9, %v4562_v2, %v4567_v44  ;;  %v9655_v2 = vld [vmem:[%s12700_s18 + $0x8] ss:$0 sps:$4 sm:$0xff]   ;;  %v9142_v58 = vcombine.low %v5090_v12, %v5090_v12  ;;  %v9143_v46 = vcombine.high %v5090_v12, %v5090_v12  ;;  %vm12717_vm9 = vcmp.ne.s16.totalorder %v12621_v13, 0 }
 0xeb1   : > { %4865 = vmatprep.subr.bf16.mxu1 %v11142_v55  ;;  %5413 = vmatprep.subr.bf16.mxu0 %v11142_v55  ;;  %v11320_v43 = vcombine.high %v4547_v27, %v4568_v61  ;;  %v11325_v28 = vcombine.low %v4547_v27, %v4568_v61 }
 0xeb2   : > { %5419 = vmatprep.mubr.bf16.mxu0 %v9143_v46 }
 0xeb4   : > { %4866 = vmatpush2.bf16.msra.mxu1 %v11140_v50  ;;  %5414 = vmatpush2.bf16.msra.mxu0 %v11140_v50 }
 0xeb5   : > { %4867 = vmatprep.subr.bf16.mxu1 %v11154_v29  ;;  %5415 = vmatprep.subr.bf16.mxu0 %v11154_v29 }
 0xeb8   : > { %4868 = vmatpush2.bf16.msra.mxu1 %v11149_v60  ;;  %5416 = vmatpush2.bf16.msra.mxu0 %v11149_v60 }
 0xeb9   : > { %4869 = vmatprep.subr.bf16.mxu1 %v11014_v21  ;;  %5417 = vmatprep.subr.bf16.mxu0 %v11014_v21  ;;  %v4644_v34 = vpop.permute.xlu1 %4643 }
 0xebc   : > { %4870 = vmatpush2.bf16.msra.mxu1 %v11012_v53  ;;  %5418 = vmatpush2.bf16.msra.mxu0 %v11012_v53 }
 0xebd   : > { %4892 = vmatprep.subr.bf16.mxu1 %v11309_v32 }
 0xebf   : > { %4872 = vmatmul.mubr.bf16.vlgmr.msra.gmra.mxu1 %v9089_v26  ;;  %5420 = vmatmul.mubr.bf16.vlgmr.msra.gmra.mxu0 %v9142_v58 }
 0xec0   : > { %4893 = vmatpush1.bf16.msra.mxu1 %v11317_v14  ;;  %4912 = vmatprep.mubr.bf16.mxu1 %v12714_v30 }
 0xec1   : > { %4894 = vmatprep.subr.bf16.mxu1 %v11320_v43 }
 0xec4   : > { %4895 = vmatpush1.bf16.msra.mxu1 %v11325_v28 }
 0xec7   : > { %9128 = vmatmul.mubr.msk.bf16.vlgmr.msra.gmra.mxu1 %vm12715_vm8, %v9655_v2  ;;  %vm12719_vm8 = vcmp.ne.s16.totalorder %v12617_v1, 0 }
 0xec8   : > { %5460 = vmatprep.mubr.bf16.mxu1 %v12714_v30 }
 0xf7f   : > { %v4873_v20 = vpop.f32.mrf.mxu1 }
 0xf80   : > { %v4874_v22 = vadd.f32 %v4873_v20, %v4644_v34 }
 0xf81   : > { %v4875_v19 = vpop.f32.mrf.mxu1 }
 0xf82   : > { %v4876_v26 = vadd.f32 %v4875_v19, %v4644_v34 }
 0xf83   : > { %v4877_v54 = vpop.f32.mrf.mxu1 }
 0xf85   : > { %v4878_v44 = vpop.f32.mrf.mxu1 }
 0xf87   : > { %v4914_v59 = vpop.f32.mrf.mxu1 }
 0xf88   : > { %v4915_v61 = vadd.f32 %v4914_v59, %v4874_v22 }
 0xf89   : > { %v4916_v27 = vpop.f32.mrf.mxu1 }
 0xf8a   : > { %v4921_v53 = vmax.f32 %v4915_v61, 0.0  ;;  %v4917_v21 = vadd.f32 %v4916_v27, %v4876_v26 }
 0xf8b   : > { %v4918_v2 = vpop.f32.mrf.mxu1 }
 0xf8c   : > { %v4923_v60 = vpack.c.bf16 %v4921_v53, %v4921_v53  ;;  %v4922_v30 = vmax.f32 %v4917_v21, 0.0 }
 0xf8d   : > { %v4919_v29 = vpop.f32.mrf.mxu1 }
 0xf8e   : > { %v4924_v50 = vpack.c.bf16 %v4922_v30, %v4922_v30  ;;  %4927 = vrot.lane.b32.xlu0 %v4923_v60, %s12489_s28 }
 0xf90   : > { %4929 = vrot.lane.b32.xlu1 %v4924_v50, %s12489_s28 }
0x1000   : > { %v4928_v12 = vpop.permute.xlu0 %4927 }
0x1001   : > { %v4934_v46 = vsel %vm1005_vm6, 0, %v4928_v12 }
0x1002   : > { %v4930_v58 = vpop.permute.xlu1 %4929  ;;  %v11345_v50 = vsel %vm1030_vm15, %v4934_v46, 0  ;;  %v5069_v30 = vsel %vm1326_vm0, %v4934_v46, 0  ;;  %v5038_v61 = vsel %vm12718_vm14, %v4934_v46, 0  ;;  %vm12723_vm14 = vcmp.ne.s16.totalorder %v12627_v39, 0 }
0x1003   : > { %v4931_v20 = vsel %vm1005_vm6, %v4928_v12, %v4930_v58  ;;  %v4937_v19 = vsel %vm1005_vm6, %v4930_v58, 0 }
0x1004   : > { %v9131_v54 = vcombine.low %v4937_v19, %v4937_v19  ;;  %v9130_v34 = vcombine.low %v4934_v46, %v4931_v20  ;;  %v5071_v53 = vsel %vm1328_vm2, %v4937_v19, 0  ;;  %v5070_v21 = vsel %vm1327_vm7, %v4931_v20, 0 }
0x1005   : > { %v11349_v60 = vsel %vm1031_vm1, %v4931_v20, 0  ;;  %v9141_v44 = vcombine.low %v5071_v53, %v5071_v53  ;;  %v9140_v22 = vcombine.low %v5069_v30, %v5070_v21  ;;  %v5040_v59 = vsel %vm12716_vm10, %v4937_v19, 0 }
0x1006   : > { %5061 = vrot.lane.b32.xlu1 %v9131_v54, %s12487_s15  ;;  %5059 = vrot.lane.b32.xlu0 %v9130_v34, %s12487_s15  ;;  %v5039_v26 = vsel %vm12717_vm9, %v4931_v20, 0  ;;  %v9139_v27 = vcombine.low %v5040_v59, %v5040_v59  ;;  %v5019_v12 = vsel %vm1215_vm13, %v4937_v19, 0  ;;  %v5018_v58 = vsel %vm1214_vm12, %v4931_v20, 0 }
0x1007   : > { %v9138_v2 = vcombine.low %v5038_v61, %v5039_v26  ;;  %v5017_v53 = vsel %vm12719_vm8, %v4934_v46, 0  ;;  %v9137_v21 = vcombine.low %v5019_v12, %v5019_v12  ;;  %vm12720_vm10 = vcmp.ne.s16.totalorder %v12591_v47, 0 }
0x1008   : > { %v9136_v30 = vcombine.low %v5017_v53, %v5018_v58  ;;  %v4965_v59 = vsel %vm12720_vm10, %v4934_v46, 0  ;;  %vm12722_vm9 = vcmp.ne.s16.totalorder %v12625_v10, 0  ;;  %vm12724_vm8 = vcmp.ne.s16.totalorder %v12629_v62, 0 }
0x1009   : > { %v4986_v12 = vsel %vm12724_vm8, %v4934_v46, 0  ;;  %vm12727_vm10 = vcmask 777216   ;;  %vm12730_vm8 = vcmask 900096  }
0x100a   : > { %5009 = vrot.lane.b32.xlu1 %v9131_v54, %s12469_s16  ;;  %5007 = vrot.lane.b32.xlu0 %v9130_v34, %s12469_s16  ;;  %s12721_s16 = sld [smem:[#allocation17_spill]] }
0x100e   : > { %5082 = vrot.lane.b32.xlu1 %v9141_v44, %s12483_s11  ;;  %5080 = vrot.lane.b32.xlu0 %v9140_v22, %s12483_s11  ;;  %v4967_v44 = vsel %vm1102_vm5, %v4937_v19, 0  ;;  %v4966_v22 = vsel %vm1101_vm4, %v4931_v20, 0 }
0x100f   : > { %v9133_v26 = vcombine.low %v4967_v44, %v4967_v44  ;;  %v9132_v61 = vcombine.low %v4965_v59, %v4966_v22 }
0x1012   : > { %5051 = vrot.lane.b32.xlu1 %v9139_v27, %s12471_s1  ;;  %5049 = vrot.lane.b32.xlu0 %v9138_v2, %s12471_s1  ;;  %v4988_v27 = vsel %vm12722_vm9, %v4937_v19, 0  ;;  %v4987_v2 = vsel %vm12723_vm14, %v4931_v20, 0  ;;  %s12725_s1 = smov 127   ;;  %v5092_v19 = vld [vmem:[%s12721_s16] sm:$0xff]  ;;  %vm12728_vm9 = vcmask 785408   ;;  %vm12729_vm14 = vcmask 908288  }
0x1013   : > { %v9135_v58 = vcombine.low %v4988_v27, %v4988_v27  ;;  %v9134_v53 = vcombine.low %v4986_v12, %v4987_v2  ;;  %s12741_s16 = sld [smem:[#allocation7_spill]] }
0x1016   : > { %5030 = vrot.lane.b32.xlu1 %v9137_v21, %s12485_s2  ;;  %5028 = vrot.lane.b32.xlu0 %v9136_v30, %s12485_s2  ;;  %v11389_v21 = vpop.f32.mrf.mxu0 }
0x1018   : > { %v11393_v30 = vpop.f32.mrf.mxu0 }
0x101a   : > { %4978 = vrot.lane.b32.xlu1 %v9133_v26, %s12481_s10  ;;  %4976 = vrot.lane.b32.xlu0 %v9132_v61, %s12481_s10  ;;  %v5425_v20 = vpop.f32.mrf.mxu0 }
0x101c   : > { %v5426_v44 = vpop.f32.mrf.mxu0 }
0x101e   : > { %4999 = vrot.lane.b32.xlu1 %v9135_v58, %s12492_s7  ;;  %4997 = vrot.lane.b32.xlu0 %v9134_v53, %s12492_s7 }
0x1022   : > { %4957 = vrot.lane.b32.xlu1 %v9131_v54, %s12725_s1  ;;  %4955 = vrot.lane.b32.xlu0 %v9130_v34, %s12725_s1 }
0x1026   : > { %5140 = vperm.xlu0 %9631, %v5092_v19  }
0x1078   : > { %v5062_v22 = vpop.permute.xlu1 %5061  ;;  %v5060_v46 = vpop.permute.xlu0 %5059 }
0x1079   : > { %v5064_v61 = vrot.slane %v5062_v22, 4  ;;  %v5063_v27 = vrot.slane %v5060_v46, 4 }
0x107b   : > { %v5065_v54 = vsel %vm1070_vm3, %v5063_v27, %v5064_v61 }
0x107c   : > { %v5010_v59 = vpop.permute.xlu1 %5009  ;;  %v5008_v26 = vpop.permute.xlu0 %5007  ;;  %v5066_v61 = vsel %vm12727_vm10, %v5060_v46, %v5065_v54  ;;  %vm12732_vm10 = vcmask 1031168  }
0x107d   : > { %v5012_v62 = vrot.slane %v5010_v59, 4  ;;  %v5011_v34 = vrot.slane %v5008_v26, 4 }
0x1080   : > { %v5083_v2 = vpop.permute.xlu1 %5082  ;;  %v5081_v12 = vpop.permute.xlu0 %5080 }
0x1081   : > { %v5085_v58 = vrot.slane %v5083_v2, 4  ;;  %v5084_v53 = vrot.slane %v5081_v12, 4 }
0x1083   : > { %v5086_v29 = vsel %vm1070_vm3, %v5084_v53, %v5085_v58 }
0x1084   : > { %v11401_v20 = vsel %vm1358_vm11, %v5081_v12, %v5086_v29  ;;  %v5052_v19 = vpop.permute.xlu1 %5051  ;;  %v5050_v44 = vpop.permute.xlu0 %5049  ;;  %v5013_v29 = vsel %vm1070_vm3, %v5011_v34, %v5012_v62 }
0x1085   : > { %12726 = vst [vmem:[#allocation46_spill] sm:$0xff] %v11401_v20  ;;  %v5054_v39 = vrot.slane %v5052_v19, 4  ;;  %v5053_v10 = vrot.slane %v5050_v44, 4  ;;  %v9190_v22 = vcombine.high %v11401_v20, %v11401_v20  ;;  %v9189_v2 = vcombine.low %v11401_v20, %v11401_v20 }
0x1087   : > { %v5055_v49 = vsel %vm1070_vm3, %v5053_v10, %v5054_v39  ;;  %9191 = vmatprep.subr.msk.bf16.mxu1 %vm1070_vm3, %v9190_v22  ;;  %v5382_v59 = vsel %vm1070_vm3, %v9189_v2, 0  ;;  %v5014_v39 = vsel %vm12729_vm14, %v5008_v26, %v5013_v29  ;;  %vm12734_vm14 = vcmask 1039360  }
0x1088   : > { %v5056_v27 = vsel %vm12728_vm9, %v5050_v44, %v5055_v49  ;;  %v5031_v12 = vpop.permute.xlu1 %5030  ;;  %5431 = vmatpush1.bf16.msra.mxu1 %v5382_v59  ;;  %v5029_v58 = vpop.permute.xlu0 %5028  ;;  %vm12733_vm9 = vcmask 916480  }
0x1089   : > { %v11413_v53 = vcombine.low %v5056_v27, %v5066_v61  ;;  %v5033_v19 = vrot.slane %v5031_v12, 4  ;;  %v5032_v13 = vrot.slane %v5029_v58, 4  ;;  %v11415_v20 = vcombine.high %v5056_v27, %v5066_v61 }
0x108b   : > { %v5034_v10 = vsel %vm1070_vm3, %v5032_v13, %v5033_v19  ;;  %5432 = vmatprep.subr.bf16.mxu1 %v11415_v20 }
0x108c   : > { %v5035_v46 = vsel %vm12730_vm8, %v5029_v58, %v5034_v10  ;;  %v4979_v62 = vpop.permute.xlu1 %4978  ;;  %5433 = vmatpush1.bf16.msra.mxu1 %v11413_v53  ;;  %v4977_v49 = vpop.permute.xlu0 %4976  ;;  %vm12736_vm8 = vcmask 850944  }
0x108d   : > { %v11422_v54 = vcombine.low %v5014_v39, %v5035_v46  ;;  %v4981_v34 = vrot.slane %v4979_v62, 4  ;;  %v4980_v44 = vrot.slane %v4977_v49, 4  ;;  %v11424_v22 = vcombine.high %v5014_v39, %v5035_v46 }
0x108f   : > { %12731 = vst [vmem:[#allocation47_spill] sm:$0xff] %v11422_v54  ;;  %5434 = vmatprep.subr.bf16.mxu1 %v11424_v22  ;;  %v4982_v26 = vsel %vm1070_vm3, %v4980_v44, %v4981_v34  ;;  %v12735_v44 = vcombine.low %v11345_v50, %v11349_v60 }
0x1090   : > { %v5000_v2 = vpop.permute.xlu1 %4999  ;;  %5435 = vmatpush1.bf16.msra.mxu1 %v11422_v54  ;;  %v4998_v13 = vpop.permute.xlu0 %4997  ;;  %v4983_v27 = vsel %vm12732_vm10, %v4977_v49, %v4982_v26  ;;  %vm12747_vm10 = vcmp.ne.s16.totalorder %v12591_v47, 0 }
0x1091   : > { %v5002_v59 = vrot.slane %v5000_v2, 4  ;;  %v5001_v61 = vrot.slane %v4998_v13, 4 }
0x1093   : > { %v5003_v29 = vsel %vm1070_vm3, %v5001_v61, %v5002_v59 }
0x1094   : > { %v5004_v12 = vsel %vm12733_vm9, %v4998_v13, %v5003_v29  ;;  %v4958_v58 = vpop.permute.xlu1 %4957  ;;  %v4956_v19 = vpop.permute.xlu0 %4955  ;;  %vm12748_vm9 = vcmp.ne.s16.totalorder %v12617_v1, 0 }
0x1095   : > { %v11432_v10 = vcombine.low %v4983_v27, %v5004_v12  ;;  %v4960_v39 = vrot.slane %v4958_v58, 4  ;;  %v4959_v46 = vrot.slane %v4956_v19, 4  ;;  %v11434_v62 = vcombine.high %v4983_v27, %v5004_v12 }
0x1097   : > { %v4961_v54 = vsel %vm1070_vm3, %v4959_v46, %v4960_v39  ;;  %5436 = vmatprep.subr.bf16.mxu1 %v11434_v62 }
0x1098   : > { %v4962_v34 = vsel %vm12734_vm14, %v4956_v19, %v4961_v54  ;;  %5437 = vmatpush1.bf16.msra.mxu1 %v11432_v10  ;;  %v9658_v54 = vld [vmem:[%s12712_s0 + $0x8] ss:$0 sps:$4 sm:$0xff]   ;;  %vm12749_vm14 = vcmp.ne.s16.totalorder %v12619_v48, 0  ;;  %s12791_s0 = smov 126  }
0x1099   : > { %v11441_v49 = vcombine.low %v11345_v50, %v4962_v34  ;;  %v11446_v2 = vcombine.high %v12735_v44, %v4962_v34 }
0x109b   : > { %5438 = vmatprep.subr.bf16.mxu1 %v11446_v2 }
0x109c   : > { %5439 = vmatpush1.bf16.msra.mxu1 %v11441_v49 }
0x109d   : > { %5440 = vmatprep.subr.bf16.mxu1 %v11309_v32 }
0x10a0   : > { %5441 = vmatpush1.bf16.msra.mxu1 %v11317_v14 }
0x10a1   : > { %5442 = vmatprep.subr.bf16.mxu1 %v11320_v43 }
0x10a4   : > { %5443 = vmatpush1.bf16.msra.mxu1 %v11325_v28 }
0x10a5   : > { %6000 = vmatprep.subr.bf16.mxu1 %v10910_v45  ;;  %v12738_v45 = vld [vmem:[#allocation38_spill] sm:$0xff] }
0x10a7   : > { %9192 = vmatmul.mubr.msk.bf16.vlgmr.msra.gmra.mxu1 %vm12736_vm8, %v9658_v54 }
0x10a8   : > { %6001 = vmatpush1.bf16.msra.mxu1 %v10908_v56  ;;  %v12737_v56 = vld [vmem:[#allocation39_spill] sm:$0xff] }
0x10a9   : > { %6002 = vmatprep.subr.bf16.mxu1 %v10926_v42  ;;  %v12740_v42 = vld [vmem:[#allocation40_spill] sm:$0xff] }
0x10ac   : > { %6003 = vmatpush1.bf16.msra.mxu1 %v10924_v63  ;;  %v12739_v63 = vld [vmem:[#allocation33_spill] sm:$0xff] }
0x10ad   : > { %6004 = vmatprep.subr.bf16.mxu1 %v10941_v38  ;;  %v12743_v38 = vld [vmem:[#allocation45_spill] sm:$0xff] }
0x10b0   : > { %6005 = vmatpush1.bf16.msra.mxu1 %v10939_v25  ;;  %v12742_v25 = vld [vmem:[#allocation43_spill] sm:$0xff] }
0x10b1   : > { %6006 = vmatprep.subr.bf16.mxu1 %v10944_v11  ;;  %v12744_v11 = vld [vmem:[#allocation44_spill] sm:$0xff] }
0x10b4   : > { %6007 = vmatpush1.bf16.msra.mxu1 %v10953_v24  ;;  %v12745_v24 = vld [vmem:[#allocation42_spill] sm:$0xff] }
0x10b5   : > { %6008 = vmatprep.subr.bf16.mxu1 %v10962_v40  ;;  %v9659_v40 = vld [vmem:[%s12741_s16] ss:$16 sps:$4 sm:$0xff]  }
0x10b8   : > { %6009 = vmatpush1.bf16.msra.mxu1 %v10960_v5  ;;  %v12746_v5 = vld [vmem:[#allocation41_spill] sm:$0xff] }
0x10b9   : > { %6010 = vmatprep.subr.bf16.mxu1 %v10977_v15  ;;  %v5141_v15 = vpop.permute.xlu0 %5140 }
0x10bc   : > { %6011 = vmatpush1.bf16.msra.mxu1 %v10975_v9  ;;  %v9661_v9 = vld [vmem:[%s12741_s16 + $0x4] ss:$16 sps:$4 sm:$0xff]  }
0x10bd   : > { %6012 = vmatprep.subr.bf16.mxu1 %v12737_v56  ;;  %6032 = vmatprep.mubr.bf16.mxu1 %v9661_v9 }
0x10c0   : > { %6013 = vmatpush1.bf16.msra.mxu1 %v12738_v45 }
0x10c1   : > { %9567 = vmatprep.subr.msk.bf16.mxu1 %vm1031_vm1, %v12739_v63 }
0x10c4   : > { %6015 = vmatpush1.bf16.msra.mxu1 %v12740_v42 }
0x10c5   : > { %6016 = vmatprep.subr.bf16.mxu1 %v11254_v31  ;;  %v5422_v31 = vadd.f32 %v11389_v21, %v5141_v15 }
0x10c8   : > { %6017 = vmatpush2.bf16.msra.mxu1 %v11252_v4 }
0x10c9   : > { %6018 = vmatprep.subr.bf16.mxu1 %v11265_v17 }
0x10cc   : > { %6019 = vmatpush2.bf16.msra.mxu1 %v11263_v0 }
0x10cd   : > { %6020 = vmatprep.subr.bf16.mxu1 %v11273_v35 }
0x10d0   : > { %6021 = vmatpush2.bf16.msra.mxu1 %v11281_v52 }
0x10d1   : > { %6022 = vmatprep.subr.bf16.mxu1 %v11123_v37 }
0x10d4   : > { %6023 = vmatpush2.bf16.msra.mxu1 %v11121_v33 }
0x10d5   : > { %6024 = vmatprep.subr.bf16.mxu1 %v11132_v23 }
0x10d8   : > { %6025 = vmatpush2.bf16.msra.mxu1 %v11130_v8  ;;  %v5424_v8 = vadd.f32 %v11393_v30, %v5141_v15  ;;  %v12753_v15 = vld [vmem:[#allocation21_spill] sm:$0xff] }
0x10d9   : > { %6026 = vmatprep.subr.bf16.mxu1 %v11142_v55 }
0x10dc   : > { %6027 = vmatpush2.bf16.msra.mxu1 %v12742_v25 }
0x10dd   : > { %6028 = vmatprep.subr.bf16.mxu1 %v12743_v38 }
0x10e0   : > { %6029 = vmatpush2.bf16.msra.mxu1 %v12744_v11 }
0x10e1   : > { %6030 = vmatprep.subr.bf16.mxu1 %v12745_v24 }
0x10e4   : > { %6031 = vmatpush2.bf16.msra.mxu1 %v12746_v5 }
0x10e7   : > { %6033 = vmatmul.mubr.bf16.vlgmr.msra.gmra.mxu1 %v9659_v40  ;;  %v12750_v40 = vld [vmem:[#allocation23_spill] sm:$0xff] }
0x10e8   : > { %vm12751_vm8 = vcmp.ne.s16.totalorder %v12750_v40, 0 }
0x1167   : > { %v5462_v33 = vpop.f32.mrf.mxu1 }
0x1168   : > { %v5463_v37 = vadd.f32 %v5462_v33, %v5422_v31 }
0x1169   : > { %v5464_v23 = vpop.f32.mrf.mxu1 }
0x116a   : > { %v5469_v55 = vmax.f32 %v5463_v37, 0.0  ;;  %v5465_v4 = vadd.f32 %v5464_v23, %v5424_v8  ;;  %v12755_v8 = vld [vmem:[#allocation27_spill] sm:$0xff] }
0x116b   : > { %v5466_v0 = vpop.f32.mrf.mxu1 }
0x116c   : > { %v5471_v17 = vpack.c.bf16 %v5469_v55, %v5469_v55  ;;  %v5470_v35 = vmax.f32 %v5465_v4, 0.0  ;;  %v12757_v55 = vld [vmem:[#allocation29_spill] sm:$0xff]  ;;  %v12760_v0 = vld [vmem:[#allocation28_spill] sm:$0xff] }
0x116d   : > { %v5467_v52 = vpop.f32.mrf.mxu1 }
0x116e   : > { %v5472_v50 = vpack.c.bf16 %v5470_v35, %v5470_v35  ;;  %5475 = vrot.lane.b32.xlu1 %v5471_v17, %s12489_s28 }
0x1170   : > { %5477 = vrot.lane.b32.xlu0 %v5472_v50, %s12489_s28 }
0x11e0   : > { %v5476_v60 = vpop.permute.xlu1 %5475 }
0x11e1   : > { %v5482_v21 = vsel %vm1005_vm6, 0, %v5476_v60 }
0x11e2   : > { %v5478_v13 = vpop.permute.xlu0 %5477  ;;  %v5513_v12 = vsel %vm12747_vm10, %v5482_v21, 0  ;;  %v11509_v39 = vsel %vm1030_vm15, %v5482_v21, 0  ;;  %v5617_v56 = vsel %vm1326_vm0, %v5482_v21, 0  ;;  %v5565_v38 = vsel %vm12748_vm9, %v5482_v21, 0 }
0x11e3   : > { %v5479_v26 = vsel %vm1005_vm6, %v5476_v60, %v5478_v13  ;;  %v5485_v30 = vsel %vm1005_vm6, %v5478_v13, 0  ;;  %vm12754_vm10 = vcmp.ne.s16.totalorder %v12753_v15, 0  ;;  %vm12756_vm9 = vcmp.ne.s16.totalorder %v12755_v8, 0  ;;  %v9662_v13 = vld [vmem:[%s12741_s16 + $0xc] ss:$16 sps:$4 sm:$0xff]  }
0x11e4   : > { %v9195_v59 = vcombine.low %v5485_v30, %v5485_v30  ;;  %v9194_v61 = vcombine.low %v5482_v21, %v5479_v26  ;;  %v5515_v29 = vsel %vm1102_vm5, %v5485_v30, 0  ;;  %v5514_v27 = vsel %vm1101_vm4, %v5479_v26, 0 }
0x11e5   : > { %v9197_v58 = vcombine.low %v5515_v29, %v5515_v29  ;;  %v9196_v19 = vcombine.low %v5513_v12, %v5514_v27  ;;  %v5488_v46 = vsel %vm1031_vm1, %v5479_v26, 0  ;;  %v5619_v44 = vsel %vm1328_vm2, %v5485_v30, 0 }
0x11e6   : > { %5505 = vrot.lane.b32.xlu0 %v9195_v59, %s12725_s1  ;;  %5503 = vrot.lane.b32.xlu1 %v9194_v61, %s12725_s1  ;;  %v9193_v34 = vcombine.low %v11509_v39, %v5488_v46  ;;  %v5618_v54 = vsel %vm1327_vm7, %v5479_v26, 0  ;;  %v9205_v45 = vcombine.low %v5619_v44, %v5619_v44  ;;  %v5567_v42 = vsel %vm1215_vm13, %v5485_v30, 0 }
0x11e7   : > { %v9204_v63 = vcombine.low %v5617_v56, %v5618_v54  ;;  %v5566_v25 = vsel %vm1214_vm12, %v5479_v26, 0  ;;  %v9201_v11 = vcombine.low %v5567_v42, %v5567_v42  ;;  %v5588_v5 = vsel %vm12749_vm14, %v5485_v30, 0  ;;  %v12766_v42 = vld [vmem:[#allocation46_spill] sm:$0xff] }
0x11e8   : > { %v9200_v24 = vcombine.low %v5565_v38, %v5566_v25  ;;  %v5587_v9 = vsel %vm12751_vm8, %v5479_v26, 0  ;;  %v5586_v31 = vsel %vm12754_vm10, %v5482_v21, 0  ;;  %v9203_v33 = vcombine.low %v5588_v5, %v5588_v5 }
0x11e9   : > { %v9202_v37 = vcombine.low %v5586_v31, %v5587_v9  ;;  %v5536_v23 = vsel %vm12756_vm9, %v5485_v30, 0  ;;  %vm12758_vm14 = vcmp.ne.s16.totalorder %v12757_v55, 0  ;;  %vm12761_vm8 = vcmp.ne.s16.totalorder %v12760_v0, 0 }
0x11ea   : > { %5526 = vrot.lane.b32.xlu0 %v9197_v58, %s12481_s10  ;;  %5524 = vrot.lane.b32.xlu1 %v9196_v19, %s12481_s10  ;;  %s12752_s10 = sld [smem:[#allocation18_spill]]  ;;  %v5535_v4 = vsel %vm12758_vm14, %v5479_v26, 0  ;;  %v5534_v17 = vsel %vm12761_vm8, %v5482_v21, 0  ;;  %v9199_v35 = vcombine.low %v5536_v23, %v5536_v23  ;;  %vm12763_vm10 = vcmask 392192  }
0x11eb   : > { %v9198_v52 = vcombine.low %v5534_v17, %v5535_v4  ;;  %9264 = vmatprep.mubr.msk.bf16.mxu0 %vm12763_vm10, %v9662_v13  ;;  %vm12764_vm9 = vcmask 1039360   ;;  %vm12765_vm14 = vcmask 1031168   ;;  %v9255_v25 = vcombine.high %v12766_v42, %v9193_v34 }
0x11ec   : > { %vm12768_vm8 = vcmask 777216   ;;  %vm12769_vm10 = vcmask 785408  }
0x11ee   : > { %5609 = vrot.lane.b32.xlu0 %v9195_v59, %s12487_s15  ;;  %5607 = vrot.lane.b32.xlu1 %v9194_v61, %s12487_s15 }
0x11f0   : > { %v5643_v50 = vld [vmem:[%s12752_s10 + $0x8] sm:$0xff]  ;;  %v5642_v60 = vld [vmem:[%s12752_s10] sm:$0xff] }
0x11f2   : > { %5630 = vrot.lane.b32.xlu0 %v9205_v45, %s12483_s11  ;;  %5628 = vrot.lane.b32.xlu1 %v9204_v63, %s12483_s11  ;;  %s12759_s11 = smov 96  }
0x11f6   : > { %5578 = vrot.lane.b32.xlu0 %v9201_v11, %s12485_s2  ;;  %5576 = vrot.lane.b32.xlu1 %v9200_v24, %s12485_s2  ;;  %s12762_s2 = smov 111   ;;  %v9566_v24 = vcombine.low %v12766_v42, %v11509_v39 }
0x11fa   : > { %5599 = vrot.lane.b32.xlu0 %v9203_v33, %s12759_s11  ;;  %5597 = vrot.lane.b32.xlu1 %v9202_v37, %s12759_s11  ;;  %v12767_v37 = vld [vmem:[#allocation47_spill] sm:$0xff] }
0x11fe   : > { %5547 = vrot.lane.b32.xlu0 %v9199_v35, %s12492_s7  ;;  %5545 = vrot.lane.b32.xlu1 %v9198_v52, %s12492_s7 }
0x1202   : > { %5557 = vrot.lane.b32.xlu0 %v9195_v59, %s12762_s2  ;;  %5555 = vrot.lane.b32.xlu1 %v9194_v61, %s12762_s2 }
0x1206   : > { %5705 = vperm.xlu0 %9631, %v5643_v50   ;;  %5700 = vperm.xlu1 %9632, %v5642_v60  }
0x1258   : > { %v5506_v26 = vpop.permute.xlu0 %5505  ;;  %v5504_v30 = vpop.permute.xlu1 %5503 }
0x1259   : > { %v5508_v21 = vrot.slane %v5506_v26, 4  ;;  %v5507_v29 = vrot.slane %v5504_v30, 4 }
0x125b   : > { %v5509_v58 = vsel %vm1070_vm3, %v5507_v29, %v5508_v21 }
0x125c   : > { %v5527_v27 = vpop.permute.xlu0 %5526  ;;  %v5525_v12 = vpop.permute.xlu1 %5524  ;;  %v5510_v61 = vsel %vm12764_vm9, %v5504_v30, %v5509_v58  ;;  %vm12770_vm9 = vcmask 900096  }
0x125d   : > { %v5529_v19 = vrot.slane %v5527_v27, 4  ;;  %v5528_v46 = vrot.slane %v5525_v12, 4 }
0x125f   : > { %v5530_v59 = vsel %vm1070_vm3, %v5528_v46, %v5529_v19 }
0x1260   : > { %v5531_v44 = vsel %vm12765_vm14, %v5525_v12, %v5530_v59  ;;  %v5610_v54 = vpop.permute.xlu0 %5609  ;;  %v5608_v56 = vpop.permute.xlu1 %5607  ;;  %vm12771_vm14 = vcmask 908288  }
0x1261   : > { %v9256_v45 = vcombine.low %v5510_v61, %v5531_v44  ;;  %v9257_v63 = vcombine.high %v5510_v61, %v5531_v44  ;;  %v5612_v17 = vrot.slane %v5610_v54, 4 }
0x1263   : > { %6043 = vmatprep.subr.bf16.mxu0 %v9257_v63 }
0x1264   : > { %v5631_v38 = vpop.permute.xlu0 %5630  ;;  %6044 = vmatpush1.bf16.msra.mxu0 %v9256_v45  ;;  %v5629_v11 = vpop.permute.xlu1 %5628 }
0x1265   : > { %6045 = vmatprep.subr.bf16.mxu0 %v9255_v25  ;;  %v5633_v39 = vrot.slane %v5631_v38, 4  ;;  %v5632_v4 = vrot.slane %v5629_v11, 4  ;;  %v6034_v45 = vpop.f32.mrf.mxu1 }
0x1267   : > { %v6036_v63 = vpop.f32.mrf.mxu1 }
0x1268   : > { %v5579_v5 = vpop.permute.xlu0 %5578  ;;  %v5577_v9 = vpop.permute.xlu1 %5576  ;;  %6046 = vmatpush1.bf16.msra.mxu0 %v9566_v24 }
0x1269   : > { %6047 = vmatprep.subr.bf16.mxu0 %v11415_v20  ;;  %v5611_v20 = vrot.slane %v5608_v56, 4  ;;  %v5581_v60 = vrot.slane %v5579_v5, 4  ;;  %v6038_v25 = vpop.f32.mrf.mxu1 }
0x126b   : > { %v5613_v50 = vsel %vm1070_vm3, %v5611_v20, %v5612_v17 }
0x126c   : > { %6048 = vmatpush1.bf16.msra.mxu0 %v11413_v53  ;;  %v5600_v31 = vpop.permute.xlu0 %5599  ;;  %v5598_v33 = vpop.permute.xlu1 %5597  ;;  %v5634_v53 = vsel %vm1070_vm3, %v5632_v4, %v5633_v39  ;;  %v5614_v30 = vsel %vm12768_vm8, %v5608_v56, %v5613_v50  ;;  %vm12772_vm8 = vcmask 916480   ;;  %v9664_v56 = vld [vmem:[%s12741_s16 + $0x8] ss:$16 sps:$4 sm:$0xff]   ;;  %v12775_v50 = vld [vmem:[#allocation37_spill] sm:$0xff] }
0x126d   : > { %6049 = vmatprep.subr.bf16.mxu0 %v11424_v22  ;;  %v5602_v22 = vrot.slane %v5600_v31, 4  ;;  %v5601_v35 = vrot.slane %v5598_v33, 4  ;;  %v5635_v13 = vsel %vm1358_vm11, %v5629_v11, %v5634_v53  ;;  %v6040_v31 = vpop.f32.mrf.mxu1 }
0x126e   : > { %v9263_v27 = vcombine.high %v5614_v30, %v5635_v13  ;;  %v9262_v58 = vcombine.low %v5614_v30, %v5635_v13  ;;  %v12777_v13 = vld [vmem:[#allocation36_spill] sm:$0xff] }
0x1270   : > { %6050 = vmatpush1.bf16.msra.mxu0 %v12767_v37  ;;  %v5548_v34 = vpop.permute.xlu0 %5547  ;;  %v5546_v23 = vpop.permute.xlu1 %5545 }
0x1271   : > { %6051 = vmatprep.subr.bf16.mxu0 %v11434_v62  ;;  %v5550_v21 = vrot.slane %v5548_v34, 4  ;;  %v5549_v29 = vrot.slane %v5546_v23, 4 }
0x1274   : > { %6052 = vmatpush1.bf16.msra.mxu0 %v11432_v10  ;;  %v5558_v52 = vpop.permute.xlu0 %5557  ;;  %v5556_v62 = vpop.permute.xlu1 %5555  ;;  %v5580_v10 = vrot.slane %v5577_v9, 4 }
0x1275   : > { %6053 = vmatprep.subr.bf16.mxu0 %v11446_v2  ;;  %v5603_v2 = vsel %vm1070_vm3, %v5601_v35, %v5602_v22  ;;  %v5560_v26 = vrot.slane %v5558_v52, 4  ;;  %v12773_v52 = vld [vmem:[#allocation35_spill] sm:$0xff] }
0x1276   : > { %v5604_v12 = vsel %vm12769_vm10, %v5598_v33, %v5603_v2  ;;  %vm12781_vm10 = vcmp.ne.s16.totalorder %v12619_v48, 0 }
0x1278   : > { %6054 = vmatpush1.bf16.msra.mxu0 %v11441_v49  ;;  %v5559_v49 = vrot.slane %v5556_v62, 4 }
0x1279   : > { %6055 = vmatprep.subr.bf16.mxu0 %v11309_v32  ;;  %v5582_v32 = vsel %vm1070_vm3, %v5580_v10, %v5581_v60 }
0x127a   : > { %v5583_v19 = vsel %vm12770_vm9, %v5577_v9, %v5582_v32  ;;  %vm12782_vm9 = vcmp.ne.s16.totalorder %v12750_v40, 0 }
0x127b   : > { %v9261_v46 = vcombine.high %v5583_v19, %v5604_v12  ;;  %v9260_v61 = vcombine.low %v5583_v19, %v5604_v12 }
0x127c   : > { %6056 = vmatpush1.bf16.msra.mxu0 %v11317_v14  ;;  %v5561_v14 = vsel %vm1070_vm3, %v5559_v49, %v5560_v26  ;;  %v12779_v49 = vld [vmem:[#allocation34_spill] sm:$0xff] }
0x127d   : > { %6057 = vmatprep.subr.bf16.mxu0 %v11320_v43  ;;  %v5551_v43 = vsel %vm1070_vm3, %v5549_v29, %v5550_v21  ;;  %v5562_v59 = vsel %vm12771_vm14, %v5556_v62, %v5561_v14  ;;  %vm12783_vm14 = vcmp.ne.s16.totalorder %v12753_v15, 0 }
0x127e   : > { %v5552_v44 = vsel %vm12772_vm8, %v5546_v23, %v5551_v43  ;;  %vm12784_vm8 = vcmp.ne.s16.totalorder %v12617_v1, 0 }
0x127f   : > { %v9259_v54 = vcombine.high %v5552_v44, %v5562_v59 }
0x1280   : > { %6058 = vmatpush1.bf16.msra.mxu0 %v11325_v28  ;;  %v9258_v28 = vcombine.low %v5552_v44, %v5562_v59 }
0x1281   : > { %6069 = vmatprep.subr.bf16.mxu0 %v9263_v27  ;;  %v5701_v42 = vpop.permute.xlu1 %5700  ;;  %v5706_v11 = vpop.permute.xlu0 %5705 }
0x1282   : > { %v6035_v38 = vadd.f32 %v6034_v45, %v5701_v42  ;;  %v6037_v9 = vadd.f32 %v6036_v63, %v5701_v42  ;;  %v6039_v34 = vadd.f32 %v6038_v25, %v5706_v11  ;;  %v6041_v17 = vadd.f32 %v6040_v31, %v5706_v11 }
0x1284   : > { %6070 = vmatpush2.bf16.msra.mxu0 %v9262_v58 }
0x1285   : > { %6071 = vmatprep.subr.bf16.mxu0 %v9261_v46 }
0x1288   : > { %6072 = vmatpush2.bf16.msra.mxu0 %v9260_v61 }
0x1289   : > { %6073 = vmatprep.subr.bf16.mxu0 %v9259_v54 }
0x128c   : > { %6074 = vmatpush2.bf16.msra.mxu0 %v9258_v28 }
0x128f   : > { %6076 = vmatmul.mubr.bf16.vlgmr.msra.gmra.mxu0 %v9664_v56 }
0x134f   : > { %v6077_v24 = vpop.f32.mrf.mxu0 }
0x1350   : > { %v6078_v5 = vadd.f32 %v6077_v24, %v6035_v38 }
0x1351   : > { %v6079_v33 = vpop.f32.mrf.mxu0 }
0x1352   : > { %v6080_v37 = vadd.f32 %v6079_v33, %v6037_v9  ;;  %v6086_v39 = vmul.f32 0.2, %v6078_v5 }
0x1353   : > { %v6081_v23 = vpop.f32.mrf.mxu0 }
0x1354   : > { %v6082_v4 = vadd.f32 %v6081_v23, %v6039_v34  ;;  %v6087_v53 = vmul.f32 0.2, %v6080_v37  ;;  %v11589_v62 = vadd.f32 %v6086_v39, %v12773_v52 }
0x1355   : > { %v6083_v20 = vpop.f32.mrf.mxu0 }
0x1356   : > { %v6088_v22 = vmul.f32 0.2, %v6082_v4  ;;  %v6084_v35 = vadd.f32 %v6083_v20, %v6041_v17  ;;  %12774 = vst [vmem:[#allocation39_spill] sm:$0xff] %v11589_v62  ;;  %v11595_v2 = vadd.f32 %v6087_v53, %v12777_v13 }
0x1358   : > { %v11592_v60 = vadd.f32 %v6088_v22, %v12775_v50  ;;  %v6089_v10 = vmul.f32 0.2, %v6084_v35  ;;  %12778 = vst [vmem:[#allocation33_spill] sm:$0xff] %v11595_v2 }
0x135a   : > { %12776 = vst [vmem:[#allocation38_spill] sm:$0xff] %v11592_v60  ;;  %v6094_v26 = vpack.c.bf16 %v11592_v60, %v11589_v62  ;;  %v11600_v30 = vadd.f32 %v6089_v10, %v12779_v49 }
0x135c   : > { %12780 = vst [vmem:[#allocation40_spill] sm:$0xff] %v11600_v30  ;;  %v6095_v32 = vpack.c.bf16 %v11600_v30, %v11595_v2  ;;  %6098 = vrot.lane.b32.xlu1 %v6094_v26, %s12489_s28 }
0x135e   : > { %6100 = vrot.lane.b32.xlu0 %v6095_v32, %s12489_s28  ;;  %s12790_s28 = sld [smem:[#allocation8_spill]] }
0x1364   : > { %v11686_v32 = vld [vmem:[%s12790_s28] sm:$0xff]  ;;  %s12811_s28 = smov 17  }
0x13ce   : > { %v6099_v21 = vpop.permute.xlu1 %6098 }
0x13cf   : > { %v11607_v27 = vsel %vm1005_vm6, 0, %v6099_v21 }
0x13d0   : > { %v6101_v29 = vpop.permute.xlu0 %6100  ;;  %v6284_v44 = vsel %vm12783_vm14, %v11607_v27, 0  ;;  %v6248_v25 = vsel %vm12784_vm8, %v11607_v27, 0  ;;  %vm12788_vm14 = vcmp.ne.s16.totalorder %v12760_v0, 0  ;;  %vm12789_vm8 = vcmp.ne.s16.totalorder %v12591_v47, 0 }
0x13d1   : > { %v11610_v12 = vsel %vm1005_vm6, %v6099_v21, %v6101_v29  ;;  %v6108_v14 = vsel %vm1005_vm6, %v6101_v29, 0  ;;  %v6192_v33 = vsel %vm12788_vm14, %v11607_v27, 0  ;;  %v6156_v20 = vsel %vm12789_vm8, %v11607_v27, 0 }
0x13d2   : > { %v9268_v58 = vcombine.low %v6108_v14, %v6108_v14  ;;  %v9267_v19 = vcombine.low %v11607_v27, %v11610_v12  ;;  %v9270_v43 = vcombine.high %v6108_v14, %v6108_v14  ;;  %v9269_v46 = vcombine.high %v11607_v27, %v11610_v12 }
0x13d3   : > { %v6286_v59 = vsel %vm12781_vm10, %v6108_v14, 0  ;;  %v6285_v61 = vsel %vm12782_vm9, %v11610_v12, 0  ;;  %v6250_v63 = vsel %vm1215_vm13, %v6108_v14, 0  ;;  %v6249_v42 = vsel %vm1214_vm12, %v11610_v12, 0 }
0x13d4   : > { %6322 = vrot.lane.b32.xlu0 %v9268_v58, %s12487_s15  ;;  %6320 = vrot.lane.b32.xlu1 %v9267_v19, %s12487_s15  ;;  %v9284_v54 = vcombine.low %v6286_v59, %v6286_v59  ;;  %v9283_v28 = vcombine.low %v6284_v44, %v6285_v61  ;;  %v9286_v56 = vcombine.high %v6286_v59, %v6286_v59  ;;  %vm12786_vm10 = vcmp.ne.s16.totalorder %v12755_v8, 0 }
0x13d5   : > { %v9285_v45 = vcombine.high %v6284_v44, %v6285_v61  ;;  %v9280_v38 = vcombine.low %v6250_v63, %v6250_v63  ;;  %v9279_v11 = vcombine.low %v6248_v25, %v6249_v42  ;;  %v9282_v24 = vcombine.high %v6250_v63, %v6250_v63 }
0x13d6   : > { %v9281_v5 = vcombine.high %v6248_v25, %v6249_v42  ;;  %v6194_v9 = vsel %vm12786_vm10, %v6108_v14, 0  ;;  %vm12787_vm9 = vcmp.ne.s16.totalorder %v12757_v55, 0  ;;  %v6158_v4 = vsel %vm1102_vm5, %v6108_v14, 0 }
0x13d7   : > { %v6193_v31 = vsel %vm12787_vm9, %v11610_v12, 0  ;;  %v9276_v37 = vcombine.low %v6194_v9, %v6194_v9  ;;  %v9278_v23 = vcombine.high %v6194_v9, %v6194_v9  ;;  %v6157_v17 = vsel %vm1101_vm4, %v11610_v12, 0 }
0x13d8   : > { %6326 = vrot.lane.b32.xlu0 %v9270_v43, %s12487_s15  ;;  %6324 = vrot.lane.b32.xlu1 %v9269_v46, %s12487_s15  ;;  %s12785_s15 = smov 110   ;;  %v9275_v34 = vcombine.low %v6192_v33, %v6193_v31  ;;  %v9277_v39 = vcombine.high %v6192_v33, %v6193_v31  ;;  %v9272_v53 = vcombine.low %v6158_v4, %v6158_v4  ;;  %v6342_v50 = vsel %vm1328_vm2, %v6108_v14, 0 }
0x13d9   : > { %v9271_v22 = vcombine.low %v6156_v20, %v6157_v17  ;;  %v9274_v35 = vcombine.high %v6158_v4, %v6158_v4  ;;  %v9273_v52 = vcombine.high %v6156_v20, %v6157_v17  ;;  %v6341_v10 = vsel %vm1327_vm7, %v11610_v12, 0 }
0x13da   : > { %v6340_v13 = vsel %vm1326_vm0, %v11607_v27, 0  ;;  %v9288_v26 = vcombine.low %v6342_v50, %v6342_v50  ;;  %v9292_v21 = vcombine.high %v11686_v32, %v11686_v32  ;;  %v9290_v29 = vcombine.high %v6342_v50, %v6342_v50 }
0x13db   : > { %v9287_v49 = vcombine.low %v6340_v13, %v6341_v10  ;;  %v9289_v14 = vcombine.high %v6340_v13, %v6341_v10  ;;  %vm12794_vm10 = vcmask 130048   ;;  %vm12795_vm9 = vcmask 777216  }
0x13dc   : > { %6230 = vrot.lane.b32.xlu0 %v9268_v58, %s12762_s2  ;;  %6228 = vrot.lane.b32.xlu1 %v9267_v19, %s12762_s2  ;;  %vm12796_vm14 = vmmov %vm12795_vm9  ;;  %vm12797_vm8 = vcmask 785408  }
0x13dd   : > { %9311 = vmatprep.mubr.msk.bf16.mxu0 %vm12794_vm10, %v9292_v21  ;;  %vm12798_vm10 = vmmov %vm12797_vm8 }
0x13e0   : > { %6234 = vrot.lane.b32.xlu0 %v9270_v43, %s12762_s2  ;;  %6232 = vrot.lane.b32.xlu1 %v9269_v46, %s12762_s2 }
0x13e4   : > { %6138 = vrot.lane.b32.xlu0 %v9268_v58, %s12725_s1  ;;  %6136 = vrot.lane.b32.xlu1 %v9267_v19, %s12725_s1 }
0x13e8   : > { %6302 = vrot.lane.b32.xlu0 %v9284_v54, %s12759_s11  ;;  %6300 = vrot.lane.b32.xlu1 %v9283_v28, %s12759_s11 }
0x13ec   : > { %6306 = vrot.lane.b32.xlu0 %v9286_v56, %s12759_s11  ;;  %6304 = vrot.lane.b32.xlu1 %v9285_v45, %s12759_s11 }
0x13f0   : > { %6266 = vrot.lane.b32.xlu0 %v9280_v38, %s12785_s15  ;;  %6264 = vrot.lane.b32.xlu1 %v9279_v11, %s12785_s15 }
0x13f4   : > { %6270 = vrot.lane.b32.xlu0 %v9282_v24, %s12785_s15  ;;  %6268 = vrot.lane.b32.xlu1 %v9281_v5, %s12785_s15 }
0x13f8   : > { %6210 = vrot.lane.b32.xlu0 %v9276_v37, %s12492_s7  ;;  %6208 = vrot.lane.b32.xlu1 %v9275_v34, %s12492_s7 }
0x13fc   : > { %6214 = vrot.lane.b32.xlu0 %v9278_v23, %s12492_s7  ;;  %6212 = vrot.lane.b32.xlu1 %v9277_v39, %s12492_s7  ;;  %s12792_s7 = sld [smem:[#allocation19_spill]] }
0x1400   : > { %6174 = vrot.lane.b32.xlu0 %v9272_v53, %s12791_s0  ;;  %6172 = vrot.lane.b32.xlu1 %v9271_v22, %s12791_s0 }
0x1402   : > { %v6377_v58 = vld [vmem:[%s12792_s7] sm:$0xff]  ;;  %s12812_s7 = smov 95  }
0x1404   : > { %6178 = vrot.lane.b32.xlu0 %v9274_v35, %s12791_s0  ;;  %6176 = vrot.lane.b32.xlu1 %v9273_v52, %s12791_s0 }
0x1408   : > { %6142 = vrot.lane.b32.xlu0 %v9270_v43, %s12725_s1  ;;  %6140 = vrot.lane.b32.xlu1 %v9269_v46, %s12725_s1 }
0x140c   : > { %6358 = vrot.lane.b32.xlu0 %v9288_v26, %s12793_s3  ;;  %6356 = vrot.lane.b32.xlu1 %v9287_v49, %s12793_s3 }
0x1410   : > { %6362 = vrot.lane.b32.xlu0 %v9290_v29, %s12793_s3  ;;  %6360 = vrot.lane.b32.xlu1 %v9289_v14, %s12793_s3 }
0x1414   : > { %6398 = vperm.xlu1 %9632, %v6377_v58  }
0x1446   : > { %v6323_v19 = vpop.permute.xlu0 %6322  ;;  %v6321_v43 = vpop.permute.xlu1 %6320 }
0x1447   : > { %v6329_v46 = vrot.slane %v6323_v19, 4  ;;  %v6328_v59 = vrot.slane %v6321_v43, 4 }
0x1449   : > { %v6332_v54 = vsel %vm1070_vm3, %v6328_v59, %v6329_v46 }
0x144a   : > { %v6327_v61 = vpop.permute.xlu0 %6326  ;;  %v6325_v44 = vpop.permute.xlu1 %6324  ;;  %v6333_v63 = vsel %vm12795_vm9, %v6321_v43, %v6332_v54  ;;  %vm12799_vm9 = vcmask 908288  }
0x144b   : > { %v6331_v28 = vrot.slane %v6327_v61, 4  ;;  %v6330_v56 = vrot.slane %v6325_v44, 4 }
0x144d   : > { %v6334_v45 = vsel %vm1070_vm3, %v6330_v56, %v6331_v28 }
0x144e   : > { %v6335_v42 = vsel %vm12796_vm14, %v6325_v44, %v6334_v45  ;;  %v6231_v25 = vpop.permute.xlu0 %6230  ;;  %v6229_v38 = vpop.permute.xlu1 %6228  ;;  %vm12800_vm14 = vcmask 900096  }
0x144f   : > { %v11700_v11 = vcombine.low %v6333_v63, %v6335_v42  ;;  %v11702_v24 = vcombine.high %v6333_v63, %v6335_v42  ;;  %v6237_v19 = vrot.slane %v6231_v25, 4  ;;  %v6236_v43 = vrot.slane %v6229_v38, 4 }
0x1451   : > { %6500 = vmatprep.subr.bf16.mxu0 %v11702_v24  ;;  %6894 = vmatprep.subr.bf16.mxu1 %v11702_v24  ;;  %v6240_v56 = vsel %vm1070_vm3, %v6236_v43, %v6237_v19 }
0x1452   : > { %v6235_v5 = vpop.permute.xlu0 %6234  ;;  %6501 = vmatpush1.bf16.msra.mxu0 %v11700_v11  ;;  %6895 = vmatpush1.bf16.msra.mxu1 %v11700_v11  ;;  %v6233_v9 = vpop.permute.xlu1 %6232 }
0x1453   : > { %v6239_v52 = vrot.slane %v6235_v5, 4  ;;  %v6238_v50 = vrot.slane %v6233_v9, 4 }
0x1455   : > { %v6242_v61 = vsel %vm1070_vm3, %v6238_v50, %v6239_v52 }
0x1456   : > { %v11708_v31 = vpop.permute.xlu0 %6138  ;;  %v11710_v33 = vpop.permute.xlu1 %6136  ;;  %v6243_v63 = vsel %vm12799_vm9, %v6233_v9, %v6242_v61 }
0x145a   : > { %v6303_v37 = vpop.permute.xlu0 %6302  ;;  %v6301_v34 = vpop.permute.xlu1 %6300 }
0x145b   : > { %v6309_v23 = vrot.slane %v6303_v37, 4  ;;  %v6308_v39 = vrot.slane %v6301_v34, 4 }
0x145d   : > { %v6312_v20 = vsel %vm1070_vm3, %v6308_v39, %v6309_v23 }
0x145e   : > { %v6307_v4 = vpop.permute.xlu0 %6306  ;;  %v6305_v17 = vpop.permute.xlu1 %6304  ;;  %v6313_v10 = vsel %vm12797_vm8, %v6301_v34, %v6312_v20  ;;  %vm12801_vm8 = vmmov %vm12800_vm14 }
0x145f   : > { %v6311_v53 = vrot.slane %v6307_v4, 4  ;;  %v6310_v22 = vrot.slane %v6305_v17, 4 }
0x1461   : > { %v6314_v35 = vsel %vm1070_vm3, %v6310_v22, %v6311_v53 }
0x1462   : > { %v6315_v13 = vsel %vm12798_vm10, %v6305_v17, %v6314_v35  ;;  %v6267_v26 = vpop.permute.xlu0 %6266  ;;  %v6265_v49 = vpop.permute.xlu1 %6264  ;;  %vm12802_vm10 = vmmov %vm12799_vm9  ;;  %vm12803_vm9 = vcmask 916480  }
0x1463   : > { %v11716_v21 = vcombine.low %v6313_v10, %v6315_v13  ;;  %v11718_v29 = vcombine.high %v6313_v10, %v6315_v13  ;;  %v6273_v14 = vrot.slane %v6267_v26, 4  ;;  %v6272_v58 = vrot.slane %v6265_v49, 4 }
0x1464   : > { %v6241_v17 = vsel %vm12802_vm10, %v6229_v38, %v6240_v56 }
0x1465   : > { %6502 = vmatprep.subr.bf16.mxu0 %v11718_v29  ;;  %6896 = vmatprep.subr.bf16.mxu1 %v11718_v29  ;;  %v6276_v44 = vsel %vm1070_vm3, %v6272_v58, %v6273_v14  ;;  %v11736_v20 = vcombine.high %v6241_v17, %v6243_v63  ;;  %v11745_v38 = vcombine.low %v6241_v17, %v6243_v63 }
0x1466   : > { %v6271_v46 = vpop.permute.xlu0 %6270  ;;  %6503 = vmatpush1.bf16.msra.mxu0 %v11716_v21  ;;  %6897 = vmatpush1.bf16.msra.mxu1 %v11716_v21  ;;  %v6269_v59 = vpop.permute.xlu1 %6268  ;;  %v6277_v42 = vsel %vm12800_vm14, %v6265_v49, %v6276_v44  ;;  %vm12804_vm14 = vmmov %vm12803_vm9 }
0x1467   : > { %v6275_v54 = vrot.slane %v6271_v46, 4  ;;  %v6274_v28 = vrot.slane %v6269_v59, 4  ;;  %v6145_v46 = vrot.slane %v11708_v31, 4 }
0x1469   : > { %v6278_v45 = vsel %vm1070_vm3, %v6274_v28, %v6275_v54 }
0x146a   : > { %v6279_v25 = vsel %vm12801_vm8, %v6269_v59, %v6278_v45  ;;  %v6211_v5 = vpop.permute.xlu0 %6210  ;;  %v6209_v37 = vpop.permute.xlu1 %6208  ;;  %v6144_v59 = vrot.slane %v11710_v33, 4  ;;  %vm12805_vm8 = vcmask 1031168  }
0x146b   : > { %v11731_v34 = vcombine.low %v6277_v42, %v6279_v25  ;;  %v11733_v23 = vcombine.high %v6277_v42, %v6279_v25  ;;  %v6217_v39 = vrot.slane %v6211_v5, 4  ;;  %v6216_v4 = vrot.slane %v6209_v37, 4  ;;  %vm12806_vm10 = vmmov %vm12805_vm8 }
0x146c   : > { %v6148_v63 = vsel %vm1070_vm3, %v6144_v59, %v6145_v46 }
0x146d   : > { %6504 = vmatprep.subr.bf16.mxu0 %v11733_v23  ;;  %6898 = vmatprep.subr.bf16.mxu1 %v11733_v23  ;;  %v6220_v22 = vsel %vm1070_vm3, %v6216_v4, %v6217_v39 }
0x146e   : > { %v6215_v9 = vpop.permute.xlu0 %6214  ;;  %6505 = vmatpush1.bf16.msra.mxu0 %v11731_v34  ;;  %6899 = vmatpush1.bf16.msra.mxu1 %v11731_v34  ;;  %v6213_v53 = vpop.permute.xlu1 %6212  ;;  %v6221_v10 = vsel %vm12803_vm9, %v6209_v37, %v6220_v22  ;;  %vm12807_vm9 = vcmask 1039360  }
0x146f   : > { %v6219_v35 = vrot.slane %v6215_v9, 4  ;;  %v6218_v52 = vrot.slane %v6213_v53, 4  ;;  %6506 = vmatprep.subr.bf16.mxu0 %v11736_v20  ;;  %6900 = vmatprep.subr.bf16.mxu1 %v11736_v20 }
0x1471   : > { %v6222_v50 = vsel %vm1070_vm3, %v6218_v52, %v6219_v35 }
0x1472   : > { %v6223_v13 = vsel %vm12804_vm14, %v6213_v53, %v6222_v50  ;;  %v6175_v26 = vpop.permute.xlu0 %6174  ;;  %6507 = vmatpush1.bf16.msra.mxu0 %v11745_v38  ;;  %6901 = vmatpush1.bf16.msra.mxu1 %v11745_v38  ;;  %v6173_v49 = vpop.permute.xlu1 %6172  ;;  %v6149_v53 = vsel %vm12807_vm9, %v11710_v33, %v6148_v63  ;;  %vm12808_vm14 = vmmov %vm12807_vm9  ;;  %vm12815_vm9 = vcmp.ne.s16.totalorder %v12753_v15, 0 }
0x1473   : > { %v11752_v14 = vcombine.low %v6221_v10, %v6223_v13  ;;  %v11754_v58 = vcombine.high %v6221_v10, %v6223_v13  ;;  %v6181_v19 = vrot.slane %v6175_v26, 4  ;;  %v6180_v43 = vrot.slane %v6173_v49, 4 }
0x1475   : > { %6508 = vmatprep.subr.bf16.mxu0 %v11754_v58  ;;  %6902 = vmatprep.subr.bf16.mxu1 %v11754_v58  ;;  %v6184_v54 = vsel %vm1070_vm3, %v6180_v43, %v6181_v19 }
0x1476   : > { %v6179_v61 = vpop.permute.xlu0 %6178  ;;  %6509 = vmatpush1.bf16.msra.mxu0 %v11752_v14  ;;  %6903 = vmatpush1.bf16.msra.mxu1 %v11752_v14  ;;  %v6177_v44 = vpop.permute.xlu1 %6176  ;;  %v6185_v42 = vsel %vm12805_vm8, %v6173_v49, %v6184_v54  ;;  %vm12813_vm8 = vcmp.ne.s16.totalorder %v12619_v48, 0 }
0x1477   : > { %v6183_v28 = vrot.slane %v6179_v61, 4  ;;  %v6182_v56 = vrot.slane %v6177_v44, 4  ;;  %v11798_v61 = vsel %vm1030_vm15, %v11607_v27, 0 }
0x1479   : > { %v6186_v45 = vsel %vm1070_vm3, %v6182_v56, %v6183_v28 }
0x147a   : > { %v6187_v31 = vsel %vm12806_vm10, %v6177_v44, %v6186_v45  ;;  %v6143_v25 = vpop.permute.xlu0 %6142  ;;  %v6141_v5 = vpop.permute.xlu1 %6140  ;;  %v9291_v45 = vcombine.low %v11686_v32, %v11686_v32  ;;  %vm12814_vm10 = vcmp.ne.s16.totalorder %v12750_v40, 0 }
0x147b   : > { %v11767_v37 = vcombine.low %v6185_v42, %v6187_v31  ;;  %v11769_v39 = vcombine.high %v6185_v42, %v6187_v31  ;;  %v6147_v4 = vrot.slane %v6143_v25, 4  ;;  %v6146_v17 = vrot.slane %v6141_v5, 4 }
0x147d   : > { %v6150_v9 = vsel %vm1070_vm3, %v6146_v17, %v6147_v4  ;;  %6510 = vmatprep.subr.bf16.mxu0 %v11769_v39  ;;  %6904 = vmatprep.subr.bf16.mxu1 %v11769_v39 }
0x147e   : > { %v6151_v22 = vsel %vm12808_vm14, %v6141_v5, %v6150_v9  ;;  %v6359_v35 = vpop.permute.xlu0 %6358  ;;  %6511 = vmatpush1.bf16.msra.mxu0 %v11767_v37  ;;  %6905 = vmatpush1.bf16.msra.mxu1 %v11767_v37  ;;  %v6357_v52 = vpop.permute.xlu1 %6356  ;;  %vm12816_vm14 = vcmp.ne.s16.totalorder %v12617_v1, 0 }
0x147f   : > { %v11779_v50 = vcombine.low %v6149_v53, %v6151_v22  ;;  %v11781_v10 = vcombine.high %v6149_v53, %v6151_v22  ;;  %v6365_v13 = vrot.slane %v6359_v35, 4  ;;  %v6364_v26 = vrot.slane %v6357_v52, 4 }
0x1481   : > { %6512 = vmatprep.subr.bf16.mxu0 %v11781_v10  ;;  %6906 = vmatprep.subr.bf16.mxu1 %v11781_v10  ;;  %v6368_v19 = vsel %vm1070_vm3, %v6364_v26, %v6365_v13 }
0x1482   : > { %v6363_v49 = vpop.permute.xlu0 %6362  ;;  %6513 = vmatpush1.bf16.msra.mxu0 %v11779_v50  ;;  %6907 = vmatpush1.bf16.msra.mxu1 %v11779_v50  ;;  %v6361_v33 = vpop.permute.xlu1 %6360  ;;  %v6369_v44 = vsel %vm1358_vm11, %v6357_v52, %v6368_v19 }
0x1483   : > { %v6367_v43 = vrot.slane %v6363_v49, 4  ;;  %v6366_v46 = vrot.slane %v6361_v33, 4  ;;  %9568 = vmatprep.subr.msk.bf16.mxu0 %vm1031_vm1, %v11610_v12  ;;  %9570 = vmatprep.subr.msk.bf16.mxu1 %vm1031_vm1, %v11610_v12 }
0x1485   : > { %v6370_v59 = vsel %vm1070_vm3, %v6366_v46, %v6367_v43 }
0x1486   : > { %v6371_v54 = vsel %vm1358_vm11, %v6361_v33, %v6370_v59  ;;  %6515 = vmatpush1.bf16.msra.mxu0 %v11798_v61  ;;  %6909 = vmatpush1.bf16.msra.mxu1 %v11798_v61 }
0x1487   : > { %v11804_v28 = vcombine.low %v6369_v44, %v6371_v54  ;;  %v11806_v56 = vcombine.high %v6369_v44, %v6371_v54 }
0x1489   : > { %12809 = vst [vmem:[#allocation43_spill] sm:$0xff] %v11804_v28  ;;  %12810 = vst [vmem:[#allocation45_spill] sm:$0xff] %v11806_v56  ;;  %6530 = vmatprep.subr.bf16.mxu0 %v11806_v56 }
0x148a   : > { %6531 = vmatpush2.bf16.msra.mxu0 %v11804_v28 }
0x148b   : > { %7341 = vmatprep.subr.bf16.mxu0 %v11702_v24 }
0x148d   : > { %6533 = vmatmul.mubr.bf16.vlgmr.msra.gmra.mxu0 %v9291_v45 }
0x148e   : > { %7342 = vmatpush1.bf16.msra.mxu0 %v11700_v11 }
0x148f   : > { %7343 = vmatprep.subr.bf16.mxu0 %v11718_v29  ;;  %v6399_v27 = vpop.permute.xlu1 %6398 }
0x1492   : > { %7344 = vmatpush1.bf16.msra.mxu0 %v11716_v21 }
0x1493   : > { %7345 = vmatprep.subr.bf16.mxu0 %v11733_v23 }
0x1496   : > { %7346 = vmatpush1.bf16.msra.mxu0 %v11731_v34 }
0x1497   : > { %7347 = vmatprep.subr.bf16.mxu0 %v11736_v20 }
0x149a   : > { %7348 = vmatpush1.bf16.msra.mxu0 %v11745_v38 }
0x149b   : > { %7349 = vmatprep.subr.bf16.mxu0 %v11754_v58 }
0x149e   : > { %7350 = vmatpush1.bf16.msra.mxu0 %v11752_v14 }
0x149f   : > { %7351 = vmatprep.subr.bf16.mxu0 %v11769_v39 }
0x14a2   : > { %7352 = vmatpush1.bf16.msra.mxu0 %v11767_v37 }
0x14a3   : > { %7353 = vmatprep.subr.bf16.mxu0 %v11781_v10 }
0x14a6   : > { %7354 = vmatpush1.bf16.msra.mxu0 %v11779_v50 }
0x14a7   : > { %9572 = vmatprep.subr.msk.bf16.mxu0 %vm1031_vm1, %v11610_v12 }
0x14aa   : > { %7356 = vmatpush1.bf16.msra.mxu0 %v11798_v61 }
0x154d   : > { %v6534_v32 = vpop.f32.mrf.mxu0 }
0x154e   : > { %v6535_v63 = vadd.f32 %v6534_v32, %v6399_v27 }
0x154f   : > { %v6536_v42 = vpop.f32.mrf.mxu0 }
0x1550   : > { %v6541_v31 = vmax.f32 %v6535_v63, 0.0  ;;  %v6537_v25 = vadd.f32 %v6536_v42, %v6399_v27 }
0x1551   : > { %v6538_v5 = vpop.f32.mrf.mxu0 }
0x1552   : > { %v6543_v4 = vpack.c.bf16 %v6541_v31, %v6541_v31  ;;  %v6542_v17 = vmax.f32 %v6537_v25, 0.0 }
0x1553   : > { %v6539_v9 = vpop.f32.mrf.mxu0 }
0x1554   : > { %v6544_v53 = vpack.c.bf16 %v6542_v17, %v6542_v17  ;;  %6547 = vrot.lane.b32.xlu0 %v6543_v4, %s12811_s28 }
0x1556   : > { %6549 = vrot.lane.b32.xlu1 %v6544_v53, %s12811_s28 }
0x15c6   : > { %v6548_v22 = vpop.permute.xlu0 %6547 }
0x15c7   : > { %v6554_v52 = vsel %vm1005_vm6, 0, %v6548_v22 }
0x15c8   : > { %v6550_v35 = vpop.permute.xlu1 %6549  ;;  %v11843_v46 = vsel %vm1030_vm15, %v6554_v52, 0  ;;  %v6689_v54 = vsel %vm1326_vm0, %v6554_v52, 0  ;;  %v6658_v42 = vsel %vm12815_vm9, %v6554_v52, 0  ;;  %v6637_v17 = vsel %vm12816_vm14, %v6554_v52, 0 }
0x15c9   : > { %v6551_v13 = vsel %vm1005_vm6, %v6548_v22, %v6550_v35  ;;  %v6557_v26 = vsel %vm1005_vm6, %v6550_v35, 0  ;;  %vm12821_vm9 = vcmp.ne.s16.totalorder %v12757_v55, 0  ;;  %vm12822_vm14 = vcmp.ne.s16.totalorder %v12760_v0, 0 }
0x15ca   : > { %v9314_v49 = vcombine.low %v6557_v26, %v6557_v26  ;;  %v9313_v33 = vcombine.low %v6554_v52, %v6551_v13  ;;  %v6691_v19 = vsel %vm1328_vm2, %v6557_v26, 0  ;;  %v6690_v43 = vsel %vm1327_vm7, %v6551_v13, 0 }
0x15cb   : > { %v11847_v59 = vsel %vm1031_vm1, %v6551_v13, 0  ;;  %v9324_v45 = vcombine.low %v6691_v19, %v6691_v19  ;;  %v9323_v27 = vcombine.low %v6689_v54, %v6690_v43  ;;  %v6660_v32 = vsel %vm12813_vm8, %v6557_v26, 0 }
0x15cc   : > { %6681 = vrot.lane.b32.xlu1 %v9314_v49, %s12812_s7  ;;  %6679 = vrot.lane.b32.xlu0 %v9313_v33, %s12812_s7  ;;  %v6659_v63 = vsel %vm12814_vm10, %v6551_v13, 0  ;;  %v9322_v31 = vcombine.low %v6660_v32, %v6660_v32  ;;  %v6639_v5 = vsel %vm1215_vm13, %v6557_v26, 0  ;;  %v6638_v4 = vsel %vm1214_vm12, %v6551_v13, 0 }
0x15cd   : > { %v9321_v25 = vcombine.low %v6658_v42, %v6659_v63  ;;  %v9320_v9 = vcombine.low %v6639_v5, %v6639_v5  ;;  %v9319_v53 = vcombine.low %v6637_v17, %v6638_v4  ;;  %v6587_v22 = vsel %vm1102_vm5, %v6557_v26, 0 }
0x15ce   : > { %v6586_v35 = vsel %vm1101_vm4, %v6551_v13, 0  ;;  %vm12818_vm8 = vcmp.ne.s16.totalorder %v12591_v47, 0  ;;  %v9316_v43 = vcombine.low %v6587_v22, %v6587_v22  ;;  %vm12820_vm10 = vcmp.ne.s16.totalorder %v12755_v8, 0 }
0x15cf   : > { %v6585_v19 = vsel %vm12818_vm8, %v6554_v52, 0  ;;  %v6606_v32 = vsel %vm12822_vm14, %v6554_v52, 0  ;;  %vm12824_vm8 = vcmask 719872   ;;  %vm12827_vm14 = vcmask 908288  }
0x15d0   : > { %6629 = vrot.lane.b32.xlu1 %v9314_v49, %s12762_s2  ;;  %6627 = vrot.lane.b32.xlu0 %v9313_v33, %s12762_s2  ;;  %v9315_v54 = vcombine.low %v6585_v19, %v6586_v35 }
0x15d4   : > { %6702 = vrot.lane.b32.xlu1 %v9324_v45, %s12793_s3  ;;  %6700 = vrot.lane.b32.xlu0 %v9323_v27, %s12793_s3  ;;  %v6608_v45 = vsel %vm12820_vm10, %v6557_v26, 0  ;;  %v6607_v27 = vsel %vm12821_vm9, %v6551_v13, 0  ;;  %v6711_v26 = vld [vmem:[%s12819_s5] sm:$0xff]  ;;  %vm12825_vm10 = vcmask 777216   ;;  %vm12826_vm9 = vcmask 785408   ;;  %s12840_s5 = sld [smem:[#allocation10_spill]] }
0x15d5   : > { %v9318_v63 = vcombine.low %v6608_v45, %v6608_v45  ;;  %v9317_v42 = vcombine.low %v6606_v32, %v6607_v27 }
0x15d8   : > { %6671 = vrot.lane.b32.xlu1 %v9322_v31, %s12759_s11  ;;  %6669 = vrot.lane.b32.xlu0 %v9321_v25, %s12759_s11  ;;  %v11890_v31 = vld [vmem:[%s12817_s4] sm:$0xff]  ;;  %s12854_s4 = sld [smem:[#allocation11_spill]] }
0x15d9   : > { %v9326_v13 = vcombine.high %v11890_v31, %v11890_v31 }
0x15db   : > { %9356 = vmatprep.mubr.msk.bf16.mxu1 %vm12824_vm8, %v9326_v13  ;;  %vm12828_vm8 = vcmask 900096  }
0x15dc   : > { %6650 = vrot.lane.b32.xlu1 %v9320_v9, %s12785_s15  ;;  %6648 = vrot.lane.b32.xlu0 %v9319_v53, %s12785_s15 }
0x15e0   : > { %6598 = vrot.lane.b32.xlu1 %v9316_v43, %s12791_s0  ;;  %6596 = vrot.lane.b32.xlu0 %v9315_v54, %s12791_s0 }
0x15e4   : > { %6619 = vrot.lane.b32.xlu1 %v9318_v63, %s12823_s6  ;;  %6617 = vrot.lane.b32.xlu0 %v9317_v42, %s12823_s6 }
0x15e8   : > { %6577 = vrot.lane.b32.xlu1 %v9314_v49, %s12725_s1  ;;  %6575 = vrot.lane.b32.xlu0 %v9313_v33, %s12725_s1 }
0x15ec   : > { %6741 = vperm.xlu0 %9631, %v6711_v26  }
0x163e   : > { %v6682_v52 = vpop.permute.xlu1 %6681  ;;  %v6680_v25 = vpop.permute.xlu0 %6679 }
0x163f   : > { %v6684_v17 = vrot.slane %v6682_v52, 4  ;;  %v6683_v9 = vrot.slane %v6680_v25, 4 }
0x1641   : > { %v6685_v33 = vsel %vm1070_vm3, %v6683_v9, %v6684_v17 }
0x1642   : > { %v6630_v5 = vpop.permute.xlu1 %6629  ;;  %v6628_v4 = vpop.permute.xlu0 %6627  ;;  %v6686_v17 = vsel %vm12825_vm10, %v6680_v25, %v6685_v33  ;;  %vm12829_vm10 = vcmask 1031168  }
0x1643   : > { %v6632_v43 = vrot.slane %v6630_v5, 4  ;;  %v6631_v54 = vrot.slane %v6628_v4, 4 }
0x1645   : > { %v6633_v9 = vsel %vm1070_vm3, %v6631_v54, %v6632_v43 }
0x1646   : > { %v6703_v53 = vpop.permute.xlu1 %6702  ;;  %v6701_v22 = vpop.permute.xlu0 %6700 }
0x1647   : > { %v6705_v35 = vrot.slane %v6703_v53, 4  ;;  %v6704_v19 = vrot.slane %v6701_v22, 4 }
0x1649   : > { %v6706_v49 = vsel %vm1070_vm3, %v6704_v19, %v6705_v35 }
0x164a   : > { %v11901_v45 = vsel %vm1358_vm11, %v6701_v22, %v6706_v49  ;;  %v6672_v27 = vpop.permute.xlu1 %6671  ;;  %v6670_v32 = vpop.permute.xlu0 %6669 }
0x164b   : > { %v9354_v63 = vcombine.high %v11901_v45, %v11901_v45  ;;  %v6674_v42 = vrot.slane %v6672_v27, 4  ;;  %v6673_v13 = vrot.slane %v6670_v32, 4  ;;  %v9353_v26 = vcombine.low %v11901_v45, %v11901_v45 }
0x164d   : > { %v6675_v52 = vsel %vm1070_vm3, %v6673_v13, %v6674_v42  ;;  %9355 = vmatprep.subr.msk.bf16.mxu1 %vm1070_vm3, %v9354_v63  ;;  %v6889_v5 = vsel %vm1070_vm3, %v9353_v26, 0  ;;  %v6634_v63 = vsel %vm12827_vm14, %v6628_v4, %v6633_v9  ;;  %vm12831_vm14 = vcmask 1039360  }
0x164e   : > { %v6676_v53 = vsel %vm12826_vm9, %v6670_v32, %v6675_v52  ;;  %v6651_v22 = vpop.permute.xlu1 %6650  ;;  %6915 = vmatpush2.bf16.msra.mxu1 %v6889_v5  ;;  %v6649_v35 = vpop.permute.xlu0 %6648  ;;  %vm12830_vm9 = vcmask 916480  }
0x164f   : > { %v11913_v19 = vcombine.low %v6676_v53, %v6686_v17  ;;  %v11915_v49 = vcombine.high %v6676_v53, %v6686_v17  ;;  %v6653_v27 = vrot.slane %v6651_v22, 4  ;;  %v6652_v44 = vrot.slane %v6649_v35, 4 }
0x1651   : > { %v6654_v42 = vsel %vm1070_vm3, %v6652_v44, %v6653_v27  ;;  %6916 = vmatprep.subr.bf16.mxu1 %v11915_v49 }
0x1652   : > { %v6655_v25 = vsel %vm12828_vm8, %v6649_v35, %v6654_v42  ;;  %v6599_v33 = vpop.permute.xlu1 %6598  ;;  %6917 = vmatpush2.bf16.msra.mxu1 %v11913_v19  ;;  %v6597_v43 = vpop.permute.xlu0 %6596  ;;  %vm12836_vm8 = vcmp.ne.s16.totalorder %v12755_v8, 0 }
0x1653   : > { %v11922_v54 = vcombine.low %v6634_v63, %v6655_v25  ;;  %v11924_v32 = vcombine.high %v6634_v63, %v6655_v25  ;;  %v6601_v13 = vrot.slane %v6599_v33, 4  ;;  %v6600_v26 = vrot.slane %v6597_v43, 4 }
0x1655   : > { %6918 = vmatprep.subr.bf16.mxu1 %v11924_v32  ;;  %v6602_v4 = vsel %vm1070_vm3, %v6600_v26, %v6601_v13  ;;  %v12833_v26 = vcombine.low %v11843_v46, %v11847_v59 }
0x1656   : > { %v6620_v52 = vpop.permute.xlu1 %6619  ;;  %6919 = vmatpush2.bf16.msra.mxu1 %v11922_v54  ;;  %v6618_v44 = vpop.permute.xlu0 %6617  ;;  %v6603_v53 = vsel %vm12829_vm10, %v6597_v43, %v6602_v4  ;;  %vm12837_vm10 = vcmp.ne.s16.totalorder %v12757_v55, 0 }
0x1657   : > { %v6622_v5 = vrot.slane %v6620_v52, 4  ;;  %v6621_v17 = vrot.slane %v6618_v44, 4 }
0x1659   : > { %v6623_v9 = vsel %vm1070_vm3, %v6621_v17, %v6622_v5 }
0x165a   : > { %v6624_v22 = vsel %vm12830_vm9, %v6618_v44, %v6623_v9  ;;  %v6578_v35 = vpop.permute.xlu1 %6577  ;;  %v6576_v27 = vpop.permute.xlu0 %6575  ;;  %v9325_v44 = vcombine.low %v11890_v31, %v11890_v31  ;;  %vm12838_vm9 = vcmp.ne.s16.totalorder %v12760_v0, 0 }
0x165b   : > { %v11932_v42 = vcombine.low %v6603_v53, %v6624_v22  ;;  %v11934_v63 = vcombine.high %v6603_v53, %v6624_v22  ;;  %v6580_v25 = vrot.slane %v6578_v35, 4  ;;  %v6579_v33 = vrot.slane %v6576_v27, 4 }
0x165d   : > { %v6581_v30 = vsel %vm1070_vm3, %v6579_v33, %v6580_v25  ;;  %6920 = vmatprep.subr.bf16.mxu1 %v11934_v63 }
0x165e   : > { %v6582_v13 = vsel %vm12831_vm14, %v6576_v27, %v6581_v30  ;;  %6921 = vmatpush2.bf16.msra.mxu1 %v11932_v42  ;;  %v12835_v30 = vmov 0   ;;  %vm12839_vm14 = vcmp.ne.s16.totalorder %v12591_v47, 0 }
0x165f   : > { %v11941_v43 = vcombine.low %v11843_v46, %v6582_v13  ;;  %v11946_v52 = vcombine.high %v12833_v26, %v6582_v13 }
0x1661   : > { %12832 = vst [vmem:[#allocation44_spill] sm:$0xff] %v11941_v43  ;;  %12834 = vst [vmem:[#allocation42_spill] sm:$0xff] %v11946_v52  ;;  %6922 = vmatprep.subr.bf16.mxu1 %v11946_v52 }
0x1662   : > { %6923 = vmatpush2.bf16.msra.mxu1 %v11941_v43 }
0x1663   : > { %6924 = vmatprep.subr.bf16.mxu1 %v11806_v56 }
0x1666   : > { %6925 = vmatpush2.bf16.msra.mxu1 %v11804_v28 }
0x1667   : > { %v6742_v4 = vpop.permute.xlu0 %6741 }
0x1669   : > { %6927 = vmatmul.mubr.bf16.vlgmr.msra.gmra.mxu1 %v9325_v44 }
0x166a   : > { %7414 = vmatprep.mubr.bf16.mxu1 %v12835_v30 }
0x1729   : > { %v6928_v5 = vpop.f32.mrf.mxu1 }
0x172a   : > { %v6929_v17 = vadd.f32 %v6928_v5, %v6742_v4 }
0x172b   : > { %v6930_v46 = vpop.f32.mrf.mxu1 }
0x172c   : > { %v6935_v59 = vmax.f32 %v6929_v17, 0.0  ;;  %v6931_v9 = vadd.f32 %v6930_v46, %v6742_v4 }
0x172d   : > { %v6932_v53 = vpop.f32.mrf.mxu1 }
0x172e   : > { %v6937_v22 = vpack.c.bf16 %v6935_v59, %v6935_v59  ;;  %v6936_v35 = vmax.f32 %v6931_v9, 0.0 }
0x172f   : > { %v6933_v27 = vpop.f32.mrf.mxu1 }
0x1730   : > { %v6938_v25 = vpack.c.bf16 %v6936_v35, %v6936_v35  ;;  %6941 = vrot.lane.b32.xlu1 %v6937_v22, %s12811_s28 }
0x1732   : > { %6943 = vrot.lane.b32.xlu0 %v6938_v25, %s12811_s28 }
0x17a2   : > { %v6942_v31 = vpop.permute.xlu1 %6941 }
0x17a3   : > { %v6948_v13 = vsel %vm1005_vm6, 0, %v6942_v31 }
0x17a4   : > { %v6944_v33 = vpop.permute.xlu0 %6943  ;;  %v11968_v59 = vsel %vm1030_vm15, %v6948_v13, 0  ;;  %v7000_v22 = vsel %vm12838_vm9, %v6948_v13, 0  ;;  %vm12843_vm9 = vcmp.ne.s16.totalorder %v12750_v40, 0 }
0x17a5   : > { %v6945_v26 = vsel %vm1005_vm6, %v6942_v31, %v6944_v33  ;;  %v6951_v44 = vsel %vm1005_vm6, %v6944_v33, 0  ;;  %v6979_v33 = vsel %vm12839_vm14, %v6948_v13, 0  ;;  %vm12844_vm14 = vcmp.ne.s16.totalorder %v12753_v15, 0 }
0x17a6   : > { %v9359_v5 = vcombine.low %v6951_v44, %v6951_v44  ;;  %v9358_v17 = vcombine.low %v6948_v13, %v6945_v26  ;;  %v7002_v4 = vsel %vm12836_vm8, %v6951_v44, 0  ;;  %v7001_v46 = vsel %vm12837_vm10, %v6945_v26, 0 }
0x17a7   : > { %v11972_v9 = vsel %vm1031_vm1, %v6945_v26, 0  ;;  %v9363_v35 = vcombine.low %v7002_v4, %v7002_v4  ;;  %v9362_v27 = vcombine.low %v7000_v22, %v7001_v46  ;;  %v6981_v25 = vsel %vm1102_vm5, %v6951_v44, 0 }
0x17a8   : > { %7023 = vrot.lane.b32.xlu0 %v9359_v5, %s12762_s2  ;;  %7021 = vrot.lane.b32.xlu1 %v9358_v17, %s12762_s2  ;;  %v6980_v31 = vsel %vm1101_vm4, %v6945_v26, 0  ;;  %v9361_v60 = vcombine.low %v6981_v25, %v6981_v25  ;;  %v7085_v4 = vsel %vm1328_vm2, %v6951_v44, 0  ;;  %v7084_v46 = vsel %vm1327_vm7, %v6945_v26, 0 }
0x17a9   : > { %v9360_v53 = vcombine.low %v6979_v33, %v6980_v31  ;;  %v7083_v22 = vsel %vm1326_vm0, %v6948_v13, 0  ;;  %vm12841_vm8 = vcmp.ne.s16.totalorder %v12617_v1, 0  ;;  %vm12842_vm10 = vcmp.ne.s16.totalorder %v12619_v48, 0 }
0x17aa   : > { %v7054_v31 = vsel %vm12842_vm10, %v6951_v44, 0  ;;  %v7053_v33 = vsel %vm12843_vm9, %v6945_v26, 0  ;;  %vm12846_vm10 = vcmask 916480   ;;  %vm12847_vm9 = vcmask 1039360  }
0x17ac   : > { %6971 = vrot.lane.b32.xlu0 %v9359_v5, %s12725_s1  ;;  %6969 = vrot.lane.b32.xlu1 %v9358_v17, %s12725_s1 }
0x17b0   : > { %7013 = vrot.lane.b32.xlu0 %v9363_v35, %s12823_s6  ;;  %7011 = vrot.lane.b32.xlu1 %v9362_v27, %s12823_s6  ;;  %v9369_v35 = vcombine.low %v7085_v4, %v7085_v4  ;;  %v9368_v27 = vcombine.low %v7083_v22, %v7084_v46  ;;  %v7052_v4 = vsel %vm12844_vm14, %v6948_v13, 0  ;;  %v9367_v46 = vcombine.low %v7054_v31, %v7054_v31 }
0x17b1   : > { %v9366_v22 = vcombine.low %v7052_v4, %v7053_v33  ;;  %vm12848_vm14 = vcmask 1031168  }
0x17b4   : > { %6992 = vrot.lane.b32.xlu0 %v9361_v60, %s12791_s0  ;;  %6990 = vrot.lane.b32.xlu1 %v9360_v53, %s12791_s0  ;;  %v7033_v60 = vsel %vm1215_vm13, %v6951_v44, 0  ;;  %v7032_v53 = vsel %vm1214_vm12, %v6945_v26, 0 }
0x17b8   : > { %7075 = vrot.lane.b32.xlu0 %v9359_v5, %s12812_s7  ;;  %7073 = vrot.lane.b32.xlu1 %v9358_v17, %s12812_s7  ;;  %v7031_v5 = vsel %vm12841_vm8, %v6948_v13, 0  ;;  %v9365_v17 = vcombine.low %v7033_v60, %v7033_v60  ;;  %vm12845_vm8 = vcmask 908288  }
0x17b9   : > { %v9364_v25 = vcombine.low %v7031_v5, %v7032_v53 }
0x17bc   : > { %7096 = vrot.lane.b32.xlu0 %v9369_v35, %s12793_s3  ;;  %7094 = vrot.lane.b32.xlu1 %v9368_v27, %s12793_s3  ;;  %v7106_v35 = vld [vmem:[%s9891_s14] sm:$0xff] }
0x17bd   : > { %v12018_v27 = vld [vmem:[%s12840_s5] sm:$0xff] }
0x17be   : > { %v9371_v26 = vcombine.high %v12018_v27, %v12018_v27 }
0x17c0   : > { %7044 = vrot.lane.b32.xlu0 %v9365_v17, %s12785_s15  ;;  %7042 = vrot.lane.b32.xlu1 %v9364_v25, %s12785_s15 }
0x17c1   : > { %7373 = vmatprep.mubr.bf16.mxu0 %v9371_v26 }
0x17c4   : > { %7065 = vrot.lane.b32.xlu0 %v9367_v46, %s12759_s11  ;;  %7063 = vrot.lane.b32.xlu1 %v9366_v22, %s12759_s11 }
0x17c8   : > { %7145 = vperm.xlu1 %9632, %v7106_v35  }
0x181a   : > { %v7024_v44 = vpop.permute.xlu0 %7023  ;;  %v7022_v60 = vpop.permute.xlu1 %7021 }
0x181b   : > { %v7026_v17 = vrot.slane %v7024_v44, 4  ;;  %v7025_v13 = vrot.slane %v7022_v60, 4 }
0x181d   : > { %v7027_v46 = vsel %vm1070_vm3, %v7025_v13, %v7026_v17 }
0x181e   : > { %v6972_v53 = vpop.permute.xlu0 %6971  ;;  %v6970_v5 = vpop.permute.xlu1 %6969  ;;  %v7028_v62 = vsel %vm12845_vm8, %v7022_v60, %v7027_v46  ;;  %vm12850_vm8 = vcmask 777216  }
0x181f   : > { %v6974_v25 = vrot.slane %v6972_v53, 4  ;;  %v6973_v31 = vrot.slane %v6970_v5, 4 }
0x1821   : > { %v6975_v26 = vsel %vm1070_vm3, %v6973_v31, %v6974_v25 }
0x1822   : > { %v7014_v33 = vpop.permute.xlu0 %7013  ;;  %v7012_v4 = vpop.permute.xlu1 %7011 }
0x1823   : > { %v7016_v22 = vrot.slane %v7014_v33, 4  ;;  %v7015_v2 = vrot.slane %v7012_v4, 4 }
0x1825   : > { %v7017_v35 = vsel %vm1070_vm3, %v7015_v2, %v7016_v22  ;;  %v6976_v2 = vsel %vm12847_vm9, %v6970_v5, %v6975_v26  ;;  %v12052_v22 = vcombine.low %v11901_v45, %v11968_v59  ;;  %vm12852_vm9 = vcmask 785408  }
0x1826   : > { %v7018_v0 = vsel %vm12846_vm10, %v7012_v4, %v7017_v35  ;;  %v6993_v55 = vpop.permute.xlu0 %6992  ;;  %v6991_v8 = vpop.permute.xlu1 %6990  ;;  %vm12851_vm10 = vcmask 900096  }
0x1827   : > { %v12027_v44 = vcombine.low %v7018_v0, %v7028_v62  ;;  %v12029_v53 = vcombine.high %v7018_v0, %v7028_v62  ;;  %v6995_v47 = vrot.slane %v6993_v55, 4  ;;  %v6994_v57 = vrot.slane %v6991_v8, 4 }
0x1829   : > { %v6996_v17 = vsel %vm1070_vm3, %v6994_v57, %v6995_v47  ;;  %7357 = vmatprep.subr.bf16.mxu0 %v12029_v53  ;;  %v12849_v57 = vcombine.low %v11968_v59, %v11972_v9 }
0x182a   : > { %v6997_v60 = vsel %vm12848_vm14, %v6991_v8, %v6996_v17  ;;  %v7076_v13 = vpop.permute.xlu0 %7075  ;;  %7358 = vmatpush2.bf16.msra.mxu0 %v12027_v44  ;;  %v7074_v25 = vpop.permute.xlu1 %7073  ;;  %vm12853_vm14 = vcmask 261120  }
0x182b   : > { %v12036_v31 = vcombine.low %v6976_v2, %v6997_v60  ;;  %v12038_v33 = vcombine.high %v6976_v2, %v6997_v60  ;;  %v7078_v0 = vrot.slane %v7076_v13, 4  ;;  %v7077_v62 = vrot.slane %v7074_v25, 4 }
0x182c   : > { %v12045_v47 = vcombine.high %v11901_v45, %v12849_v57 }
0x182d   : > { %7359 = vmatprep.subr.bf16.mxu0 %v12038_v33  ;;  %v7079_v5 = vsel %vm1070_vm3, %v7077_v62, %v7078_v0 }
0x182e   : > { %v7097_v55 = vpop.permute.xlu0 %7096  ;;  %7360 = vmatpush2.bf16.msra.mxu0 %v12036_v31  ;;  %v7095_v8 = vpop.permute.xlu1 %7094  ;;  %v7080_v9 = vsel %vm12850_vm8, %v7074_v25, %v7079_v5  ;;  %vm12855_vm8 = vcmp.ne.s16.totalorder %v12619_v48, 0 }
0x182f   : > { %v7099_v4 = vrot.slane %v7097_v55, 4  ;;  %v7098_v46 = vrot.slane %v7095_v8, 4  ;;  %7361 = vmatprep.subr.bf16.mxu0 %v12045_v47 }
0x1831   : > { %v7100_v35 = vsel %vm1070_vm3, %v7098_v46, %v7099_v4 }
0x1832   : > { %v7101_v26 = vsel %vm1358_vm11, %v7095_v8, %v7100_v35  ;;  %v7045_v17 = vpop.permute.xlu0 %7044  ;;  %v7043_v2 = vpop.permute.xlu1 %7042  ;;  %7362 = vmatpush2.bf16.msra.mxu0 %v12052_v22 }
0x1833   : > { %v12058_v60 = vcombine.low %v7080_v9, %v7101_v26  ;;  %v12060_v13 = vcombine.high %v7080_v9, %v7101_v26  ;;  %v7047_v0 = vrot.slane %v7045_v17, 4  ;;  %v7046_v62 = vrot.slane %v7043_v2, 4  ;;  %7363 = vmatprep.subr.bf16.mxu0 %v11915_v49  ;;  %v9669_v9 = vld [vmem:[%s12840_s5 + $0x8] ss:$0 sps:$4 sm:$0xff]  }
0x1834   : > { %v9370_v26 = vcombine.low %v12018_v27, %v12018_v27 }
0x1835   : > { %7394 = vmatprep.subr.bf16.mxu1 %v12060_v13  ;;  %v7048_v25 = vsel %vm1070_vm3, %v7046_v62, %v7047_v0 }
0x1836   : > { %v7066_v45 = vpop.permute.xlu0 %7065  ;;  %7395 = vmatpush1.bf16.msra.mxu1 %v12058_v60  ;;  %v7064_v59 = vpop.permute.xlu1 %7063  ;;  %7364 = vmatpush2.bf16.msra.mxu0 %v11913_v19  ;;  %v7049_v5 = vsel %vm12851_vm10, %v7043_v2, %v7048_v25  ;;  %vm12856_vm10 = vcmp.ne.s16.totalorder %v12750_v40, 0 }
0x1837   : > { %v7068_v57 = vrot.slane %v7066_v45, 4  ;;  %v7067_v55 = vrot.slane %v7064_v59, 4  ;;  %7365 = vmatprep.subr.bf16.mxu0 %v11924_v32 }
0x1839   : > { %v7069_v8 = vsel %vm1070_vm3, %v7067_v55, %v7068_v57 }
0x183a   : > { %v7070_v4 = vsel %vm12852_vm9, %v7064_v59, %v7069_v8  ;;  %7366 = vmatpush2.bf16.msra.mxu0 %v11922_v54  ;;  %vm12857_vm9 = vcmp.ne.s16.totalorder %v12753_v15, 0  ;;  %v12866_v15 = vld [vmem:[#allocation28_spill] sm:$0xff] }
0x183b   : > { %v12072_v46 = vcombine.low %v7049_v5, %v7070_v4  ;;  %v12074_v35 = vcombine.high %v7049_v5, %v7070_v4  ;;  %7367 = vmatprep.subr.bf16.mxu0 %v11934_v63 }
0x183d   : > { %7396 = vmatprep.subr.bf16.mxu1 %v12074_v35 }
0x183e   : > { %7368 = vmatpush2.bf16.msra.mxu0 %v11932_v42  ;;  %7397 = vmatpush1.bf16.msra.mxu1 %v12072_v46 }
0x183f   : > { %7369 = vmatprep.subr.bf16.mxu0 %v11946_v52  ;;  %7889 = vmatprep.subr.bf16.mxu1 %v11702_v24 }
0x1841   : > { %9409 = vmatmul.mubr.msk.bf16.vlgmr.msra.gmra.mxu1 %vm12853_vm14, %v9669_v9  ;;  %vm12858_vm14 = vcmp.ne.s16.totalorder %v12617_v1, 0 }
0x1842   : > { %7370 = vmatpush2.bf16.msra.mxu0 %v11941_v43  ;;  %7890 = vmatpush1.bf16.msra.mxu1 %v11700_v11 }
0x1843   : > { %7891 = vmatprep.subr.bf16.mxu1 %v11718_v29  ;;  %7371 = vmatprep.subr.bf16.mxu0 %v11806_v56  ;;  %v7146_v59 = vpop.permute.xlu1 %7145 }
0x1846   : > { %7372 = vmatpush2.bf16.msra.mxu0 %v11804_v28  ;;  %7892 = vmatpush1.bf16.msra.mxu1 %v11716_v21 }
0x1847   : > { %7893 = vmatprep.subr.bf16.mxu1 %v11733_v23 }
0x1849   : > { %7374 = vmatmul.mubr.bf16.vlgmr.msra.gmra.mxu0 %v9370_v26 }
0x184a   : > { %7894 = vmatpush1.bf16.msra.mxu1 %v11731_v34  ;;  %7962 = vmatprep.mubr.bf16.mxu0 %v12835_v30  ;;  %v7592_v30 = vld [vmem:[%s12854_s4] sm:$0xff] }
0x184b   : > { %7895 = vmatprep.subr.bf16.mxu1 %v11736_v20  ;;  %v9423_v27 = vcombine.low %v7592_v30, %v7592_v30  ;;  %v9424_v17 = vcombine.high %v7592_v30, %v7592_v30 }
0x184d   : > { %7921 = vmatprep.mubr.bf16.mxu1 %v9424_v17 }
0x184e   : > { %7896 = vmatpush1.bf16.msra.mxu1 %v11745_v38 }
0x184f   : > { %7897 = vmatprep.subr.bf16.mxu1 %v11754_v58 }
0x1852   : > { %7898 = vmatpush1.bf16.msra.mxu1 %v11752_v14 }
0x1853   : > { %7899 = vmatprep.subr.bf16.mxu1 %v11769_v39 }
0x1856   : > { %7900 = vmatpush1.bf16.msra.mxu1 %v11767_v37 }
0x1857   : > { %7901 = vmatprep.subr.bf16.mxu1 %v11781_v10 }
0x185a   : > { %7902 = vmatpush1.bf16.msra.mxu1 %v11779_v50 }
0x185b   : > { %9574 = vmatprep.subr.msk.bf16.mxu1 %vm1031_vm1, %v11610_v12 }
0x185e   : > { %7904 = vmatpush1.bf16.msra.mxu1 %v11798_v61 }
0x185f   : > { %7905 = vmatprep.subr.bf16.mxu1 %v12029_v53 }
0x1862   : > { %7906 = vmatpush2.bf16.msra.mxu1 %v12027_v44 }
0x1863   : > { %7907 = vmatprep.subr.bf16.mxu1 %v12038_v33 }
0x1866   : > { %7908 = vmatpush2.bf16.msra.mxu1 %v12036_v31 }
0x1867   : > { %7909 = vmatprep.subr.bf16.mxu1 %v12045_v47 }
0x186a   : > { %7910 = vmatpush2.bf16.msra.mxu1 %v12052_v22 }
0x186b   : > { %7911 = vmatprep.subr.bf16.mxu1 %v11915_v49 }
0x186e   : > { %7912 = vmatpush2.bf16.msra.mxu1 %v11913_v19 }
0x186f   : > { %7913 = vmatprep.subr.bf16.mxu1 %v11924_v32 }
0x1872   : > { %7914 = vmatpush2.bf16.msra.mxu1 %v11922_v54 }
0x1873   : > { %7915 = vmatprep.subr.bf16.mxu1 %v11934_v63 }
0x1876   : > { %7916 = vmatpush2.bf16.msra.mxu1 %v11932_v42 }
0x1877   : > { %7917 = vmatprep.subr.bf16.mxu1 %v11946_v52 }
0x187a   : > { %7918 = vmatpush2.bf16.msra.mxu1 %v11941_v43 }
0x187b   : > { %7919 = vmatprep.subr.bf16.mxu1 %v11806_v56 }
0x187e   : > { %7920 = vmatpush2.bf16.msra.mxu1 %v11804_v28 }
0x1881   : > { %7922 = vmatmul.mubr.bf16.vlgmr.msra.gmra.mxu1 %v9423_v27 }
0x1901   : > { %v7416_v2 = vpop.f32.mrf.mxu1 }
0x1903   : > { %v7418_v0 = vpop.f32.mrf.mxu1 }
0x1905   : > { %v7420_v62 = vpop.f32.mrf.mxu1 }
0x1907   : > { %v7421_v45 = vpop.f32.mrf.mxu1 }
0x1909   : > { %v7375_v25 = vpop.f32.mrf.mxu0 }
0x190a   : > { %v7376_v57 = vadd.f32 %v7375_v25, %v7146_v59 }
0x190b   : > { %v7377_v55 = vpop.f32.mrf.mxu0 }
0x190c   : > { %v7417_v8 = vadd.f32 %v7416_v2, %v7376_v57  ;;  %v7378_v5 = vadd.f32 %v7377_v55, %v7146_v59 }
0x190d   : > { %v7379_v4 = vpop.f32.mrf.mxu0 }
0x190e   : > { %v7423_v9 = vmax.f32 %v7417_v8, 0.0  ;;  %v7419_v26 = vadd.f32 %v7418_v0, %v7378_v5  ;;  %v12862_v0 = vld [vmem:[#allocation27_spill] sm:$0xff] }
0x190f   : > { %v7380_v56 = vpop.f32.mrf.mxu0 }
0x1910   : > { %v7425_v28 = vpack.c.bf16 %v7423_v9, %v7423_v9  ;;  %v7424_v43 = vmax.f32 %v7419_v26, 0.0 }
0x1912   : > { %v7426_v52 = vpack.c.bf16 %v7424_v43, %v7424_v43  ;;  %7429 = vrot.lane.b32.xlu0 %v7425_v28, %s12811_s28 }
0x1914   : > { %7431 = vrot.lane.b32.xlu1 %v7426_v52, %s12811_s28 }
0x1941   : > { %v12181_v48 = vpop.f32.mrf.mxu1 }
0x1984   : > { %v7430_v30 = vpop.permute.xlu0 %7429 }
0x1985   : > { %v7436_v17 = vsel %vm1005_vm6, 0, %v7430_v30 }
0x1986   : > { %v7432_v27 = vpop.permute.xlu1 %7431  ;;  %v12137_v43 = vsel %vm1030_vm15, %v7436_v17, 0  ;;  %v7571_v25 = vsel %vm1326_vm0, %v7436_v17, 0  ;;  %v7540_v4 = vsel %vm12857_vm9, %v7436_v17, 0 }
0x1987   : > { %v7433_v62 = vsel %vm1005_vm6, %v7430_v30, %v7432_v27  ;;  %v7439_v2 = vsel %vm1005_vm6, %v7432_v27, 0 }
0x1988   : > { %v9412_v45 = vcombine.low %v7439_v2, %v7439_v2  ;;  %v9411_v59 = vcombine.low %v7436_v17, %v7433_v62  ;;  %v7573_v56 = vsel %vm1328_vm2, %v7439_v2, 0  ;;  %v7572_v28 = vsel %vm1327_vm7, %v7433_v62, 0 }
0x1989   : > { %v12141_v52 = vsel %vm1031_vm1, %v7433_v62, 0  ;;  %v9422_v57 = vcombine.low %v7573_v56, %v7573_v56  ;;  %v9421_v55 = vcombine.low %v7571_v25, %v7572_v28  ;;  %v7542_v8 = vsel %vm12855_vm8, %v7439_v2, 0 }
0x198a   : > { %7563 = vrot.lane.b32.xlu1 %v9412_v45, %s12812_s7  ;;  %7561 = vrot.lane.b32.xlu0 %v9411_v59, %s12812_s7  ;;  %v7541_v5 = vsel %vm12856_vm10, %v7433_v62, 0  ;;  %v9420_v9 = vcombine.low %v7542_v8, %v7542_v8  ;;  %v7521_v30 = vsel %vm1215_vm13, %v7439_v2, 0  ;;  %v7520_v27 = vsel %vm1214_vm12, %v7433_v62, 0 }
0x198b   : > { %v9419_v26 = vcombine.low %v7540_v4, %v7541_v5  ;;  %v7519_v56 = vsel %vm12858_vm14, %v7436_v17, 0  ;;  %v9418_v28 = vcombine.low %v7521_v30, %v7521_v30  ;;  %v7468_v8 = vsel %vm1101_vm4, %v7433_v62, 0  ;;  %v12860_v5 = vld [vmem:[#allocation30_spill] sm:$0xff] }
0x198c   : > { %v9417_v25 = vcombine.low %v7519_v56, %v7520_v27  ;;  %vm12861_vm8 = vcmp.ne.s16.totalorder %v12860_v5, 0  ;;  %vm12863_vm10 = vcmp.ne.s16.totalorder %v12862_v0, 0  ;;  %v12864_v27 = vld [vmem:[#allocation29_spill] sm:$0xff]  ;;  %vm12867_vm14 = vcmp.ne.s16.totalorder %v12866_v15, 0 }
0x198d   : > { %v7467_v4 = vsel %vm12861_vm8, %v7436_v17, 0  ;;  %v7490_v30 = vsel %vm12863_vm10, %v7439_v2, 0  ;;  %vm12865_vm9 = vcmp.ne.s16.totalorder %v12864_v27, 0  ;;  %vm12869_vm8 = vcmask 777216  }
0x198e   : > { %7511 = vrot.lane.b32.xlu1 %v9412_v45, %s12762_s2  ;;  %7509 = vrot.lane.b32.xlu0 %v9411_v59, %s12762_s2  ;;  %v7489_v56 = vsel %vm12865_vm9, %v7433_v62, 0  ;;  %vm12870_vm10 = vcmask 785408   ;;  %vm12871_vm9 = vcmask 908288  }
0x1992   : > { %7584 = vrot.lane.b32.xlu1 %v9422_v57, %s12793_s3  ;;  %7582 = vrot.lane.b32.xlu0 %v9421_v55, %s12793_s3  ;;  %v7469_v57 = vsel %vm1102_vm5, %v7439_v2, 0  ;;  %v7594_v2 = vld [vmem:[%s9896_s8] sm:$0xff] }
0x1996   : > { %7553 = vrot.lane.b32.xlu1 %v9420_v9, %s12759_s11  ;;  %7551 = vrot.lane.b32.xlu0 %v9419_v26, %s12759_s11  ;;  %v9414_v9 = vcombine.low %v7469_v57, %v7469_v57  ;;  %v9413_v26 = vcombine.low %v7467_v4, %v7468_v8  ;;  %v12185_v57 = vpop.f32.mrf.mxu1 }
0x1998   : > { %v7927_v62 = vpop.f32.mrf.mxu1 }
0x199a   : > { %7532 = vrot.lane.b32.xlu1 %v9418_v28, %s12785_s15  ;;  %7530 = vrot.lane.b32.xlu0 %v9417_v25, %s12785_s15  ;;  %v7488_v28 = vsel %vm12867_vm14, %v7436_v17, 0  ;;  %v9416_v25 = vcombine.low %v7490_v30, %v7490_v30  ;;  %v7928_v8 = vpop.f32.mrf.mxu1  ;;  %vm12872_vm14 = vcmask 900096  }
0x199b   : > { %v9415_v40 = vcombine.low %v7488_v28, %v7489_v56 }
0x199e   : > { %7480 = vrot.lane.b32.xlu1 %v9414_v9, %s12791_s0  ;;  %7478 = vrot.lane.b32.xlu0 %v9413_v26, %s12791_s0 }
0x19a2   : > { %7501 = vrot.lane.b32.xlu1 %v9416_v25, %s12823_s6  ;;  %7499 = vrot.lane.b32.xlu0 %v9415_v40, %s12823_s6 }
0x19a6   : > { %7459 = vrot.lane.b32.xlu1 %v9412_v45, %s12725_s1  ;;  %7457 = vrot.lane.b32.xlu0 %v9411_v59, %s12725_s1 }
0x19aa   : > { %7642 = vperm.xlu0 %9631, %v7594_v2  }
0x19fc   : > { %v7564_v4 = vpop.permute.xlu1 %7563  ;;  %v7562_v17 = vpop.permute.xlu0 %7561 }
0x19fd   : > { %v7566_v30 = vrot.slane %v7564_v4, 4  ;;  %v7565_v56 = vrot.slane %v7562_v17, 4 }
0x19ff   : > { %v7567_v45 = vsel %vm1070_vm3, %v7565_v56, %v7566_v30 }
0x1a00   : > { %v7512_v9 = vpop.permute.xlu1 %7511  ;;  %v7510_v26 = vpop.permute.xlu0 %7509 }
0x1a01   : > { %v7514_v0 = vrot.slane %v7512_v9, 4  ;;  %v7513_v59 = vrot.slane %v7510_v26, 4  ;;  %v7568_v9 = vsel %vm12869_vm8, %v7562_v17, %v7567_v45  ;;  %vm12874_vm8 = vcmask 1031168  }
0x1a04   : > { %v7585_v28 = vpop.permute.xlu1 %7584  ;;  %v7583_v25 = vpop.permute.xlu0 %7582 }
0x1a05   : > { %v7587_v15 = vrot.slane %v7585_v28, 4  ;;  %v7586_v40 = vrot.slane %v7583_v25, 4 }
0x1a07   : > { %v7588_v27 = vsel %vm1070_vm3, %v7586_v40, %v7587_v15 }
0x1a08   : > { %v12193_v62 = vsel %vm1358_vm11, %v7583_v25, %v7588_v27  ;;  %v7554_v2 = vpop.permute.xlu1 %7553  ;;  %v7552_v8 = vpop.permute.xlu0 %7551  ;;  %v7515_v27 = vsel %vm1070_vm3, %v7513_v59, %v7514_v0 }
0x1a09   : > { %12868 = vst [vmem:[#allocation41_spill] sm:$0xff] %v12193_v62  ;;  %v9471_v1 = vcombine.high %v12193_v62, %v12193_v62  ;;  %v7556_v4 = vrot.slane %v7554_v2, 4  ;;  %v7555_v41 = vrot.slane %v7552_v8, 4  ;;  %v9470_v28 = vcombine.low %v12193_v62, %v12193_v62 }
0x1a0b   : > { %v7557_v36 = vsel %vm1070_vm3, %v7555_v41, %v7556_v4  ;;  %9472 = vmatprep.subr.msk.bf16.mxu0 %vm1070_vm3, %v9471_v1  ;;  %v7884_v15 = vsel %vm1070_vm3, %v9470_v28, 0  ;;  %v7516_v1 = vsel %vm12871_vm9, %v7510_v26, %v7515_v27  ;;  %vm12876_vm9 = vcmask 1039360  }
0x1a0c   : > { %v7558_v30 = vsel %vm12870_vm10, %v7552_v8, %v7557_v36  ;;  %v7533_v56 = vpop.permute.xlu1 %7532  ;;  %7933 = vmatpush1.bf16.msra.mxu0 %v7884_v15  ;;  %v7531_v25 = vpop.permute.xlu0 %7530  ;;  %vm12875_vm10 = vcmask 916480  }
0x1a0d   : > { %v12205_v40 = vcombine.low %v7558_v30, %v7568_v9  ;;  %v12207_v2 = vcombine.high %v7558_v30, %v7568_v9  ;;  %v7535_v62 = vrot.slane %v7533_v56, 4  ;;  %v7534_v6 = vrot.slane %v7531_v25, 4 }
0x1a0f   : > { %v7536_v41 = vsel %vm1070_vm3, %v7534_v6, %v7535_v62  ;;  %7934 = vmatprep.subr.bf16.mxu0 %v12207_v2 }
0x1a10   : > { %v7537_v17 = vsel %vm12872_vm14, %v7531_v25, %v7536_v41  ;;  %v7481_v0 = vpop.permute.xlu1 %7480  ;;  %7935 = vmatpush1.bf16.msra.mxu0 %v12205_v40  ;;  %v7479_v36 = vpop.permute.xlu0 %7478  ;;  %vm12878_vm14 = vcmask 850944  }
0x1a11   : > { %v12214_v45 = vcombine.low %v7516_v1, %v7537_v17  ;;  %v12216_v59 = vcombine.high %v7516_v1, %v7537_v17  ;;  %v7483_v8 = vrot.slane %v7481_v0, 4  ;;  %v7482_v4 = vrot.slane %v7479_v36, 4 }
0x1a13   : > { %12873 = vst [vmem:[#allocation46_spill] sm:$0xff] %v12214_v45  ;;  %7936 = vmatprep.subr.bf16.mxu0 %v12216_v59  ;;  %v7484_v26 = vsel %vm1070_vm3, %v7482_v4, %v7483_v8  ;;  %v12877_v4 = vcombine.low %v12137_v43, %v12141_v52 }
0x1a14   : > { %v7502_v28 = vpop.permute.xlu1 %7501  ;;  %7937 = vmatpush1.bf16.msra.mxu0 %v12214_v45  ;;  %v7500_v6 = vpop.permute.xlu0 %7499  ;;  %v7485_v27 = vsel %vm12874_vm8, %v7479_v36, %v7484_v26  ;;  %vm12884_vm8 = vcmp.ne.s16.totalorder %v12860_v5, 0 }
0x1a15   : > { %v7504_v62 = vrot.slane %v7502_v28, 4  ;;  %v7503_v15 = vrot.slane %v7500_v6, 4 }
0x1a17   : > { %v7505_v9 = vsel %vm1070_vm3, %v7503_v15, %v7504_v62 }
0x1a18   : > { %v7506_v30 = vsel %vm12875_vm10, %v7500_v6, %v7505_v9  ;;  %v7460_v56 = vpop.permute.xlu1 %7459  ;;  %v7458_v25 = vpop.permute.xlu0 %7457  ;;  %vm12907_vm10 = vcmask 777216  }
0x1a19   : > { %v12224_v41 = vcombine.low %v7485_v27, %v7506_v30  ;;  %v12226_v1 = vcombine.high %v7485_v27, %v7506_v30  ;;  %v7462_v17 = vrot.slane %v7460_v56, 4  ;;  %v7461_v0 = vrot.slane %v7458_v25, 4 }
0x1a1b   : > { %v7463_v45 = vsel %vm1070_vm3, %v7461_v0, %v7462_v17  ;;  %7938 = vmatprep.subr.bf16.mxu0 %v12226_v1  ;;  %v12890_v17 = vld [vmem:[#allocation22_spill] sm:$0xff] }
0x1a1c   : > { %v7464_v8 = vsel %vm12876_vm9, %v7458_v25, %v7463_v45  ;;  %7939 = vmatpush1.bf16.msra.mxu0 %v12224_v41  ;;  %v9674_v45 = vld [vmem:[%s12854_s4 + $0x8] ss:$0 sps:$4 sm:$0xff]   ;;  %s12879_s4 = sld [smem:[#allocation12_spill]] }
0x1a1d   : > { %v12233_v36 = vcombine.low %v12137_v43, %v7464_v8  ;;  %v12238_v28 = vcombine.high %v12877_v4, %v7464_v8  ;;  %v12892_v8 = vld [vmem:[#allocation23_spill] sm:$0xff] }
0x1a1f   : > { %7940 = vmatprep.subr.bf16.mxu0 %v12238_v28 }
0x1a20   : > { %7941 = vmatpush1.bf16.msra.mxu0 %v12233_v36 }
0x1a21   : > { %7942 = vmatprep.subr.bf16.mxu0 %v12060_v13 }
0x1a24   : > { %7943 = vmatpush1.bf16.msra.mxu0 %v12058_v60 }
0x1a25   : > { %7944 = vmatprep.subr.bf16.mxu0 %v12074_v35 }
0x1a28   : > { %7945 = vmatpush1.bf16.msra.mxu0 %v12072_v46 }
0x1a29   : > { %8502 = vmatprep.subr.bf16.mxu0 %v11702_v24  ;;  %v12882_v24 = vld [vmem:[#allocation45_spill] sm:$0xff] }
0x1a2b   : > { %9473 = vmatmul.mubr.msk.bf16.vlgmr.msra.gmra.mxu0 %vm12878_vm14, %v9674_v45  ;;  %v12894_v45 = vld [vmem:[#allocation21_spill] sm:$0xff]  ;;  %vm12910_vm14 = vcmask 908288  }
0x1a2c   : > { %8503 = vmatpush1.bf16.msra.mxu0 %v11700_v11  ;;  %v12881_v11 = vld [vmem:[#allocation44_spill] sm:$0xff] }
0x1a2d   : > { %8504 = vmatprep.subr.bf16.mxu0 %v11718_v29  ;;  %v9675_v29 = vld [vmem:[%s12879_s4] ss:$16 sps:$4 sm:$0xff]  }
0x1a30   : > { %8505 = vmatpush1.bf16.msra.mxu0 %v11716_v21  ;;  %v12883_v21 = vld [vmem:[#allocation43_spill] sm:$0xff] }
0x1a31   : > { %8506 = vmatprep.subr.bf16.mxu0 %v11733_v23  ;;  %v7643_v23 = vpop.permute.xlu0 %7642 }
0x1a34   : > { %8507 = vmatpush1.bf16.msra.mxu0 %v11731_v34  ;;  %v9677_v34 = vld [vmem:[%s12879_s4 + $0x4] ss:$16 sps:$4 sm:$0xff]  }
0x1a35   : > { %8508 = vmatprep.subr.bf16.mxu0 %v11736_v20  ;;  %8534 = vmatprep.mubr.bf16.mxu0 %v9677_v34  ;;  %v7924_v20 = vadd.f32 %v12181_v48, %v7643_v23  ;;  %v12898_v34 = vld [vmem:[#allocation29_spill] sm:$0xff] }
0x1a38   : > { %8509 = vmatpush1.bf16.msra.mxu0 %v11745_v38 }
0x1a39   : > { %8510 = vmatprep.subr.bf16.mxu0 %v11754_v58 }
0x1a3c   : > { %8511 = vmatpush1.bf16.msra.mxu0 %v11752_v14  ;;  %v7926_v14 = vadd.f32 %v12185_v57, %v7643_v23 }
0x1a3d   : > { %8512 = vmatprep.subr.bf16.mxu0 %v11769_v39 }
0x1a40   : > { %8513 = vmatpush1.bf16.msra.mxu0 %v11767_v37 }
0x1a41   : > { %8514 = vmatprep.subr.bf16.mxu0 %v11781_v10 }
0x1a44   : > { %8515 = vmatpush1.bf16.msra.mxu0 %v11779_v50 }
0x1a45   : > { %9576 = vmatprep.subr.msk.bf16.mxu0 %vm1031_vm1, %v11610_v12  ;;  %v12880_v12 = vld [vmem:[#allocation42_spill] sm:$0xff] }
0x1a48   : > { %8517 = vmatpush1.bf16.msra.mxu0 %v11798_v61 }
0x1a49   : > { %8518 = vmatprep.subr.bf16.mxu0 %v12029_v53 }
0x1a4c   : > { %8519 = vmatpush2.bf16.msra.mxu0 %v12027_v44 }
0x1a4d   : > { %8520 = vmatprep.subr.bf16.mxu0 %v12038_v33 }
0x1a50   : > { %8521 = vmatpush2.bf16.msra.mxu0 %v12036_v31 }
0x1a51   : > { %8522 = vmatprep.subr.bf16.mxu0 %v12045_v47 }
0x1a54   : > { %8523 = vmatpush2.bf16.msra.mxu0 %v12052_v22 }
0x1a55   : > { %8524 = vmatprep.subr.bf16.mxu0 %v11915_v49 }
0x1a58   : > { %8525 = vmatpush2.bf16.msra.mxu0 %v11913_v19 }
0x1a59   : > { %8526 = vmatprep.subr.bf16.mxu0 %v11924_v32 }
0x1a5c   : > { %8527 = vmatpush2.bf16.msra.mxu0 %v11922_v54 }
0x1a5d   : > { %8528 = vmatprep.subr.bf16.mxu0 %v11934_v63 }
0x1a60   : > { %8529 = vmatpush2.bf16.msra.mxu0 %v11932_v42 }
0x1a61   : > { %8530 = vmatprep.subr.bf16.mxu0 %v12880_v12 }
0x1a64   : > { %8531 = vmatpush2.bf16.msra.mxu0 %v12881_v11 }
0x1a65   : > { %8532 = vmatprep.subr.bf16.mxu0 %v12882_v24 }
0x1a68   : > { %8533 = vmatpush2.bf16.msra.mxu0 %v12883_v21  ;;  %v12896_v21 = vld [vmem:[#allocation27_spill] sm:$0xff] }
0x1a6b   : > { %8535 = vmatmul.mubr.bf16.vlgmr.msra.gmra.mxu0 %v9675_v29 }
0x1aeb   : > { %v7964_v38 = vpop.f32.mrf.mxu0 }
0x1aec   : > { %v7965_v58 = vadd.f32 %v7964_v38, %v7924_v20  ;;  %v12900_v20 = vld [vmem:[#allocation28_spill] sm:$0xff] }
0x1aed   : > { %v7966_v37 = vpop.f32.mrf.mxu0 }
0x1aee   : > { %v7971_v39 = vmax.f32 %v7965_v58, 0.0  ;;  %v7967_v50 = vadd.f32 %v7966_v37, %v7926_v14  ;;  %v8145_v37 = vld [vmem:[%s9901_s24 + $0x8] sm:$0xff] }
0x1aef   : > { %v7968_v10 = vpop.f32.mrf.mxu0 }
0x1af0   : > { %v7973_v61 = vpack.c.bf16 %v7971_v39, %v7971_v39  ;;  %v7972_v19 = vmax.f32 %v7967_v50, 0.0  ;;  %v8144_v39 = vld [vmem:[%s9901_s24] sm:$0xff]  ;;  %v9678_v50 = vld [vmem:[%s12879_s4 + $0xc] ss:$16 sps:$4 sm:$0xff]  }
0x1af1   : > { %v7969_v49 = vpop.f32.mrf.mxu0 }
0x1af2   : > { %v7974_v54 = vpack.c.bf16 %v7972_v19, %v7972_v19  ;;  %7977 = vrot.lane.b32.xlu1 %v7973_v61, %s12811_s28 }
0x1af4   : > { %7979 = vrot.lane.b32.xlu0 %v7974_v54, %s12811_s28 }
0x1b64   : > { %v7978_v32 = vpop.permute.xlu1 %7977 }
0x1b65   : > { %v7984_v48 = vsel %vm1005_vm6, 0, %v7978_v32 }
0x1b66   : > { %v7980_v42 = vpop.permute.xlu0 %7979  ;;  %v8015_v22 = vsel %vm12884_vm8, %v7984_v48, 0  ;;  %v12301_v57 = vsel %vm1030_vm15, %v7984_v48, 0  ;;  %v8119_v18 = vsel %vm1326_vm0, %v7984_v48, 0  ;;  %vm12893_vm15 = vcmp.ne.s16.totalorder %v12892_v8, 0 }
0x1b67   : > { %v7981_v63 = vsel %vm1005_vm6, %v7978_v32, %v7980_v42  ;;  %v7987_v44 = vsel %vm1005_vm6, %v7980_v42, 0  ;;  %vm12889_vm6 = vcmp.ne.s16.totalorder %v12888_v3, 0  ;;  %vm12899_vm0 = vcmp.ne.s16.totalorder %v12898_v34, 0 }
0x1b68   : > { %v9476_v53 = vcombine.low %v7987_v44, %v7987_v44  ;;  %v9475_v31 = vcombine.low %v7984_v48, %v7981_v63  ;;  %v8017_v33 = vsel %vm1102_vm5, %v7987_v44, 0  ;;  %v8016_v47 = vsel %vm1101_vm4, %v7981_v63, 0  ;;  %vm12903_vm4 = vmmov %vm12876_vm9 }
0x1b69   : > { %v9478_v43 = vcombine.low %v8017_v33, %v8017_v33  ;;  %v9477_v52 = vcombine.low %v8015_v22, %v8016_v47  ;;  %v7990_v51 = vsel %vm1031_vm1, %v7981_v63, 0  ;;  %v8121_v6 = vsel %vm1328_vm2, %v7987_v44, 0 }
0x1b6a   : > { %8007 = vrot.lane.b32.xlu0 %v9476_v53, %s12725_s1  ;;  %8005 = vrot.lane.b32.xlu1 %v9475_v31, %s12725_s1  ;;  %v9474_v55 = vcombine.low %v12301_v57, %v7990_v51  ;;  %v8120_v5 = vsel %vm1327_vm7, %v7981_v63, 0  ;;  %v9486_v26 = vcombine.low %v8121_v6, %v8121_v6  ;;  %v8069_v9 = vsel %vm1215_vm13, %v7987_v44, 0 }
0x1b6b   : > { %v9485_v62 = vcombine.low %v8119_v18, %v8120_v5  ;;  %v8068_v30 = vsel %vm1214_vm12, %v7981_v63, 0  ;;  %v8067_v7 = vsel %vm12889_vm6, %v7984_v48, 0  ;;  %v9482_v56 = vcombine.low %v8069_v9, %v8069_v9  ;;  %v12906_v9 = vld [vmem:[#allocation46_spill] sm:$0xff] }
0x1b6c   : > { %v9481_v25 = vcombine.low %v8067_v7, %v8068_v30  ;;  %vm12891_vm7 = vcmp.ne.s16.totalorder %v12890_v17, 0  ;;  %v8089_v4 = vsel %vm12893_vm15, %v7981_v63, 0  ;;  %vm12895_vm12 = vcmp.ne.s16.totalorder %v12894_v45, 0 }
0x1b6d   : > { %v8090_v0 = vsel %vm12891_vm7, %v7987_v44, 0  ;;  %v8088_v12 = vsel %vm12895_vm12, %v7984_v48, 0  ;;  %vm12897_vm13 = vcmp.ne.s16.totalorder %v12896_v21, 0  ;;  %v8037_v23 = vsel %vm12899_vm0, %v7981_v63, 0 }
0x1b6e   : > { %8028 = vrot.lane.b32.xlu0 %v9478_v43, %s12791_s0  ;;  %8026 = vrot.lane.b32.xlu1 %v9477_v52, %s12791_s0  ;;  %v9484_v11 = vcombine.low %v8090_v0, %v8090_v0  ;;  %v9483_v24 = vcombine.low %v8088_v12, %v8089_v4  ;;  %v8038_v29 = vsel %vm12897_vm13, %v7987_v44, 0  ;;  %vm12901_vm1 = vcmp.ne.s16.totalorder %v12900_v20, 0  ;;  %v12905_v52 = vld [vmem:[#allocation41_spill] sm:$0xff] }
0x1b6f   : > { %v8036_v38 = vsel %vm12901_vm1, %v7984_v48, 0  ;;  %v9480_v14 = vcombine.low %v8038_v29, %v8038_v29  ;;  %vm12902_vm2 = vcmask 392192   ;;  %vm12904_vm5 = vcmask 1031168  }
0x1b70   : > { %v9479_v58 = vcombine.low %v8036_v38, %v8037_v23  ;;  %9545 = vmatprep.mubr.msk.bf16.mxu1 %vm12902_vm2, %v9678_v50  ;;  %v9536_v51 = vcombine.high %v12905_v52, %v9474_v55  ;;  %v9575_v16 = vcombine.low %v12905_v52, %v12301_v57  ;;  %vm12908_vm9 = vcmask 785408  }
0x1b71   : > { %vm12911_vm8 = vcmask 916480  }
0x1b72   : > { %8111 = vrot.lane.b32.xlu0 %v9476_v53, %s12812_s7  ;;  %8109 = vrot.lane.b32.xlu1 %v9475_v31, %s12812_s7 }
0x1b76   : > { %8132 = vrot.lane.b32.xlu0 %v9486_v26, %s12793_s3  ;;  %8130 = vrot.lane.b32.xlu1 %v9485_v62, %s12793_s3  ;;  %s12914_s3 = sshll.u32 %s12918_s23, 5 }
0x1b7a   : > { %8080 = vrot.lane.b32.xlu0 %v9482_v56, %s12785_s15  ;;  %8078 = vrot.lane.b32.xlu1 %v9481_v25, %s12785_s15 }
0x1b7e   : > { %8101 = vrot.lane.b32.xlu0 %v9484_v11, %s12759_s11  ;;  %8099 = vrot.lane.b32.xlu1 %v9483_v24, %s12759_s11 }
0x1b82   : > { %8049 = vrot.lane.b32.xlu0 %v9480_v14, %s12823_s6  ;;  %8047 = vrot.lane.b32.xlu1 %v9479_v58, %s12823_s6  ;;  %v9680_v58 = vld [vmem:[%s12879_s4 + $0x8] ss:$16 sps:$4 sm:$0xff]   ;;  %s958_s6 = scalar_lea.vmem %s9906_s19, %s12914_s3 }
0x1b86   : > { %8059 = vrot.lane.b32.xlu0 %v9476_v53, %s12762_s2  ;;  %8057 = vrot.lane.b32.xlu1 %v9475_v31, %s12762_s2 }
0x1b8a   : > { %8207 = vperm.xlu0 %9631, %v8145_v37   ;;  %8202 = vperm.xlu1 %9632, %v8144_v39   ;;  %v8536_v37 = vpop.f32.mrf.mxu0 }
0x1b8c   : > { %v8538_v39 = vpop.f32.mrf.mxu0 }
0x1bdc   : > { %v8008_v10 = vpop.permute.xlu0 %8007  ;;  %v8006_v61 = vpop.permute.xlu1 %8005 }
0x1bdd   : > { %v8010_v19 = vrot.slane %v8008_v10, 4  ;;  %v8009_v49 = vrot.slane %v8006_v61, 4  ;;  %v8540_v10 = vpop.f32.mrf.mxu0 }
0x1bdf   : > { %v8011_v42 = vsel %vm1070_vm3, %v8009_v49, %v8010_v19 }
0x1be0   : > { %v8029_v54 = vpop.permute.xlu0 %8028  ;;  %v8027_v32 = vpop.permute.xlu1 %8026  ;;  %v8012_v53 = vsel %vm12903_vm4, %v8006_v61, %v8011_v42 }
0x1be1   : > { %v8031_v48 = vrot.slane %v8029_v54, 4  ;;  %v8030_v63 = vrot.slane %v8027_v32, 4  ;;  %v8542_v42 = vpop.f32.mrf.mxu0 }
0x1be3   : > { %v8032_v44 = vsel %vm1070_vm3, %v8030_v63, %v8031_v48 }
0x1be4   : > { %v8033_v31 = vsel %vm12904_vm5, %v8027_v32, %v8032_v44  ;;  %v8112_v33 = vpop.permute.xlu0 %8111  ;;  %v8110_v47 = vpop.permute.xlu1 %8109 }
0x1be5   : > { %v9537_v22 = vcombine.low %v8012_v53, %v8033_v31  ;;  %v9538_v43 = vcombine.high %v8012_v53, %v8033_v31  ;;  %v8114_v3 = vrot.slane %v8112_v33, 4 }
0x1be7   : > { %8545 = vmatprep.subr.bf16.mxu1 %v9538_v43 }
0x1be8   : > { %v8133_v6 = vpop.permute.xlu0 %8132  ;;  %8546 = vmatpush1.bf16.msra.mxu1 %v9537_v22  ;;  %v8131_v5 = vpop.permute.xlu1 %8130 }
0x1be9   : > { %8547 = vmatprep.subr.bf16.mxu1 %v9536_v51  ;;  %v8135_v57 = vrot.slane %v8133_v6, 4  ;;  %v8134_v30 = vrot.slane %v8131_v5, 4 }
0x1bec   : > { %v8081_v18 = vpop.permute.xlu0 %8080  ;;  %v8079_v26 = vpop.permute.xlu1 %8078  ;;  %8548 = vmatpush1.bf16.msra.mxu1 %v9575_v16 }
0x1bed   : > { %8549 = vmatprep.subr.bf16.mxu1 %v12207_v2  ;;  %v8113_v2 = vrot.slane %v8110_v47, 4  ;;  %v8083_v17 = vrot.slane %v8081_v18, 4 }
0x1bef   : > { %v8115_v25 = vsel %vm1070_vm3, %v8113_v2, %v8114_v3 }
0x1bf0   : > { %8550 = vmatpush1.bf16.msra.mxu1 %v12205_v40  ;;  %v8102_v62 = vpop.permute.xlu0 %8101  ;;  %v8100_v15 = vpop.permute.xlu1 %8099  ;;  %v8136_v40 = vsel %vm1070_vm3, %v8134_v30, %v8135_v57  ;;  %v8116_v4 = vsel %vm12907_vm10, %v8110_v47, %v8115_v25  ;;  %v12912_v47 = vld [vmem:[#allocation39_spill] sm:$0xff]  ;;  %v9686_v30 = vld [vmem:[%s9924_s26 + $0x8] sm:$0xff]  ;;  %v9688_v25 = vld [vmem:[%s9924_s26 + $0x18] sm:$0xff] }
0x1bf1   : > { %8551 = vmatprep.subr.bf16.mxu1 %v12216_v59  ;;  %v8104_v59 = vrot.slane %v8102_v62, 4  ;;  %v8103_v7 = vrot.slane %v8100_v15, 4  ;;  %v8137_v0 = vsel %vm1358_vm11, %v8131_v5, %v8136_v40  ;;  %vm12909_vm11 = vcmask 900096   ;;  %v12913_v5 = vld [vmem:[#allocation33_spill] sm:$0xff]  ;;  %v12916_v40 = vld [vmem:[#allocation40_spill] sm:$0xff] }
0x1bf2   : > { %v9544_v45 = vcombine.high %v8116_v4, %v8137_v0  ;;  %v9543_v21 = vcombine.low %v8116_v4, %v8137_v0  ;;  %v9685_v62 = vld [vmem:[%s9924_s26] sm:$0xff] }
0x1bf4   : > { %8552 = vmatpush1.bf16.msra.mxu1 %v12906_v9  ;;  %v8050_v55 = vpop.permute.xlu0 %8049  ;;  %v8048_v27 = vpop.permute.xlu1 %8047 }
0x1bf5   : > { %8553 = vmatprep.subr.bf16.mxu1 %v12226_v1  ;;  %v8052_v12 = vrot.slane %v8050_v55, 4  ;;  %v8051_v11 = vrot.slane %v8048_v27, 4  ;;  %v12915_v55 = vld [vmem:[#allocation38_spill] sm:$0xff] }
0x1bf8   : > { %8554 = vmatpush1.bf16.msra.mxu1 %v12224_v41  ;;  %v8060_v56 = vpop.permute.xlu0 %8059  ;;  %v8058_v1 = vpop.permute.xlu1 %8057  ;;  %v8082_v41 = vrot.slane %v8079_v26, 4 }
0x1bf9   : > { %8555 = vmatprep.subr.bf16.mxu1 %v12238_v28  ;;  %v8105_v28 = vsel %vm1070_vm3, %v8103_v7, %v8104_v59  ;;  %v8062_v8 = vrot.slane %v8060_v56, 4  ;;  %v9687_v7 = vld [vmem:[%s9924_s26 + $0x10] sm:$0xff] }
0x1bfa   : > { %v8106_v24 = vsel %vm12908_vm9, %v8100_v15, %v8105_v28 }
0x1bfc   : > { %8556 = vmatpush1.bf16.msra.mxu1 %v12233_v36  ;;  %v8061_v36 = vrot.slane %v8058_v1, 4 }
0x1bfd   : > { %8557 = vmatprep.subr.bf16.mxu1 %v12060_v13  ;;  %v8084_v13 = vsel %vm1070_vm3, %v8082_v41, %v8083_v17 }
0x1bfe   : > { %v8085_v29 = vsel %vm12909_vm11, %v8079_v26, %v8084_v13 }
0x1bff   : > { %v9542_v34 = vcombine.high %v8085_v29, %v8106_v24  ;;  %v9541_v20 = vcombine.low %v8085_v29, %v8106_v24 }
0x1c00   : > { %8558 = vmatpush1.bf16.msra.mxu1 %v12058_v60  ;;  %v8063_v60 = vsel %vm1070_vm3, %v8061_v36, %v8062_v8 }
0x1c01   : > { %8559 = vmatprep.subr.bf16.mxu1 %v12074_v35  ;;  %v8053_v35 = vsel %vm1070_vm3, %v8051_v11, %v8052_v12  ;;  %v8064_v23 = vsel %vm12910_vm14, %v8058_v1, %v8063_v60 }
0x1c02   : > { %v8054_v38 = vsel %vm12911_vm8, %v8048_v27, %v8053_v35 }
0x1c03   : > { %v9540_v14 = vcombine.high %v8054_v38, %v8064_v23 }
0x1c04   : > { %8560 = vmatpush1.bf16.msra.mxu1 %v12072_v46  ;;  %v9539_v46 = vcombine.low %v8054_v38, %v8064_v23 }
0x1c05   : > { %8571 = vmatprep.subr.bf16.mxu1 %v9544_v45  ;;  %v8203_v50 = vpop.permute.xlu1 %8202  ;;  %v8208_v19 = vpop.permute.xlu0 %8207 }
0x1c06   : > { %v8537_v61 = vadd.f32 %v8536_v37, %v8203_v50  ;;  %v8539_v54 = vadd.f32 %v8538_v39, %v8203_v50  ;;  %v8541_v63 = vadd.f32 %v8540_v10, %v8208_v19  ;;  %v8543_v33 = vadd.f32 %v8542_v42, %v8208_v19 }
0x1c08   : > { %8572 = vmatpush2.bf16.msra.mxu1 %v9543_v21 }
0x1c09   : > { %8573 = vmatprep.subr.bf16.mxu1 %v9542_v34 }
0x1c0c   : > { %8574 = vmatpush2.bf16.msra.mxu1 %v9541_v20 }
0x1c0d   : > { %8575 = vmatprep.subr.bf16.mxu1 %v9540_v14 }
0x1c10   : > { %8576 = vmatpush2.bf16.msra.mxu1 %v9539_v46 }
0x1c13   : > { %8578 = vmatmul.mubr.bf16.vlgmr.msra.gmra.mxu1 %v9680_v58 }
0x1cd3   : > { %v8579_v49 = vpop.f32.mrf.mxu1 }
0x1cd4   : > { %v8580_v32 = vadd.f32 %v8579_v49, %v8537_v61 }
0x1cd5   : > { %v8581_v48 = vpop.f32.mrf.mxu1 }
0x1cd6   : > { %v8588_v44 = vmul.f32 0.2, %v8580_v32  ;;  %v8582_v53 = vadd.f32 %v8581_v48, %v8539_v54 }
0x1cd7   : > { %v8583_v31 = vpop.f32.mrf.mxu1 }
0x1cd8   : > { %v8592_v22 = vadd.f32 %v8588_v44, %v12912_v47  ;;  %v8589_v43 = vmul.f32 0.2, %v8582_v53  ;;  %v8584_v52 = vadd.f32 %v8583_v31, %v8541_v63 }
0x1cd9   : > { %v8585_v51 = vpop.f32.mrf.mxu1 }
0x1cda   : > { %v8596_v6 = vmul.f32 0.2, %v8592_v22  ;;  %v8593_v16 = vadd.f32 %v8589_v43, %v12913_v5  ;;  %v8590_v18 = vmul.f32 0.2, %v8584_v52  ;;  %v8586_v26 = vadd.f32 %v8585_v51, %v8543_v33 }
0x1cdc   : > { %v8600_v15 = vadd.f32 %v9685_v62, %v8596_v6  ;;  %v8597_v9 = vmul.f32 0.2, %v8593_v16  ;;  %v8594_v27 = vadd.f32 %v8590_v18, %v12915_v55  ;;  %v8591_v57 = vmul.f32 0.2, %v8586_v26 }
0x1cde   : > { %8604 = vst [vmem:[%s958_s6] sm:$0xff] %v8600_v15  ;;  %v8601_v3 = vadd.f32 %v9686_v30, %v8597_v9  ;;  %v8598_v2 = vmul.f32 0.2, %v8594_v27  ;;  %v8595_v59 = vadd.f32 %v8591_v57, %v12916_v40 }
0x1ce0   : > { %8605 = vst [vmem:[%s958_s6 + $0x8] sm:$0xff] %v8601_v3  ;;  %v8602_v56 = vadd.f32 %v9687_v7, %v8598_v2  ;;  %v8599_v1 = vmul.f32 0.2, %v8595_v59 }
0x1ce2   : > { %8606 = vst [vmem:[%s958_s6 + $0x10] sm:$0xff] %v8602_v56  ;;  %v8603_v17 = vadd.f32 %v9688_v25, %v8599_v1 }
0x1ce4   : > { %8607 = vst [vmem:[%s958_s6 + $0x18] sm:$0xff] %v8603_v17 }
0x1ce5 PF: > { %s73_s22 = sadd.s32 1, %s9695_s22  }
0x1ce6   : > { %p70_p4 = scmp.ge.s32.totalorder %s73_s22, 4  }
0x1ce8   :  { %72 = sbr.rel (!%p70_p4) target bundleno = 54 (0x36), region = 205 }

</bundles_post_ra>
